<compile_context>
chip_gen: v6e
topology: v6e:2x2x1
jax: 0.10.0
libtpu: 0.0.40
codegen_flags: <defaults>
</compile_context>

<pallas_src>
import functools

import jax
import jax.numpy as jnp
from jax.experimental import pallas as pl
from jax.experimental.pallas import tpu as pltpu

EPS = 1e-5        # torch.nn.InstanceNorm2d default
_PAD_TAIL = 8     # extra bf16 scratch rows so dead-column taps never read OOB


def _resblock_kernel(x_ref, w_ref, p_ref, o_ref, padf_ref, padb_ref, *, H, W, C):
    """Fused conv1 -> IN1 -> relu -> conv2 -> IN2 -> + residual (one image).

    x_ref    : (1, H*W, C)              f32  unpadded input, dense rows (width W)
    w_ref    : (18, C, C)               bf16 taps [conv1: 0..8, conv2: 9..17], (t, Cin, Cout)
    p_ref    : (8, C)                   f32  rows = b1, g1, be1, b2, g2, be2, 0, 0
    o_ref    : (1, H*W, C)              f32  dense output
    padf_ref : ((H+2)*(W+2), C)         f32  staging for padded activations (both convs)
    padb_ref : ((H+2)*(W+2)+TAIL, C)    bf16 conv operand buffer (static-offset access only)
    """
    Wp = W + 2
    n_out = H * Wp            # rows of the wide-row conv-output layout
    n_pad = (H + 2) * Wp      # rows of the flattened padded layout
    inv_hw = 1.0 / float(H * W)

    # Column index of each wide-layout row; cols >= W are dead positions.
    col = jax.lax.broadcasted_iota(jnp.int32, (n_out, 1), 0) % Wp
    valid = col < W

    def refresh_conv_buf():
        # One bulk f32 -> bf16 cast; all conv taps then read bf16 at STATIC offsets.
        padb_ref[pl.ds(0, n_pad), :] = padf_ref[...].astype(jnp.bfloat16)

    def conv3x3(w_base):
        # out[j] = sum_t pad[j + dy*Wp + dx] @ w[w_base + t],  t = dy*3 + dx.
        acc = None
        for t in range(9):
            dy, dx = divmod(t, 3)
            patch = padb_ref[pl.ds(dy * Wp + dx, n_out), :]        # bf16
            part = jnp.dot(patch, w_ref[w_base + t],
                           preferred_element_type=jnp.float32)
            acc = part if acc is None else acc + part
        return acc

    def inst_norm(y, bias, gamma, beta):
        # Masked statistics over exactly the H*W valid positions, centered variance.
        y = y + bias
        mean = jnp.sum(jnp.where(valid, y, 0.0), axis=0, keepdims=True) * inv_hw
        d = y - mean
        var = jnp.sum(jnp.where(valid, d * d, 0.0), axis=0, keepdims=True) * inv_hw
        return d * (jax.lax.rsqrt(var + EPS) * gamma) + beta

    def reflect_rows_tb():
        # top padded row <- image row 1 (padded row 2); bottom <- image row H-2.
        padf_ref[pl.ds(0, Wp), :] = padf_ref[pl.ds(2 * Wp, Wp), :]
        padf_ref[pl.ds((H + 1) * Wp, Wp), :] = padf_ref[pl.ds((H - 1) * Wp, Wp), :]

    # ---- stage 0: deterministic conv buffer, build conv1's reflection padding
    padb_ref[...] = jnp.zeros_like(padb_ref)

    @pl.loop(0, H)
    def _(r):
        xrow = x_ref[0, pl.ds(r * W, W), :]            # (W, C) f32
        base = (r + 1) * Wp
        padf_ref[pl.ds(base + 1, W), :] = xrow         # interior cols 1..W
        padf_ref[pl.ds(base, 1), :] = xrow[1:2, :]     # left reflect  <- x[r, 1]
        padf_ref[pl.ds(base + W + 1, 1), :] = xrow[W - 2:W - 1, :]   # right <- x[r, W-2]

    reflect_rows_tb()
    refresh_conv_buf()

    # ---- conv1 -> IN1 -> relu -----------------------------------------------
    y = conv3x3(0)
    y = inst_norm(y, p_ref[0:1, :], p_ref[1:2, :], p_ref[2:3, :])
    y = jnp.maximum(y, 0.0)

    # ---- rebuild reflection padding for conv2 --------------------------------
    # Bulk shifted store: padf[(r+1)*Wp + 1 + c] = y[r*Wp + c]; y's two dead
    # columns land exactly on border positions that are overwritten below.
    padf_ref[pl.ds(Wp + 1, n_out), :] = y

    @pl.loop(0, H)
    def _(r):
        base = (r + 1) * Wp
        padf_ref[pl.ds(base, 1), :] = padf_ref[pl.ds(base + 2, 1), :]          # left  <- y[r,1]
        padf_ref[pl.ds(base + W + 1, 1), :] = padf_ref[pl.ds(base + W - 1, 1), :]  # right <- y[r,W-2]

    reflect_rows_tb()
    refresh_conv_buf()

    # ---- conv2 -> IN2 ---------------------------------------------------------
    z = conv3x3(9)
    z = inst_norm(z, p_ref[3:4, :], p_ref[4:5, :], p_ref[5:6, :])

    # ---- residual add + dense output (drop the 2 dead columns per row) -------
    padf_ref[pl.ds(0, n_out), :] = z   # padf is dead as a conv buffer now; reuse as staging

    @pl.loop(0, H)
    def _(r):
        o_ref[0, pl.ds(r * W, W), :] = (
            padf_ref[pl.ds(r * Wp, W), :] + x_ref[0, pl.ds(r * W, W), :])


def _vmem_capacity_bytes():
    try:
        return int(pltpu.get_tpu_info().vmem_capacity_bytes)
    except Exception:
        return 64 << 20     # conservative fallback (v7x per-TC size)


def residual_block_nhwc(x_nhwc, params):
    """NHWC entry point (preferred for chaining ReCoNet blocks: keep
    activations NHWC across blocks, transpose only at the network boundary).
    x_nhwc: (N, H, W, C) f32; params: PyTorch-layout tensors."""
    x = x_nhwc.astype(jnp.float32)
    N, H, W, C = x.shape
    Hp, Wp = H + 2, W + 2
    n_out, n_pad = H * Wp, Hp * Wp

    x_flat = x.reshape(N, H * W, C)        # row-major reshape: free, no relayout

    # torch (Cout, Cin, 3, 3) -> (tap, Cin, Cout); both convs stacked, bf16.
    def prep_w(w):
        return jnp.transpose(w, (2, 3, 1, 0)).reshape(9, C, C)
    w_all = jnp.concatenate(
        [prep_w(params["conv1_w"]), prep_w(params["conv2_w"])],
        axis=0).astype(jnp.bfloat16)

    # Pack the six (C,) params into one (8, C) f32 input (single small DMA).
    p_all = jnp.zeros((8, C), jnp.float32).at[:6].set(
        jnp.stack([params["conv1_b"], params["in1_gamma"], params["in1_beta"],
                   params["conv2_b"], params["in2_gamma"], params["in2_beta"]],
                  axis=0).astype(jnp.float32))

    # VMEM budget: double-buffered in/out blocks + scratches + f32 temporaries.
    est = (2 * H * W * C * 4               # input blocks
           + 2 * H * W * C * 4             # output blocks
           + 2 * 18 * C * C * 2            # weights (double-buffered)
           + 2 * 8 * C * 4                 # params
           + n_pad * C * 4                 # f32 pad staging scratch
           + (n_pad + _PAD_TAIL) * C * 2   # bf16 conv operand scratch
           + 6 * n_out * C * 4             # f32 temporaries / spills (y, z, acc)
           + (2 << 20))
    cap = max(int(_vmem_capacity_bytes() * 0.9), 32 << 20)
    vmem_limit = int(min(max(est, 32 << 20), cap))

    kernel = functools.partial(_resblock_kernel, H=H, W=W, C=C)
    out = pl.pallas_call(
        kernel,
        out_shape=jax.ShapeDtypeStruct((N, H * W, C), jnp.float32),
        grid=(N,),
        in_specs=[
            pl.BlockSpec((1, H * W, C), lambda n: (n, 0, 0)),   # unpadded x
            pl.BlockSpec((18, C, C), lambda n: (0, 0, 0)),      # conv weights
            pl.BlockSpec((8, C), lambda n: (0, 0)),             # packed params
        ],
        out_specs=pl.BlockSpec((1, H * W, C), lambda n: (n, 0, 0)),
        scratch_shapes=[
            pltpu.VMEM((n_pad, C), jnp.float32),                # f32 pad staging
            pltpu.VMEM((n_pad + _PAD_TAIL, C), jnp.bfloat16),   # bf16 conv operands
        ],
        compiler_params=pltpu.CompilerParams(
            dimension_semantics=("parallel",),
            vmem_limit_bytes=vmem_limit),
    )(x_flat, w_all, p_all)

    return out.reshape(N, H, W, C)


def residual_block_pallas(x_nchw, params):
    """PyTorch-compatible entry point: NCHW in, NCHW out. (For stacked blocks,
    call residual_block_nhwc directly and transpose only at the boundary.)"""
    x = jnp.transpose(x_nchw, (0, 2, 3, 1))
    out = residual_block_nhwc(x, params)
    return jnp.transpose(out, (0, 3, 1, 2))


# ----------------------- pure-JAX references (for checking) -----------------
def residual_block_ref(x, p, conv_dtype=jnp.float32):
    """NCHW reference. conv_dtype=bfloat16 mirrors the kernel's MXU operand
    quantization (f32 accumulation; IN / residual math in f32)."""
    def conv(h, w, b):
        hp = jnp.pad(h, ((0, 0), (0, 0), (1, 1), (1, 1)), mode="reflect")
        y = jax.lax.conv_general_dilated(
            hp.astype(conv_dtype), w.astype(conv_dtype), (1, 1), "VALID",
            dimension_numbers=("NCHW", "OIHW", "NCHW"),
            preferred_element_type=jnp.float32)
        return y + b[None, :, None, None]

    def inorm(y, g, bt):
        mean = y.mean(axis=(2, 3), keepdims=True)
        var = ((y - mean) ** 2).mean(axis=(2, 3), keepdims=True)
        return ((y - mean) * jax.lax.rsqrt(var + EPS)
                * g[None, :, None, None] + bt[None, :, None, None])

    h = jnp.maximum(inorm(conv(x, p["conv1_w"], p["conv1_b"]),
                          p["in1_gamma"], p["in1_beta"]), 0.0)
    h = h.astype(conv_dtype).astype(jnp.float32)   # mirror kernel's bf16 conv2 input
    out = inorm(conv(h, p["conv2_w"], p["conv2_b"]),
                p["in2_gamma"], p["in2_beta"])
    return out + x


if __name__ == "__main__":
    N, C, H, W = 2, 4, 16, 16          # in_channels == out_channels (residual)
    key = jax.random.PRNGKey(0)
    ks = jax.random.split(key, 9)

    x = jax.random.normal(ks[0], (N, C, H, W), jnp.float32)
    params = {
        "conv1_w":  0.2 * jax.random.normal(ks[1], (C, C, 3, 3), jnp.float32),
        "conv1_b":  0.1 * jax.random.normal(ks[2], (C,), jnp.float32),
        "in1_gamma": 1.0 + 0.1 * jax.random.normal(ks[3], (C,), jnp.float32),
        "in1_beta":  0.1 * jax.random.normal(ks[4], (C,), jnp.float32),
        "conv2_w":  0.2 * jax.random.normal(ks[5], (C, C, 3, 3), jnp.float32),
        "conv2_b":  0.1 * jax.random.normal(ks[6], (C,), jnp.float32),
        "in2_gamma": 1.0 + 0.1 * jax.random.normal(ks[7], (C,), jnp.float32),
        "in2_beta":  0.1 * jax.random.normal(ks[8], (C,), jnp.float32),
    }

    out = residual_block_pallas(x, params)
    out = jax.block_until_ready(out)
    assert out.shape == (N, C, H, W)

    # Structural check against a reference with the same bf16 MXU quantization.
    ref_bf16 = residual_block_ref(x, params, conv_dtype=jnp.bfloat16)
    err_bf16 = float(jnp.max(jnp.abs(out - ref_bf16)))
    assert jnp.allclose(out, ref_bf16, atol=1e-2, rtol=1e-2), err_bf16

    # Sanity check against the full-f32 reference (error is only bf16 operands).
    ref_f32 = residual_block_ref(x, params, conv_dtype=jnp.float32)
    err_f32 = float(jnp.max(jnp.abs(out - ref_f32)))
    assert jnp.allclose(out, ref_f32, atol=0.1, rtol=0.1), err_f32

    print("KERNEL_OK")
</pallas_src>

<mosaic_0001>
module attributes {stable_mosaic.version = 11 : i64} {
  func.func @_resblock_kernel(%arg0: i32, %arg1: memref<1x256x4xf32, #tpu.memory_space<vmem>>, %arg2: memref<18x4x4xbf16, #tpu.memory_space<vmem>>, %arg3: memref<8x4xf32, #tpu.memory_space<vmem>>, %arg4: memref<1x256x4xf32, #tpu.memory_space<vmem>>, %arg5: memref<324x4xf32, #tpu.memory_space<vmem>>, %arg6: memref<332x4xbf16, #tpu.memory_space<vmem>>) attributes {dimension_semantics = [#tpu.dimension_semantics<parallel>], iteration_bounds = array<i64: 2>, scalar_prefetch = 0 : i64, scratch_operands = 2 : i64, tpu.core_type = #tpu.core_type<tc>, window_params = [{transform_indices = @transform_0, window_bounds = array<i64: 1, 256, 4>}, {pipeline_mode = #tpu.pipeline_mode<synchronous>, transform_indices = @transform_1, window_bounds = array<i64: 18, 4, 4>}, {pipeline_mode = #tpu.pipeline_mode<synchronous>, transform_indices = @transform_2, window_bounds = array<i64: 8, 4>}, {transform_indices = @transform_3, window_bounds = array<i64: 1, 256, 4>}]} {
    %0 = tpu.iota {dimensions = array<i32: 0>} : vector<288x1xi32>
    %c18_i32 = arith.constant 18 : i32
    %c0_i32 = arith.constant 0 : i32
    %1 = arith.cmpi eq, %c18_i32, %c0_i32 : i32
    %c1_i32 = arith.constant 1 : i32
    %2 = arith.select %1, %c1_i32, %c18_i32 : i32
    %3 = vector.broadcast %2 : i32 to vector<288x1xi32>
    %4 = arith.remsi %0, %3 : vector<288x1xi32>
    %c0_i32_0 = arith.constant 0 : i32
    %5 = vector.broadcast %c0_i32_0 : i32 to vector<288x1xi32>
    %6 = arith.cmpi ne, %4, %5 : vector<288x1xi32>
    %c0_i32_1 = arith.constant 0 : i32
    %7 = vector.broadcast %c0_i32_1 : i32 to vector<288x1xi32>
    %8 = arith.cmpi slt, %4, %7 : vector<288x1xi32>
    %c0_i32_2 = arith.constant 0 : i32
    %9 = arith.cmpi slt, %2, %c0_i32_2 : i32
    %10 = vector.broadcast %9 : i1 to vector<288x1xi1>
    %11 = vector.broadcast %10 : vector<288x1xi1> to vector<288x1xi1>
    %12 = arith.xori %8, %11 : vector<288x1xi1>
    %13 = arith.andi %12, %6 : vector<288x1xi1>
    %14 = vector.broadcast %2 : i32 to vector<288x1xi32>
    %15 = arith.addi %4, %14 : vector<288x1xi32>
    %16 = arith.select %13, %15, %4 : vector<288x1xi1>, vector<288x1xi32>
    %c16_i32 = arith.constant 16 : i32
    %17 = vector.broadcast %c16_i32 : i32 to vector<288x1xi32>
    %18 = arith.cmpi slt, %16, %17 : vector<288x1xi32>
    %cst = arith.constant 0.000000e+00 : bf16
    %19 = vector.broadcast %cst : bf16 to vector<332x4xbf16>
    %c0 = arith.constant 0 : index
    %c0_3 = arith.constant 0 : index
    %20 = vector.load %arg6[%c0, %c0_3] : memref<332x4xbf16, #tpu.memory_space<vmem>>, vector<332x4xbf16>
    tpu.vector_store %arg6[%c0, %c0_3], %19 {strides = array<i32>} : memref<332x4xbf16, #tpu.memory_space<vmem>>, vector<332x4xbf16>,
    %c0_i32_4 = arith.constant 0 : i32
    %c16_i32_5 = arith.constant 16 : i32
    %21 = arith.addi %c0_i32_4, %c16_i32_5 : i32
    %c1_i32_6 = arith.constant 1 : i32
    scf.for %arg7 = %c0_i32_4 to %21 step %c1_i32_6  : i32 {
      %c1_i32_154 = arith.constant 1 : i32
      %194 = arith.muli %arg7, %c1_i32_154 : i32
      %c0_i32_155 = arith.constant 0 : i32
      %195 = arith.addi %c0_i32_155, %194 : i32
      %c16_i32_156 = arith.constant 16 : i32
      %196 = arith.muli %195, %c16_i32_156 : i32
      %c0_157 = arith.constant 0 : index
      %197 = arith.index_cast %196 : i32 to index
      %c0_158 = arith.constant 0 : index
      %198 = vector.load %arg1[%c0_157, %197, %c0_158] : memref<1x256x4xf32, #tpu.memory_space<vmem>>, vector<1x16x4xf32>
      %199 = vector.shape_cast %198 : vector<1x16x4xf32> to vector<16x4xf32>
      %c1_i32_159 = arith.constant 1 : i32
      %200 = arith.addi %195, %c1_i32_159 : i32
      %c18_i32_160 = arith.constant 18 : i32
      %201 = arith.muli %200, %c18_i32_160 : i32
      %c1_i32_161 = arith.constant 1 : i32
      %202 = arith.addi %201, %c1_i32_161 : i32
      %203 = arith.index_cast %202 : i32 to index
      %c0_162 = arith.constant 0 : index
      %204 = vector.load %arg5[%203, %c0_162] : memref<324x4xf32, #tpu.memory_space<vmem>>, vector<16x4xf32>
      tpu.vector_store %arg5[%203, %c0_162], %199 {strides = array<i32>} : memref<324x4xf32, #tpu.memory_space<vmem>>, vector<16x4xf32>,
      %205 = vector.extract_strided_slice %199 {offsets = [1, 0], sizes = [1, 4], strides = [1, 1]} : vector<16x4xf32> to vector<1x4xf32>
      %206 = arith.index_cast %201 : i32 to index
      %c0_163 = arith.constant 0 : index
      %207 = vector.load %arg5[%206, %c0_163] : memref<324x4xf32, #tpu.memory_space<vmem>>, vector<1x4xf32>
      tpu.vector_store %arg5[%206, %c0_163], %205 {strides = array<i32>} : memref<324x4xf32, #tpu.memory_space<vmem>>, vector<1x4xf32>,
      %208 = vector.extract_strided_slice %199 {offsets = [14, 0], sizes = [1, 4], strides = [1, 1]} : vector<16x4xf32> to vector<1x4xf32>
      %c16_i32_164 = arith.constant 16 : i32
      %209 = arith.addi %201, %c16_i32_164 : i32
      %c1_i32_165 = arith.constant 1 : i32
      %210 = arith.addi %209, %c1_i32_165 : i32
      %211 = arith.index_cast %210 : i32 to index
      %c0_166 = arith.constant 0 : index
      %212 = vector.load %arg5[%211, %c0_166] : memref<324x4xf32, #tpu.memory_space<vmem>>, vector<1x4xf32>
      tpu.vector_store %arg5[%211, %c0_166], %208 {strides = array<i32>} : memref<324x4xf32, #tpu.memory_space<vmem>>, vector<1x4xf32>,
    }
    %c16_i32_7 = arith.constant 16 : i32
    %c36 = arith.constant 36 : index
    %c0_8 = arith.constant 0 : index
    %22 = vector.load %arg5[%c36, %c0_8] : memref<324x4xf32, #tpu.memory_space<vmem>>, vector<18x4xf32>
    %c0_9 = arith.constant 0 : index
    %c0_10 = arith.constant 0 : index
    %23 = vector.load %arg5[%c0_9, %c0_10] : memref<324x4xf32, #tpu.memory_space<vmem>>, vector<18x4xf32>
    tpu.vector_store %arg5[%c0_9, %c0_10], %22 {strides = array<i32>} : memref<324x4xf32, #tpu.memory_space<vmem>>, vector<18x4xf32>,
    %c270 = arith.constant 270 : index
    %c0_11 = arith.constant 0 : index
    %24 = vector.load %arg5[%c270, %c0_11] : memref<324x4xf32, #tpu.memory_space<vmem>>, vector<18x4xf32>
    %c306 = arith.constant 306 : index
    %c0_12 = arith.constant 0 : index
    %25 = vector.load %arg5[%c306, %c0_12] : memref<324x4xf32, #tpu.memory_space<vmem>>, vector<18x4xf32>
    tpu.vector_store %arg5[%c306, %c0_12], %24 {strides = array<i32>} : memref<324x4xf32, #tpu.memory_space<vmem>>, vector<18x4xf32>,
    %c0_13 = arith.constant 0 : index
    %c0_14 = arith.constant 0 : index
    %26 = vector.load %arg5[%c0_13, %c0_14] : memref<324x4xf32, #tpu.memory_space<vmem>>, vector<324x4xf32>
    %27 = arith.truncf %26 : vector<324x4xf32> to vector<324x4xbf16>
    %c0_15 = arith.constant 0 : index
    %c0_16 = arith.constant 0 : index
    %28 = vector.load %arg6[%c0_15, %c0_16] : memref<332x4xbf16, #tpu.memory_space<vmem>>, vector<324x4xbf16>
    tpu.vector_store %arg6[%c0_15, %c0_16], %27 {strides = array<i32>} : memref<332x4xbf16, #tpu.memory_space<vmem>>, vector<324x4xbf16>,
    %c0_17 = arith.constant 0 : index
    %c0_18 = arith.constant 0 : index
    %29 = vector.load %arg6[%c0_17, %c0_18] : memref<332x4xbf16, #tpu.memory_space<vmem>>, vector<288x4xbf16>
    %c0_19 = arith.constant 0 : index
    %c0_20 = arith.constant 0 : index
    %c0_21 = arith.constant 0 : index
    %30 = vector.load %arg2[%c0_19, %c0_20, %c0_21] : memref<18x4x4xbf16, #tpu.memory_space<vmem>>, vector<1x4x4xbf16>
    %31 = vector.shape_cast %30 : vector<1x4x4xbf16> to vector<4x4xbf16>
    %cst_22 = arith.constant dense<0.000000e+00> : vector<288x4xf32>
    %32 = tpu.matmul %29, %31, %cst_22 {dimension_numbers = #tpu.dot_dimension_numbers<[1], [0], [0], [1], [0, 0, 1, 1], [], []>} : vector<288x4xbf16>, vector<4x4xbf16>, vector<288x4xf32> -> vector<288x4xf32>
    %c1 = arith.constant 1 : index
    %c0_23 = arith.constant 0 : index
    %33 = vector.load %arg6[%c1, %c0_23] : memref<332x4xbf16, #tpu.memory_space<vmem>>, vector<288x4xbf16>
    %c1_24 = arith.constant 1 : index
    %c0_25 = arith.constant 0 : index
    %c0_26 = arith.constant 0 : index
    %34 = vector.load %arg2[%c1_24, %c0_25, %c0_26] : memref<18x4x4xbf16, #tpu.memory_space<vmem>>, vector<1x4x4xbf16>
    %35 = vector.shape_cast %34 : vector<1x4x4xbf16> to vector<4x4xbf16>
    %cst_27 = arith.constant dense<0.000000e+00> : vector<288x4xf32>
    %36 = tpu.matmul %33, %35, %cst_27 {dimension_numbers = #tpu.dot_dimension_numbers<[1], [0], [0], [1], [0, 0, 1, 1], [], []>} : vector<288x4xbf16>, vector<4x4xbf16>, vector<288x4xf32> -> vector<288x4xf32>
    %37 = arith.addf %32, %36 : vector<288x4xf32>
    %c2 = arith.constant 2 : index
    %c0_28 = arith.constant 0 : index
    %38 = vector.load %arg6[%c2, %c0_28] : memref<332x4xbf16, #tpu.memory_space<vmem>>, vector<288x4xbf16>
    %c2_29 = arith.constant 2 : index
    %c0_30 = arith.constant 0 : index
    %c0_31 = arith.constant 0 : index
    %39 = vector.load %arg2[%c2_29, %c0_30, %c0_31] : memref<18x4x4xbf16, #tpu.memory_space<vmem>>, vector<1x4x4xbf16>
    %40 = vector.shape_cast %39 : vector<1x4x4xbf16> to vector<4x4xbf16>
    %cst_32 = arith.constant dense<0.000000e+00> : vector<288x4xf32>
    %41 = tpu.matmul %38, %40, %cst_32 {dimension_numbers = #tpu.dot_dimension_numbers<[1], [0], [0], [1], [0, 0, 1, 1], [], []>} : vector<288x4xbf16>, vector<4x4xbf16>, vector<288x4xf32> -> vector<288x4xf32>
    %42 = arith.addf %37, %41 : vector<288x4xf32>
    %c18 = arith.constant 18 : index
    %c0_33 = arith.constant 0 : index
    %43 = vector.load %arg6[%c18, %c0_33] : memref<332x4xbf16, #tpu.memory_space<vmem>>, vector<288x4xbf16>
    %c3 = arith.constant 3 : index
    %c0_34 = arith.constant 0 : index
    %c0_35 = arith.constant 0 : index
    %44 = vector.load %arg2[%c3, %c0_34, %c0_35] : memref<18x4x4xbf16, #tpu.memory_space<vmem>>, vector<1x4x4xbf16>
    %45 = vector.shape_cast %44 : vector<1x4x4xbf16> to vector<4x4xbf16>
    %cst_36 = arith.constant dense<0.000000e+00> : vector<288x4xf32>
    %46 = tpu.matmul %43, %45, %cst_36 {dimension_numbers = #tpu.dot_dimension_numbers<[1], [0], [0], [1], [0, 0, 1, 1], [], []>} : vector<288x4xbf16>, vector<4x4xbf16>, vector<288x4xf32> -> vector<288x4xf32>
    %47 = arith.addf %42, %46 : vector<288x4xf32>
    %c19 = arith.constant 19 : index
    %c0_37 = arith.constant 0 : index
    %48 = vector.load %arg6[%c19, %c0_37] : memref<332x4xbf16, #tpu.memory_space<vmem>>, vector<288x4xbf16>
    %c4 = arith.constant 4 : index
    %c0_38 = arith.constant 0 : index
    %c0_39 = arith.constant 0 : index
    %49 = vector.load %arg2[%c4, %c0_38, %c0_39] : memref<18x4x4xbf16, #tpu.memory_space<vmem>>, vector<1x4x4xbf16>
    %50 = vector.shape_cast %49 : vector<1x4x4xbf16> to vector<4x4xbf16>
    %cst_40 = arith.constant dense<0.000000e+00> : vector<288x4xf32>
    %51 = tpu.matmul %48, %50, %cst_40 {dimension_numbers = #tpu.dot_dimension_numbers<[1], [0], [0], [1], [0, 0, 1, 1], [], []>} : vector<288x4xbf16>, vector<4x4xbf16>, vector<288x4xf32> -> vector<288x4xf32>
    %52 = arith.addf %47, %51 : vector<288x4xf32>
    %c20 = arith.constant 20 : index
    %c0_41 = arith.constant 0 : index
    %53 = vector.load %arg6[%c20, %c0_41] : memref<332x4xbf16, #tpu.memory_space<vmem>>, vector<288x4xbf16>
    %c5 = arith.constant 5 : index
    %c0_42 = arith.constant 0 : index
    %c0_43 = arith.constant 0 : index
    %54 = vector.load %arg2[%c5, %c0_42, %c0_43] : memref<18x4x4xbf16, #tpu.memory_space<vmem>>, vector<1x4x4xbf16>
    %55 = vector.shape_cast %54 : vector<1x4x4xbf16> to vector<4x4xbf16>
    %cst_44 = arith.constant dense<0.000000e+00> : vector<288x4xf32>
    %56 = tpu.matmul %53, %55, %cst_44 {dimension_numbers = #tpu.dot_dimension_numbers<[1], [0], [0], [1], [0, 0, 1, 1], [], []>} : vector<288x4xbf16>, vector<4x4xbf16>, vector<288x4xf32> -> vector<288x4xf32>
    %57 = arith.addf %52, %56 : vector<288x4xf32>
    %c36_45 = arith.constant 36 : index
    %c0_46 = arith.constant 0 : index
    %58 = vector.load %arg6[%c36_45, %c0_46] : memref<332x4xbf16, #tpu.memory_space<vmem>>, vector<288x4xbf16>
    %c6 = arith.constant 6 : index
    %c0_47 = arith.constant 0 : index
    %c0_48 = arith.constant 0 : index
    %59 = vector.load %arg2[%c6, %c0_47, %c0_48] : memref<18x4x4xbf16, #tpu.memory_space<vmem>>, vector<1x4x4xbf16>
    %60 = vector.shape_cast %59 : vector<1x4x4xbf16> to vector<4x4xbf16>
    %cst_49 = arith.constant dense<0.000000e+00> : vector<288x4xf32>
    %61 = tpu.matmul %58, %60, %cst_49 {dimension_numbers = #tpu.dot_dimension_numbers<[1], [0], [0], [1], [0, 0, 1, 1], [], []>} : vector<288x4xbf16>, vector<4x4xbf16>, vector<288x4xf32> -> vector<288x4xf32>
    %62 = arith.addf %57, %61 : vector<288x4xf32>
    %c37 = arith.constant 37 : index
    %c0_50 = arith.constant 0 : index
    %63 = vector.load %arg6[%c37, %c0_50] : memref<332x4xbf16, #tpu.memory_space<vmem>>, vector<288x4xbf16>
    %c7 = arith.constant 7 : index
    %c0_51 = arith.constant 0 : index
    %c0_52 = arith.constant 0 : index
    %64 = vector.load %arg2[%c7, %c0_51, %c0_52] : memref<18x4x4xbf16, #tpu.memory_space<vmem>>, vector<1x4x4xbf16>
    %65 = vector.shape_cast %64 : vector<1x4x4xbf16> to vector<4x4xbf16>
    %cst_53 = arith.constant dense<0.000000e+00> : vector<288x4xf32>
    %66 = tpu.matmul %63, %65, %cst_53 {dimension_numbers = #tpu.dot_dimension_numbers<[1], [0], [0], [1], [0, 0, 1, 1], [], []>} : vector<288x4xbf16>, vector<4x4xbf16>, vector<288x4xf32> -> vector<288x4xf32>
    %67 = arith.addf %62, %66 : vector<288x4xf32>
    %c38 = arith.constant 38 : index
    %c0_54 = arith.constant 0 : index
    %68 = vector.load %arg6[%c38, %c0_54] : memref<332x4xbf16, #tpu.memory_space<vmem>>, vector<288x4xbf16>
    %c8 = arith.constant 8 : index
    %c0_55 = arith.constant 0 : index
    %c0_56 = arith.constant 0 : index
    %69 = vector.load %arg2[%c8, %c0_55, %c0_56] : memref<18x4x4xbf16, #tpu.memory_space<vmem>>, vector<1x4x4xbf16>
    %70 = vector.shape_cast %69 : vector<1x4x4xbf16> to vector<4x4xbf16>
    %cst_57 = arith.constant dense<0.000000e+00> : vector<288x4xf32>
    %71 = tpu.matmul %68, %70, %cst_57 {dimension_numbers = #tpu.dot_dimension_numbers<[1], [0], [0], [1], [0, 0, 1, 1], [], []>} : vector<288x4xbf16>, vector<4x4xbf16>, vector<288x4xf32> -> vector<288x4xf32>
    %72 = arith.addf %67, %71 : vector<288x4xf32>
    %c0_58 = arith.constant 0 : index
    %c0_59 = arith.constant 0 : index
    %73 = vector.load %arg3[%c0_58, %c0_59] : memref<8x4xf32, #tpu.memory_space<vmem>>, vector<1x4xf32>
    %c1_60 = arith.constant 1 : index
    %c0_61 = arith.constant 0 : index
    %74 = vector.load %arg3[%c1_60, %c0_61] : memref<8x4xf32, #tpu.memory_space<vmem>>, vector<1x4xf32>
    %c2_62 = arith.constant 2 : index
    %c0_63 = arith.constant 0 : index
    %75 = vector.load %arg3[%c2_62, %c0_63] : memref<8x4xf32, #tpu.memory_space<vmem>>, vector<1x4xf32>
    %76 = vector.broadcast %73 : vector<1x4xf32> to vector<288x4xf32>
    %77 = arith.addf %72, %76 : vector<288x4xf32>
    %cst_64 = arith.constant 0.000000e+00 : f32
    %78 = vector.shape_cast %18 : vector<288x1xi1> to vector<288x1xi1>
    %79 = vector.broadcast %78 : vector<288x1xi1> to vector<288x4xi1>
    %80 = vector.broadcast %cst_64 : f32 to vector<288x4xf32>
    %81 = arith.select %79, %77, %80 : vector<288x4xi1>, vector<288x4xf32>
    %cst_65 = arith.constant dense<0.000000e+00> : vector<4xf32>
    %82 = vector.multi_reduction <add>, %81, %cst_65 [0] : vector<288x4xf32> to vector<4xf32>
    %83 = vector.shape_cast %82 : vector<4xf32> to vector<1x4xf32>
    %cst_66 = arith.constant 3.906250e-03 : f32
    %84 = vector.broadcast %cst_66 : f32 to vector<1x4xf32>
    %85 = arith.mulf %83, %84 : vector<1x4xf32>
    %86 = vector.broadcast %85 : vector<1x4xf32> to vector<288x4xf32>
    %87 = arith.subf %77, %86 : vector<288x4xf32>
    %88 = arith.mulf %87, %87 : vector<288x4xf32>
    %cst_67 = arith.constant 0.000000e+00 : f32
    %89 = vector.shape_cast %18 : vector<288x1xi1> to vector<288x1xi1>
    %90 = vector.broadcast %89 : vector<288x1xi1> to vector<288x4xi1>
    %91 = vector.broadcast %cst_67 : f32 to vector<288x4xf32>
    %92 = arith.select %90, %88, %91 : vector<288x4xi1>, vector<288x4xf32>
    %cst_68 = arith.constant dense<0.000000e+00> : vector<4xf32>
    %93 = vector.multi_reduction <add>, %92, %cst_68 [0] : vector<288x4xf32> to vector<4xf32>
    %94 = vector.shape_cast %93 : vector<4xf32> to vector<1x4xf32>
    %cst_69 = arith.constant 3.906250e-03 : f32
    %95 = vector.broadcast %cst_69 : f32 to vector<1x4xf32>
    %96 = arith.mulf %94, %95 : vector<1x4xf32>
    %cst_70 = arith.constant 9.99999974E-6 : f32
    %97 = vector.broadcast %cst_70 : f32 to vector<1x4xf32>
    %98 = arith.addf %96, %97 : vector<1x4xf32>
    %99 = math.rsqrt %98 : vector<1x4xf32>
    %100 = arith.mulf %99, %74 : vector<1x4xf32>
    %101 = vector.broadcast %100 : vector<1x4xf32> to vector<288x4xf32>
    %102 = arith.mulf %87, %101 : vector<288x4xf32>
    %103 = vector.broadcast %75 : vector<1x4xf32> to vector<288x4xf32>
    %104 = arith.addf %102, %103 : vector<288x4xf32>
    %cst_71 = arith.constant 0.000000e+00 : f32
    %105 = vector.broadcast %cst_71 : f32 to vector<288x4xf32>
    %106 = arith.maximumf %104, %105 : vector<288x4xf32>
    %c19_72 = arith.constant 19 : index
    %c0_73 = arith.constant 0 : index
    %107 = vector.load %arg5[%c19_72, %c0_73] : memref<324x4xf32, #tpu.memory_space<vmem>>, vector<288x4xf32>
    tpu.vector_store %arg5[%c19_72, %c0_73], %106 {strides = array<i32>} : memref<324x4xf32, #tpu.memory_space<vmem>>, vector<288x4xf32>,
    %c0_i32_74 = arith.constant 0 : i32
    %c16_i32_75 = arith.constant 16 : i32
    %108 = arith.addi %c0_i32_74, %c16_i32_75 : i32
    %c1_i32_76 = arith.constant 1 : i32
    scf.for %arg7 = %c0_i32_74 to %108 step %c1_i32_76  : i32 {
      %c1_i32_154 = arith.constant 1 : i32
      %194 = arith.muli %arg7, %c1_i32_154 : i32
      %c0_i32_155 = arith.constant 0 : i32
      %195 = arith.addi %c0_i32_155, %194 : i32
      %c1_i32_156 = arith.constant 1 : i32
      %196 = arith.addi %195, %c1_i32_156 : i32
      %c18_i32_157 = arith.constant 18 : i32
      %197 = arith.muli %196, %c18_i32_157 : i32
      %c2_i32 = arith.constant 2 : i32
      %198 = arith.addi %197, %c2_i32 : i32
      %199 = arith.index_cast %198 : i32 to index
      %c0_158 = arith.constant 0 : index
      %200 = vector.load %arg5[%199, %c0_158] : memref<324x4xf32, #tpu.memory_space<vmem>>, vector<1x4xf32>
      %201 = arith.index_cast %197 : i32 to index
      %c0_159 = arith.constant 0 : index
      %202 = vector.load %arg5[%201, %c0_159] : memref<324x4xf32, #tpu.memory_space<vmem>>, vector<1x4xf32>
      tpu.vector_store %arg5[%201, %c0_159], %200 {strides = array<i32>} : memref<324x4xf32, #tpu.memory_space<vmem>>, vector<1x4xf32>,
      %c16_i32_160 = arith.constant 16 : i32
      %203 = arith.addi %197, %c16_i32_160 : i32
      %c1_i32_161 = arith.constant 1 : i32
      %204 = arith.subi %203, %c1_i32_161 : i32
      %205 = arith.index_cast %204 : i32 to index
      %c0_162 = arith.constant 0 : index
      %206 = vector.load %arg5[%205, %c0_162] : memref<324x4xf32, #tpu.memory_space<vmem>>, vector<1x4xf32>
      %c16_i32_163 = arith.constant 16 : i32
      %207 = arith.addi %197, %c16_i32_163 : i32
      %c1_i32_164 = arith.constant 1 : i32
      %208 = arith.addi %207, %c1_i32_164 : i32
      %209 = arith.index_cast %208 : i32 to index
      %c0_165 = arith.constant 0 : index
      %210 = vector.load %arg5[%209, %c0_165] : memref<324x4xf32, #tpu.memory_space<vmem>>, vector<1x4xf32>
      tpu.vector_store %arg5[%209, %c0_165], %206 {strides = array<i32>} : memref<324x4xf32, #tpu.memory_space<vmem>>, vector<1x4xf32>,
    }
    %c16_i32_77 = arith.constant 16 : i32
    %c36_78 = arith.constant 36 : index
    %c0_79 = arith.constant 0 : index
    %109 = vector.load %arg5[%c36_78, %c0_79] : memref<324x4xf32, #tpu.memory_space<vmem>>, vector<18x4xf32>
    %c0_80 = arith.constant 0 : index
    %c0_81 = arith.constant 0 : index
    %110 = vector.load %arg5[%c0_80, %c0_81] : memref<324x4xf32, #tpu.memory_space<vmem>>, vector<18x4xf32>
    tpu.vector_store %arg5[%c0_80, %c0_81], %109 {strides = array<i32>} : memref<324x4xf32, #tpu.memory_space<vmem>>, vector<18x4xf32>,
    %c270_82 = arith.constant 270 : index
    %c0_83 = arith.constant 0 : index
    %111 = vector.load %arg5[%c270_82, %c0_83] : memref<324x4xf32, #tpu.memory_space<vmem>>, vector<18x4xf32>
    %c306_84 = arith.constant 306 : index
    %c0_85 = arith.constant 0 : index
    %112 = vector.load %arg5[%c306_84, %c0_85] : memref<324x4xf32, #tpu.memory_space<vmem>>, vector<18x4xf32>
    tpu.vector_store %arg5[%c306_84, %c0_85], %111 {strides = array<i32>} : memref<324x4xf32, #tpu.memory_space<vmem>>, vector<18x4xf32>,
    %c0_86 = arith.constant 0 : index
    %c0_87 = arith.constant 0 : index
    %113 = vector.load %arg5[%c0_86, %c0_87] : memref<324x4xf32, #tpu.memory_space<vmem>>, vector<324x4xf32>
    %114 = arith.truncf %113 : vector<324x4xf32> to vector<324x4xbf16>
    %c0_88 = arith.constant 0 : index
    %c0_89 = arith.constant 0 : index
    %115 = vector.load %arg6[%c0_88, %c0_89] : memref<332x4xbf16, #tpu.memory_space<vmem>>, vector<324x4xbf16>
    tpu.vector_store %arg6[%c0_88, %c0_89], %114 {strides = array<i32>} : memref<332x4xbf16, #tpu.memory_space<vmem>>, vector<324x4xbf16>,
    %c0_90 = arith.constant 0 : index
    %c0_91 = arith.constant 0 : index
    %116 = vector.load %arg6[%c0_90, %c0_91] : memref<332x4xbf16, #tpu.memory_space<vmem>>, vector<288x4xbf16>
    %c9 = arith.constant 9 : index
    %c0_92 = arith.constant 0 : index
    %c0_93 = arith.constant 0 : index
    %117 = vector.load %arg2[%c9, %c0_92, %c0_93] : memref<18x4x4xbf16, #tpu.memory_space<vmem>>, vector<1x4x4xbf16>
    %118 = vector.shape_cast %117 : vector<1x4x4xbf16> to vector<4x4xbf16>
    %cst_94 = arith.constant dense<0.000000e+00> : vector<288x4xf32>
    %119 = tpu.matmul %116, %118, %cst_94 {dimension_numbers = #tpu.dot_dimension_numbers<[1], [0], [0], [1], [0, 0, 1, 1], [], []>} : vector<288x4xbf16>, vector<4x4xbf16>, vector<288x4xf32> -> vector<288x4xf32>
    %c1_95 = arith.constant 1 : index
    %c0_96 = arith.constant 0 : index
    %120 = vector.load %arg6[%c1_95, %c0_96] : memref<332x4xbf16, #tpu.memory_space<vmem>>, vector<288x4xbf16>
    %c10 = arith.constant 10 : index
    %c0_97 = arith.constant 0 : index
    %c0_98 = arith.constant 0 : index
    %121 = vector.load %arg2[%c10, %c0_97, %c0_98] : memref<18x4x4xbf16, #tpu.memory_space<vmem>>, vector<1x4x4xbf16>
    %122 = vector.shape_cast %121 : vector<1x4x4xbf16> to vector<4x4xbf16>
    %cst_99 = arith.constant dense<0.000000e+00> : vector<288x4xf32>
    %123 = tpu.matmul %120, %122, %cst_99 {dimension_numbers = #tpu.dot_dimension_numbers<[1], [0], [0], [1], [0, 0, 1, 1], [], []>} : vector<288x4xbf16>, vector<4x4xbf16>, vector<288x4xf32> -> vector<288x4xf32>
    %124 = arith.addf %119, %123 : vector<288x4xf32>
    %c2_100 = arith.constant 2 : index
    %c0_101 = arith.constant 0 : index
    %125 = vector.load %arg6[%c2_100, %c0_101] : memref<332x4xbf16, #tpu.memory_space<vmem>>, vector<288x4xbf16>
    %c11 = arith.constant 11 : index
    %c0_102 = arith.constant 0 : index
    %c0_103 = arith.constant 0 : index
    %126 = vector.load %arg2[%c11, %c0_102, %c0_103] : memref<18x4x4xbf16, #tpu.memory_space<vmem>>, vector<1x4x4xbf16>
    %127 = vector.shape_cast %126 : vector<1x4x4xbf16> to vector<4x4xbf16>
    %cst_104 = arith.constant dense<0.000000e+00> : vector<288x4xf32>
    %128 = tpu.matmul %125, %127, %cst_104 {dimension_numbers = #tpu.dot_dimension_numbers<[1], [0], [0], [1], [0, 0, 1, 1], [], []>} : vector<288x4xbf16>, vector<4x4xbf16>, vector<288x4xf32> -> vector<288x4xf32>
    %129 = arith.addf %124, %128 : vector<288x4xf32>
    %c18_105 = arith.constant 18 : index
    %c0_106 = arith.constant 0 : index
    %130 = vector.load %arg6[%c18_105, %c0_106] : memref<332x4xbf16, #tpu.memory_space<vmem>>, vector<288x4xbf16>
    %c12 = arith.constant 12 : index
    %c0_107 = arith.constant 0 : index
    %c0_108 = arith.constant 0 : index
    %131 = vector.load %arg2[%c12, %c0_107, %c0_108] : memref<18x4x4xbf16, #tpu.memory_space<vmem>>, vector<1x4x4xbf16>
    %132 = vector.shape_cast %131 : vector<1x4x4xbf16> to vector<4x4xbf16>
    %cst_109 = arith.constant dense<0.000000e+00> : vector<288x4xf32>
    %133 = tpu.matmul %130, %132, %cst_109 {dimension_numbers = #tpu.dot_dimension_numbers<[1], [0], [0], [1], [0, 0, 1, 1], [], []>} : vector<288x4xbf16>, vector<4x4xbf16>, vector<288x4xf32> -> vector<288x4xf32>
    %134 = arith.addf %129, %133 : vector<288x4xf32>
    %c19_110 = arith.constant 19 : index
    %c0_111 = arith.constant 0 : index
    %135 = vector.load %arg6[%c19_110, %c0_111] : memref<332x4xbf16, #tpu.memory_space<vmem>>, vector<288x4xbf16>
    %c13 = arith.constant 13 : index
    %c0_112 = arith.constant 0 : index
    %c0_113 = arith.constant 0 : index
    %136 = vector.load %arg2[%c13, %c0_112, %c0_113] : memref<18x4x4xbf16, #tpu.memory_space<vmem>>, vector<1x4x4xbf16>
    %137 = vector.shape_cast %136 : vector<1x4x4xbf16> to vector<4x4xbf16>
    %cst_114 = arith.constant dense<0.000000e+00> : vector<288x4xf32>
    %138 = tpu.matmul %135, %137, %cst_114 {dimension_numbers = #tpu.dot_dimension_numbers<[1], [0], [0], [1], [0, 0, 1, 1], [], []>} : vector<288x4xbf16>, vector<4x4xbf16>, vector<288x4xf32> -> vector<288x4xf32>
    %139 = arith.addf %134, %138 : vector<288x4xf32>
    %c20_115 = arith.constant 20 : index
    %c0_116 = arith.constant 0 : index
    %140 = vector.load %arg6[%c20_115, %c0_116] : memref<332x4xbf16, #tpu.memory_space<vmem>>, vector<288x4xbf16>
    %c14 = arith.constant 14 : index
    %c0_117 = arith.constant 0 : index
    %c0_118 = arith.constant 0 : index
    %141 = vector.load %arg2[%c14, %c0_117, %c0_118] : memref<18x4x4xbf16, #tpu.memory_space<vmem>>, vector<1x4x4xbf16>
    %142 = vector.shape_cast %141 : vector<1x4x4xbf16> to vector<4x4xbf16>
    %cst_119 = arith.constant dense<0.000000e+00> : vector<288x4xf32>
    %143 = tpu.matmul %140, %142, %cst_119 {dimension_numbers = #tpu.dot_dimension_numbers<[1], [0], [0], [1], [0, 0, 1, 1], [], []>} : vector<288x4xbf16>, vector<4x4xbf16>, vector<288x4xf32> -> vector<288x4xf32>
    %144 = arith.addf %139, %143 : vector<288x4xf32>
    %c36_120 = arith.constant 36 : index
    %c0_121 = arith.constant 0 : index
    %145 = vector.load %arg6[%c36_120, %c0_121] : memref<332x4xbf16, #tpu.memory_space<vmem>>, vector<288x4xbf16>
    %c15 = arith.constant 15 : index
    %c0_122 = arith.constant 0 : index
    %c0_123 = arith.constant 0 : index
    %146 = vector.load %arg2[%c15, %c0_122, %c0_123] : memref<18x4x4xbf16, #tpu.memory_space<vmem>>, vector<1x4x4xbf16>
    %147 = vector.shape_cast %146 : vector<1x4x4xbf16> to vector<4x4xbf16>
    %cst_124 = arith.constant dense<0.000000e+00> : vector<288x4xf32>
    %148 = tpu.matmul %145, %147, %cst_124 {dimension_numbers = #tpu.dot_dimension_numbers<[1], [0], [0], [1], [0, 0, 1, 1], [], []>} : vector<288x4xbf16>, vector<4x4xbf16>, vector<288x4xf32> -> vector<288x4xf32>
    %149 = arith.addf %144, %148 : vector<288x4xf32>
    %c37_125 = arith.constant 37 : index
    %c0_126 = arith.constant 0 : index
    %150 = vector.load %arg6[%c37_125, %c0_126] : memref<332x4xbf16, #tpu.memory_space<vmem>>, vector<288x4xbf16>
    %c16 = arith.constant 16 : index
    %c0_127 = arith.constant 0 : index
    %c0_128 = arith.constant 0 : index
    %151 = vector.load %arg2[%c16, %c0_127, %c0_128] : memref<18x4x4xbf16, #tpu.memory_space<vmem>>, vector<1x4x4xbf16>
    %152 = vector.shape_cast %151 : vector<1x4x4xbf16> to vector<4x4xbf16>
    %cst_129 = arith.constant dense<0.000000e+00> : vector<288x4xf32>
    %153 = tpu.matmul %150, %152, %cst_129 {dimension_numbers = #tpu.dot_dimension_numbers<[1], [0], [0], [1], [0, 0, 1, 1], [], []>} : vector<288x4xbf16>, vector<4x4xbf16>, vector<288x4xf32> -> vector<288x4xf32>
    %154 = arith.addf %149, %153 : vector<288x4xf32>
    %c38_130 = arith.constant 38 : index
    %c0_131 = arith.constant 0 : index
    %155 = vector.load %arg6[%c38_130, %c0_131] : memref<332x4xbf16, #tpu.memory_space<vmem>>, vector<288x4xbf16>
    %c17 = arith.constant 17 : index
    %c0_132 = arith.constant 0 : index
    %c0_133 = arith.constant 0 : index
    %156 = vector.load %arg2[%c17, %c0_132, %c0_133] : memref<18x4x4xbf16, #tpu.memory_space<vmem>>, vector<1x4x4xbf16>
    %157 = vector.shape_cast %156 : vector<1x4x4xbf16> to vector<4x4xbf16>
    %cst_134 = arith.constant dense<0.000000e+00> : vector<288x4xf32>
    %158 = tpu.matmul %155, %157, %cst_134 {dimension_numbers = #tpu.dot_dimension_numbers<[1], [0], [0], [1], [0, 0, 1, 1], [], []>} : vector<288x4xbf16>, vector<4x4xbf16>, vector<288x4xf32> -> vector<288x4xf32>
    %159 = arith.addf %154, %158 : vector<288x4xf32>
    %c3_135 = arith.constant 3 : index
    %c0_136 = arith.constant 0 : index
    %160 = vector.load %arg3[%c3_135, %c0_136] : memref<8x4xf32, #tpu.memory_space<vmem>>, vector<1x4xf32>
    %c4_137 = arith.constant 4 : index
    %c0_138 = arith.constant 0 : index
    %161 = vector.load %arg3[%c4_137, %c0_138] : memref<8x4xf32, #tpu.memory_space<vmem>>, vector<1x4xf32>
    %c5_139 = arith.constant 5 : index
    %c0_140 = arith.constant 0 : index
    %162 = vector.load %arg3[%c5_139, %c0_140] : memref<8x4xf32, #tpu.memory_space<vmem>>, vector<1x4xf32>
    %163 = vector.broadcast %160 : vector<1x4xf32> to vector<288x4xf32>
    %164 = arith.addf %159, %163 : vector<288x4xf32>
    %cst_141 = arith.constant 0.000000e+00 : f32
    %165 = vector.shape_cast %18 : vector<288x1xi1> to vector<288x1xi1>
    %166 = vector.broadcast %165 : vector<288x1xi1> to vector<288x4xi1>
    %167 = vector.broadcast %cst_141 : f32 to vector<288x4xf32>
    %168 = arith.select %166, %164, %167 : vector<288x4xi1>, vector<288x4xf32>
    %cst_142 = arith.constant dense<0.000000e+00> : vector<4xf32>
    %169 = vector.multi_reduction <add>, %168, %cst_142 [0] : vector<288x4xf32> to vector<4xf32>
    %170 = vector.shape_cast %169 : vector<4xf32> to vector<1x4xf32>
    %cst_143 = arith.constant 3.906250e-03 : f32
    %171 = vector.broadcast %cst_143 : f32 to vector<1x4xf32>
    %172 = arith.mulf %170, %171 : vector<1x4xf32>
    %173 = vector.broadcast %172 : vector<1x4xf32> to vector<288x4xf32>
    %174 = arith.subf %164, %173 : vector<288x4xf32>
    %175 = arith.mulf %174, %174 : vector<288x4xf32>
    %cst_144 = arith.constant 0.000000e+00 : f32
    %176 = vector.shape_cast %18 : vector<288x1xi1> to vector<288x1xi1>
    %177 = vector.broadcast %176 : vector<288x1xi1> to vector<288x4xi1>
    %178 = vector.broadcast %cst_144 : f32 to vector<288x4xf32>
    %179 = arith.select %177, %175, %178 : vector<288x4xi1>, vector<288x4xf32>
    %cst_145 = arith.constant dense<0.000000e+00> : vector<4xf32>
    %180 = vector.multi_reduction <add>, %179, %cst_145 [0] : vector<288x4xf32> to vector<4xf32>
    %181 = vector.shape_cast %180 : vector<4xf32> to vector<1x4xf32>
    %cst_146 = arith.constant 3.906250e-03 : f32
    %182 = vector.broadcast %cst_146 : f32 to vector<1x4xf32>
    %183 = arith.mulf %181, %182 : vector<1x4xf32>
    %cst_147 = arith.constant 9.99999974E-6 : f32
    %184 = vector.broadcast %cst_147 : f32 to vector<1x4xf32>
    %185 = arith.addf %183, %184 : vector<1x4xf32>
    %186 = math.rsqrt %185 : vector<1x4xf32>
    %187 = arith.mulf %186, %161 : vector<1x4xf32>
    %188 = vector.broadcast %187 : vector<1x4xf32> to vector<288x4xf32>
    %189 = arith.mulf %174, %188 : vector<288x4xf32>
    %190 = vector.broadcast %162 : vector<1x4xf32> to vector<288x4xf32>
    %191 = arith.addf %189, %190 : vector<288x4xf32>
    %c0_148 = arith.constant 0 : index
    %c0_149 = arith.constant 0 : index
    %192 = vector.load %arg5[%c0_148, %c0_149] : memref<324x4xf32, #tpu.memory_space<vmem>>, vector<288x4xf32>
    tpu.vector_store %arg5[%c0_148, %c0_149], %191 {strides = array<i32>} : memref<324x4xf32, #tpu.memory_space<vmem>>, vector<288x4xf32>,
    %c0_i32_150 = arith.constant 0 : i32
    %c16_i32_151 = arith.constant 16 : i32
    %193 = arith.addi %c0_i32_150, %c16_i32_151 : i32
    %c1_i32_152 = arith.constant 1 : i32
    scf.for %arg7 = %c0_i32_150 to %193 step %c1_i32_152  : i32 {
      %c1_i32_154 = arith.constant 1 : i32
      %194 = arith.muli %arg7, %c1_i32_154 : i32
      %c0_i32_155 = arith.constant 0 : i32
      %195 = arith.addi %c0_i32_155, %194 : i32
      %c18_i32_156 = arith.constant 18 : i32
      %196 = arith.muli %195, %c18_i32_156 : i32
      %197 = arith.index_cast %196 : i32 to index
      %c0_157 = arith.constant 0 : index
      %198 = vector.load %arg5[%197, %c0_157] : memref<324x4xf32, #tpu.memory_space<vmem>>, vector<16x4xf32>
      %c16_i32_158 = arith.constant 16 : i32
      %199 = arith.muli %195, %c16_i32_158 : i32
      %c0_159 = arith.constant 0 : index
      %200 = arith.index_cast %199 : i32 to index
      %c0_160 = arith.constant 0 : index
      %201 = vector.load %arg1[%c0_159, %200, %c0_160] : memref<1x256x4xf32, #tpu.memory_space<vmem>>, vector<1x16x4xf32>
      %202 = vector.shape_cast %201 : vector<1x16x4xf32> to vector<16x4xf32>
      %203 = arith.addf %198, %202 : vector<16x4xf32>
      %c16_i32_161 = arith.constant 16 : i32
      %204 = arith.muli %195, %c16_i32_161 : i32
      %c0_162 = arith.constant 0 : index
      %205 = arith.index_cast %204 : i32 to index
      %c0_163 = arith.constant 0 : index
      %206 = vector.load %arg4[%c0_162, %205, %c0_163] : memref<1x256x4xf32, #tpu.memory_space<vmem>>, vector<1x16x4xf32>
      %207 = vector.shape_cast %206 : vector<1x16x4xf32> to vector<16x4xf32>
      %208 = vector.shape_cast %203 : vector<16x4xf32> to vector<1x16x4xf32>
      tpu.vector_store %arg4[%c0_162, %205, %c0_163], %208 {strides = array<i32>} : memref<1x256x4xf32, #tpu.memory_space<vmem>>, vector<1x16x4xf32>,
    }
    %c16_i32_153 = arith.constant 16 : i32
    return
  }
  func.func @transform_0(%arg0: i32) -> (i32, i32, i32) {
    %c0_i32 = arith.constant 0 : i32
    %c0_i32_0 = arith.constant 0 : i32
    %c0_i32_1 = arith.constant 0 : i32
    return %arg0, %c0_i32, %c0_i32_0 : i32, i32, i32
  }
  func.func @transform_1(%arg0: i32) -> (i32, i32, i32) {
    %c0_i32 = arith.constant 0 : i32
    %c0_i32_0 = arith.constant 0 : i32
    %c0_i32_1 = arith.constant 0 : i32
    %c0_i32_2 = arith.constant 0 : i32
    return %c0_i32, %c0_i32_0, %c0_i32_1 : i32, i32, i32
  }
  func.func @transform_2(%arg0: i32) -> (i32, i32) {
    %c0_i32 = arith.constant 0 : i32
    %c0_i32_0 = arith.constant 0 : i32
    %c0_i32_1 = arith.constant 0 : i32
    return %c0_i32, %c0_i32_0 : i32, i32
  }
  func.func @transform_3(%arg0: i32) -> (i32, i32, i32) {
    %c0_i32 = arith.constant 0 : i32
    %c0_i32_0 = arith.constant 0 : i32
    %c0_i32_1 = arith.constant 0 : i32
    return %arg0, %c0_i32, %c0_i32_0 : i32, i32, i32
  }
}

</mosaic_0001>

<bundles_post_ra>
// kernel: tpu_custom_call.1
= control target key start
LH: loop header
LB: loop body
LE: loop exit
PB: predicated region body
PF: predicated region fallthrough
CT: control target
= control target key end

     0   :  { %s11446_s12 = smov 0   ;;  %s17012_s0 = inlined_call_operand.vmem [shape: f32[2,256,4], index: 0, kind: input, shape index: {}]   ;;  %s17013_s1 = inlined_call_operand.vmem [shape: bf16[18,4,4], index: 1, kind: input, shape index: {}]   ;;  %s17014_s2 = inlined_call_operand.vmem [shape: f32[8,4], index: 2, kind: input, shape index: {}]   ;;  %s17015_s3 = inlined_call_operand.vmem [shape: f32[2,256,4], index: 3, kind: output, shape index: {}]  }
   0x1 LB: > { %s9466_s13 = sadd.s32 4294967295, %s11411_s12   ;;  %p9470_p0 = scmp.ge.s32.totalorder %s11411_s12, 1  ;;  %s11411_s12 = sphi %s11446_s12, %s13_s12  }
   0x2   : > { %p137_p1 = scmp.lt.s32.totalorder %s11411_s12, 3 }
   0x4   : > { %p138_p2 = pnand %p9470_p0, %p137_p1 }
   0x6   : > { %141 = sbr.rel (%p138_p2) target bundleno = 1780 (0x6f4), region = 32 }
   0xb   : > { %p11456_p3 = scmp.lt.s32.totalorder %s9466_s13, 1  ;;  %vm17025_vm0 = vcmask 27648   ;;  %v11425_v0 = vmov 0   ;;  %v172_v1 = vlaneseq  ;;  %s11413_s22 = smov 0  }
   0xc   : > { %822 = vst.msk [vmem:[#allocation3] sm:$0xf] %vm17025_vm0, %v11425_v0  ;;  %823 = vst.msk [vmem:[#allocation3 + $0x4] sm:$0xf] %vm17025_vm0, %v11425_v0 }
   0xd   : > { %824 = vst.msk [vmem:[#allocation3 + $0x8] sm:$0xf] %vm17025_vm0, %v11425_v0  ;;  %825 = vst.msk [vmem:[#allocation3 + $0xc] sm:$0xf] %vm17025_vm0, %v11425_v0  ;;  %s18713_s13 = smov (!%p11456_p3, %s9466_s13), 1  ;;  %v11515_v2 = vshrl.u32 %v172_v1, 7 }
   0xe   : > { %826 = vst.msk [vmem:[#allocation3 + $0x10] sm:$0xf] %vm17025_vm0, %v11425_v0  ;;  %827 = vst.msk [vmem:[#allocation3 + $0x14] sm:$0xf] %vm17025_vm0, %v11425_v0  ;;  %s10038_s15 = sshll.u32 %s18713_s13, 8 }
   0xf   : > { %828 = vst.msk [vmem:[#allocation3 + $0x18] sm:$0xf] %vm17025_vm0, %v11425_v0  ;;  %829 = vst.msk [vmem:[#allocation3 + $0x1c] sm:$0xf] %vm17025_vm0, %v11425_v0  ;;  %s11508_s18 = scalar_lea.vmem %s17012_s0, %s10038_s15  ;;  %s11513_s21 = scalar_lea.vmem %s17015_s3, %s10038_s15  ;;  %v11518_v3 = vadd.s32 8, %v11515_v2  ;;  %v11521_v4 = vadd.s32 16, %v11515_v2 }
  0x10   : > { %830 = vst.msk [vmem:[#allocation3 + $0x20] sm:$0xf] %vm17025_vm0, %v11425_v0  ;;  %831 = vst.msk [vmem:[#allocation3 + $0x24] sm:$0xf] %vm17025_vm0, %v11425_v0  ;;  %v11524_v5 = vadd.s32 24, %v11515_v2  ;;  %v11527_v6 = vadd.s32 32, %v11515_v2 }
  0x11   : > { %832 = vst.msk [vmem:[#allocation3 + $0x28] sm:$0xf] %vm17025_vm0, %v11425_v0  ;;  %833 = vst.msk [vmem:[#allocation3 + $0x2c] sm:$0xf] %vm17025_vm0, %v11425_v0  ;;  %v11530_v7 = vadd.s32 40, %v11515_v2  ;;  %v11533_v8 = vadd.s32 48, %v11515_v2 }
  0x12   : > { %834 = vst.msk [vmem:[#allocation3 + $0x30] sm:$0xf] %vm17025_vm0, %v11425_v0  ;;  %835 = vst.msk [vmem:[#allocation3 + $0x34] sm:$0xf] %vm17025_vm0, %v11425_v0  ;;  %v11536_v9 = vmul.u32.u64.low 3817748708, %v11515_v2  ;;  %v11537_v10 = vmul.u32.u64.high 3817748708, %v11515_v2, %v11536_v9 }
  0x13   : > { %836 = vst.msk [vmem:[#allocation3 + $0x38] sm:$0xf] %vm17025_vm0, %v11425_v0  ;;  %837 = vst.msk [vmem:[#allocation3 + $0x3c] sm:$0xf] %vm17025_vm0, %v11425_v0  ;;  %v11540_v11 = vmul.u32.u64.low 3817748708, %v11518_v3  ;;  %v11541_v12 = vmul.u32.u64.high 3817748708, %v11518_v3, %v11540_v11 }
  0x14   : > { %838 = vst.msk [vmem:[#allocation3 + $0x40] sm:$0xf] %vm17025_vm0, %v11425_v0  ;;  %839 = vst.msk [vmem:[#allocation3 + $0x44] sm:$0xf] %vm17025_vm0, %v11425_v0  ;;  %v11544_v13 = vmul.u32.u64.low 3817748708, %v11521_v4  ;;  %v11545_v14 = vmul.u32.u64.high 3817748708, %v11521_v4, %v11544_v13 }
  0x15   : > { %840 = vst.msk [vmem:[#allocation3 + $0x48] sm:$0xf] %vm17025_vm0, %v11425_v0  ;;  %841 = vst.msk [vmem:[#allocation3 + $0x4c] sm:$0xf] %vm17025_vm0, %v11425_v0  ;;  %v11548_v15 = vmul.u32.u64.low 3817748708, %v11524_v5  ;;  %v11549_v16 = vmul.u32.u64.high 3817748708, %v11524_v5, %v11548_v15 }
  0x16   : > { %842 = vst.msk [vmem:[#allocation3 + $0x50] sm:$0xf] %vm17025_vm0, %v11425_v0  ;;  %843 = vst.msk [vmem:[#allocation3 + $0x54] sm:$0xf] %vm17025_vm0, %v11425_v0  ;;  %v11552_v17 = vmul.u32.u64.low 3817748708, %v11527_v6  ;;  %v11553_v18 = vmul.u32.u64.high 3817748708, %v11527_v6, %v11552_v17 }
  0x17   : > { %844 = vst.msk [vmem:[#allocation3 + $0x58] sm:$0xf] %vm17025_vm0, %v11425_v0  ;;  %845 = vst.msk [vmem:[#allocation3 + $0x5c] sm:$0xf] %vm17025_vm0, %v11425_v0  ;;  %v11556_v19 = vadd.s32 56, %v11515_v2  ;;  %v11559_v20 = vadd.s32 64, %v11515_v2 }
  0x18   : > { %846 = vst.msk [vmem:[#allocation3 + $0x60] sm:$0xf] %vm17025_vm0, %v11425_v0  ;;  %847 = vst.msk [vmem:[#allocation3 + $0x64] sm:$0xf] %vm17025_vm0, %v11425_v0  ;;  %v11562_v21 = vadd.s32 72, %v11515_v2  ;;  %v11565_v22 = vadd.s32 80, %v11515_v2 }
  0x19   : > { %848 = vst.msk [vmem:[#allocation3 + $0x68] sm:$0xf] %vm17025_vm0, %v11425_v0  ;;  %849 = vst.msk [vmem:[#allocation3 + $0x6c] sm:$0xf] %vm17025_vm0, %v11425_v0  ;;  %v11568_v23 = vmul.u32.u64.low 3817748708, %v11530_v7  ;;  %v11569_v24 = vmul.u32.u64.high 3817748708, %v11530_v7, %v11568_v23 }
  0x1a   : > { %850 = vst.msk [vmem:[#allocation3 + $0x70] sm:$0xf] %vm17025_vm0, %v11425_v0  ;;  %851 = vst.msk [vmem:[#allocation3 + $0x74] sm:$0xf] %vm17025_vm0, %v11425_v0  ;;  %v11572_v25 = vmul.u32.u64.low 3817748708, %v11533_v8  ;;  %v11573_v26 = vmul.u32.u64.high 3817748708, %v11533_v8, %v11572_v25 }
  0x1b   : > { %852 = vst.msk [vmem:[#allocation3 + $0x78] sm:$0xf] %vm17025_vm0, %v11425_v0  ;;  %853 = vst.msk [vmem:[#allocation3 + $0x7c] sm:$0xf] %vm17025_vm0, %v11425_v0  ;;  %v11576_v27 = vadd.s32 88, %v11515_v2  ;;  %v11579_v28 = vadd.s32 96, %v11515_v2 }
  0x1c   : > { %854 = vst.msk [vmem:[#allocation3 + $0x80] sm:$0xf] %vm17025_vm0, %v11425_v0  ;;  %855 = vst.msk [vmem:[#allocation3 + $0x84] sm:$0xf] %vm17025_vm0, %v11425_v0  ;;  %v11582_v29 = vadd.s32 104, %v11515_v2  ;;  %v11585_v30 = vadd.s32 112, %v11515_v2 }
  0x1d   : > { %856 = vst.msk [vmem:[#allocation3 + $0x88] sm:$0xf] %vm17025_vm0, %v11425_v0  ;;  %857 = vst.msk [vmem:[#allocation3 + $0x8c] sm:$0xf] %vm17025_vm0, %v11425_v0  ;;  %v11588_v31 = vadd.s32 120, %v11515_v2  ;;  %v11591_v32 = vadd.s32 128, %v11515_v2 }
  0x1e   : > { %858 = vst.msk [vmem:[#allocation3 + $0x90] sm:$0xf] %vm17025_vm0, %v11425_v0  ;;  %859 = vst.msk [vmem:[#allocation3 + $0x94] sm:$0xf] %vm17025_vm0, %v11425_v0  ;;  %v11594_v33 = vadd.s32 136, %v11515_v2  ;;  %v11597_v34 = vadd.s32 144, %v11515_v2 }
  0x1f   : > { %860 = vst.msk [vmem:[#allocation3 + $0x98] sm:$0xf] %vm17025_vm0, %v11425_v0  ;;  %861 = vst.msk [vmem:[#allocation3 + $0x9c] sm:$0xf] %vm17025_vm0, %v11425_v0  ;;  %v11600_v35 = vadd.s32 152, %v11515_v2  ;;  %v11603_v36 = vadd.s32 160, %v11515_v2 }
  0x20   : > { %862 = vst.msk [vmem:[#allocation3 + $0xa0] sm:$0xf] %vm17025_vm0, %v11425_v0  ;;  %17245 = vst [vmem:[#allocation4_spill] sm:$0xff] %v11515_v2  ;;  %v11606_v37 = vmul.u32.u64.low 3817748708, %v11556_v19  ;;  %v11607_v38 = vmul.u32.u64.high 3817748708, %v11556_v19, %v11606_v37  ;;  %v11610_v39 = vadd.s32 168, %v11515_v2 }
  0x21   : > { %v215_v40 = vshrl.u32 %v11537_v10, 4  ;;  %v11614_v41 = vmul.u32.u64.low 3817748708, %v11559_v20  ;;  %v11615_v42 = vmul.u32.u64.high 3817748708, %v11559_v20, %v11614_v41  ;;  %v11618_v43 = vadd.s32 176, %v11515_v2 }
  0x22   : > { %v11621_v44 = vadd.s32 184, %v11515_v2  ;;  %v226_v45 = vshrl.u32 %v11541_v12, 4  ;;  %v237_v46 = vshrl.u32 %v11545_v14, 4  ;;  %v11626_v47 = vadd.s32 192, %v11515_v2 }
  0x23   : > { %v11629_v48 = vadd.s32 200, %v11515_v2  ;;  %v248_v49 = vshrl.u32 %v11549_v16, 4  ;;  %v259_v50 = vshrl.u32 %v11553_v18, 4  ;;  %v11642_v55 = vadd.s32 208, %v11515_v2 }
  0x24   : > { %v11634_v51 = vmul.u32.u64.low 3817748708, %v11562_v21  ;;  %v11635_v52 = vmul.u32.u64.high 3817748708, %v11562_v21, %v11634_v51  ;;  %v11638_v53 = vmul.u32.u64.low 3817748708, %v11565_v22  ;;  %v11639_v54 = vmul.u32.u64.high 3817748708, %v11565_v22, %v11638_v53 }
  0x25   : > { %v216_v56 = vmul.u32 18, %v215_v40  ;;  %v270_v57 = vshrl.u32 %v11569_v24, 4  ;;  %v281_v58 = vshrl.u32 %v11573_v26, 4  ;;  %v11647_v59 = vadd.s32 216, %v11515_v2 }
  0x26   : > { %v11650_v60 = vadd.s32 224, %v11515_v2  ;;  %v227_v61 = vmul.u32 18, %v226_v45  ;;  %v238_v62 = vmul.u32 18, %v237_v46  ;;  %v11653_v63 = vadd.s32 232, %v11515_v2 }
  0x27   : > { %17246 = vst [vmem:[#allocation5_spill] sm:$0xff] %v11647_v59  ;;  %v11656_v0 = vadd.s32 240, %v11515_v2  ;;  %v249_v1 = vmul.u32 18, %v248_v49  ;;  %v260_v9 = vmul.u32 18, %v259_v50  ;;  %v292_v16 = vshrl.u32 %v11607_v38, 4 }
  0x28   : > { %17247 = vst [vmem:[#allocation6_spill] sm:$0xff] %v11650_v60  ;;  %17248 = vst [vmem:[#allocation7_spill] sm:$0xff] %v11653_v63  ;;  %v11659_v10 = vmul.u32.u64.low 3817748708, %v11576_v27  ;;  %v11660_v11 = vmul.u32.u64.high 3817748708, %v11576_v27, %v11659_v10  ;;  %v11663_v12 = vmul.u32.u64.low 3817748708, %v11579_v28  ;;  %v11664_v13 = vmul.u32.u64.high 3817748708, %v11579_v28, %v11663_v12 }
  0x29   : > { %17249 = vst [vmem:[#allocation8_spill] sm:$0xff] %v11656_v0  ;;  %v271_v14 = vmul.u32 18, %v270_v57  ;;  %v282_v15 = vmul.u32 18, %v281_v58  ;;  %v303_v17 = vshrl.u32 %v11615_v42, 4  ;;  %v11677_v26 = vadd.s32 248, %v11515_v2 }
  0x2a   : > { %v11669_v18 = vmul.u32.u64.low 3817748708, %v11582_v29  ;;  %v11670_v23 = vmul.u32.u64.high 3817748708, %v11582_v29, %v11669_v18  ;;  %v11673_v24 = vmul.u32.u64.low 3817748708, %v11585_v30  ;;  %v11674_v25 = vmul.u32.u64.high 3817748708, %v11585_v30, %v11673_v24 }
  0x2b   : > { %17250 = vst [vmem:[#allocation9_spill] sm:$0xff] %v11677_v26  ;;  %v11680_v37 = vadd.s32 256, %v11515_v2  ;;  %v11683_v40 = vadd.s32 264, %v11515_v2  ;;  %v11686_v38 = vadd.s32 272, %v11515_v2  ;;  %v11689_v41 = vadd.s32 280, %v11515_v2 }
  0x2c   : > { %v11692_v42 = vsub.s32 %v11515_v2, %v216_v56  ;;  %v314_v45 = vshrl.u32 %v11635_v52, 4  ;;  %v325_v46 = vshrl.u32 %v11639_v54, 4  ;;  %v11697_v49 = vsub.s32 %v11518_v3, %v227_v61 }
  0x2d   : > { %17251 = vst [vmem:[#allocation10_spill] sm:$0xff] %v11680_v37  ;;  %17252 = vst [vmem:[#allocation11_spill] sm:$0xff] %v11683_v40  ;;  %v11700_v50 = vsub.s32 %v11521_v4, %v238_v62  ;;  %v11703_v51 = vsub.s32 %v11524_v5, %v249_v1  ;;  %v293_v53 = vmul.u32 18, %v292_v16  ;;  %v11706_v57 = vsub.s32 %v11527_v6, %v260_v9 }
  0x2e   : > { %v11709_v56 = vsub.s32 %v11530_v7, %v271_v14  ;;  %v11712_v52 = vsub.s32 %v11533_v8, %v282_v15  ;;  %v304_v54 = vmul.u32 18, %v303_v17  ;;  %v315_v5 = vmul.u32 18, %v314_v45 }
  0x2f   : > { %v11715_v3 = vmul.u32.u64.low 3817748708, %v11588_v31  ;;  %v11716_v58 = vmul.u32.u64.high 3817748708, %v11588_v31, %v11715_v3  ;;  %v11719_v4 = vmul.u32.u64.low 3817748708, %v11591_v32  ;;  %v11720_v61 = vmul.u32.u64.high 3817748708, %v11591_v32, %v11719_v4 }
  0x30   : > { %v326_v62 = vmul.u32 18, %v325_v46  ;;  %v336_v6 = vshrl.u32 %v11660_v11, 4  ;;  %v347_v1 = vshrl.u32 %v11664_v13, 4  ;;  %v11733_v12 = vsub.s32 %v11556_v19, %v293_v53 }
  0x31   : > { %v11725_v7 = vmul.u32.u64.low 3817748708, %v11594_v33  ;;  %v11726_v9 = vmul.u32.u64.high 3817748708, %v11594_v33, %v11725_v7  ;;  %v11729_v8 = vmul.u32.u64.low 3817748708, %v11597_v34  ;;  %v11730_v10 = vmul.u32.u64.high 3817748708, %v11597_v34, %v11729_v8 }
  0x32   : > { %v11736_v14 = vsub.s32 %v11559_v20, %v304_v54  ;;  %v358_v15 = vshrl.u32 %v11670_v23, 4  ;;  %v369_v11 = vshrl.u32 %v11674_v25, 4  ;;  %v11749_v24 = vsub.s32 %v11562_v21, %v315_v5 }
  0x33   : > { %v11741_v13 = vmul.u32.u64.low 3817748708, %v11600_v35  ;;  %v11742_v16 = vmul.u32.u64.high 3817748708, %v11600_v35, %v11741_v13  ;;  %v11745_v17 = vmul.u32.u64.low 3817748708, %v11603_v36  ;;  %v11746_v18 = vmul.u32.u64.high 3817748708, %v11603_v36, %v11745_v17 }
  0x34   : > { %v11752_v19 = vsub.s32 %v11565_v22, %v326_v62  ;;  %v337_v20 = vmul.u32 18, %v336_v6  ;;  %v348_v45 = vmul.u32 18, %v347_v1  ;;  %v380_v62 = vshrl.u32 %v11716_v58, 4 }
  0x35   : > { %v11755_v23 = vmul.u32.u64.low 3817748708, %v11610_v39  ;;  %v11756_v46 = vmul.u32.u64.high 3817748708, %v11610_v39, %v11755_v23  ;;  %v11759_v25 = vmul.u32.u64.low 3817748708, %v11618_v43  ;;  %v11760_v53 = vmul.u32.u64.high 3817748708, %v11618_v43, %v11759_v25 }
  0x36   : > { %v11763_v54 = vmul.u32.u64.low 3817748708, %v11621_v44  ;;  %v11764_v3 = vmul.u32.u64.high 3817748708, %v11621_v44, %v11763_v54  ;;  %v11767_v21 = vmul.u32.u64.low 3817748708, %v11626_v47  ;;  %v11768_v4 = vmul.u32.u64.high 3817748708, %v11626_v47, %v11767_v21 }
  0x37   : > { %v359_v22 = vmul.u32 18, %v358_v15  ;;  %v370_v5 = vmul.u32 18, %v369_v11  ;;  %v391_v6 = vshrl.u32 %v11720_v61, 4  ;;  %v402_v17 = vshrl.u32 %v11726_v9, 4 }
  0x38   : > { %v11773_v1 = vmul.u32.u64.low 3817748708, %v11629_v48  ;;  %v11774_v7 = vmul.u32.u64.high 3817748708, %v11629_v48, %v11773_v1  ;;  %v11777_v8 = vmul.u32.u64.low 3817748708, %v11642_v55  ;;  %v11778_v13 = vmul.u32.u64.high 3817748708, %v11642_v55, %v11777_v8 }
  0x39   : > { %v413_v23 = vshrl.u32 %v11730_v10, 4  ;;  %v11783_v25 = vmul.u32.u64.low 3817748708, %v11647_v59  ;;  %v11784_v15 = vmul.u32.u64.high 3817748708, %v11647_v59, %v11783_v25  ;;  %v424_v21 = vshrl.u32 %v11742_v16, 4 }
  0x3a   : > { %v11787_v58 = vmul.u32.u64.low 3817748708, %v11650_v60  ;;  %v11788_v11 = vmul.u32.u64.high 3817748708, %v11650_v60, %v11787_v58  ;;  %v11791_v61 = vmul.u32.u64.low 3817748708, %v11653_v63  ;;  %v11792_v54 = vmul.u32.u64.high 3817748708, %v11653_v63, %v11791_v61 }
  0x3b   : > { %v435_v1 = vshrl.u32 %v11746_v18, 4  ;;  %v11797_v9 = vmul.u32.u64.low 3817748708, %v11656_v0  ;;  %v11798_v8 = vmul.u32.u64.high 3817748708, %v11656_v0, %v11797_v9  ;;  %v381_v58 = vmul.u32 18, %v380_v62 }
  0x3c   : > { %v11801_v10 = vmul.u32.u64.low 3817748708, %v11677_v26  ;;  %v11802_v2 = vmul.u32.u64.high 3817748708, %v11677_v26, %v11801_v10  ;;  %v11805_v25 = vmul.u32.u64.low 3817748708, %v11680_v37  ;;  %v11806_v60 = vmul.u32.u64.high 3817748708, %v11680_v37, %v11805_v25 }
  0x3d   : > { %v392_v59 = vmul.u32 18, %v391_v6  ;;  %v446_v61 = vshrl.u32 %v11756_v46, 4  ;;  %v457_v16 = vshrl.u32 %v11760_v53, 4  ;;  %v468_v18 = vshrl.u32 %v11764_v3, 4 }
  0x3e   : > { %v479_v63 = vshrl.u32 %v11768_v4, 4  ;;  %v11813_v9 = vmul.u32.u64.low 3817748708, %v11683_v40  ;;  %v11814_v0 = vmul.u32.u64.high 3817748708, %v11683_v40, %v11813_v9  ;;  %v11817_v10 = vsub.s32 %v11576_v27, %v337_v20 }
  0x3f   : > { %v11820_v37 = vsub.s32 %v11579_v28, %v348_v45  ;;  %v403_v62 = vmul.u32 18, %v402_v17  ;;  %v414_v6 = vmul.u32 18, %v413_v23  ;;  %v490_v53 = vshrl.u32 %v11774_v7, 4 }
  0x40   : > { %v425_v25 = vmul.u32 18, %v424_v21  ;;  %v436_v46 = vmul.u32 18, %v435_v1  ;;  %v501_v3 = vshrl.u32 %v11778_v13, 4  ;;  %v11825_v4 = vsub.s32 %v11582_v29, %v359_v22 }
  0x41   : > { %v447_v26 = vmul.u32 18, %v446_v61  ;;  %v458_v40 = vmul.u32 18, %v457_v16  ;;  %v512_v9 = vshrl.u32 %v11784_v15, 4  ;;  %v523_v28 = vshrl.u32 %v11788_v11, 4 }
  0x42   : > { %17253 = vst [vmem:[#allocation12_spill] sm:$0xff] %v11825_v4  ;;  %v469_v27 = vmul.u32 18, %v468_v18  ;;  %v480_v20 = vmul.u32 18, %v479_v63  ;;  %v534_v45 = vshrl.u32 %v11792_v54, 4  ;;  %v545_v17 = vshrl.u32 %v11798_v8, 4 }
  0x43   : > { %v556_v23 = vshrl.u32 %v11802_v2, 4  ;;  %v11833_v7 = vmul.u32.u64.low 3817748708, %v11686_v38  ;;  %v11834_v13 = vmul.u32.u64.high 3817748708, %v11686_v38, %v11833_v7  ;;  %v491_v29 = vmul.u32 18, %v490_v53 }
  0x44   : > { %v502_v22 = vmul.u32 18, %v501_v3  ;;  %v567_v21 = vshrl.u32 %v11806_v60, 4  ;;  %v578_v15 = vshrl.u32 %v11814_v0, 4  ;;  %v11839_v63 = vsub.s32 %v11585_v30, %v370_v5  ;;  %v17262_v3 = vld [vmem:[#allocation9_spill] sm:$0xff] }
  0x45   : > { %v513_v11 = vmul.u32 18, %v512_v9  ;;  %v11842_v54 = vmul.u32.u64.low 3817748708, %v11689_v41  ;;  %v11843_v1 = vmul.u32.u64.high 3817748708, %v11689_v41, %v11842_v54  ;;  %v11846_v2 = vsub.s32 %v11588_v31, %v381_v58  ;;  %v17263_v9 = vld [vmem:[#allocation10_spill] sm:$0xff] }
  0x46   : > { %v11849_v8 = vsub.s32 %v11591_v32, %v392_v59  ;;  %v524_v61 = vmul.u32 18, %v523_v28  ;;  %v535_v16 = vmul.u32 18, %v534_v45  ;;  %vm605_vm2 = vcmp.ne.s32.totalorder %v11692_v42, 0 }
  0x47   : > { %vm606_vm3 = vcmp.ne.s32.totalorder %v11697_v49, 0  ;;  %vm607_vm4 = vcmp.ne.s32.totalorder %v11700_v50, 0  ;;  %vm608_vm5 = vcmp.ne.s32.totalorder %v11703_v51, 0  ;;  %v11856_v30 = vsub.s32 %v11594_v33, %v403_v62 }
  0x48   : > { %v546_v60 = vmul.u32 18, %v545_v17  ;;  %v557_v0 = vmul.u32 18, %v556_v23  ;;  %v589_v31 = vshrl.u32 %v11834_v13, 4  ;;  %v11864_v32 = vsub.s32 %v11597_v34, %v414_v6 }
  0x49   : > { %v11867_v59 = vsub.s32 %v11600_v35, %v425_v25  ;;  %v568_v33 = vmul.u32 18, %v567_v21  ;;  %v579_v5 = vmul.u32 18, %v578_v15  ;;  %v11873_v58 = vsub.s32 %v11603_v36, %v436_v46  ;;  %v17259_v46 = vld [vmem:[#allocation7_spill] sm:$0xff]  ;;  %v17381_v13 = vld [vmem:[#allocation12_spill] sm:$0xff] }
  0x4a   : > { %v11876_v18 = vsub.s32 %v11610_v39, %v447_v26  ;;  %v11879_v34 = vsub.s32 %v11618_v43, %v458_v40  ;;  %v600_v35 = vshrl.u32 %v11843_v1, 4  ;;  %v11884_v62 = vsub.s32 %v11621_v44, %v469_v27  ;;  %v17255_v39 = vld [vmem:[#allocation5_spill] sm:$0xff]  ;;  %v17257_v26 = vld [vmem:[#allocation6_spill] sm:$0xff] }
  0x4b   : > { %v11887_v6 = vsub.s32 %v11626_v47, %v480_v20  ;;  %v11890_v25 = vsub.s32 %v11629_v48, %v491_v29  ;;  %v11893_v36 = vsub.s32 %v11642_v55, %v502_v22  ;;  %v11897_v43 = vsub.s32 %v17255_v39, %v513_v11  ;;  %v17261_v47 = vld [vmem:[#allocation8_spill] sm:$0xff]  ;;  %v17264_v20 = vld [vmem:[#allocation11_spill] sm:$0xff] }
  0x4c   : > { %v11900_v40 = vsub.s32 %v17257_v26, %v524_v61  ;;  %v11903_v44 = vsub.s32 %v17259_v46, %v535_v16  ;;  %v590_v53 = vmul.u32 18, %v589_v31  ;;  %v11907_v48 = vsub.s32 %v17261_v47, %v546_v60 }
  0x4d   : > { %17254 = vst [vmem:[#allocation13_spill] sm:$0xff] %v11887_v6  ;;  %17256 = vst [vmem:[#allocation5_spill] sm:$0xff] %v11897_v43  ;;  %v11910_v55 = vsub.s32 %v17262_v3, %v557_v0  ;;  %v11913_v27 = vsub.s32 %v17263_v9, %v568_v33  ;;  %v11916_v28 = vsub.s32 %v17264_v20, %v579_v5  ;;  %v601_v45 = vmul.u32 18, %v600_v35 }
  0x4e   : > { %17258 = vst [vmem:[#allocation6_spill] sm:$0xff] %v11900_v40  ;;  %17260 = vst [vmem:[#allocation7_spill] sm:$0xff] %v11903_v44  ;;  %vm641_vm14 = vcmp.lt.s32.totalorder %v11692_v42, 0  ;;  %vm642_vm15 = vcmp.lt.s32.totalorder %v11697_v49, 0  ;;  %vm643_vm13 = vcmp.lt.s32.totalorder %v11700_v50, 0  ;;  %v11929_v17 = vsub.s32 %v11686_v38, %v590_v53 }
  0x4f   : > { %v11941_v38 = vsub.s32 %v11689_v41, %v601_v45  ;;  %vm11951_vm12 = vmand %vm641_vm14, %vm605_vm2  ;;  %vm17271_vm2 = vcmp.lt.s32.totalorder %v11703_v51, 0  ;;  %vm17275_vm0 = vcmp.lt.s32.totalorder %v11706_v57, 0  ;;  %vm17282_vm7 = vcmp.ne.s32.totalorder %v11712_v52, 0 }
  0x50   : > { %vm11959_vm8 = vmand %vm642_vm15, %vm606_vm3  ;;  %v17284_v21 = vmov 0  ;;  %vm17290_vm10 = vcmp.ne.s32.totalorder %v11736_v14, 0  ;;  %vm17291_vm11 = vcmp.lt.s32.totalorder %v11736_v14, 0  ;;  %v12043_v61 = vadd.s32 18, %v11692_v42 }
  0x51   : > { %vm11967_vm1 = vmand %vm643_vm13, %vm607_vm4  ;;  %vm17274_vm13 = vcmp.ne.s32.totalorder %v11706_v57, 0  ;;  %vm17283_vm4 = vcmp.lt.s32.totalorder %v11712_v52, 0  ;;  %v12046_v16 = vadd.s32 18, %v11697_v49  ;;  %v12049_v60 = vadd.s32 18, %v11700_v50 }
  0x52   : > { %vm11975_vm14 = vmand %vm17271_vm2, %vm608_vm5  ;;  %vm17278_vm5 = vcmp.ne.s32.totalorder %v11709_v56, 0  ;;  %vm17279_vm2 = vcmp.lt.s32.totalorder %v11709_v56, 0  ;;  %v12052_v0 = vadd.s32 18, %v11703_v51  ;;  %v17304_v31 = vmov 0 }
  0x53   : > { %vm11988_vm9 = vmand %vm17275_vm0, %vm17274_vm13  ;;  %vm17286_vm0 = vcmp.ne.s32.totalorder %v11733_v12, 0  ;;  %vm17287_vm13 = vcmp.lt.s32.totalorder %v11733_v12, 0  ;;  %v12065_v33 = vadd.s32 18, %v11706_v57  ;;  %v12068_v5 = vadd.s32 18, %v11709_v56 }
  0x54   : > { %vm11996_vm3 = vmand %vm17279_vm2, %vm17278_vm5  ;;  %vm17299_vm2 = vcmp.lt.s32.totalorder %v11752_v19, 0  ;;  %v12071_v35 = vadd.s32 18, %v11712_v52  ;;  %v12074_v39 = vadd.s32 18, %v11733_v12  ;;  %v17309_v26 = vmov 0 }
  0x55   : > { %vm12004_vm6 = vmand %vm17283_vm4, %vm17282_vm7  ;;  %vm17294_vm4 = vcmp.ne.s32.totalorder %v11749_v24, 0  ;;  %v12087_v46 = vadd.s32 18, %v11736_v14  ;;  %v12090_v53 = vadd.s32 18, %v11749_v24  ;;  %v12093_v47 = vadd.s32 18, %v11752_v19  ;;  %v17453_v41 = vld [vmem:[#allocation6_spill] sm:$0xff] }
  0x56   : > { %v17285_v21 = vsel %vm12004_vm6, 4294967295, %v17284_v21  ;;  %vm12012_vm15 = vmand %vm17287_vm13, %vm17286_vm0  ;;  %vm17295_vm6 = vcmp.lt.s32.totalorder %v11749_v24, 0  ;;  %vm17298_vm13 = vcmp.ne.s32.totalorder %v11752_v19, 0  ;;  %v12096_v3 = vadd.s32 18, %v11817_v10 }
  0x57   : > { %vm12022_vm7 = vmand %vm17291_vm11, %vm17290_vm10  ;;  %vm17302_vm11 = vcmp.ne.s32.totalorder %v11817_v10, 0  ;;  %v17314_v9 = vmov 0  ;;  %v12109_v20 = vadd.s32 18, %v11820_v37  ;;  %v12112_v45 = vadd.s32 18, %v11825_v4 }
  0x58   : > { %vm12030_vm0 = vmand %vm17295_vm6, %vm17294_vm4  ;;  %v756_v23 = vsel %vm12012_vm15, %v12074_v39, %v11733_v12  ;;  %vm17392_vm15 = vcmp.lt.s32.totalorder %v11884_v62, 0 }
  0x59   : > { %vm12038_vm5 = vmand %vm17299_vm2, %vm17298_vm13  ;;  %vm17303_vm2 = vcmp.lt.s32.totalorder %v11817_v10, 0  ;;  %17317 = vst [vmem:[#allocation11_spill] sm:$0xff] %v12112_v45  ;;  %v12131_v45 = vadd.s32 18, %v11849_v8  ;;  %vm17366_vm13 = vcmp.lt.s32.totalorder %v11873_v58, 0 }
  0x5a   : > { %vm12060_vm4 = vmand %vm17303_vm2, %vm17302_vm11  ;;  %vm17307_vm11 = vcmp.ne.s32.totalorder %v11820_v37, 0  ;;  %vm17308_vm2 = vcmp.lt.s32.totalorder %v11820_v37, 0  ;;  %v759_v12 = vsel %vm12038_vm5, %v12093_v47, %v11752_v19  ;;  %v17418_v47 = vmov 0 }
  0x5b   : > { %v17305_v31 = vsel %vm12060_vm4, 4294967295, %v17304_v31  ;;  %vm12082_vm6 = vmand %vm17308_vm2, %vm17307_vm11  ;;  %vm17312_vm11 = vcmp.ne.s32.totalorder %v11825_v4, 0  ;;  %vm17313_vm2 = vcmp.lt.s32.totalorder %v11825_v4, 0  ;;  %17325 = vst [vmem:[#allocation17_spill] sm:$0xff] %v12131_v45  ;;  %v12140_v4 = vadd.s32 18, %v11867_v59 }
  0x5c   : > { %17306 = vst [vmem:[#allocation8_spill] sm:$0xff] %v17305_v31  ;;  %v17310_v26 = vsel %vm12082_vm6, 4294967295, %v17309_v26  ;;  %vm12104_vm6 = vmand %vm17313_vm2, %vm17312_vm11  ;;  %v12118_v31 = vadd.s32 18, %v11846_v2  ;;  %vm17320_vm11 = vcmp.ne.s32.totalorder %v11839_v63, 0  ;;  %vm17321_vm2 = vcmp.lt.s32.totalorder %v11839_v63, 0 }
  0x5d   : > { %17311 = vst [vmem:[#allocation9_spill] sm:$0xff] %v17310_v26  ;;  %v17315_v9 = vsel %vm12104_vm6, 4294967295, %v17314_v9  ;;  %v12115_v26 = vadd.s32 18, %v11839_v63  ;;  %vm12126_vm6 = vmand %vm17321_vm2, %vm17320_vm11  ;;  %vm17329_vm11 = vcmp.ne.s32.totalorder %v11846_v2, 0  ;;  %vm17330_vm2 = vcmp.lt.s32.totalorder %v11846_v2, 0 }
  0x5e   : > { %17316 = vst [vmem:[#allocation10_spill] sm:$0xff] %v17315_v9  ;;  %17319 = vst [vmem:[#allocation15_spill] sm:$0xff] %v12118_v31  ;;  %v17322_v9 = vmov 0  ;;  %v12137_v31 = vadd.s32 18, %v11864_v32  ;;  %v12162_v45 = vadd.s32 18, %v11884_v62  ;;  %v760_v7 = vsel %vm12060_vm4, %v12096_v3, %v11817_v10 }
  0x5f   : > { %17318 = vst [vmem:[#allocation14_spill] sm:$0xff] %v12115_v26  ;;  %v17323_v9 = vsel %vm12126_vm6, 4294967295, %v17322_v9  ;;  %v12134_v26 = vadd.s32 18, %v11856_v30  ;;  %17328 = vst [vmem:[#allocation20_spill] sm:$0xff] %v12140_v4  ;;  %v12159_v4 = vadd.s32 18, %v11879_v34  ;;  %v17557_v3 = vmov 0 }
  0x60   : > { %17324 = vst [vmem:[#allocation16_spill] sm:$0xff] %v17323_v9  ;;  %17327 = vst [vmem:[#allocation19_spill] sm:$0xff] %v12137_v31  ;;  %v17331_v9 = vmov 0  ;;  %v12156_v31 = vadd.s32 18, %v11876_v18  ;;  %v17382_v29 = vld [vmem:[#allocation11_spill] sm:$0xff] }
  0x61   : > { %17326 = vst [vmem:[#allocation18_spill] sm:$0xff] %v12134_v26  ;;  %vm12148_vm6 = vmand %vm17330_vm2, %vm17329_vm11  ;;  %v12153_v26 = vadd.s32 18, %v11873_v58  ;;  %vm17338_vm11 = vcmp.ne.s32.totalorder %v11849_v8, 0  ;;  %vm17339_vm2 = vcmp.lt.s32.totalorder %v11849_v8, 0 }
  0x62   : > { %v17332_v9 = vsel %vm12148_vm6, 4294967295, %v17331_v9  ;;  %17335 = vst [vmem:[#allocation23_spill] sm:$0xff] %v12156_v31  ;;  %17336 = vst [vmem:[#allocation24_spill] sm:$0xff] %v12159_v4  ;;  %v12175_v31 = vadd.s32 18, %v11887_v6  ;;  %v12178_v4 = vadd.s32 18, %v11890_v25  ;;  %v17347_v6 = vmov 0 }
  0x63   : > { %17333 = vst [vmem:[#allocation21_spill] sm:$0xff] %v17332_v9  ;;  %17334 = vst [vmem:[#allocation22_spill] sm:$0xff] %v12153_v26  ;;  %v17340_v9 = vmov 0  ;;  %v12184_v26 = vadd.s32 18, %v11897_v43  ;;  %v12206_v43 = vadd.s32 18, %v11910_v55 }
  0x64   : > { %17337 = vst [vmem:[#allocation25_spill] sm:$0xff] %v12162_v45  ;;  %vm12170_vm6 = vmand %vm17339_vm2, %vm17338_vm11  ;;  %v12181_v45 = vadd.s32 18, %v11893_v36  ;;  %vm17345_vm11 = vcmp.ne.s32.totalorder %v11856_v30, 0  ;;  %vm17346_vm2 = vcmp.lt.s32.totalorder %v11856_v30, 0 }
  0x65   : > { %v17341_v9 = vsel %vm12170_vm6, 4294967295, %v17340_v9  ;;  %17342 = vst [vmem:[#allocation26_spill] sm:$0xff] %v12178_v4  ;;  %17344 = vst [vmem:[#allocation28_spill] sm:$0xff] %v12184_v26  ;;  %v12197_v4 = vadd.s32 18, %v11900_v40  ;;  %v12203_v26 = vadd.s32 18, %v11907_v48  ;;  %v17355_v40 = vmov 0 }
  0x66   : > { %17343 = vst [vmem:[#allocation27_spill] sm:$0xff] %v12181_v45  ;;  %vm12192_vm6 = vmand %vm17346_vm2, %vm17345_vm11  ;;  %v12200_v45 = vadd.s32 18, %v11903_v44  ;;  %vm17353_vm11 = vcmp.ne.s32.totalorder %v11864_v32, 0  ;;  %vm17354_vm2 = vcmp.lt.s32.totalorder %v11864_v32, 0  ;;  %v17383_v10 = vld [vmem:[#allocation10_spill] sm:$0xff]  ;;  %v17388_v54 = vld [vmem:[#allocation15_spill] sm:$0xff] }
  0x67   : > { %v17348_v6 = vsel %vm12192_vm6, 4294967295, %v17347_v6  ;;  %17349 = vst [vmem:[#allocation29_spill] sm:$0xff] %v12197_v4  ;;  %17351 = vst [vmem:[#allocation31_spill] sm:$0xff] %v12203_v26  ;;  %v12222_v26 = vadd.s32 18, %v11916_v28  ;;  %v12228_v4 = vadd.s32 18, %v11941_v38  ;;  %v17386_v15 = vld [vmem:[#allocation16_spill] sm:$0xff] }
  0x68   : > { %17350 = vst [vmem:[#allocation30_spill] sm:$0xff] %v12200_v45  ;;  %17352 = vst [vmem:[#allocation32_spill] sm:$0xff] %v12206_v43  ;;  %v12219_v45 = vadd.s32 18, %v11913_v27  ;;  %v12225_v43 = vadd.s32 18, %v11929_v17  ;;  %vm17387_vm4 = vnez %v17386_v15 }
  0x69   : > { %vm12214_vm6 = vmand %vm17354_vm2, %vm17353_vm11  ;;  %17358 = vst [vmem:[#allocation34_spill] sm:$0xff] %v12222_v26  ;;  %vm17361_vm11 = vcmp.ne.s32.totalorder %v11867_v59, 0  ;;  %vm17362_vm2 = vcmp.lt.s32.totalorder %v11867_v59, 0  ;;  %v751_v26 = vsel %vm11967_vm1, %v12049_v60, %v11700_v50  ;;  %v754_v50 = vsel %vm11996_vm3, %v12068_v5, %v11709_v56  ;;  %v17397_v60 = vld [vmem:[#allocation18_spill] sm:$0xff]  ;;  %v17401_v5 = vld [vmem:[#allocation20_spill] sm:$0xff] }
  0x6a   : > { %v17356_v40 = vsel %vm12214_vm6, 4294967295, %v17355_v40  ;;  %17357 = vst [vmem:[#allocation33_spill] sm:$0xff] %v12219_v45  ;;  %17359 = vst [vmem:[#allocation35_spill] sm:$0xff] %v12225_v43  ;;  %v749_v43 = vsel %vm11951_vm12, %v12043_v61, %v11692_v42  ;;  %v752_v45 = vsel %vm11975_vm14, %v12052_v0, %v11703_v51  ;;  %vm17365_vm12 = vcmp.ne.s32.totalorder %v11873_v58, 0  ;;  %v17389_v1 = vld [vmem:[#allocation21_spill] sm:$0xff]  ;;  %v17399_v0 = vld [vmem:[#allocation19_spill] sm:$0xff] }
  0x6b   : > { %17360 = vst [vmem:[#allocation36_spill] sm:$0xff] %v12228_v4  ;;  %vm12236_vm6 = vmand %vm17362_vm2, %vm17361_vm11  ;;  %v750_v4 = vsel %vm11959_vm8, %v12046_v16, %v11697_v49  ;;  %v753_v49 = vsel %vm11988_vm9, %v12065_v33, %v11706_v57  ;;  %vm17369_vm1 = vnez %v17285_v21  ;;  %vm17370_vm9 = vcmp.ne.s32.totalorder %v11876_v18, 0  ;;  %v17385_v21 = vld [vmem:[#allocation14_spill] sm:$0xff]  ;;  %v17395_v16 = vld [vmem:[#allocation17_spill] sm:$0xff] }
  0x6c   : > { %vm12262_vm10 = vmand %vm17366_vm13, %vm17365_vm12  ;;  %v755_v51 = vsel %vm17369_vm1, %v12071_v35, %v11712_v52  ;;  %vm17371_vm13 = vcmp.lt.s32.totalorder %v11876_v18, 0  ;;  %v757_v56 = vsel %vm12022_vm7, %v12087_v46, %v11736_v14  ;;  %v758_v52 = vsel %vm12030_vm0, %v12090_v53, %v11749_v24  ;;  %v17379_v24 = vld [vmem:[#allocation9_spill] sm:$0xff]  ;;  %v17409_v44 = vld [vmem:[#allocation24_spill] sm:$0xff] }
  0x6d   : > { %vm12288_vm12 = vmand %vm17371_vm13, %vm17370_vm9  ;;  %vm17375_vm7 = vcmp.ne.s32.totalorder %v11879_v34, 0  ;;  %vm17376_vm1 = vcmp.lt.s32.totalorder %v11879_v34, 0  ;;  %vm17380_vm5 = vnez %v17379_v24  ;;  %vm17384_vm0 = vnez %v17383_v10  ;;  %v17410_v46 = vld [vmem:[#allocation25_spill] sm:$0xff] }
  0x6e   : > { %vm12314_vm9 = vmand %vm17376_vm1, %vm17375_vm7  ;;  %v761_v19 = vsel %vm17380_vm5, %v12109_v20, %v11820_v37  ;;  %v762_v22 = vsel %vm17384_vm0, %v17382_v29, %v17381_v13  ;;  %v763_v11 = vsel %vm17387_vm4, %v17385_v21, %v11839_v63  ;;  %vm17390_vm13 = vnez %v17389_v1  ;;  %v17438_v20 = vld [vmem:[#allocation5_spill] sm:$0xff]  ;;  %v17468_v13 = vld [vmem:[#allocation7_spill] sm:$0xff] }
  0x6f   : > { %v764_v61 = vsel %vm17390_vm13, %v17388_v54, %v11846_v2  ;;  %vm17391_vm5 = vcmp.ne.s32.totalorder %v11884_v62, 0  ;;  %vm17396_vm0 = vnez %v17341_v9  ;;  %vm17398_vm4 = vnez %v17348_v6  ;;  %v17407_v6 = vld [vmem:[#allocation22_spill] sm:$0xff] }
  0x70   : > { %vm12340_vm3 = vmand %vm17392_vm15, %vm17391_vm5  ;;  %v765_v63 = vsel %vm17396_vm0, %v17395_v16, %v11849_v8  ;;  %v766_v2 = vsel %vm17398_vm4, %v17397_v60, %v11856_v30  ;;  %vm17400_vm13 = vnez %v17356_v40  ;;  %v768_v35 = vsel %vm12236_vm6, %v17401_v5, %v11867_v59  ;;  %v17402_v8 = vld [vmem:[#allocation13_spill] sm:$0xff]  ;;  %v17408_v40 = vld [vmem:[#allocation23_spill] sm:$0xff] }
  0x71   : > { %v767_v33 = vsel %vm17400_vm13, %v17399_v0, %v11864_v32  ;;  %vm17403_vm0 = vcmp.ne.s32.totalorder %v17402_v8, 0  ;;  %vm17404_vm1 = vcmp.lt.s32.totalorder %v17402_v8, 0  ;;  %v769_v32 = vsel %vm12262_vm10, %v17407_v6, %v11873_v58  ;;  %v17553_v58 = vld [vmem:[#allocation35_spill] sm:$0xff] }
  0x72   : > { %vm12366_vm7 = vmand %vm17404_vm1, %vm17403_vm0  ;;  %v770_v59 = vsel %vm12288_vm12, %v17408_v40, %v11876_v18  ;;  %v771_v39 = vsel %vm12314_vm9, %v17409_v44, %v11879_v34  ;;  %v772_v53 = vsel %vm12340_vm3, %v17410_v46, %v11884_v62  ;;  %vm17411_vm6 = vcmp.ne.s32.totalorder %v11890_v25, 0  ;;  %v17541_v44 = vld [vmem:[#allocation34_spill] sm:$0xff] }
  0x73   : > { %vm17412_vm1 = vcmp.lt.s32.totalorder %v11890_v25, 0  ;;  %v773_v18 = vsel %vm12366_vm7, %v12175_v31, %v17402_v8  ;;  %vm12398_vm12 = vcmp.lt.s32.totalorder %v749_v43, 16  ;;  %v17415_v34 = vmov 0  ;;  %v17428_v43 = vld [vmem:[#allocation26_spill] sm:$0xff] }
  0x74   : > { %vm12390_vm10 = vmand %vm17412_vm1, %vm17411_vm6  ;;  %v17416_v34 = vsel %vm12398_vm12, 4294967295, %v17415_v34  ;;  %vm12402_vm9 = vcmp.lt.s32.totalorder %v750_v4, 16  ;;  %vm12406_vm3 = vcmp.lt.s32.totalorder %v751_v26, 16  ;;  %v17421_v62 = vmov 0 }
  0x75   : > { %17417 = vst [vmem:[#allocation8_spill] sm:$0xff] %v17416_v34  ;;  %v17419_v47 = vsel %vm12402_vm9, 4294967295, %v17418_v47  ;;  %v17422_v62 = vsel %vm12406_vm3, 4294967295, %v17421_v62  ;;  %vm17424_vm4 = vcmp.ne.s32.totalorder %v11893_v36, 0  ;;  %vm17425_vm13 = vcmp.lt.s32.totalorder %v11893_v36, 0 }
  0x76   : > { %17420 = vst [vmem:[#allocation9_spill] sm:$0xff] %v17419_v47  ;;  %17423 = vst [vmem:[#allocation12_spill] sm:$0xff] %v17422_v62  ;;  %v774_v4 = vsel %vm12390_vm10, %v17428_v43, %v11890_v25  ;;  %vm12422_vm7 = vcmp.lt.s32.totalorder %v752_v45, 16  ;;  %v17429_v31 = vmov 0  ;;  %vm12426_vm6 = vcmp.lt.s32.totalorder %v753_v49, 16  ;;  %v17443_v25 = vld [vmem:[#allocation27_spill] sm:$0xff] }
  0x77   : > { %vm12414_vm0 = vmand %vm17425_vm13, %vm17424_vm4  ;;  %v17430_v31 = vsel %vm12422_vm7, 4294967295, %v17429_v31  ;;  %v17432_v26 = vmov 0  ;;  %vm12430_vm1 = vcmp.lt.s32.totalorder %v754_v50, 16  ;;  %v17435_v9 = vmov 0 }
  0x78   : > { %17431 = vst [vmem:[#allocation11_spill] sm:$0xff] %v17430_v31  ;;  %v17433_v26 = vsel %vm12426_vm6, 4294967295, %v17432_v26  ;;  %v17436_v9 = vsel %vm12430_vm1, 4294967295, %v17435_v9  ;;  %vm17439_vm4 = vcmp.ne.s32.totalorder %v17438_v20, 0  ;;  %vm17440_vm13 = vcmp.lt.s32.totalorder %v17438_v20, 0 }
  0x79   : > { %17434 = vst [vmem:[#allocation10_spill] sm:$0xff] %v17433_v26  ;;  %17437 = vst [vmem:[#allocation14_spill] sm:$0xff] %v17436_v9  ;;  %v775_v45 = vsel %vm12414_vm0, %v17443_v25, %v11893_v36  ;;  %vm12446_vm10 = vcmp.lt.s32.totalorder %v755_v51, 16  ;;  %v17444_v49 = vmov 0  ;;  %vm12450_vm15 = vcmp.lt.s32.totalorder %v756_v23, 16  ;;  %v17458_v36 = vld [vmem:[#allocation28_spill] sm:$0xff] }
  0x7a   : > { %vm12438_vm5 = vmand %vm17440_vm13, %vm17439_vm4  ;;  %v17445_v49 = vsel %vm12446_vm10, 4294967295, %v17444_v49  ;;  %v17447_v50 = vmov 0  ;;  %vm12454_vm14 = vcmp.lt.s32.totalorder %v757_v56, 16  ;;  %v17450_v57 = vmov 0 }
  0x7b   : > { %17446 = vst [vmem:[#allocation16_spill] sm:$0xff] %v17445_v49  ;;  %v17448_v50 = vsel %vm12450_vm15, 4294967295, %v17447_v50  ;;  %v17451_v57 = vsel %vm12454_vm14, 4294967295, %v17450_v57  ;;  %vm17454_vm4 = vcmp.ne.s32.totalorder %v17453_v41, 0  ;;  %vm17455_vm13 = vcmp.lt.s32.totalorder %v17453_v41, 0 }
  0x7c   : > { %17449 = vst [vmem:[#allocation15_spill] sm:$0xff] %v17448_v50  ;;  %17452 = vst [vmem:[#allocation21_spill] sm:$0xff] %v17451_v57  ;;  %v776_v51 = vsel %vm12438_vm5, %v17458_v36, %v17438_v20  ;;  %vm12470_vm0 = vcmp.lt.s32.totalorder %v758_v52, 16  ;;  %v17459_v23 = vmov 0  ;;  %vm12474_vm2 = vcmp.lt.s32.totalorder %v759_v12, 16  ;;  %v17473_v52 = vld [vmem:[#allocation29_spill] sm:$0xff] }
  0x7d   : > { %vm12462_vm8 = vmand %vm17455_vm13, %vm17454_vm4  ;;  %v17460_v23 = vsel %vm12470_vm0, 4294967295, %v17459_v23  ;;  %v17462_v56 = vmov 0  ;;  %vm12478_vm11 = vcmp.lt.s32.totalorder %v760_v7, 16  ;;  %v17465_v24 = vmov 0 }
  0x7e   : > { %17461 = vst [vmem:[#allocation17_spill] sm:$0xff] %v17460_v23  ;;  %v17463_v56 = vsel %vm12474_vm2, 4294967295, %v17462_v56  ;;  %v17466_v24 = vsel %vm12478_vm11, 4294967295, %v17465_v24  ;;  %vm17469_vm4 = vcmp.ne.s32.totalorder %v17468_v13, 0  ;;  %vm17470_vm13 = vcmp.lt.s32.totalorder %v17468_v13, 0 }
  0x7f   : > { %17464 = vst [vmem:[#allocation18_spill] sm:$0xff] %v17463_v56  ;;  %17467 = vst [vmem:[#allocation19_spill] sm:$0xff] %v17466_v24  ;;  %v777_v12 = vsel %vm12462_vm8, %v17473_v52, %v17453_v41  ;;  %vm12494_vm5 = vcmp.lt.s32.totalorder %v761_v19, 16  ;;  %v17474_v10 = vmov 0  ;;  %vm12498_vm0 = vcmp.lt.s32.totalorder %v762_v22, 16  ;;  %v17487_v19 = vld [vmem:[#allocation30_spill] sm:$0xff] }
  0x80   : > { %vm12486_vm14 = vmand %vm17470_vm13, %vm17469_vm4  ;;  %v17475_v10 = vsel %vm12494_vm5, 4294967295, %v17474_v10  ;;  %v17477_v7 = vmov 0  ;;  %vm12502_vm11 = vcmp.lt.s32.totalorder %v763_v11, 16  ;;  %v17480_v21 = vmov 0 }
  0x81   : > { %17476 = vst [vmem:[#allocation20_spill] sm:$0xff] %v17475_v10  ;;  %v17478_v7 = vsel %vm12498_vm0, 4294967295, %v17477_v7  ;;  %v17481_v21 = vsel %vm12502_vm11, 4294967295, %v17480_v21  ;;  %vm17483_vm4 = vcmp.ne.s32.totalorder %v11907_v48, 0  ;;  %vm17484_vm13 = vcmp.lt.s32.totalorder %v11907_v48, 0 }
  0x82   : > { %17479 = vst [vmem:[#allocation13_spill] sm:$0xff] %v17478_v7  ;;  %17482 = vst [vmem:[#allocation22_spill] sm:$0xff] %v17481_v21  ;;  %v778_v22 = vsel %vm12486_vm14, %v17487_v19, %v17468_v13  ;;  %vm12518_vm8 = vcmp.lt.s32.totalorder %v764_v61, 16  ;;  %v17488_v54 = vmov 0  ;;  %vm12522_vm0 = vcmp.lt.s32.totalorder %v765_v63, 16  ;;  %v17501_v61 = vld [vmem:[#allocation31_spill] sm:$0xff] }
  0x83   : > { %vm12510_vm2 = vmand %vm17484_vm13, %vm17483_vm4  ;;  %v17489_v54 = vsel %vm12518_vm8, 4294967295, %v17488_v54  ;;  %v17491_v11 = vmov 0  ;;  %vm12526_vm11 = vcmp.lt.s32.totalorder %v766_v2, 16  ;;  %v17494_v1 = vmov 0 }
  0x84   : > { %17490 = vst [vmem:[#allocation23_spill] sm:$0xff] %v17489_v54  ;;  %v17492_v11 = vsel %vm12522_vm0, 4294967295, %v17491_v11  ;;  %v17495_v1 = vsel %vm12526_vm11, 4294967295, %v17494_v1  ;;  %vm17497_vm4 = vcmp.ne.s32.totalorder %v11910_v55, 0  ;;  %vm17498_vm13 = vcmp.lt.s32.totalorder %v11910_v55, 0 }
  0x85   : > { %17493 = vst [vmem:[#allocation24_spill] sm:$0xff] %v17492_v11  ;;  %17496 = vst [vmem:[#allocation25_spill] sm:$0xff] %v17495_v1  ;;  %v779_v16 = vsel %vm12510_vm2, %v17501_v61, %v11907_v48  ;;  %vm12542_vm14 = vcmp.lt.s32.totalorder %v767_v33, 16  ;;  %v17502_v63 = vmov 0  ;;  %vm12546_vm0 = vcmp.lt.s32.totalorder %v768_v35, 16  ;;  %v17515_v48 = vld [vmem:[#allocation32_spill] sm:$0xff] }
  0x86   : > { %vm12534_vm5 = vmand %vm17498_vm13, %vm17497_vm4  ;;  %v17503_v63 = vsel %vm12542_vm14, 4294967295, %v17502_v63  ;;  %v17505_v60 = vmov 0  ;;  %vm12550_vm11 = vcmp.lt.s32.totalorder %v769_v32, 16  ;;  %v17508_v2 = vmov 0 }
  0x87   : > { %17504 = vst [vmem:[#allocation26_spill] sm:$0xff] %v17503_v63  ;;  %v17506_v60 = vsel %vm12546_vm0, 4294967295, %v17505_v60  ;;  %v17509_v2 = vsel %vm12550_vm11, 4294967295, %v17508_v2  ;;  %vm17511_vm4 = vcmp.ne.s32.totalorder %v11913_v27, 0  ;;  %vm17512_vm13 = vcmp.lt.s32.totalorder %v11913_v27, 0 }
  0x88   : > { %17507 = vst [vmem:[#allocation5_spill] sm:$0xff] %v17506_v60  ;;  %17510 = vst [vmem:[#allocation27_spill] sm:$0xff] %v17509_v2  ;;  %v780_v33 = vsel %vm12534_vm5, %v17515_v48, %v11910_v55  ;;  %vm12566_vm2 = vcmp.lt.s32.totalorder %v770_v59, 16  ;;  %v17516_v5 = vmov 0  ;;  %vm12570_vm0 = vcmp.lt.s32.totalorder %v771_v39, 16  ;;  %v17529_v55 = vld [vmem:[#allocation33_spill] sm:$0xff] }
  0x89   : > { %vm12558_vm8 = vmand %vm17512_vm13, %vm17511_vm4  ;;  %v17517_v5 = vsel %vm12566_vm2, 4294967295, %v17516_v5  ;;  %v17519_v35 = vmov 0  ;;  %vm12574_vm11 = vcmp.lt.s32.totalorder %v772_v53, 16  ;;  %v17522_v8 = vmov 0 }
  0x8a   : > { %17518 = vst [vmem:[#allocation6_spill] sm:$0xff] %v17517_v5  ;;  %v17520_v35 = vsel %vm12570_vm0, 4294967295, %v17519_v35  ;;  %v17523_v8 = vsel %vm12574_vm11, 4294967295, %v17522_v8  ;;  %vm17525_vm4 = vcmp.ne.s32.totalorder %v11916_v28, 0  ;;  %vm17526_vm13 = vcmp.lt.s32.totalorder %v11916_v28, 0 }
  0x8b   : > { %17521 = vst [vmem:[#allocation28_spill] sm:$0xff] %v17520_v35  ;;  %17524 = vst [vmem:[#allocation7_spill] sm:$0xff] %v17523_v8  ;;  %v781_v6 = vsel %vm12558_vm8, %v17529_v55, %v11913_v27  ;;  %vm12590_vm5 = vcmp.lt.s32.totalorder %v773_v18, 16  ;;  %v17530_v32 = vmov 0  ;;  %vm12594_vm2 = vcmp.lt.s32.totalorder %v774_v4, 16  ;;  %v17563_v4 = vld [vmem:[#allocation36_spill] sm:$0xff] }
  0x8c   : > { %vm12582_vm14 = vmand %vm17526_vm13, %vm17525_vm4  ;;  %v17531_v32 = vsel %vm12590_vm5, 4294967295, %v17530_v32  ;;  %v17533_v40 = vmov 0  ;;  %vm12598_vm11 = vcmp.lt.s32.totalorder %v775_v45, 16  ;;  %v17536_v59 = vmov 0 }
  0x8d   : > { %17532 = vst [vmem:[#allocation29_spill] sm:$0xff] %v17531_v32  ;;  %v17534_v40 = vsel %vm12594_vm2, 4294967295, %v17533_v40  ;;  %v17537_v59 = vsel %vm12598_vm11, 4294967295, %v17536_v59  ;;  %vm17539_vm4 = vcmp.ne.s32.totalorder %v11929_v17, 0  ;;  %vm17540_vm13 = vcmp.lt.s32.totalorder %v11929_v17, 0 }
  0x8e   : > { %17535 = vst [vmem:[#allocation30_spill] sm:$0xff] %v17534_v40  ;;  %17538 = vst [vmem:[#allocation31_spill] sm:$0xff] %v17537_v59  ;;  %v782_v27 = vsel %vm12582_vm14, %v17541_v44, %v11916_v28  ;;  %vm12610_vm8 = vcmp.lt.s32.totalorder %v776_v51, 16  ;;  %v17542_v39 = vmov 0  ;;  %vm12614_vm5 = vcmp.lt.s32.totalorder %v777_v12, 16 }
  0x8f   : > { %vm711_vm0 = vmand %vm17540_vm13, %vm17539_vm4  ;;  %v17543_v39 = vsel %vm12610_vm8, 4294967295, %v17542_v39  ;;  %v17545_v46 = vmov 0  ;;  %vm12618_vm2 = vcmp.lt.s32.totalorder %v778_v22, 16  ;;  %v17548_v53 = vmov 0 }
  0x90   : > { %17544 = vst [vmem:[#allocation32_spill] sm:$0xff] %v17543_v39  ;;  %v17546_v46 = vsel %vm12614_vm5, 4294967295, %v17545_v46  ;;  %v17549_v53 = vsel %vm12618_vm2, 4294967295, %v17548_v53  ;;  %vm17551_vm11 = vcmp.ne.s32.totalorder %v11941_v38, 0  ;;  %vm17552_vm4 = vcmp.lt.s32.totalorder %v11941_v38, 0 }
  0x91   : > { %17547 = vst [vmem:[#allocation33_spill] sm:$0xff] %v17546_v46  ;;  %17550 = vst [vmem:[#allocation34_spill] sm:$0xff] %v17549_v53  ;;  %v783_v28 = vsel %vm711_vm0, %v17553_v58, %v11929_v17  ;;  %vm12628_vm14 = vcmp.lt.s32.totalorder %v779_v16, 16  ;;  %v17554_v18 = vmov 0  ;;  %vm12632_vm8 = vcmp.lt.s32.totalorder %v780_v33, 16 }
  0x92   : > { %vm712_vm13 = vmand %vm17552_vm4, %vm17551_vm11  ;;  %v17555_v18 = vsel %vm12628_vm14, 4294967295, %v17554_v18  ;;  %v17558_v3 = vsel %vm12632_vm8, 4294967295, %v17557_v3  ;;  %vm12636_vm5 = vcmp.lt.s32.totalorder %v781_v6, 16  ;;  %v17560_v43 = vmov 0 }
  0x93   : > { %17556 = vst [vmem:[#allocation35_spill] sm:$0xff] %v17555_v18  ;;  %17559 = vst [vmem:[#allocation37_spill] sm:$0xff] %v17558_v3  ;;  %v17561_v43 = vsel %vm12636_vm5, 4294967295, %v17560_v43  ;;  %v784_v20 = vsel %vm712_vm13, %v17563_v4, %v11941_v38  ;;  %vm12642_vm2 = vcmp.lt.s32.totalorder %v782_v27, 16  ;;  %v17564_v42 = vmov 0 }
  0x94   : > { %17562 = vst [vmem:[#allocation38_spill] sm:$0xff] %v17561_v43  ;;  %v17565_v42 = vsel %vm12642_vm2, 4294967295, %v17564_v42  ;;  %vm12646_vm11 = vcmp.lt.s32.totalorder %v783_v28, 16  ;;  %v17567_v17 = vmov 0  ;;  %vm12650_vm0 = vcmp.lt.s32.totalorder %v784_v20, 16 }
  0x95   : > { %17566 = vst [vmem:[#allocation36_spill] sm:$0xff] %v17565_v42  ;;  %v17568_v17 = vsel %vm12646_vm11, 4294967295, %v17567_v17  ;;  %v17570_v25 = vmov 0 }
  0x96   : > { %17569 = vst [vmem:[#allocation39_spill] sm:$0xff] %v17568_v17  ;;  %v17571_v25 = vsel %vm12650_vm0, 4294967295, %v17570_v25 }
  0x97   : > { %17572 = vst [vmem:[#allocation40_spill] sm:$0xff] %v17571_v25 }
  0x98 LB: >> { %s9475_s23 = sshll.u32 %s11415_s22, 4  ;;  %s9400_s24 = smul.u32 18, %s11415_s22  ;;  %vm17088_vm4 = vcmask 31744   ;;  %vm883_vm13 = vcmask 25601   ;;  %vm887_vm5 = vcmask 30726   ;;  %s11415_s22 = sphi %s11413_s22, %s870_s22  }
  0x99   : >> { %s872_s25 = scalar_lea.vmem %s11508_s18, %s9475_s23  ;;  %s870_s22 = sadd.s32 1, %s11415_s22  }
  0x9a   : >> { %v873_v38 = vld [vmem:[%s872_s25] sm:$0xff]  ;;  %v874_v45 = vld [vmem:[%s872_s25 + $0x8] sm:$0xff]  ;;  %s9401_s26 = scalar_lea.vmem [#allocation2], %s9400_s24  ;;  %p867_p4 = scmp.ge.s32.totalorder %s870_s22, 16  }
  0x9b   : >> { %9476 = vst.msk [vmem:[%s9401_s26 + $0x13] sm:$0xff] %vm17088_vm4, %v873_v38  ;;  %9477 = vst.msk [vmem:[%s9401_s26 + $0x1b] sm:$0xff] %vm17088_vm4, %v874_v45  ;;  %v9521_v41 = vld [vmem:[%s17013_s1 + $0x2] sm:$0x3] (%p867_p4)  ;;  %vm17089_vm0 = vcmask (%p867_p4), 1041408   ;;  %s11417_s27 = smov (%p867_p4), 0  }
  0x9c   : >> { %9478 = vst.msk [vmem:[%s9401_s26 + $0x11] sm:$0x2] %vm883_vm13, %v873_v38  ;;  %869 = sbr.rel (!%p867_p4) target bundleno = 152 (0x98), region = 111  ;;  %v1185_v14 = vld [vmem:[%s17013_s1] sm:$0x3] (%p867_p4)  ;;  %11148 = vmatprep.subr.msk.bf16.mxu0 (%p867_p4), %vm17089_vm0, %v9521_v41  ;;  %v1487_v51 = vsel (%p867_p4), %vm17089_vm0, %v9521_v41, 0 }
  0x9d   : >> { %9479 = vst.msk [vmem:[%s9401_s26 + $0x1d] sm:$0x40] %vm887_vm5, %v874_v45  ;;  %11149 = vmatprep.subr.msk.bf16.mxu1 (%p867_p4), %vm17089_vm0, %v1185_v14  ;;  %v1703_v13 = vsel (%p867_p4), %vm17089_vm0, %v1185_v14, 0  ;;  %10465 = vmatpush3.bf16.msra.mxu0 (%p867_p4), %v1487_v51  ;;  %vm17573_vm5 = vcmask (%p867_p4), 25600   ;;  %v12673_v19 = vld [vmem:[%s17013_s1 + $0x4] sm:$0x3] (%p867_p4) }
  0x9e   : > { %10503 = vmatpush3.bf16.msra.mxu1 (%p867_p4), %v1703_v13  ;;  %11150 = vmatprep.subr.msk.bf16.mxu0 (%p867_p4), %vm17089_vm0, %v12673_v19  ;;  %vm17574_vm13 = vcmask (%p867_p4), 27648   ;;  %v12949_v56 = vld [vmem:[%s17013_s1 + $0xa] sm:$0x3] (%p867_p4) }
  0xa4   : > { %v889_v36 = vld [vmem:[#allocation2 + $0x24] sm:$0xff]  ;;  %v890_v29 = vld [vmem:[#allocation2 + $0x2c] sm:$0xff]  ;;  %v891_v52 = vld [vmem:[#allocation2 + $0x34] sm:$0x3] }
  0xa5   : > { %893 = vst.msk [vmem:[#allocation2] sm:$0xff] %vm17088_vm4, %v889_v36  ;;  %v905_v12 = vld [vmem:[#allocation2 + $0x18] sm:$0xff]  ;;  %894 = vst.msk [vmem:[#allocation2 + $0x8] sm:$0xff] %vm17088_vm4, %v890_v29  ;;  %v906_v22 = vld [vmem:[#allocation2 + $0x20] sm:$0xff] }
  0xa6   : > { %895 = vst.msk [vmem:[#allocation2 + $0x10] sm:$0x3] %vm17573_vm5, %v891_v52  ;;  %v10043_v15 = vpack.c.bf16 %v905_v12, %v905_v12  ;;  %v907_v37 = vld [vmem:[#allocation2 + $0x28] sm:$0xff]  ;;  %v10044_v61 = vpack.c.bf16 %v906_v22, %v906_v22  ;;  %v908_v0 = vld [vmem:[#allocation2 + $0x30] sm:$0xff]  ;;  %v909_v48 = vld [vmem:[#allocation2 + $0x38] sm:$0xff] }
  0xa7   : > { %v10045_v16 = vpack.c.bf16 %v907_v37, %v907_v37  ;;  %v910_v33 = vld [vmem:[#allocation2 + $0x40] sm:$0xff]  ;;  %v10046_v30 = vpack.c.bf16 %v908_v0, %v908_v0  ;;  %v10047_v55 = vpack.c.bf16 %v909_v48, %v909_v48  ;;  %v911_v6 = vld [vmem:[#allocation2 + $0x48] sm:$0xff]  ;;  %v912_v27 = vld [vmem:[#allocation2 + $0x50] sm:$0xff] }
  0xa8   : > { %1111 = vst.msk [vmem:[#allocation3 + $0xc] sm:$0xf] %vm17574_vm13, %v10043_v15  ;;  %v10048_v44 = vpack.c.bf16 %v910_v33, %v910_v33  ;;  %v913_v58 = vld [vmem:[#allocation2 + $0x58] sm:$0xff]  ;;  %vm17575_vm5 = vmmov %vm17574_vm13  ;;  %v10049_v28 = vpack.c.bf16 %v911_v6, %v911_v6  ;;  %v10050_v4 = vpack.c.bf16 %v912_v27, %v912_v27  ;;  %v914_v38 = vld [vmem:[#allocation2 + $0x60] sm:$0xff] }
  0xa9   : > { %1112 = vst.msk [vmem:[#allocation3 + $0x10] sm:$0xf] %vm17575_vm5, %v10044_v61  ;;  %vm17576_vm4 = vmmov %vm17575_vm5  ;;  %v10051_v20 = vpack.c.bf16 %v913_v58, %v913_v58  ;;  %v915_v45 = vld [vmem:[#allocation2 + $0x68] sm:$0xff]  ;;  %v916_v41 = vld [vmem:[#allocation2 + $0x70] sm:$0xff]  ;;  %v10052_v14 = vpack.c.bf16 %v914_v38, %v914_v38 }
  0xaa   : > { %1113 = vst.msk [vmem:[#allocation3 + $0x14] sm:$0xf] %vm17576_vm4, %v10045_v16  ;;  %vm17577_vm0 = vmmov %vm17576_vm4  ;;  %v10053_v36 = vpack.c.bf16 %v915_v45, %v915_v45  ;;  %v917_v51 = vld [vmem:[#allocation2 + $0x78] sm:$0xff]  ;;  %v10054_v13 = vpack.c.bf16 %v916_v41, %v916_v41  ;;  %v918_v29 = vld [vmem:[#allocation2 + $0x80] sm:$0xff] }
  0xab   : > { %1114 = vst.msk [vmem:[#allocation3 + $0x18] sm:$0xf] %vm17577_vm0, %v10046_v30  ;;  %vm17578_vm2 = vmmov %vm17577_vm0  ;;  %v919_v52 = vld [vmem:[#allocation2 + $0x88] sm:$0xff]  ;;  %v10055_v12 = vpack.c.bf16 %v917_v51, %v917_v51  ;;  %v10056_v15 = vpack.c.bf16 %v918_v29, %v918_v29  ;;  %v920_v37 = vld [vmem:[#allocation2 + $0x90] sm:$0xff] }
  0xac   : > { %1115 = vst.msk [vmem:[#allocation3 + $0x1c] sm:$0xf] %vm17578_vm2, %v10047_v55  ;;  %vm17579_vm13 = vmmov %vm17577_vm0  ;;  %v10057_v22 = vpack.c.bf16 %v919_v52, %v919_v52  ;;  %v921_v61 = vld [vmem:[#allocation2 + $0x98] sm:$0xff]  ;;  %v922_v16 = vld [vmem:[#allocation2 + $0xa0] sm:$0xff]  ;;  %v10058_v48 = vpack.c.bf16 %v920_v37, %v920_v37 }
  0xad   : > { %1116 = vst.msk [vmem:[#allocation3 + $0x20] sm:$0xf] %vm17579_vm13, %v10048_v44  ;;  %vm17580_vm5 = vmmov %vm17577_vm0  ;;  %v902_v0 = vld [vmem:[#allocation2] sm:$0xff]  ;;  %v10059_v33 = vpack.c.bf16 %v921_v61, %v921_v61  ;;  %v923_v30 = vld [vmem:[#allocation2 + $0xa8] sm:$0xff]  ;;  %v10060_v55 = vpack.c.bf16 %v922_v16, %v922_v16 }
  0xae   : > { %1117 = vst.msk [vmem:[#allocation3 + $0x24] sm:$0xf] %vm17580_vm5, %v10049_v28  ;;  %vm17581_vm4 = vmmov %vm17577_vm0  ;;  %v924_v6 = vld [vmem:[#allocation2 + $0xb0] sm:$0xff]  ;;  %v903_v44 = vld [vmem:[#allocation2 + $0x8] sm:$0xff]  ;;  %v10040_v58 = vpack.c.bf16 %v902_v0, %v902_v0  ;;  %v10061_v28 = vpack.c.bf16 %v923_v30, %v923_v30 }
  0xaf   : > { %1118 = vst.msk [vmem:[#allocation3 + $0x28] sm:$0xf] %vm17581_vm4, %v10050_v4  ;;  %vm17582_vm11 = vmmov %vm17577_vm0  ;;  %v904_v27 = vld [vmem:[#allocation2 + $0x10] sm:$0xff]  ;;  %v925_v4 = vld [vmem:[#allocation2 + $0xb8] sm:$0xff]  ;;  %v10041_v38 = vpack.c.bf16 %v903_v44, %v903_v44 }
  0xb0   : > { %1119 = vst.msk [vmem:[#allocation3 + $0x2c] sm:$0xf] %vm17582_vm11, %v10051_v20  ;;  %vm17583_vm2 = vmmov %vm17577_vm0  ;;  %v10062_v20 = vpack.c.bf16 %v924_v6, %v924_v6  ;;  %v10042_v45 = vpack.c.bf16 %v904_v27, %v904_v27  ;;  %v10063_v41 = vpack.c.bf16 %v925_v4, %v925_v4  ;;  %v928_v51 = vld [vmem:[#allocation2 + $0xd0] sm:$0xff]  ;;  %v929_v52 = vld [vmem:[#allocation2 + $0xd8] sm:$0xff] }
  0xb1   : > { %1120 = vst.msk [vmem:[#allocation3 + $0x30] sm:$0xf] %vm17583_vm2, %v10052_v14  ;;  %vm17584_vm13 = vmmov %vm17577_vm0  ;;  %v926_v14 = vld [vmem:[#allocation2 + $0xc0] sm:$0xff]  ;;  %v12704_v61 = vld [vmem:[#allocation3 + $0x10] sm:$0xff]  }
  0xb2   : > { %1121 = vst.msk [vmem:[#allocation3 + $0x34] sm:$0xf] %vm17577_vm0, %v10053_v36  ;;  %vm17585_vm11 = vmmov %vm17577_vm0  ;;  %v927_v36 = vld [vmem:[#allocation2 + $0xc8] sm:$0xff]  ;;  %v1303_v6 = vshrl.u32 %v12704_v61, 16  ;;  %v938_v17 = vld [vmem:[#allocation2 + $0x120] sm:$0xff] }
  0xb3   : > { %1122 = vst.msk [vmem:[#allocation3 + $0x38] sm:$0xf] %vm17584_vm13, %v10054_v13  ;;  %vm17586_vm5 = vmmov %vm17577_vm0  ;;  %v10064_v13 = vpack.c.bf16 %v926_v14, %v926_v14  ;;  %v10065_v29 = vpack.c.bf16 %v927_v36, %v927_v36  ;;  %v12708_v16 = vld [vmem:[#allocation3 + $0x18] sm:$0xff]   ;;  %v10076_v53 = vpack.c.bf16 %v938_v17, %v938_v17  ;;  %v12834_v40 = vld [vmem:[#allocation3 + $0x10] sm:$0xff]  }
  0xb4   : > { %1123 = vst.msk [vmem:[#allocation3 + $0x3c] sm:$0xf] %vm17585_vm11, %v10055_v12  ;;  %vm17587_vm4 = vmmov %vm17577_vm0  ;;  %v10066_v12 = vpack.c.bf16 %v928_v51, %v928_v51  ;;  %v1307_v44 = vshll.u32 %v12708_v16, 16  ;;  %v12836_v59 = vld [vmem:[#allocation3 + $0x18] sm:$0xff]   ;;  %v939_v24 = vld [vmem:[#allocation2 + $0x128] sm:$0xff]  ;;  %v3090_v26 = vrot.slane %v12834_v40, 2 }
  0xb5   : > { %1124 = vst.msk [vmem:[#allocation3 + $0x40] sm:$0xf] %vm17586_vm5, %v10056_v15  ;;  %vm17588_vm2 = vmmov %vm17577_vm0  ;;  %v930_v15 = vld [vmem:[#allocation2 + $0xe0] sm:$0xff]  ;;  %v12870_v60 = vld [vmem:[#allocation3 + $0x20] sm:$0xff]  }
  0xb6   : > { %1125 = vst.msk [vmem:[#allocation3 + $0x44] sm:$0xf] %vm17587_vm4, %v10057_v22  ;;  %vm17589_vm13 = vmmov %vm17577_vm0  ;;  %v10067_v22 = vpack.c.bf16 %v929_v52, %v929_v52  ;;  %v10068_v37 = vpack.c.bf16 %v930_v15, %v930_v15  ;;  %v1309_v51 = vrot.slane %v1307_v44, 1  ;;  %v931_v44 = vld [vmem:[#allocation2 + $0xe8] sm:$0xff] }
  0xb7   : > { %1126 = vst.msk [vmem:[#allocation3 + $0x48] sm:$0xf] %vm17588_vm2, %v10058_v48  ;;  %vm17590_vm11 = vmmov %vm17577_vm0  ;;  %v1299_v48 = vshll.u32 %v12704_v61, 16  ;;  %v896_v23 = vld [vmem:[#allocation2 + $0x10e] sm:$0xff] }
  0xb8   : > { %1127 = vst.msk [vmem:[#allocation3 + $0x4c] sm:$0xf] %vm17577_vm0, %v10059_v33  ;;  %vm17591_vm5 = vmmov %vm17577_vm0  ;;  %v12977_v50 = vld [vmem:[#allocation3 + $0x28] sm:$0xff]  }
  0xb9   : > { %1128 = vst.msk [vmem:[#allocation3 + $0x50] sm:$0xf] %vm17589_vm13, %v10060_v55  ;;  %vm17592_vm4 = vmmov %vm17577_vm0 }
  0xba   : > { %1108 = vst.msk [vmem:[#allocation3] sm:$0xf] %vm17590_vm11, %v10040_v58  ;;  %vm17593_vm2 = vmmov %vm17577_vm0 }
  0xbb   : > { %1129 = vst.msk [vmem:[#allocation3 + $0x54] sm:$0xf] %vm17591_vm5, %v10061_v28  ;;  %vm17594_vm13 = vmmov %vm17577_vm0 }
  0xbc   : > { %1130 = vst.msk [vmem:[#allocation3 + $0x58] sm:$0xf] %vm17592_vm4, %v10062_v20  ;;  %vm17595_vm8 = vmmov %vm17577_vm0  ;;  %v1301_v20 = vrot.slane %v1299_v48, 1 }
  0xbd   : > { %1109 = vst.msk [vmem:[#allocation3 + $0x4] sm:$0xf] %vm17593_vm2, %v10041_v38  ;;  %vm17596_vm11 = vmmov %vm17577_vm0  ;;  %v12721_v38 = vld [vmem:[#allocation3 + $0x20] sm:$0xff]  }
  0xbe   : > { %1110 = vst.msk [vmem:[#allocation3 + $0x8] sm:$0xf] %vm17577_vm0, %v10042_v45  ;;  %vm17597_vm5 = vmmov %vm17577_vm0  ;;  %v1305_v36 = vor.u32 %v1303_v6, %v1301_v20  ;;  %v12749_v25 = vld [vmem:[#allocation3 + $0x40] sm:$0xff]  }
  0xbf   : > { %1131 = vst.msk [vmem:[#allocation3 + $0x5c] sm:$0xf] %vm17594_vm13, %v10063_v41  ;;  %vm17598_vm4 = vmmov %vm17577_vm0  ;;  %v12725_v41 = vld [vmem:[#allocation3 + $0x28] sm:$0xff]   ;;  %vm17603_vm13 = vcmask 1041408   ;;  %v1347_v17 = vshll.u32 %v12749_v25, 16 }
  0xc0   : > { %1132 = vst.msk [vmem:[#allocation3 + $0x60] sm:$0xf] %vm17595_vm8, %v10064_v13  ;;  %vm17599_vm14 = vmmov %vm17577_vm0  ;;  %vm17600_vm8 = vcmask 31744   ;;  %v1981_v52 = vsel %vm17603_vm13, %v12673_v19, 0  ;;  %v1323_v6 = vshll.u32 %v12725_v41, 16  ;;  %v932_v19 = vld [vmem:[#allocation2 + $0xf0] sm:$0xff] }
  0xc1   : > { %1133 = vst.msk [vmem:[#allocation3 + $0x64] sm:$0xf] %vm17596_vm11, %v10065_v29  ;;  %v1149_v0 = vld [vmem:[#allocation3] sm:$0xf]  ;;  %vm17601_vm2 = vmmov %vm17600_vm8  ;;  %v10070_v42 = vpack.c.bf16 %v932_v19, %v932_v19  ;;  %vm17608_vm13 = vcmask 27648  }
  0xc2   : > { %1134 = vst.msk [vmem:[#allocation3 + $0x68] sm:$0xf] %vm17597_vm5, %v10066_v12  ;;  %vm17602_vm0 = vmmov %vm17601_vm2  ;;  %v1315_v12 = vshll.u32 %v12721_v38, 16 }
  0xc3   : > { %1135 = vst.msk [vmem:[#allocation3 + $0x6c] sm:$0xf] %vm17598_vm4, %v10067_v22  ;;  %v1311_v22 = vshrl.u32 %v12708_v16, 16  ;;  %vm17604_vm11 = vmmov %vm17602_vm0  ;;  %vm17209_vm4 = vcmask 1046528  }
  0xc4   : > { %1136 = vst.msk [vmem:[#allocation3 + $0x70] sm:$0xf] %vm17599_vm14, %v10068_v37  ;;  %v12711_v33 = vld [vmem:[#allocation3 + $0x4] sm:$0xf]  ;;  %vm17207_vm14 = vsmask.f32 7424  ;;  %vm17605_vm5 = vmmov %vm17602_vm0 }
  0xc5   : > { %v12713_v30 = vld [vmem:[#allocation3 + $0x8] sm:$0xff]   ;;  %v9522_v55 = vcombine.low %v1149_v0, %v12711_v33  ;;  %v12734_v37 = vld [vmem:[#allocation3 + $0x30] sm:$0xff]   ;;  %v1310_v48 = vsel %vm17207_vm14, %v1305_v36, %v1309_v51  ;;  %v10069_v36 = vpack.c.bf16 %v931_v44, %v931_v44  ;;  %v12764_v44 = vld [vmem:[%s17013_s1 + $0x8] sm:$0x3] }
  0xc6   : > { %v1291_v27 = vshll.u32 %v12713_v30, 16  ;;  %v1295_v58 = vshrl.u32 %v12713_v30, 16 }
  0xc7   : > { %v1284_v28 = vshrl.u32 %v9522_v55, 16  ;;  %v1286_v4 = vshll.u32 %v9522_v55, 16  ;;  %10504 = vmatprep.mubr.msk.bf16.mxu1 %vm17600_vm8, %v9522_v55  ;;  %v1319_v55 = vshrl.u32 %v12721_v38, 16  ;;  %vm17606_vm8 = vmmov %vm17602_vm0  ;;  %1137 = vst.msk [vmem:[#allocation3 + $0x74] sm:$0xf] %vm17608_vm13, %v10069_v36  ;;  %v12772_v36 = vld [vmem:[#allocation3 + $0x58] sm:$0xff]  }
  0xc8   : > { %v1293_v45 = vrot.slane %v1291_v27, 1  ;;  %10505 = vmatmul.mubr.msk.bf16.vlgmr.msra.gmra.mxu1 %vm17601_vm2, %v12713_v30  ;;  %v1317_v27 = vrot.slane %v1315_v12, 1  ;;  %vm17607_vm2 = vmmov %vm17602_vm0 }
  0xc9   : > { %v1288_v14 = vrot.slane %v1286_v4, 1  ;;  %10508 = vmatprep.mubr.msk.bf16.mxu1 %vm17602_vm0, %v12704_v61  ;;  %v934_v4 = vld [vmem:[#allocation2 + $0x100] sm:$0xff] }
  0xca   : > { %v1297_v13 = vor.u32 %v1295_v58, %v1293_v45  ;;  %v12742_v58 = vld [vmem:[#allocation3 + $0x38] sm:$0xff]   ;;  %v1321_v12 = vor.u32 %v1319_v55, %v1317_v27  ;;  %v10072_v55 = vpack.c.bf16 %v934_v4, %v934_v4 }
  0xcb   : > { %v1289_v29 = vor.u32 %v1288_v14, %v1284_v28  ;;  %v933_v28 = vld [vmem:[#allocation2 + $0xf8] sm:$0xff]  ;;  %v1331_v14 = vshll.u32 %v12734_v37, 16  ;;  %v1339_v19 = vshll.u32 %v12742_v58, 16 }
  0xcc   : > { %v1302_v15 = vsel %vm17207_vm14, %v1297_v13, %v1301_v20  ;;  %v1313_v20 = vor.u32 %v1311_v22, %v1309_v51  ;;  %v935_v13 = vld [vmem:[#allocation2 + $0x108] sm:$0xff]  ;;  %v9597_v51 = vld [vmem:[%s17013_s1 + $0x6] sm:$0x3]  ;;  %v1335_v22 = vshrl.u32 %v12734_v37, 16 }
  0xcd   : > { %v1294_v0 = vsel %vm17207_vm14, %v1289_v29, %v1293_v45  ;;  %v1327_v45 = vshrl.u32 %v12725_v41, 16  ;;  %v936_v29 = vld [vmem:[#allocation2 + $0x110] sm:$0xff] }
  0xce   : > { %10466 = vmatprep.mubr.msk.bf16.mxu0 %vm17604_vm11, %v1294_v0  ;;  %v937_v0 = vld [vmem:[#allocation2 + $0x118] sm:$0xff]  ;;  %vm17609_vm11 = vcmask 1041408   ;;  %v10074_v43 = vpack.c.bf16 %v936_v29, %v936_v29  ;;  %v1318_v4 = vsel %vm17207_vm14, %v1313_v20, %v1317_v27  ;;  %v1890_v27 = vrot.slane %v12713_v30, 1 }
  0xcf   : > { %10467 = vmatmul.mubr.msk.bf16.vlgmr.msra.gmra.mxu0 %vm17605_vm5, %v1302_v15  ;;  %v1325_v15 = vrot.slane %v1323_v6, 1  ;;  %11151 = vmatprep.subr.msk.bf16.mxu1 %vm17609_vm11, %v9597_v51  ;;  %v1882_v6 = vld [vmem:[#allocation3] sm:$0xe]  ;;  %vm17610_vm5 = vmmov %vm17608_vm13  ;;  %v10075_v3 = vpack.c.bf16 %v937_v0, %v937_v0  ;;  %v1892_v20 = vrot.slane %v12704_v61, 1  ;;  %v1333_v29 = vrot.slane %v1331_v14, 1 }
  0xd0   : > { %10541 = vmatpush3.bf16.msra.mxu0 %v1981_v52  ;;  %10470 = vmatprep.mubr.msk.bf16.mxu0 %vm17606_vm8, %v1310_v48  ;;  %v10071_v52 = vpack.c.bf16 %v933_v28, %v933_v28  ;;  %v12757_v48 = vld [vmem:[#allocation3 + $0x48] sm:$0xff]   ;;  %1138 = vst.msk [vmem:[#allocation3 + $0x78] sm:$0xf] %vm17610_vm5, %v10070_v42  ;;  %vm17611_vm8 = vmmov %vm17610_vm5  ;;  %v10073_v28 = vpack.c.bf16 %v935_v13, %v935_v13  ;;  %v1896_v61 = vrot.slane %v12721_v38, 1  ;;  %v1343_v14 = vshrl.u32 %v12742_v58, 16 }
  0xd1   : > { %10509 = vmatmul.mubr.msk.bf16.gmra.mxu1 %vm17607_vm2, %v12708_v16  ;;  %vm17612_vm2 = vmmov %vm17609_vm11  ;;  %v1326_v46 = vsel %vm17207_vm14, %v1321_v12, %v1325_v15  ;;  %v9578_v42 = vcombine.low %v1882_v6, %v12711_v33  ;;  %v1329_v13 = vor.u32 %v1327_v45, %v1325_v15  ;;  %v1355_v0 = vshll.u32 %v12757_v48, 16  ;;  %v12796_v12 = vld [vmem:[#allocation3 + $0x60] sm:$0xff]  }
  0xd2   : > { %10512 = vmatprep.mubr.msk.bf16.mxu1 %vm17602_vm0, %v12721_v38  ;;  %1139 = vst.msk [vmem:[#allocation3 + $0x7c] sm:$0xf] %vm17611_vm8, %v10071_v52  ;;  %11152 = vmatprep.subr.msk.bf16.mxu0 %vm17612_vm2, %v12764_v44  ;;  %vm17613_vm0 = vmmov %vm17610_vm5  ;;  %v1894_v33 = vrot.slane %v12708_v16, 1  ;;  %v1337_v30 = vor.u32 %v1335_v22, %v1333_v29  ;;  %v1341_v45 = vrot.slane %v1339_v19, 1  ;;  %v1371_v15 = vshll.u32 %v12772_v36, 16  ;;  %v12802_v52 = vld [vmem:[#allocation3 + $0x68] sm:$0xff]  }
  0xd3   : > { %1140 = vst.msk [vmem:[#allocation3 + $0x80] sm:$0xf] %vm17613_vm0, %v10072_v55  ;;  %vm17614_vm13 = vmmov %vm17612_vm2  ;;  %v1900_v55 = vrot.slane %v12734_v37, 1  ;;  %v1349_v6 = vrot.slane %v1347_v17, 1  ;;  %v1357_v19 = vrot.slane %v1355_v0, 1  ;;  %v1391_v8 = vshrl.u32 %v12802_v52, 16 }
  0xd4   : > { %v2420_v18 = vsel %vm17614_vm13, %v9597_v51, 0  ;;  %vm17615_vm11 = vmmov %vm17613_vm0  ;;  %v12811_v38 = vsel %vm17209_vm4, %v1894_v33, %v1896_v61  ;;  %v1334_v51 = vsel %vm17207_vm14, %v1329_v13, %v1333_v29  ;;  %v1342_v29 = vsel %vm17207_vm14, %v1337_v30, %v1341_v45  ;;  %v2196_v17 = vld [vmem:[#allocation3 + $0x8] sm:$0xe]  ;;  %v12831_v0 = vld [vmem:[#allocation3 + $0xc] sm:$0xf] }
  0xd5   : > { %1141 = vst.msk [vmem:[#allocation3 + $0x84] sm:$0xf] %vm17615_vm11, %v10073_v28  ;;  %vm17616_vm5 = vmmov %vm17613_vm0  ;;  %10579 = vmatpush3.bf16.msra.mxu1 %v2420_v18  ;;  %v12790_v18 = vsel %vm17209_vm4, %v1890_v27, %v1892_v20  ;;  %v1359_v28 = vshrl.u32 %v12757_v48, 16  ;;  %v1383_v30 = vshrl.u32 %v12796_v12, 16 }
  0xd6   : > { %1142 = vst.msk [vmem:[#allocation3 + $0x88] sm:$0xf] %vm17616_vm5, %v10074_v43  ;;  %vm17617_vm8 = vmmov %vm17613_vm0  ;;  %v12787_v43 = vld [vmem:[#allocation3 + $0x50] sm:$0xff]  }
  0xd7   : > { %1143 = vst.msk [vmem:[#allocation3 + $0x8c] sm:$0xf] %vm17617_vm8, %v10075_v3  ;;  %vm17618_vm2 = vmmov %vm17613_vm0  ;;  %vm17619_vm0 = vcmask 31744   ;;  %v1889_v3 = vrot.slane %v9578_v42, 1  ;;  %v1367_v42 = vshrl.u32 %v12787_v43, 16 }
  0xd8   : > { %1144 = vst.msk [vmem:[#allocation3 + $0x90] sm:$0xf] %vm17618_vm2, %v10076_v53  ;;  %10471 = vmatmul.mubr.msk.bf16.gmra.mxu0 %vm17619_vm0, %v1318_v4  ;;  %vm17620_vm13 = vmmov %vm17619_vm0  ;;  %v1898_v53 = vrot.slane %v12725_v41, 1  ;;  %v1363_v4 = vshll.u32 %v12787_v43, 16 }
  0xd9   : > { %10474 = vmatprep.mubr.msk.bf16.mxu0 %vm17620_vm13, %v1326_v46  ;;  %vm17621_vm11 = vmmov %vm17619_vm0  ;;  %v12805_v16 = vsel %vm17209_vm4, %v1889_v3, %v1890_v27  ;;  %v12808_v46 = vsel %vm17209_vm4, %v1892_v20, %v1894_v33  ;;  %v1375_v27 = vshrl.u32 %v12772_v36, 16  ;;  %v1379_v20 = vshll.u32 %v12796_v12, 16  ;;  %899 = vst.msk [vmem:[#allocation2 + $0x132] sm:$0xff] %vm17619_vm0, %v896_v23 }
  0xda   : > { %10513 = vmatmul.mubr.msk.bf16.gmra.mxu1 %vm17621_vm11, %v12725_v41  ;;  %vm17622_vm5 = vmmov %vm17619_vm0  ;;  %v1351_v41 = vshrl.u32 %v12749_v25, 16  ;;  %v12818_v22 = vsel %vm17209_vm4, %v1896_v61, %v1898_v53  ;;  %v12827_v13 = vsel %vm17209_vm4, %v1898_v53, %v1900_v55  ;;  %v1345_v3 = vor.u32 %v1343_v14, %v1341_v45  ;;  %v12840_v45 = vld [vmem:[#allocation3 + $0x70] sm:$0xff]  }
  0xdb   : > { %10516 = vmatprep.mubr.msk.bf16.mxu1 %vm17622_vm5, %v12734_v37  ;;  %v1373_v33 = vrot.slane %v1371_v15, 1  ;;  %v1387_v37 = vshll.u32 %v12802_v52, 16  ;;  %vm17623_vm8 = vmmov %vm17619_vm0  ;;  %v1365_v39 = vrot.slane %v1363_v4, 1  ;;  %v1361_v53 = vor.u32 %v1359_v28, %v1357_v19 }
  0xdc   : > { %v1353_v61 = vor.u32 %v1351_v41, %v1349_v6  ;;  %vm17624_vm2 = vmmov %vm17619_vm0  ;;  %v1381_v32 = vrot.slane %v1379_v20, 1  ;;  %v1902_v14 = vrot.slane %v12742_v58, 1  ;;  %v1350_v15 = vsel %vm17207_vm14, %v1345_v3, %v1349_v6  ;;  %v12846_v41 = vld [vmem:[#allocation3 + $0x78] sm:$0xff]   ;;  %v12876_v1 = vld [vmem:[#allocation3 + $0x80] sm:$0xff]  }
  0xdd   : > { %v12849_v4 = vcombine.low %v2196_v17, %v12831_v0  ;;  %v1904_v28 = vrot.slane %v12749_v25, 1  ;;  %vm17625_vm13 = vmmov %vm17619_vm0  ;;  %v1377_v20 = vor.u32 %v1375_v27, %v1373_v33  ;;  %v1906_v17 = vrot.slane %v12757_v48, 1 }
  0xde   : > { %v12856_v6 = vsel %vm17209_vm4, %v1900_v55, %v1902_v14  ;;  %v1358_v5 = vsel %vm17207_vm14, %v1353_v61, %v1357_v19  ;;  %v1395_v27 = vshll.u32 %v12840_v45, 16  ;;  %v1385_v35 = vor.u32 %v1383_v30, %v1381_v32  ;;  %v12878_v19 = vld [vmem:[#allocation3 + $0x88] sm:$0xff]   ;;  %vm17626_vm11 = vmmov %vm17619_vm0 }
  0xdf   : > { %v12861_v3 = vsel %vm17209_vm4, %v1902_v14, %v1904_v28  ;;  %v1403_v55 = vshll.u32 %v12846_v41, 16  ;;  %v2328_v2 = vrot.slane %v12849_v4, 1  ;;  %v12873_v14 = vsel %vm17209_vm4, %v1904_v28, %v1906_v17  ;;  %vm17627_vm5 = vmmov %vm17619_vm0 }
  0xe0   : > { %10475 = vmatmul.mubr.msk.bf16.gmra.mxu0 %vm17623_vm8, %v1334_v51  ;;  %v1369_v51 = vor.u32 %v1367_v42, %v1365_v39  ;;  %v1910_v61 = vrot.slane %v12772_v36, 1  ;;  %v12887_v30 = vsel %vm17207_vm14, %v1377_v20, %v1381_v32  ;;  %v1399_v63 = vshrl.u32 %v12840_v45, 16  ;;  %vm17628_vm8 = vmmov %vm17619_vm0 }
  0xe1   : > { %10478 = vmatprep.mubr.msk.bf16.mxu0 %vm17624_vm2, %v1342_v29  ;;  %v1389_v29 = vrot.slane %v1387_v37, 1  ;;  %v1908_v37 = vrot.slane %v12787_v43, 1  ;;  %v1405_v32 = vrot.slane %v1403_v55, 1  ;;  %v1916_v20 = vrot.slane %v12840_v45, 1  ;;  %vm17629_vm2 = vmmov %vm17619_vm0 }
  0xe2   : > { %10517 = vmatmul.mubr.msk.bf16.gmra.mxu1 %vm17619_vm0, %v12742_v58  ;;  %v2329_v58 = vrot.slane %v12834_v40, 1  ;;  %v1374_v42 = vsel %vm17207_vm14, %v1369_v51, %v1373_v33  ;;  %v1914_v33 = vrot.slane %v12802_v52, 1  ;;  %v1397_v51 = vrot.slane %v1395_v27, 1 }
  0xe3   : > { %10520 = vmatprep.mubr.msk.bf16.mxu1 %vm17625_vm13, %v12749_v25  ;;  %v1366_v25 = vsel %vm17207_vm14, %v1361_v53, %v1365_v39  ;;  %v12881_v39 = vsel %vm17209_vm4, %v1906_v17, %v1908_v37  ;;  %v1912_v53 = vrot.slane %v12796_v12, 1  ;;  %v1393_v28 = vor.u32 %v1391_v8, %v1389_v29  ;;  %vm17631_vm13 = vmmov %vm17619_vm0 }
  0xe4   : > { %v1407_v17 = vshrl.u32 %v12846_v41, 16  ;;  %v12894_v11 = vsel %vm17209_vm4, %v1908_v37, %v1910_v61  ;;  %v12902_v8 = vsel %vm17207_vm14, %v1385_v35, %v1389_v29  ;;  %v1411_v27 = vshll.u32 %v12876_v1, 16 }
  0xe5   : > { %v12897_v54 = vsel %vm17209_vm4, %v1910_v61, %v1912_v53  ;;  %v1419_v37 = vshll.u32 %v12878_v19, 16  ;;  %v1920_v35 = vrot.slane %v12876_v1, 1  ;;  %v1401_v29 = vor.u32 %v1399_v63, %v1397_v51 }
  0xe6   : > { %v17630_v55 = vrot.slane %v12836_v59, 1  ;;  %v12923_v7 = vsel %vm17209_vm4, %v1914_v33, %v1916_v20  ;;  %v12927_v21 = vsel %vm17209_vm4, %v2328_v2, %v2329_v58  ;;  %v1409_v2 = vor.u32 %v1407_v17, %v1405_v32 }
  0xe8   : > { %10479 = vmatmul.mubr.msk.bf16.gmra.mxu0 %vm17626_vm11, %v1350_v15  ;;  %v12904_v15 = vld [vmem:[#allocation3 + $0x90] ss:$0 sps:$4 sm:$0x11]   ;;  %v12919_v61 = vsel %vm17209_vm4, %v2329_v58, %v17630_v55  ;;  %v12936_v55 = vsel %vm17207_vm14, %v1393_v28, %v1397_v51  ;;  %v12942_v58 = vrot.slane %v1411_v27, 1  ;;  %v12953_v28 = vsel %vm17207_vm14, %v1401_v29, %v1405_v32 }
  0xe9   : > { %10482 = vmatprep.mubr.msk.bf16.mxu0 %vm17627_vm5, %v1358_v5  ;;  %v12907_v5 = vsel %vm17209_vm4, %v1912_v53, %v1914_v33  ;;  %v1922_v33 = vrot.slane %v12878_v19, 1  ;;  %vm17632_vm11 = vcmask 1041408   ;;  %vm17633_vm5 = vmmov %vm17619_vm0  ;;  %v2646_v32 = vshll.u32 %v12849_v4, 16 }
  0xea   : > { %10521 = vmatmul.mubr.msk.bf16.gmra.mxu1 %vm17628_vm8, %v12757_v48  ;;  %v1918_v48 = vrot.slane %v12846_v41, 1  ;;  %11153 = vmatprep.subr.msk.bf16.mxu1 %vm17632_vm11, %v12949_v56  ;;  %vm17634_vm8 = vcmask 27648   ;;  %v2651_v27 = vshrl.u32 %v12834_v40, 16  ;;  %v2663_v29 = vshll.u32 %v12836_v59, 16 }
  0xeb   : > { %10524 = vmatprep.mubr.msk.bf16.mxu1 %vm17629_vm2, %v12787_v43  ;;  %v1924_v43 = vrot.slane %v12904_v15, 1  ;;  %v12957_v23 = vsel %vm17209_vm4, %v1920_v35, %v1922_v33  ;;  %vm17635_vm2 = vmmov %vm17619_vm0  ;;  %vm17206_vm0 = vsmask.f32 6400  ;;  %vm17208_vm11 = vcmask 1045504  }
  0xec   : > { %v12930_v10 = vsel %vm17209_vm4, %v1916_v20, %v1918_v48  ;;  %v12933_v63 = vsel %vm17209_vm4, %v1918_v48, %v1920_v35  ;;  %v12944_v20 = vrot.slane %v1419_v37, 1  ;;  %v10077_v48 = vpack.c.bf16 %v939_v24, %v939_v24  ;;  %v3082_v24 = vld [vmem:[#allocation3 + $0x8] sm:$0xc] }
  0xed   : > { %v12960_v17 = vsel %vm17209_vm4, %v1922_v33, %v1924_v43  ;;  %v2654_v37 = vshll.u32 %v12834_v40, 16  ;;  %v2660_v35 = vshrl.u32 %v12836_v59, 16  ;;  %v2648_v33 = vrot.slane %v2646_v32, 2  ;;  %v12983_v32 = vld [vmem:[#allocation3 + $0x30] sm:$0xff]  }
  0xee   : > { %1145 = vst.msk [vmem:[#allocation3 + $0x94] sm:$0xf] %vm17634_vm8, %v10077_v48  ;;  %v2665_v53 = vrot.slane %v2663_v29, 2  ;;  %v2678_v40 = vshrl.u32 %v12977_v50, 16 }
  0xef   : > { %v2656_v48 = vrot.slane %v2654_v37, 2  ;;  %v2662_v51 = vrot.slane %v2660_v35, 1 }
  0xf0   : > { %10483 = vmatmul.mubr.msk.bf16.gmra.mxu0 %vm17631_vm13, %v1366_v25  ;;  %v2643_v25 = vshrl.u32 %v12849_v4, 16  ;;  %vm17636_vm13 = vmmov %vm17635_vm2  ;;  %v2653_v4 = vrot.slane %v2651_v27, 1 }
  0xf1   : > { %10486 = vmatprep.mubr.msk.bf16.mxu0 %vm17633_vm5, %v1374_v42  ;;  %v9656_v42 = vcombine.low %v3082_v24, %v12831_v0  ;;  %v3092_v0 = vrot.slane %v12836_v59, 2  ;;  %v2666_v31 = vor.u32 %v2665_v53, %v2662_v51  ;;  %vm17637_vm5 = vmmov %vm17635_vm2  ;;  %v12997_v53 = vld [vmem:[#allocation3 + $0x38] sm:$0xff]  }
  0xf2   : > { %10525 = vmatmul.mubr.msk.bf16.gmra.mxu1 %vm17635_vm2, %v12772_v36  ;;  %v2645_v43 = vrot.slane %v2643_v25, 1  ;;  %v940_v36 = vld [vmem:[#allocation2 + $0x130] sm:$0xff]  ;;  %v2657_v49 = vor.u32 %v2656_v48, %v2653_v4  ;;  %v2672_v25 = vshll.u32 %v12870_v60, 16 }
  0xf3   : > { %10528 = vmatprep.mubr.msk.bf16.mxu1 %vm17636_vm13, %v12796_v12  ;;  %v3089_v57 = vrot.slane %v9656_v42, 2  ;;  %v10078_v24 = vpack.c.bf16 %v940_v36, %v940_v36  ;;  %v2669_v12 = vshrl.u32 %v12870_v60, 16  ;;  %v12992_v35 = vsel %vm17208_vm11, %v3090_v26, %v3092_v0  ;;  %vm17638_vm13 = vmmov %vm17635_vm2 }
  0xf4   : > { %v2649_v9 = vor.u32 %v2648_v33, %v2645_v43  ;;  %v13001_v51 = vsel %vm17206_vm0, %v2657_v49, %v2666_v31  ;;  %v2674_v29 = vrot.slane %v2672_v25, 2  ;;  %v3094_v42 = vrot.slane %v12870_v60, 2  ;;  %v13015_v33 = vld [vmem:[#allocation3 + $0x40] sm:$0xff]  }
  0xf5   : > { %v12989_v37 = vsel %vm17208_vm11, %v3089_v57, %v3090_v26  ;;  %1146 = vst.msk [vmem:[#allocation3 + $0x98] sm:$0xf] %vm17634_vm8, %v10078_v24  ;;  %v2681_v57 = vshll.u32 %v12977_v50, 16  ;;  %v2680_v26 = vrot.slane %v2678_v40, 1  ;;  %v3096_v43 = vrot.slane %v12977_v50, 2  ;;  %v13030_v40 = vld [vmem:[#allocation3 + $0x48] sm:$0xff]   ;;  %vm17647_vm8 = vmmov %vm17635_vm2 }
  0xf6   : > { %v12986_v27 = vsel %vm17206_vm0, %v2649_v9, %v2657_v49  ;;  %v2671_v9 = vrot.slane %v2669_v12, 1  ;;  %v13013_v49 = vsel %vm17207_vm14, %v1409_v2, %v12942_v58  ;;  %v13021_v36 = vsel %vm17208_vm11, %v3092_v0, %v3094_v42 }
  0xf7   : > { %v2683_v48 = vrot.slane %v2681_v57, 2  ;;  %v13024_v24 = vsel %vm17208_vm11, %v3094_v42, %v3096_v43  ;;  %v2696_v12 = vshrl.u32 %v12997_v53, 16  ;;  %v17641_v2 = vshrl.u32 %v12876_v1, 16 }
  0xf8   : > { %10487 = vmatmul.mubr.msk.bf16.gmra.mxu0 %vm17637_vm5, %v12887_v30  ;;  %v2687_v30 = vshrl.u32 %v12983_v32, 16  ;;  %v2675_v4 = vor.u32 %v2674_v29, %v2671_v9  ;;  %vm17639_vm5 = vmmov %vm17635_vm2  ;;  %17640 = vst [vmem:[#allocation41_spill] sm:$0xff] %v13024_v24  ;;  %v2699_v0 = vshll.u32 %v12997_v53, 16  ;;  %v3098_v42 = vrot.slane %v12983_v32, 2 }
  0xf9   : > { %10490 = vmatprep.mubr.msk.bf16.mxu0 %vm17635_vm2, %v12902_v8  ;;  %v2690_v8 = vshll.u32 %v12983_v32, 16  ;;  %v1417_v25 = vor.u32 %v17641_v2, %v12942_v58  ;;  %v2684_v29 = vor.u32 %v2683_v48, %v2680_v26  ;;  %v2698_v57 = vrot.slane %v2696_v12, 1 }
  0xfa   : > { %10529 = vmatmul.mubr.msk.bf16.gmra.mxu1 %vm17638_vm13, %v12802_v52  ;;  %v2689_v52 = vrot.slane %v2687_v30, 1  ;;  %v13033_v9 = vsel %vm17206_vm0, %v2666_v31, %v2675_v4  ;;  %v3100_v30 = vrot.slane %v12997_v53, 2  ;;  %v2705_v58 = vshrl.u32 %v13015_v33, 16  ;;  %vm17650_vm13 = vmmov %vm17635_vm2 }
  0xfb   : > { %10532 = vmatprep.mubr.msk.bf16.mxu1 %vm17639_vm5, %v12840_v45  ;;  %17642 = vst [vmem:[#allocation42_spill] sm:$0xff] %v13033_v9  ;;  %v2692_v45 = vrot.slane %v2690_v8, 2  ;;  %v13039_v47 = vsel %vm17206_vm0, %v2675_v4, %v2684_v29  ;;  %v2708_v2 = vshll.u32 %v13015_v33, 16  ;;  %v17644_v31 = vshrl.u32 %v12878_v19, 16  ;;  %v13056_v4 = vld [vmem:[#allocation3 + $0x50] sm:$0xff]   ;;  %vm17651_vm5 = vmmov %vm17635_vm2 }
  0xfc   : > { %17643 = vst [vmem:[#allocation43_spill] sm:$0xff] %v13039_v47  ;;  %v2701_v48 = vrot.slane %v2699_v0, 2  ;;  %v13049_v8 = vsel %vm17208_vm11, %v3096_v43, %v3098_v42  ;;  %v13052_v12 = vsel %vm17208_vm11, %v3098_v42, %v3100_v30  ;;  %v17649_v43 = vshll.u32 %v12904_v15, 16 }
  0xfd   : > { %v2693_v62 = vor.u32 %v2692_v45, %v2689_v52  ;;  %v13046_v26 = vor.u32 %v17644_v31, %v12944_v20  ;;  %17645 = vst [vmem:[#allocation44_spill] sm:$0xff] %v13049_v8  ;;  %17646 = vst [vmem:[#allocation45_spill] sm:$0xff] %v13052_v12  ;;  %v2707_v45 = vrot.slane %v2705_v58, 1  ;;  %v2710_v34 = vrot.slane %v2708_v2, 2 }
  0xfe   : > { %v2714_v31 = vshrl.u32 %v13030_v40, 16  ;;  %v1429_v0 = vrot.slane %v17649_v43, 1  ;;  %v2702_v42 = vor.u32 %v2701_v48, %v2698_v57  ;;  %v2717_v12 = vshll.u32 %v13030_v40, 16 }
  0xff   : > { %v13059_v52 = vsel %vm17206_vm0, %v2684_v29, %v2693_v62  ;;  %v13070_v29 = vld [vmem:[#allocation3 + $0x58] sm:$0xff]   ;;  %v2711_v58 = vor.u32 %v2710_v34, %v2707_v45  ;;  %v2723_v47 = vshrl.u32 %v13056_v4, 16  ;;  %v1422_v15 = vsel %vm17207_vm14, %v1417_v25, %v12944_v20  ;;  %v13093_v25 = vld [vmem:[#allocation3 + $0x68] sm:$0xff]  }
 0x100   : > { %10491 = vmatmul.mubr.msk.bf16.gmra.mxu0 %vm17647_vm8, %v12936_v55  ;;  %17648 = vst [vmem:[#allocation46_spill] sm:$0xff] %v13059_v52  ;;  %v3102_v55 = vrot.slane %v13015_v33, 2  ;;  %v2716_v2 = vrot.slane %v2714_v31, 1  ;;  %v3104_v52 = vrot.slane %v13030_v40, 2  ;;  %v13081_v57 = vsel %vm17206_vm0, %v2693_v62, %v2702_v42  ;;  %vm17656_vm8 = vmmov %vm17635_vm2 }
 0x101   : > { %10494 = vmatprep.mubr.msk.bf16.mxu0 %vm17635_vm2, %v12953_v28  ;;  %v13078_v28 = vld [vmem:[#allocation3 + $0x60] sm:$0xff]   ;;  %17652 = vst [vmem:[#allocation47_spill] sm:$0xff] %v13081_v57  ;;  %v13087_v34 = vsel %vm17206_vm0, %v2702_v42, %v2711_v58  ;;  %v2725_v31 = vrot.slane %v2723_v47, 1  ;;  %v2726_v20 = vshll.u32 %v13056_v4, 16  ;;  %v2732_v43 = vshrl.u32 %v13070_v29, 16 }
 0x102   : > { %10533 = vmatmul.mubr.msk.bf16.gmra.mxu1 %vm17650_vm13, %v12846_v41  ;;  %v2719_v41 = vrot.slane %v2717_v12, 2  ;;  %v13084_v48 = vsel %vm17208_vm11, %v3100_v30, %v3102_v55  ;;  %17654 = vst [vmem:[#allocation49_spill] sm:$0xff] %v13087_v34  ;;  %v13090_v45 = vsel %vm17208_vm11, %v3102_v55, %v3104_v52  ;;  %v2735_v62 = vshll.u32 %v13070_v29, 16  ;;  %v13098_v30 = vld [vmem:[#allocation3 + $0x70] sm:$0xff]   ;;  %vm17657_vm13 = vmmov %vm17635_vm2 }
 0x103   : > { %10536 = vmatprep.mubr.msk.bf16.mxu1 %vm17651_vm5, %v12876_v1  ;;  %17653 = vst [vmem:[#allocation48_spill] sm:$0xff] %v13084_v48  ;;  %17655 = vst [vmem:[#allocation50_spill] sm:$0xff] %v13090_v45  ;;  %v3106_v12 = vrot.slane %v13056_v4, 2  ;;  %v2728_v57 = vrot.slane %v2726_v20, 2  ;;  %v3108_v42 = vrot.slane %v13070_v29, 2  ;;  %v2741_v55 = vshrl.u32 %v13078_v28, 16 }
 0x104   : > { %v2720_v1 = vor.u32 %v2719_v41, %v2716_v2  ;;  %v2744_v47 = vshll.u32 %v13078_v28, 16  ;;  %v2734_v34 = vrot.slane %v2732_v43, 1  ;;  %v2737_v2 = vrot.slane %v2735_v62, 2  ;;  %vm17658_vm5 = vmmov %vm17635_vm2 }
 0x105   : > { %v13107_v41 = vsel %vm17208_vm11, %v3104_v52, %v3106_v12  ;;  %v2729_v48 = vor.u32 %v2728_v57, %v2725_v31  ;;  %v13112_v20 = vsel %vm17208_vm11, %v3106_v12, %v3108_v42  ;;  %v2743_v8 = vrot.slane %v2741_v55, 1 }
 0x106   : > { %v13104_v45 = vsel %vm17206_vm0, %v2711_v58, %v2720_v1  ;;  %v2746_v24 = vrot.slane %v2744_v47, 2  ;;  %v2738_v9 = vor.u32 %v2737_v2, %v2734_v34  ;;  %v2750_v58 = vshrl.u32 %v13093_v25, 16 }
 0x107   : > { %v2753_v43 = vshll.u32 %v13093_v25, 16  ;;  %v3110_v62 = vrot.slane %v13078_v28, 2  ;;  %v3112_v57 = vrot.slane %v13093_v25, 2  ;;  %v2759_v31 = vshrl.u32 %v13098_v30, 16 }
 0x108   : > { %10495 = vmatmul.mubr.msk.bf16.gmra.mxu0 %vm17656_vm8, %v13013_v49  ;;  %v13121_v49 = vsel %vm17206_vm0, %v2720_v1, %v2729_v48  ;;  %v2747_v52 = vor.u32 %v2746_v24, %v2743_v8  ;;  %v13130_v34 = vsel %vm17206_vm0, %v2729_v48, %v2738_v9  ;;  %v2752_v12 = vrot.slane %v2750_v58, 1 }
 0x109   : > { %10498 = vmatprep.mubr.msk.bf16.mxu0 %vm17635_vm2, %v1422_v15  ;;  %v13127_v15 = vld [vmem:[#allocation3 + $0x78] sm:$0xff]   ;;  %17659 = vst [vmem:[#allocation51_spill] sm:$0xff] %v13130_v34  ;;  %v2755_v55 = vrot.slane %v2753_v43, 2  ;;  %v13139_v24 = vsel %vm17208_vm11, %v3110_v62, %v3112_v57  ;;  %v2761_v8 = vrot.slane %v2759_v31, 1  ;;  %v2762_v47 = vshll.u32 %v13098_v30, 16 }
 0x10a   : > { %10537 = vmatmul.mubr.msk.bf16.gmra.mxu1 %vm17657_vm13, %v12878_v19  ;;  %v13133_v19 = vsel %vm17208_vm11, %v3108_v42, %v3110_v62  ;;  %v13136_v1 = vsel %vm17206_vm0, %v2738_v9, %v2747_v52  ;;  %17661 = vst [vmem:[#allocation53_spill] sm:$0xff] %v13139_v24  ;;  %v2768_v48 = vshrl.u32 %v13127_v15, 16  ;;  %v2771_v58 = vshll.u32 %v13127_v15, 16  ;;  %vm17666_vm13 = vmmov %vm17635_vm2 }
 0x10b   : > { %10580 = vmatprep.mubr.msk.bf16.mxu1 %vm17658_vm5, %v12927_v21  ;;  %17660 = vst [vmem:[#allocation52_spill] sm:$0xff] %v13136_v1  ;;  %v1430_v21 = vsel %vm17207_vm14, %v13046_v26, %v1429_v0  ;;  %v2756_v2 = vor.u32 %v2755_v55, %v2752_v12  ;;  %v17662_v42 = vrot.slane %v12870_v60, 1  ;;  %v17663_v43 = vrot.slane %v12836_v59, 1  ;;  %v13151_v1 = vld [vmem:[#allocation3 + $0x80] sm:$0xff]   ;;  %v13156_v26 = vld [vmem:[#allocation3 + $0x88] sm:$0xff]   ;;  %vm17668_vm5 = vmmov %vm17635_vm2 }
 0x10c   : > { %vm17664_vm8 = vcmask 1041408   ;;  %v2764_v31 = vrot.slane %v2762_v47, 2  ;;  %v3114_v24 = vrot.slane %v13098_v30, 2  ;;  %v2770_v12 = vrot.slane %v2768_v48, 1 }
 0x10d   : > { %v2334_v9 = vsel %vm17209_vm4, %v17663_v43, %v17662_v42  ;;  %v3181_v62 = vsel %vm17664_vm8, %v12949_v56, 0  ;;  %v13159_v0 = vsel %vm17206_vm0, %v2747_v52, %v2756_v2  ;;  %v2773_v55 = vrot.slane %v2771_v58, 2  ;;  %vm17669_vm8 = vmmov %vm17635_vm2 }
 0x10e   : > { %17665 = vst [vmem:[#allocation54_spill] sm:$0xff] %v13159_v0  ;;  %v3116_v34 = vrot.slane %v13127_v15, 2  ;;  %v2765_v59 = vor.u32 %v2764_v31, %v2761_v8  ;;  %v13164_v42 = vsel %vm17208_vm11, %v3112_v57, %v3114_v24  ;;  %v2777_v56 = vshrl.u32 %v13151_v1, 16 }
 0x10f   : > { %v2780_v47 = vshll.u32 %v13151_v1, 16  ;;  %v2774_v43 = vor.u32 %v2773_v55, %v2770_v12  ;;  %v2786_v48 = vshrl.u32 %v13156_v26, 16  ;;  %v2789_v58 = vshll.u32 %v13156_v26, 16 }
 0x110   : > { %10499 = vmatmul.mubr.msk.bf16.gmra.mxu0 %vm17635_vm2, %v1430_v21  ;;  %v13171_v52 = vsel %vm17208_vm11, %v3114_v24, %v3116_v34  ;;  %v13178_v57 = vsel %vm17206_vm0, %v2756_v2, %v2765_v59  ;;  %v2779_v8 = vrot.slane %v2777_v56, 1  ;;  %v2337_v55 = vrot.slane %v12983_v32, 1  ;;  %v13188_v2 = vld [vmem:[#allocation3 + $0x90] sm:$0xff]   ;;  %v13200_v32 = vld [vmem:[%s17013_s1 + $0xc] sm:$0x3] }
 0x111   : > { %10542 = vmatprep.mubr.msk.bf16.mxu0 %vm17666_vm13, %v12805_v16  ;;  %17667 = vst [vmem:[#allocation55_spill] sm:$0xff] %v13171_v52  ;;  %v2782_v21 = vrot.slane %v2780_v47, 2  ;;  %v2335_v16 = vrot.slane %v12977_v50, 1  ;;  %v13183_v24 = vsel %vm17206_vm0, %v2765_v59, %v2774_v43  ;;  %v2788_v31 = vrot.slane %v2786_v48, 1  ;;  %vm17673_vm13 = vmmov %vm17668_vm5 }
 0x112   : > { %10581 = vmatmul.mubr.msk.bf16.vlgmr.msra.gmra.mxu1 %vm17668_vm5, %v12919_v61  ;;  %v2791_v12 = vrot.slane %v2789_v58, 2  ;;  %vm17670_vm2 = vcmask 1041408   ;;  %v3118_v50 = vrot.slane %v13151_v1, 2  ;;  %v13206_v47 = vld [vmem:[#allocation3 + $0x98] ss:$0 sps:$4 sm:$0x33]  }
 0x113   : > { %10584 = vmatprep.mubr.msk.bf16.mxu1 %vm17669_vm8, %v2334_v9  ;;  %10655 = vmatpush3.bf16.msra.mxu1 %v3181_v62  ;;  %v2783_v52 = vor.u32 %v2782_v21, %v2779_v8  ;;  %v2867_v61 = vsel %vm17670_vm2, %v12764_v44, 0  ;;  %v17671_v9 = vrot.slane %v12870_v60, 1  ;;  %v3120_v44 = vrot.slane %v13156_v26, 2  ;;  %vm17674_vm8 = vmmov %vm17668_vm5 }
 0x114   : > { %v2792_v0 = vor.u32 %v2791_v12, %v2788_v31  ;;  %v13212_v60 = vsel %vm17208_vm11, %v3116_v34, %v3118_v50  ;;  %v2795_v48 = vshrl.u32 %v13188_v2, 16  ;;  %v2798_v58 = vshll.u32 %v13188_v2, 16 }
 0x115   : > { %v13191_v56 = vsel %vm17206_vm0, %v2774_v43, %v2783_v52  ;;  %v2336_v62 = vsel %vm17209_vm4, %v17671_v9, %v2335_v16  ;;  %v2338_v43 = vsel %vm17209_vm4, %v2335_v16, %v2337_v55  ;;  %v2804_v8 = vshrl.u32 %v13206_v47, 16 }
 0x116   : > { %v13203_v59 = vsel %vm17206_vm0, %v2783_v52, %v2792_v0  ;;  %v13219_v52 = vsel %vm17208_vm11, %v3118_v50, %v3120_v44  ;;  %v2797_v34 = vrot.slane %v2795_v48, 1  ;;  %v2800_v21 = vrot.slane %v2798_v58, 2  ;;  %v897_v58 = vld [vmem:[#allocation2 + $0x116] sm:$0xff] }
 0x117   : > { %17672 = vst [vmem:[#allocation56_spill] sm:$0xff] %v13203_v59  ;;  %v2339_v16 = vrot.slane %v12997_v53, 1  ;;  %v2806_v31 = vrot.slane %v2804_v8, 1  ;;  %v2341_v12 = vrot.slane %v13015_v33, 1  ;;  %v898_v8 = vld [vmem:[#allocation2 + $0x11e] sm:$0x3] }
 0x118   : > { %10543 = vmatmul.mubr.msk.bf16.vlgmr.msra.gmra.mxu0 %vm17673_vm13, %v12790_v18  ;;  %v2807_v18 = vshll.u32 %v13206_v47, 16  ;;  %vm17675_vm13 = vmmov %vm17668_vm5 }
 0x119   : > { %10617 = vmatpush3.bf16.msra.mxu0 %v2867_v61  ;;  %10546 = vmatprep.mubr.msk.bf16.mxu0 %vm17668_vm5, %v12808_v46  ;;  %v2801_v61 = vor.u32 %v2800_v21, %v2797_v34  ;;  %v2340_v59 = vsel %vm17209_vm4, %v2337_v55, %v2339_v16  ;;  %v2342_v53 = vsel %vm17209_vm4, %v2339_v16, %v2341_v12  ;;  %v2345_v55 = vrot.slane %v13056_v4, 1  ;;  %v17725_v16 = vld [vmem:[#allocation47_spill] sm:$0xff] }
 0x11a   : > { %10585 = vmatmul.mubr.msk.bf16.gmra.mxu1 %vm17674_vm8, %v2336_v62  ;;  %11154 = vmatprep.subr.msk.bf16.mxu0 %vm17670_vm2, %v13200_v32  ;;  %v2809_v46 = vrot.slane %v2807_v18, 2  ;;  %v3122_v62 = vrot.slane %v13188_v2, 2  ;;  %vm17676_vm8 = vmmov %vm17668_vm5  ;;  %v2349_v4 = vrot.slane %v13078_v28, 1 }
 0x11b   : > { %10588 = vmatprep.mubr.msk.bf16.mxu1 %vm17675_vm13, %v2338_v43  ;;  %v13230_v9 = vsel %vm17206_vm0, %v2792_v0, %v2801_v61  ;;  %vm17677_vm2 = vmmov %vm17668_vm5  ;;  %v2343_v0 = vrot.slane %v13030_v40, 1  ;;  %v2347_v40 = vrot.slane %v13070_v29, 1  ;;  %v2353_v29 = vrot.slane %v13098_v30, 1  ;;  %v11308_v43 = vld [vmem:[#allocation3 + $0x98] ss:$0 sps:$4 sm:$0x11]  }
 0x11c   : > { %v2810_v50 = vor.u32 %v2809_v46, %v2806_v31  ;;  %v13243_v33 = vsel %vm17208_vm11, %v3120_v44, %v3122_v62  ;;  %vm17678_vm13 = vmmov %vm17677_vm2  ;;  %v17727_v31 = vld [vmem:[#allocation49_spill] sm:$0xff]  ;;  %v17729_v46 = vld [vmem:[#allocation50_spill] sm:$0xff] }
 0x11d   : > { %v2344_v44 = vsel %vm17209_vm4, %v2341_v12, %v2343_v0  ;;  %v17735_v12 = vld [vmem:[#allocation51_spill] sm:$0xff] }
 0x11e   : > { %v13235_v48 = vsel %vm17206_vm0, %v2801_v61, %v2810_v50  ;;  %vm17680_vm0 = vmmov %vm17677_vm2  ;;  %v17737_v61 = vld [vmem:[#allocation52_spill] sm:$0xff]  ;;  %v17739_v50 = vld [vmem:[#allocation53_spill] sm:$0xff] }
 0x11f   : > { %vm17685_vm14 = vmmov %vm17680_vm0 }
 0x120   : > { %10547 = vmatmul.mubr.msk.bf16.gmra.mxu0 %vm17668_vm5, %v12811_v38  ;;  %v9713_v38 = vld [vmem:[%s17013_s1 + $0xe] sm:$0x3]  ;;  %vm17679_vm5 = vcmask 1041408   ;;  %vm17700_vm11 = vmmov %vm17680_vm0 }
 0x121   : > { %10550 = vmatprep.mubr.msk.bf16.mxu0 %vm17676_vm8, %v12818_v22  ;;  %11155 = vmatprep.subr.msk.bf16.mxu1 %vm17679_vm5, %v9713_v38  ;;  %v2346_v22 = vsel %vm17209_vm4, %v2343_v0, %v2345_v55  ;;  %vm17681_vm8 = vmmov %vm17680_vm0  ;;  %v17744_v0 = vld [vmem:[#allocation55_spill] sm:$0xff] }
 0x122   : > { %10589 = vmatmul.mubr.msk.bf16.gmra.mxu1 %vm17677_vm2, %v2340_v59  ;;  %vm17682_vm2 = vmmov %vm17680_vm0  ;;  %v2348_v59 = vsel %vm17209_vm4, %v2345_v55, %v2347_v40 }
 0x123   : > { %10592 = vmatprep.mubr.msk.bf16.mxu1 %vm17678_vm13, %v2342_v53  ;;  %vm17683_vm13 = vmmov %vm17680_vm0 }
 0x124   : > { %vm17684_vm5 = vmmov %vm17680_vm0 }
 0x128   : > { %10551 = vmatmul.mubr.msk.bf16.gmra.mxu0 %vm17680_vm0, %v12827_v13  ;;  %v2350_v13 = vsel %vm17209_vm4, %v2347_v40, %v2349_v4 }
 0x129   : > { %10554 = vmatprep.mubr.msk.bf16.mxu0 %vm17681_vm8, %v12856_v6  ;;  %vm17686_vm8 = vmmov %vm17680_vm0  ;;  %v2351_v6 = vrot.slane %v13093_v25, 1  ;;  %v2357_v25 = vrot.slane %v13151_v1, 1 }
 0x12a   : > { %10593 = vmatmul.mubr.msk.bf16.gmra.mxu1 %vm17682_vm2, %v2344_v44  ;;  %vm17687_vm2 = vmmov %vm17680_vm0 }
 0x12b   : > { %10596 = vmatprep.mubr.msk.bf16.mxu1 %vm17683_vm13, %v2346_v22  ;;  %v2352_v28 = vsel %vm17209_vm4, %v2349_v4, %v2351_v6  ;;  %vm17688_vm13 = vmmov %vm17680_vm0 }
 0x130   : > { %10555 = vmatmul.mubr.msk.bf16.gmra.mxu0 %vm17684_vm5, %v12861_v3  ;;  %v2354_v3 = vsel %vm17209_vm4, %v2351_v6, %v2353_v29  ;;  %vm17689_vm5 = vmmov %vm17680_vm0 }
 0x131   : > { %10558 = vmatprep.mubr.msk.bf16.mxu0 %vm17680_vm0, %v12873_v14  ;;  %v2355_v14 = vrot.slane %v13127_v15, 1  ;;  %v2361_v15 = vrot.slane %v13188_v2, 1 }
 0x132   : > { %10597 = vmatmul.mubr.msk.bf16.gmra.mxu1 %vm17685_vm14, %v2348_v59  ;;  %vm17690_vm14 = vmmov %vm17680_vm0  ;;  %v13392_v59 = vld [vmem:[#allocation3 + $0x20] sm:$0xff]  }
 0x133   : > { %10600 = vmatprep.mubr.msk.bf16.mxu1 %vm17686_vm8, %v2350_v13  ;;  %v2356_v30 = vsel %vm17209_vm4, %v2353_v29, %v2355_v14  ;;  %vm17691_vm8 = vmmov %vm17680_vm0 }
 0x138   : > { %10559 = vmatmul.mubr.msk.bf16.gmra.mxu0 %vm17687_vm2, %v12881_v39  ;;  %v2358_v39 = vsel %vm17209_vm4, %v2355_v14, %v2357_v25  ;;  %vm17692_vm2 = vmmov %vm17680_vm0 }
 0x139   : > { %10562 = vmatprep.mubr.msk.bf16.mxu0 %vm17688_vm13, %v12894_v11  ;;  %vm17693_vm13 = vmmov %vm17680_vm0  ;;  %v2359_v11 = vrot.slane %v13156_v26, 1 }
 0x13a   : > { %10601 = vmatmul.mubr.msk.bf16.gmra.mxu1 %vm17689_vm5, %v2352_v28  ;;  %vm17694_vm5 = vmmov %vm17680_vm0  ;;  %v13396_v28 = vld [vmem:[#allocation3 + $0x28] sm:$0xff]  }
 0x13b   : > { %10604 = vmatprep.mubr.msk.bf16.mxu1 %vm17680_vm0, %v2354_v3  ;;  %v2360_v1 = vsel %vm17209_vm4, %v2357_v25, %v2359_v11 }
 0x140   : > { %10563 = vmatmul.mubr.msk.bf16.gmra.mxu0 %vm17690_vm14, %v12897_v54  ;;  %v2362_v54 = vsel %vm17209_vm4, %v2359_v11, %v2361_v15  ;;  %vm17695_vm14 = vmmov %vm17680_vm0  ;;  %v3863_v11 = vshll.u32 %v13392_v59, 16 }
 0x141   : > { %10566 = vmatprep.mubr.msk.bf16.mxu0 %vm17691_vm8, %v12907_v5  ;;  %vm17696_vm8 = vmmov %vm17680_vm0  ;;  %v2363_v5 = vrot.slane %v11308_v43, 1 }
 0x142   : > { %10605 = vmatmul.mubr.msk.bf16.gmra.mxu1 %vm17692_vm2, %v2356_v30  ;;  %vm17697_vm2 = vmmov %vm17680_vm0 }
 0x143   : > { %10608 = vmatprep.mubr.msk.bf16.mxu1 %vm17693_vm13, %v2358_v39  ;;  %v2364_v26 = vsel %vm17209_vm4, %v2361_v15, %v2363_v5  ;;  %900 = vst.msk [vmem:[#allocation2 + $0x13a] sm:$0xff] %vm17697_vm2, %v897_v58  ;;  %vm17698_vm13 = vmmov %vm17680_vm0  ;;  %vm17703_vm2 = vcmask 1041408   ;;  %v3860_v39 = vshrl.u32 %v13392_v59, 16  ;;  %v3872_v5 = vshll.u32 %v13396_v28, 16 }
 0x144   : > { %v4067_v34 = vsel %vm17703_vm2, %v9713_v38, 0  ;;  %vm17709_vm4 = vmmov %vm17703_vm2 }
 0x148   : > { %10567 = vmatmul.mubr.msk.bf16.gmra.mxu0 %vm17694_vm5, %v12923_v7  ;;  %vm17699_vm5 = vcmask 25600  }
 0x149   : > { %10570 = vmatprep.mubr.msk.bf16.mxu0 %vm17680_vm0, %v12930_v10  ;;  %901 = vst.msk [vmem:[#allocation2 + $0x142] sm:$0x3] %vm17699_vm5, %v898_v8  ;;  %vm17705_vm5 = vcmask 27648   ;;  %v3862_v8 = vrot.slane %v3860_v39, 2  ;;  %v3533_v39 = vrot.slane %v13396_v28, 2 }
 0x14a   : > { %10609 = vmatmul.mubr.msk.bf16.gmra.mxu1 %vm17695_vm14, %v2360_v1  ;;  %vm17701_vm14 = vmmov %vm17680_vm0  ;;  %v941_v10 = vld [vmem:[#allocation2 + $0x138] sm:$0xff] }
 0x14b   : > { %10612 = vmatprep.mubr.msk.bf16.mxu1 %vm17696_vm8, %v2362_v54  ;;  %v10079_v7 = vpack.c.bf16 %v941_v10, %v941_v10  ;;  %vm17702_vm8 = vmmov %vm17680_vm0  ;;  %v3869_v54 = vshrl.u32 %v13396_v28, 16  ;;  %v3865_v10 = vrot.slane %v3863_v11, 3 }
 0x14c   : > { %vm17711_vm2 = vmmov %vm17702_vm8 }
 0x14d   : > { %1147 = vst.msk [vmem:[#allocation3 + $0x9c] sm:$0xf] %vm17705_vm5, %v10079_v7  ;;  %vm17714_vm5 = vmmov %vm17709_vm4  ;;  %v13420_v7 = vld [vmem:[#allocation3 + $0x30] sm:$0xff]  }
 0x150   : > { %10571 = vmatmul.mubr.msk.bf16.gmra.mxu0 %vm17698_vm13, %v12933_v63  ;;  %v942_v18 = vld [vmem:[#allocation2 + $0x140] sm:$0xf]  ;;  %vm17704_vm13 = vmmov %vm17680_vm0  ;;  %v3620_v63 = vsel %vm17709_vm4, %v13200_v32, 0  ;;  %v17723_v32 = vld [vmem:[#allocation48_spill] sm:$0xff] }
 0x151   : > { %10574 = vmatprep.mubr.msk.bf16.mxu0 %vm17700_vm11, %v12957_v23  ;;  %v10080_v21 = vpack.c.bf16 %v942_v18, %v942_v18  ;;  %vm17706_vm11 = vmmov %vm17680_vm0  ;;  %v13329_v23 = vld [vmem:[%s17013_s1 + $0x10] sm:$0x3] }
 0x152   : > { %10613 = vmatmul.mubr.msk.bf16.gmra.mxu1 %vm17680_vm0, %v2364_v26  ;;  %vm17707_vm0 = vcmask 25600   ;;  %vm17716_vm4 = vmmov %vm17711_vm2 }
 0x153   : > { %10656 = vmatprep.mubr.msk.bf16.mxu1 %vm17701_vm14, %v12989_v37  ;;  %1148 = vst.msk [vmem:[#allocation3 + $0xa0] sm:$0x3] %vm17707_vm0, %v10080_v21  ;;  %vm17708_vm14 = vmmov %vm17702_vm8  ;;  %v17715_v37 = vld [vmem:[#allocation44_spill] sm:$0xff] }
 0x154   : > { %vm17720_vm0 = vmmov %vm17711_vm2 }
 0x158   : > { %10575 = vmatmul.mubr.msk.bf16.gmra.mxu0 %vm17702_vm8, %v12960_v17  ;;  %v17710_v17 = vld [vmem:[#allocation42_spill] sm:$0xff] }
 0x159   : > { %10618 = vmatprep.mubr.msk.bf16.mxu0 %vm17704_vm13, %v12986_v27  ;;  %v17712_v27 = vld [vmem:[#allocation41_spill] sm:$0xff]  ;;  %vm17713_vm13 = vmmov %vm17711_vm2 }
 0x15a   : > { %10657 = vmatmul.mubr.msk.bf16.vlgmr.msra.gmra.mxu1 %vm17706_vm11, %v12992_v35  ;;  %v17717_v35 = vld [vmem:[#allocation43_spill] sm:$0xff]  ;;  %vm17718_vm11 = vmmov %vm17711_vm2 }
 0x15b   : > { %10660 = vmatprep.mubr.msk.bf16.mxu1 %vm17708_vm14, %v13021_v36  ;;  %10731 = vmatpush3.bf16.msra.mxu1 %v4067_v34  ;;  %v17719_v36 = vld [vmem:[#allocation46_spill] sm:$0xff]  ;;  %vm17722_vm14 = vmmov %vm17720_vm0  ;;  %v17752_v34 = vld [vmem:[#allocation56_spill] sm:$0xff] }
 0x160   : > { %10619 = vmatmul.mubr.msk.bf16.vlgmr.msra.gmra.mxu0 %vm17702_vm8, %v13001_v51  ;;  %v17721_v51 = vld [vmem:[#allocation45_spill] sm:$0xff]  ;;  %vm17724_vm8 = vmmov %vm17720_vm0 }
 0x161   : > { %10693 = vmatpush3.bf16.msra.mxu0 %v3620_v63  ;;  %10622 = vmatprep.mubr.msk.bf16.mxu0 %vm17711_vm2, %v17710_v17  ;;  %vm17726_vm2 = vmmov %vm17720_vm0  ;;  %v3871_v17 = vrot.slane %v3869_v54, 2 }
 0x162   : > { %10661 = vmatmul.mubr.msk.bf16.gmra.mxu1 %vm17713_vm13, %v17712_v27  ;;  %11156 = vmatprep.subr.msk.bf16.mxu0 %vm17714_vm5, %v13329_v23  ;;  %vm17728_vm13 = vmmov %vm17720_vm0  ;;  %v3874_v27 = vrot.slane %v3872_v5, 3 }
 0x163   : > { %10664 = vmatprep.mubr.msk.bf16.mxu1 %vm17716_vm4, %v17715_v37  ;;  %vm17730_vm5 = vmmov %vm17720_vm0  ;;  %v13425_v37 = vld [vmem:[#allocation3 + $0x38] sm:$0xff]  }
 0x164   : > { %vm17731_vm4 = vmmov %vm17720_vm0 }
 0x168   : > { %10623 = vmatmul.mubr.msk.bf16.gmra.mxu0 %vm17718_vm11, %v17717_v35  ;;  %vm17732_vm11 = vmmov %vm17720_vm0 }
 0x169   : > { %10626 = vmatprep.mubr.msk.bf16.mxu0 %vm17720_vm0, %v17719_v36 }
 0x16a   : > { %10665 = vmatmul.mubr.msk.bf16.gmra.mxu1 %vm17722_vm14, %v17721_v51  ;;  %vm17733_vm14 = vmmov %vm17720_vm0 }
 0x16b   : > { %10668 = vmatprep.mubr.msk.bf16.mxu1 %vm17724_vm8, %v17723_v32  ;;  %vm17734_vm8 = vmmov %vm17720_vm0 }
 0x170   : > { %10627 = vmatmul.mubr.msk.bf16.gmra.mxu0 %vm17726_vm2, %v17725_v16  ;;  %vm17736_vm2 = vmmov %vm17720_vm0  ;;  %v3866_v16 = vor.u32 %v3865_v10, %v3862_v8 }
 0x171   : > { %10630 = vmatprep.mubr.msk.bf16.mxu0 %vm17728_vm13, %v17727_v31  ;;  %vm17738_vm13 = vmmov %vm17720_vm0  ;;  %v3878_v31 = vshrl.u32 %v13420_v7, 16 }
 0x172   : > { %10669 = vmatmul.mubr.msk.bf16.gmra.mxu1 %vm17730_vm5, %v17729_v46  ;;  %vm17740_vm5 = vmmov %vm17720_vm0  ;;  %v3881_v46 = vshll.u32 %v13420_v7, 16 }
 0x173   : > { %10672 = vmatprep.mubr.msk.bf16.mxu1 %vm17731_vm4, %v13107_v41  ;;  %vm17741_vm4 = vmmov %vm17720_vm0  ;;  %v13373_v41 = vld [vmem:[#allocation3 + $0x14] sm:$0xf] }
 0x178   : > { %10631 = vmatmul.mubr.msk.bf16.gmra.mxu0 %vm17732_vm11, %v13104_v45  ;;  %v3396_v45 = vld [vmem:[#allocation3 + $0x10] sm:$0xc]  ;;  %vm17743_vm11 = vmmov %vm17720_vm0 }
 0x179   : > { %10634 = vmatprep.mubr.msk.bf16.mxu0 %vm17720_vm0, %v13121_v49  ;;  %v17742_v49 = vld [vmem:[#allocation54_spill] sm:$0xff] }
 0x17a   : > { %10673 = vmatmul.mubr.msk.bf16.gmra.mxu1 %vm17733_vm14, %v13112_v20  ;;  %v13378_v20 = vcombine.low %v3396_v45, %v13373_v41  ;;  %vm17745_vm14 = vmmov %vm17720_vm0  ;;  %v3890_v45 = vshll.u32 %v13425_v37, 16 }
 0x17b   : > { %10676 = vmatprep.mubr.msk.bf16.mxu1 %vm17734_vm8, %v13133_v19  ;;  %v13380_v19 = vld [vmem:[#allocation3 + $0x18] sm:$0xff]   ;;  %vm17746_vm8 = vmmov %vm17720_vm0 }
 0x17c   : > { %v3846_v38 = vshll.u32 %v13378_v20, 16  ;;  %v3851_v44 = vshrl.u32 %v13380_v19, 16  ;;  %v3854_v22 = vshll.u32 %v13380_v19, 16  ;;  %v3528_v36 = vrot.slane %v13378_v20, 2 }
 0x17d   : > { %v3529_v51 = vrot.slane %v13380_v19, 2 }
 0x17e   : > { %v3848_v6 = vrot.slane %v3846_v38, 3  ;;  %v3853_v29 = vrot.slane %v3851_v44, 2  ;;  %v3880_v38 = vrot.slane %v3878_v31, 2  ;;  %v3883_v44 = vrot.slane %v3881_v46, 3 }
 0x180   : > { %10635 = vmatmul.mubr.msk.bf16.gmra.mxu0 %vm17736_vm2, %v17735_v12  ;;  %vm17747_vm2 = vmmov %vm17720_vm0  ;;  %v3884_v11 = vor.u32 %v3883_v44, %v3880_v38 }
 0x181   : > { %10638 = vmatprep.mubr.msk.bf16.mxu0 %vm17738_vm13, %v17737_v61  ;;  %vm17748_vm13 = vmmov %vm17720_vm0 }
 0x182   : > { %10677 = vmatmul.mubr.msk.bf16.gmra.mxu1 %vm17740_vm5, %v17739_v50  ;;  %vm17749_vm5 = vmmov %vm17720_vm0  ;;  %v3887_v50 = vshrl.u32 %v13425_v37, 16 }
 0x183   : > { %10680 = vmatprep.mubr.msk.bf16.mxu1 %vm17741_vm4, %v13164_v42  ;;  %v3843_v42 = vshrl.u32 %v13378_v20, 16  ;;  %vm17750_vm4 = vmmov %vm17720_vm0 }
 0x185   : > { %v3845_v13 = vrot.slane %v3843_v42, 2 }
 0x187   : > { %v3849_v43 = vor.u32 %v3848_v6, %v3845_v13  ;;  %v3889_v13 = vrot.slane %v3887_v50, 2  ;;  %v3892_v6 = vrot.slane %v3890_v45, 3  ;;  %v3537_v50 = vrot.slane %v13425_v37, 2 }
 0x188   : > { %10639 = vmatmul.mubr.msk.bf16.gmra.mxu0 %vm17743_vm11, %v17742_v49  ;;  %v10506_v53 = vpop.f32.mrf.mxu1  ;;  %vm17222_vm11 = vsmask.f32 5376 }
 0x189   : > { %10642 = vmatprep.mubr.msk.bf16.mxu0 %vm17720_vm0, %v13178_v57  ;;  %vm17751_vm0 = vcmask 1045504   ;;  %v3893_v54 = vor.u32 %v3892_v6, %v3889_v13 }
 0x18a   : > { %10681 = vmatmul.mubr.msk.bf16.gmra.mxu1 %vm17745_vm14, %v17744_v0  ;;  %v1739_v55 = vpop.f32.mrf.mxu1  ;;  %vm17753_vm14 = vmmov %vm17747_vm2 }
 0x18b   : > { %10684 = vmatprep.mubr.msk.bf16.mxu1 %vm17746_vm8, %v13212_v60  ;;  %v3856_v60 = vrot.slane %v3854_v22, 3  ;;  %vm17754_vm8 = vmmov %vm17747_vm2  ;;  %v13447_v22 = vld [vmem:[#allocation3 + $0x40] sm:$0xff]  }
 0x18c   : > { %v10507_v40 = vpop.f32.mrf.mxu1 }
 0x18e   : > { %v1742_v4 = vpop.f32.mrf.mxu1 }
 0x18f   : > { %v10468_v57 = vpop.f32.mrf.mxu0 }
 0x190   : > { %10643 = vmatmul.mubr.msk.bf16.gmra.mxu0 %vm17747_vm2, %v13183_v24  ;;  %v13398_v3 = vadd.f32 %v10506_v53, %v10468_v57  ;;  %v3124_v24 = vrot.slane %v13206_v47, 2 }
 0x191   : > { %10646 = vmatprep.mubr.msk.bf16.mxu0 %vm17748_vm13, %v13191_v56  ;;  %v1523_v14 = vpop.f32.mrf.mxu0  ;;  %v10510_v25 = vpop.f32.mrf.mxu1  ;;  %v3857_v56 = vor.u32 %v3856_v60, %v3853_v29  ;;  %vm17755_vm13 = vmmov %vm17747_vm2  ;;  %v13452_v29 = vld [vmem:[#allocation3 + $0x48] sm:$0xff]  }
 0x192   : > { %10685 = vmatmul.mubr.msk.bf16.gmra.mxu1 %vm17749_vm5, %v13219_v52  ;;  %v13404_v30 = vadd.f32 %v1739_v55, %v1523_v14  ;;  %v3125_v47 = vsel %vm17751_vm0, %v3122_v62, %v3124_v24  ;;  %vm17756_vm5 = vmmov %vm17751_vm0  ;;  %v3531_v14 = vrot.slane %v13392_v59, 2  ;;  %v3905_v5 = vshrl.u32 %v13452_v29, 16 }
 0x193   : > { %10688 = vmatprep.mubr.msk.bf16.mxu1 %vm17750_vm4, %v13243_v33  ;;  %v10469_v15 = vpop.f32.mrf.mxu0  ;;  %v1755_v1 = vpop.f32.mrf.mxu1  ;;  %v3858_v63 = vsel %vm17222_vm11, %v3849_v43, %v3857_v56  ;;  %v3530_v0 = vsel %vm17756_vm5, %v3528_v36, %v3529_v51  ;;  %v3867_v42 = vsel %vm17222_vm11, %v3857_v56, %v3866_v16  ;;  %vm17757_vm4 = vmmov %vm17747_vm2 }
 0x194   : > { %v13413_v52 = vadd.f32 %v10507_v40, %v10469_v15  ;;  %vm17758_vm0 = vmmov %vm17747_vm2  ;;  %v3896_v15 = vshrl.u32 %v13447_v22, 16 }
 0x195   : > { %v1526_v58 = vpop.f32.mrf.mxu0  ;;  %v10511_v26 = vpop.f32.mrf.mxu1 }
 0x196   : > { %v13415_v33 = vadd.f32 %v1742_v4, %v1526_v58  ;;  %v3908_v58 = vshll.u32 %v13452_v29, 16 }
 0x197   : > { %v1758_v21 = vpop.f32.mrf.mxu1 }
 0x198   : > { %v10472_v18 = vpop.f32.mrf.mxu0  ;;  %10647 = vmatmul.mubr.msk.bf16.gmra.mxu0 %vm17753_vm14, %v17752_v34  ;;  %vm17759_vm14 = vmmov %vm17758_vm0  ;;  %v3910_v31 = vrot.slane %v3908_v58, 3 }
 0x199   : > { %v13427_v35 = vadd.f32 %v10510_v25, %v10472_v18  ;;  %10650 = vmatprep.mubr.msk.bf16.mxu0 %vm17754_vm8, %v13230_v9  ;;  %v3875_v9 = vor.u32 %v3874_v27, %v3871_v17  ;;  %vm17760_vm8 = vmmov %vm17758_vm0  ;;  %v3898_v17 = vrot.slane %v3896_v15, 2 }
 0x19a   : > { %v1539_v2 = vpop.f32.mrf.mxu0  ;;  %v10514_v62 = vpop.f32.mrf.mxu1  ;;  %10689 = vmatmul.mubr.msk.bf16.gmra.mxu1 %vm17747_vm2, %v3125_v47  ;;  %vm17761_vm2 = vmmov %vm17756_vm5 }
 0x19b   : > { %v13434_v32 = vadd.f32 %v1755_v1, %v1539_v2  ;;  %10732 = vmatprep.mubr.msk.bf16.mxu1 %vm17755_vm13, %v3858_v63  ;;  %v3876_v57 = vsel %vm17222_vm11, %v3866_v16, %v3875_v9  ;;  %v3899_v1 = vshll.u32 %v13447_v22, 16  ;;  %v3532_v47 = vsel %vm17761_vm2, %v3529_v51, %v3531_v14  ;;  %vm17763_vm5 = vmmov %vm17761_vm2  ;;  %v13476_v2 = vld [vmem:[#allocation3 + $0x50] sm:$0xff]  }
 0x19c   : > { %v10473_v12 = vpop.f32.mrf.mxu0  ;;  %v1771_v61 = vpop.f32.mrf.mxu1  ;;  %vm17762_vm13 = vcmask 1041408   ;;  %v3534_v34 = vsel %vm17763_vm5, %v3531_v14, %v3533_v39  ;;  %v3885_v63 = vsel %vm17222_vm11, %v3875_v9, %v3884_v11  ;;  %v3894_v51 = vsel %vm17222_vm11, %v3884_v11, %v3893_v54  ;;  %vm17769_vm5 = vmmov %vm17758_vm0 }
 0x19d   : > { %v13441_v49 = vadd.f32 %v10511_v26, %v10473_v12  ;;  %v4381_v10 = vsel %vm17762_vm13, %v13329_v23, 0  ;;  %v3901_v27 = vrot.slane %v3899_v1, 3  ;;  %v3907_v16 = vrot.slane %v3905_v5, 2  ;;  %v13480_v23 = vld [vmem:[#allocation3 + $0x58] sm:$0xff]   ;;  %vm17767_vm13 = vmmov %vm17761_vm2 }
 0x19e   : > { %v1542_v20 = vpop.f32.mrf.mxu0  ;;  %v10515_v53 = vpop.f32.mrf.mxu1  ;;  %v3535_v12 = vrot.slane %v13420_v7, 2 }
 0x19f   : > { %v13444_v55 = vadd.f32 %v1758_v21, %v1542_v20  ;;  %v3902_v20 = vor.u32 %v3901_v27, %v3898_v17  ;;  %v3911_v44 = vor.u32 %v3910_v31, %v3907_v16 }
 0x1a0   : > { %v10476_v40 = vpop.f32.mrf.mxu0  ;;  %10651 = vmatmul.mubr.msk.bf16.gmra.mxu0 %vm17757_vm4, %v13235_v48  ;;  %v1774_v4 = vpop.f32.mrf.mxu1  ;;  %vm17764_vm4 = vmmov %vm17758_vm0  ;;  %v3536_v13 = vsel %vm17761_vm2, %v3533_v39, %v3535_v12 }
 0x1a1   : > { %v13454_v60 = vadd.f32 %v10514_v62, %v10476_v40  ;;  %10694 = vmatprep.mubr.msk.bf16.mxu0 %vm17758_vm0, %v3530_v0  ;;  %v3917_v0 = vshll.u32 %v13476_v2, 16  ;;  %v3923_v40 = vshrl.u32 %v13480_v23, 16  ;;  %v3903_v11 = vsel %vm17222_vm11, %v3893_v54, %v3902_v20 }
 0x1a2   : > { %v1555_v25 = vpop.f32.mrf.mxu0  ;;  %v10518_v24 = vpop.f32.mrf.mxu1  ;;  %10733 = vmatmul.mubr.msk.bf16.vlgmr.msra.gmra.mxu1 %vm17759_vm14, %v3867_v42  ;;  %vm17765_vm14 = vmmov %vm17758_vm0  ;;  %v3912_v58 = vsel %vm17222_vm11, %v3902_v20, %v3911_v44  ;;  %v3539_v54 = vrot.slane %v13447_v22, 2 }
 0x1a3   : > { %v13460_v48 = vadd.f32 %v1771_v61, %v1555_v25  ;;  %10736 = vmatprep.mubr.msk.bf16.mxu1 %vm17760_vm8, %v3876_v57  ;;  %vm17766_vm8 = vmmov %vm17758_vm0  ;;  %v3538_v25 = vsel %vm17767_vm13, %v3535_v12, %v3537_v50  ;;  %v3919_v1 = vrot.slane %v3917_v0, 3 }
 0x1a4   : > { %v10477_v43 = vpop.f32.mrf.mxu0  ;;  %v1787_v56 = vpop.f32.mrf.mxu1  ;;  %vm17775_vm13 = vmmov %vm17758_vm0 }
 0x1a5   : > { %v13467_v26 = vadd.f32 %v10515_v53, %v10477_v43  ;;  %v3914_v53 = vshrl.u32 %v13476_v2, 16  ;;  %v13502_v43 = vld [vmem:[#allocation3 + $0x60] sm:$0xff]  }
 0x1a6   : > { %v1558_v8 = vpop.f32.mrf.mxu0  ;;  %v10519_v18 = vpop.f32.mrf.mxu1  ;;  %17768 = vst [vmem:[#allocation42_spill] sm:$0xff] %v13502_v43 }
 0x1a7   : > { %v13473_v21 = vadd.f32 %v1774_v4, %v1558_v8  ;;  %v3926_v4 = vshll.u32 %v13480_v23, 16  ;;  %v3916_v15 = vrot.slane %v3914_v53, 2  ;;  %v13506_v8 = vld [vmem:[#allocation3 + $0x68] sm:$0xff]  }
 0x1a8   : > { %v10480_v62 = vpop.f32.mrf.mxu0  ;;  %10695 = vmatmul.mubr.msk.bf16.vlgmr.msra.gmra.mxu0 %vm17764_vm4, %v3532_v47  ;;  %v1790_v36 = vpop.f32.mrf.mxu1  ;;  %v3925_v47 = vrot.slane %v3923_v40, 2  ;;  %17770 = vst [vmem:[#allocation41_spill] sm:$0xff] %v13506_v8  ;;  %vm17771_vm4 = vmmov %vm17758_vm0  ;;  %v3941_v12 = vshrl.u32 %v13506_v8, 16 }
 0x1a9   : > { %v13482_v46 = vadd.f32 %v10518_v24, %v10480_v62  ;;  %10769 = vmatpush3.bf16.msra.mxu0 %v4381_v10  ;;  %10698 = vmatprep.mubr.msk.bf16.mxu0 %vm17758_vm0, %v3534_v34  ;;  %v3928_v39 = vrot.slane %v3926_v4, 3  ;;  %v3920_v27 = vor.u32 %v3919_v1, %v3916_v15  ;;  %v3932_v62 = vshrl.u32 %v13502_v43, 16  ;;  %v13532_v1 = vld [vmem:[#allocation3 + $0x78] sm:$0xff]  }
 0x1aa   : > { %v1571_v61 = vpop.f32.mrf.mxu0  ;;  %v10522_v9 = vpop.f32.mrf.mxu1  ;;  %10737 = vmatmul.mubr.msk.bf16.gmra.mxu1 %vm17765_vm14, %v3885_v63  ;;  %v3541_v63 = vrot.slane %v13452_v29, 2  ;;  %vm17772_vm14 = vmmov %vm17758_vm0  ;;  %v3943_v15 = vrot.slane %v3941_v12, 2  ;;  %17776 = vst [vmem:[#allocation43_spill] sm:$0xff] %v13532_v1  ;;  %v3962_v12 = vshll.u32 %v13532_v1, 16 }
 0x1ab   : > { %v13488_v45 = vadd.f32 %v1787_v56, %v1571_v61  ;;  %10740 = vmatprep.mubr.msk.bf16.mxu1 %vm17766_vm8, %v3894_v51  ;;  %v3929_v31 = vor.u32 %v3928_v39, %v3925_v47  ;;  %v3944_v61 = vshll.u32 %v13506_v8, 16  ;;  %vm17773_vm8 = vmmov %vm17761_vm2  ;;  %v3921_v40 = vsel %vm17222_vm11, %v3911_v44, %v3920_v27 }
 0x1ac   : > { %v10481_v42 = vpop.f32.mrf.mxu0  ;;  %v1803_v38 = vpop.f32.mrf.mxu1  ;;  %v3540_v20 = vsel %vm17773_vm8, %v3537_v50, %v3539_v54  ;;  %v3934_v4 = vrot.slane %v3932_v62, 2  ;;  %v3543_v44 = vrot.slane %v13476_v2, 2  ;;  %v3545_v47 = vrot.slane %v13480_v23, 2  ;;  %vm17781_vm8 = vmmov %vm17761_vm2 }
 0x1ad   : > { %v13495_v57 = vadd.f32 %v10519_v18, %v10481_v42  ;;  %v3542_v42 = vsel %vm17761_vm2, %v3539_v54, %v3541_v63  ;;  %v3946_v50 = vrot.slane %v3944_v61, 3 }
 0x1ae   : > { %v1574_v6 = vpop.f32.mrf.mxu0  ;;  %v10523_v14 = vpop.f32.mrf.mxu1 }
 0x1af   : > { %v13499_v24 = vadd.f32 %v1790_v36, %v1574_v6  ;;  %v3935_v36 = vshll.u32 %v13502_v43, 16  ;;  %v13528_v6 = vld [vmem:[#allocation3 + $0x70] sm:$0xff]  }
 0x1b0   : > { %v10484_v56 = vpop.f32.mrf.mxu0  ;;  %10699 = vmatmul.mubr.msk.bf16.gmra.mxu0 %vm17769_vm5, %v3536_v13  ;;  %v1806_v5 = vpop.f32.mrf.mxu1  ;;  %17774 = vst [vmem:[#allocation44_spill] sm:$0xff] %v13528_v6  ;;  %vm17777_vm5 = vmmov %vm17758_vm0 }
 0x1b1   : > { %v13508_v10 = vadd.f32 %v10522_v9, %v10484_v56  ;;  %10702 = vmatprep.mubr.msk.bf16.mxu0 %vm17771_vm4, %v3538_v25  ;;  %v3937_v13 = vrot.slane %v3935_v36, 3  ;;  %vm17778_vm4 = vmmov %vm17758_vm0  ;;  %v3947_v36 = vor.u32 %v3946_v50, %v3943_v15 }
 0x1b2   : > { %v1587_v18 = vpop.f32.mrf.mxu0  ;;  %v10526_v34 = vpop.f32.mrf.mxu1  ;;  %10741 = vmatmul.mubr.msk.bf16.gmra.mxu1 %vm17758_vm0, %v3903_v11 }
 0x1b3   : > { %v13514_v17 = vadd.f32 %v1803_v38, %v1587_v18  ;;  %10744 = vmatprep.mubr.msk.bf16.mxu1 %vm17772_vm14, %v3912_v58  ;;  %v3938_v54 = vor.u32 %v3937_v13, %v3934_v4  ;;  %v3950_v18 = vshrl.u32 %v13528_v6, 16  ;;  %vm17780_vm14 = vmmov %vm17761_vm2 }
 0x1b4   : > { %v10485_v51 = vpop.f32.mrf.mxu0  ;;  %v1819_v16 = vpop.f32.mrf.mxu1  ;;  %vm17784_vm2 = vmmov %vm17758_vm0 }
 0x1b5   : > { %v13521_v9 = vadd.f32 %v10523_v14, %v10485_v51  ;;  %v3930_v14 = vsel %vm17222_vm11, %v3920_v27, %v3929_v31  ;;  %v3959_v51 = vshrl.u32 %v13532_v1, 16  ;;  %v3939_v4 = vsel %vm17222_vm11, %v3929_v31, %v3938_v54 }
 0x1b6   : > { %v1590_v53 = vpop.f32.mrf.mxu0  ;;  %v10527_v0 = vpop.f32.mrf.mxu1  ;;  %v3952_v13 = vrot.slane %v3950_v18, 2  ;;  %v3547_v31 = vrot.slane %v13502_v43, 2  ;;  %v3549_v18 = vrot.slane %v13506_v8, 2 }
 0x1b7   : > { %v13525_v38 = vadd.f32 %v1806_v5, %v1590_v53 }
 0x1b8   : > { %v10488_v25 = vpop.f32.mrf.mxu0  ;;  %10703 = vmatmul.mubr.msk.bf16.gmra.mxu0 %vm17775_vm13, %v3540_v20  ;;  %v1822_v11 = vpop.f32.mrf.mxu1  ;;  %v3544_v20 = vsel %vm17780_vm14, %v3541_v63, %v3543_v44  ;;  %v3964_v63 = vrot.slane %v3962_v12, 3  ;;  %vm17787_vm13 = vmmov %vm17758_vm0 }
 0x1b9   : > { %v13534_v56 = vadd.f32 %v10526_v34, %v10488_v25  ;;  %10706 = vmatprep.mubr.msk.bf16.mxu0 %vm17777_vm5, %v3542_v42  ;;  %v3953_v34 = vshll.u32 %v13528_v6, 16  ;;  %v3546_v42 = vsel %vm17781_vm8, %v3543_v44, %v3545_v47  ;;  %vm17788_vm5 = vmmov %vm17758_vm0 }
 0x1ba   : > { %v1603_v5 = vpop.f32.mrf.mxu0  ;;  %v10530_v58 = vpop.f32.mrf.mxu1  ;;  %10745 = vmatmul.mubr.msk.bf16.gmra.mxu1 %vm17778_vm4, %v3921_v40  ;;  %vm17790_vm4 = vmmov %vm17758_vm0 }
 0x1bb   : > { %v13540_v39 = vadd.f32 %v1819_v16, %v1603_v5  ;;  %10748 = vmatprep.mubr.msk.bf16.mxu1 %vm17758_vm0, %v3930_v14  ;;  %v3955_v25 = vrot.slane %v3953_v34, 3  ;;  %v13554_v14 = vld [vmem:[#allocation3 + $0x80] sm:$0xff]   ;;  %v3961_v5 = vrot.slane %v3959_v51, 2  ;;  %vm17792_vm0 = vmmov %vm17781_vm8 }
 0x1bc   : > { %v10489_v27 = vpop.f32.mrf.mxu0  ;;  %v1835_v62 = vpop.f32.mrf.mxu1  ;;  %17783 = vst [vmem:[#allocation48_spill] sm:$0xff] %v13554_v14  ;;  %v3968_v51 = vshrl.u32 %v13554_v14, 16  ;;  %vm17793_vm14 = vmmov %vm17792_vm0 }
 0x1bd   : > { %v13547_v61 = vadd.f32 %v10527_v0, %v10489_v27  ;;  %v3948_v0 = vsel %vm17222_vm11, %v3938_v54, %v3947_v36  ;;  %v13558_v27 = vld [vmem:[#allocation3 + $0x88] sm:$0xff]   ;;  %v3956_v54 = vor.u32 %v3955_v25, %v3952_v13  ;;  %vm17795_vm8 = vmmov %vm17784_vm2 }
 0x1be   : > { %v1606_v16 = vpop.f32.mrf.mxu0  ;;  %v10531_v53 = vpop.f32.mrf.mxu1  ;;  %17785 = vst [vmem:[#allocation47_spill] sm:$0xff] %v13558_v27 }
 0x1bf   : > { %17779 = vst [vmem:[#allocation46_spill] sm:$0xff] %v13547_v61  ;;  %v13551_v40 = vadd.f32 %v1822_v11, %v1606_v16  ;;  %v3965_v16 = vor.u32 %v3964_v63, %v3961_v5  ;;  %v3957_v25 = vsel %vm17222_vm11, %v3947_v36, %v3956_v54  ;;  %v3551_v36 = vrot.slane %v13528_v6, 2 }
 0x1c0   : > { %v10492_v15 = vpop.f32.mrf.mxu0  ;;  %10707 = vmatmul.mubr.msk.bf16.gmra.mxu0 %vm17784_vm2, %v3544_v20  ;;  %v1838_v50 = vpop.f32.mrf.mxu1 }
 0x1c1   : > { %17782 = vst [vmem:[#allocation45_spill] sm:$0xff] %v13551_v40  ;;  %v13560_v61 = vadd.f32 %v10530_v58, %v10492_v15  ;;  %10710 = vmatprep.mubr.msk.bf16.mxu0 %vm17787_vm13, %v3546_v42  ;;  %v3971_v58 = vshll.u32 %v13554_v14, 16  ;;  %v3977_v42 = vshrl.u32 %v13558_v27, 16  ;;  %v3980_v15 = vshll.u32 %v13558_v27, 16  ;;  %vm17798_vm13 = vmmov %vm17784_vm2 }
 0x1c2   : > { %v1619_v11 = vpop.f32.mrf.mxu0  ;;  %v10534_v44 = vpop.f32.mrf.mxu1  ;;  %10749 = vmatmul.mubr.msk.bf16.gmra.mxu1 %vm17788_vm5, %v3939_v4  ;;  %v3548_v4 = vsel %vm17792_vm0, %v3545_v47, %v3547_v31  ;;  %vm17800_vm5 = vmmov %vm17784_vm2 }
 0x1c3   : > { %17786 = vst [vmem:[#allocation49_spill] sm:$0xff] %v13560_v61  ;;  %v13566_v34 = vadd.f32 %v1835_v62, %v1619_v11  ;;  %10752 = vmatprep.mubr.msk.bf16.mxu1 %vm17790_vm4, %v3948_v0  ;;  %v3550_v0 = vsel %vm17793_vm14, %v3547_v31, %v3549_v18  ;;  %v3973_v8 = vrot.slane %v3971_v58, 3  ;;  %v13580_v61 = vld [vmem:[#allocation3 + $0x90] sm:$0xff]   ;;  %v3982_v47 = vrot.slane %v3980_v15, 3  ;;  %vm17802_vm4 = vmmov %vm17792_vm0 }
 0x1c4   : > { %v10493_v12 = vpop.f32.mrf.mxu0  ;;  %v1851_v20 = vpop.f32.mrf.mxu1  ;;  %17794 = vst [vmem:[#allocation52_spill] sm:$0xff] %v13580_v61  ;;  %vm17804_vm14 = vmmov %vm17784_vm2 }
 0x1c5   : > { %17789 = vst [vmem:[#allocation50_spill] sm:$0xff] %v13566_v34  ;;  %v13573_v43 = vadd.f32 %v10531_v53, %v10493_v12  ;;  %v3970_v34 = vrot.slane %v3968_v51, 2  ;;  %v3966_v53 = vsel %vm17222_vm11, %v3956_v54, %v3965_v16  ;;  %v3979_v12 = vrot.slane %v3977_v42, 2 }
 0x1c6   : > { %v1622_v62 = vpop.f32.mrf.mxu0  ;;  %v10535_v11 = vpop.f32.mrf.mxu1  ;;  %v3553_v51 = vrot.slane %v13532_v1, 2  ;;  %v3986_v42 = vshrl.u32 %v13580_v61, 16 }
 0x1c7   : > { %17791 = vst [vmem:[#allocation51_spill] sm:$0xff] %v13573_v43  ;;  %v13577_v13 = vadd.f32 %v1838_v50, %v1622_v62  ;;  %v13584_v43 = vld [vmem:[#allocation3 + $0x98] sm:$0xff]   ;;  %v3974_v54 = vor.u32 %v3973_v8, %v3970_v34  ;;  %v3983_v62 = vor.u32 %v3982_v47, %v3979_v12 }
 0x1c8   : > { %v10496_v5 = vpop.f32.mrf.mxu0  ;;  %10711 = vmatmul.mubr.msk.bf16.gmra.mxu0 %vm17795_vm8, %v3548_v4  ;;  %v1854_v63 = vpop.f32.mrf.mxu1  ;;  %17796 = vst [vmem:[#allocation53_spill] sm:$0xff] %v13584_v43  ;;  %vm17805_vm8 = vmmov %vm17784_vm2 }
 0x1c9   : > { %v13586_v40 = vadd.f32 %v10534_v44, %v10496_v5  ;;  %10714 = vmatprep.mubr.msk.bf16.mxu0 %vm17784_vm2, %v3550_v0  ;;  %v3989_v44 = vshll.u32 %v13580_v61, 16  ;;  %v3995_v0 = vshrl.u32 %v13584_v43, 16  ;;  %v3998_v5 = vshll.u32 %v13584_v43, 16 }
 0x1ca   : > { %v1635_v50 = vpop.f32.mrf.mxu0  ;;  %v10538_v31 = vpop.f32.mrf.mxu1  ;;  %10753 = vmatmul.mubr.msk.bf16.gmra.mxu1 %vm17798_vm13, %v3957_v25  ;;  %v3552_v25 = vsel %vm17802_vm4, %v3549_v18, %v3551_v36  ;;  %v3975_v34 = vsel %vm17222_vm11, %v3965_v16, %v3974_v54  ;;  %vm17806_vm13 = vmmov %vm17784_vm2 }
 0x1cb   : > { %17797 = vst [vmem:[#allocation54_spill] sm:$0xff] %v13586_v40  ;;  %v13592_v58 = vadd.f32 %v1851_v20, %v1635_v50  ;;  %10756 = vmatprep.mubr.msk.bf16.mxu1 %vm17800_vm5, %v3966_v53  ;;  %v3554_v53 = vsel %vm17792_vm0, %v3551_v36, %v3553_v51  ;;  %v3991_v1 = vrot.slane %v3989_v44, 3  ;;  %v13606_v40 = vld [vmem:[#allocation3 + $0xa0] ss:$0 sps:$4 sm:$0x77]   ;;  %v4000_v18 = vrot.slane %v3998_v5, 3  ;;  %vm17807_vm5 = vmmov %vm17792_vm0 }
 0x1cc   : > { %v10497_v15 = vpop.f32.mrf.mxu0  ;;  %v1867_v4 = vpop.f32.mrf.mxu1  ;;  %17803 = vst [vmem:[#allocation57_spill] sm:$0xff] %v13606_v40  ;;  %vm17808_vm4 = vmmov %vm17792_vm0 }
 0x1cd   : > { %17799 = vst [vmem:[#allocation55_spill] sm:$0xff] %v13592_v58  ;;  %v13599_v6 = vadd.f32 %v10535_v11, %v10497_v15  ;;  %v3988_v58 = vrot.slane %v3986_v42, 2  ;;  %v3984_v11 = vsel %vm17222_vm11, %v3974_v54, %v3983_v62  ;;  %v3997_v15 = vrot.slane %v3995_v0, 2  ;;  %vm17809_vm0 = vmmov %vm17784_vm2 }
 0x1ce   : > { %v1638_v20 = vpop.f32.mrf.mxu0  ;;  %v10539_v50 = vpop.f32.mrf.mxu1  ;;  %v3557_v42 = vrot.slane %v13558_v27, 2  ;;  %v4004_v54 = vshrl.u32 %v13606_v40, 16 }
 0x1cf   : > { %17801 = vst [vmem:[#allocation56_spill] sm:$0xff] %v13599_v6  ;;  %v13603_v8 = vadd.f32 %v1854_v63, %v1638_v20  ;;  %v3555_v63 = vrot.slane %v13554_v14, 2  ;;  %v4001_v20 = vor.u32 %v4000_v18, %v3997_v15 }
 0x1d0   : > { %v10500_v12 = vpop.f32.mrf.mxu0  ;;  %10715 = vmatmul.mubr.msk.bf16.gmra.mxu0 %vm17804_vm14, %v3552_v25  ;;  %v1870_v47 = vpop.f32.mrf.mxu1  ;;  %v3992_v25 = vor.u32 %v3991_v1, %v3988_v58  ;;  %v4006_v1 = vrot.slane %v4004_v54, 2  ;;  %vm17810_vm14 = vmmov %vm17809_vm0 }
 0x1d1   : > { %v13610_v6 = vadd.f32 %v10538_v31, %v10500_v12  ;;  %10718 = vmatprep.mubr.msk.bf16.mxu0 %vm17805_vm8, %v3554_v53  ;;  %v4007_v31 = vshll.u32 %v13606_v40, 16  ;;  %v3556_v12 = vsel %vm17807_vm5, %v3553_v51, %v3555_v63  ;;  %v3558_v27 = vsel %vm17808_vm4, %v3555_v63, %v3557_v42  ;;  %vm17811_vm8 = vmmov %vm17809_vm0 }
 0x1d2   : > { %v1651_v36 = vpop.f32.mrf.mxu0  ;;  %v10582_v16 = vpop.f32.mrf.mxu1  ;;  %10757 = vmatmul.mubr.msk.bf16.gmra.mxu1 %vm17784_vm2, %v3975_v34  ;;  %v4002_v15 = vsel %vm17222_vm11, %v3992_v25, %v4001_v20  ;;  %v3559_v51 = vrot.slane %v13580_v61, 2  ;;  %vm17812_vm2 = vmmov %vm17809_vm0 }
 0x1d3   : > { %v13616_v44 = vadd.f32 %v1867_v4, %v1651_v36  ;;  %10760 = vmatprep.mubr.msk.bf16.mxu1 %vm17806_vm13, %v3984_v11  ;;  %v3993_v11 = vsel %vm17222_vm11, %v3983_v62, %v3992_v25  ;;  %v4009_v58 = vrot.slane %v4007_v31, 3  ;;  %v4282_v25 = vld [vmem:[#allocation3 + $0x10] sm:$0x8]  ;;  %vm17813_vm13 = vmmov %vm17808_vm4 }
 0x1d4   : > { %v10501_v0 = vpop.f32.mrf.mxu0  ;;  %v2456_v5 = vpop.f32.mrf.mxu1  ;;  %vm17814_vm5 = vmmov %vm17808_vm4 }
 0x1d5   : > { %v13621_v53 = vadd.f32 %v10539_v50, %v10501_v0  ;;  %v4010_v54 = vor.u32 %v4009_v58, %v4006_v1  ;;  %vm17815_vm4 = vmmov %vm17809_vm0 }
 0x1d6   : > { %v1654_v14 = vpop.f32.mrf.mxu0  ;;  %v10583_v34 = vpop.f32.mrf.mxu1 }
 0x1d7   : > { %v13625_v4 = vadd.f32 %v1870_v47, %v1654_v14  ;;  %v3561_v14 = vrot.slane %v13584_v43, 2  ;;  %v4011_v1 = vsel %vm17222_vm11, %v4001_v20, %v4010_v54 }
 0x1d8   : > { %v10544_v36 = vpop.f32.mrf.mxu0  ;;  %10719 = vmatmul.mubr.msk.bf16.gmra.mxu0 %vm17809_vm0, %v3556_v12  ;;  %v2459_v40 = vpop.f32.mrf.mxu1  ;;  %v3560_v12 = vsel %vm17813_vm13, %v3557_v42, %v3559_v51  ;;  %vm17818_vm13 = vmmov %vm17809_vm0 }
 0x1d9   : > { %v2162_v50 = vadd.f32 %v10544_v36, %v13398_v3  ;;  %10722 = vmatprep.mubr.msk.bf16.mxu0 %vm17810_vm14, %v3558_v27  ;;  %v11328_v36 = vld [vmem:[#allocation3 + $0xa0] ss:$0 sps:$4 sm:$0x33]   ;;  %v3562_v43 = vsel %vm17814_vm5, %v3559_v51, %v3561_v14  ;;  %vm17816_vm14 = vmmov %vm17809_vm0 }
 0x1da   : > { %v2017_v18 = vpop.f32.mrf.mxu0  ;;  %v10586_v63 = vpop.f32.mrf.mxu1  ;;  %10761 = vmatmul.mubr.msk.bf16.gmra.mxu1 %vm17811_vm8, %v3993_v11  ;;  %vm17221_vm8 = vcmask 1044480  }
 0x1db   : > { %v2160_v62 = vadd.f32 %v2017_v18, %v13404_v30  ;;  %v13636_v47 = vadd.f32 %v10582_v16, %v2162_v50  ;;  %10764 = vmatprep.mubr.msk.bf16.mxu1 %vm17812_vm2, %v4002_v15  ;;  %v9734_v30 = vcombine.low %v4282_v25, %v13373_v41  ;;  %v3563_v50 = vrot.slane %v11328_v36, 2  ;;  %vm17817_vm2 = vmmov %vm17814_vm5 }
 0x1dc   : > { %v10545_v31 = vpop.f32.mrf.mxu0  ;;  %v2472_v3 = vpop.f32.mrf.mxu1  ;;  %vm17819_vm5 = vmmov %vm17809_vm0 }
 0x1dd   : > { %v2163_v27 = vadd.f32 %v10545_v31, %v13413_v52  ;;  %v13640_v0 = vadd.f32 %v2456_v5, %v2160_v62  ;;  %v4289_v41 = vrot.slane %v9734_v30, 3  ;;  %v4294_v30 = vrot.slane %v13396_v28, 3 }
 0x1de   : > { %v2020_v11 = vpop.f32.mrf.mxu0  ;;  %v10587_v61 = vpop.f32.mrf.mxu1 }
 0x1df   : > { %v2161_v16 = vadd.f32 %v2020_v11, %v13415_v33  ;;  %v13646_v15 = vadd.f32 %v10583_v34, %v2163_v27  ;;  %v4290_v33 = vrot.slane %v13380_v19, 3 }
 0x1e0   : > { %v10548_v58 = vpop.f32.mrf.mxu0  ;;  %10723 = vmatmul.mubr.msk.bf16.gmra.mxu0 %vm17815_vm4, %v3560_v12  ;;  %v2475_v52 = vpop.f32.mrf.mxu1  ;;  %vm17820_vm4 = vmmov %vm17809_vm0 }
 0x1e1   : > { %v2166_v5 = vadd.f32 %v10548_v58, %v13427_v35  ;;  %v13651_v42 = vadd.f32 %v2459_v40, %v2161_v16  ;;  %10726 = vmatprep.mubr.msk.bf16.mxu0 %vm17809_vm0, %v3562_v43  ;;  %v3564_v43 = vsel %vm17817_vm2, %v3561_v14, %v3563_v50  ;;  %v4291_v27 = vsel %vm17221_vm8, %v4289_v41, %v4290_v33  ;;  %vm17822_vm2 = vmmov %vm17809_vm0 }
 0x1e2   : > { %v2033_v51 = vpop.f32.mrf.mxu0  ;;  %v10590_v18 = vpop.f32.mrf.mxu1  ;;  %10765 = vmatmul.mubr.msk.bf16.gmra.mxu1 %vm17816_vm14, %v4011_v1  ;;  %vm17821_vm14 = vmmov %vm17809_vm0 }
 0x1e3   : > { %v2164_v20 = vadd.f32 %v2033_v51, %v13434_v32  ;;  %v13657_v34 = vadd.f32 %v10586_v63, %v2166_v5 }
 0x1e4   : > { %v10549_v62 = vpop.f32.mrf.mxu0  ;;  %v2488_v54 = vpop.f32.mrf.mxu1 }
 0x1e5   : > { %v2167_v35 = vadd.f32 %v10549_v62, %v13441_v49  ;;  %v13660_v40 = vadd.f32 %v2472_v3, %v2164_v20  ;;  %v4292_v49 = vrot.slane %v13392_v59, 3 }
 0x1e6   : > { %v2036_v25 = vpop.f32.mrf.mxu0  ;;  %v10591_v31 = vpop.f32.mrf.mxu1 }
 0x1e7   : > { %v2165_v12 = vadd.f32 %v2036_v25, %v13444_v55  ;;  %v13665_v19 = vadd.f32 %v10587_v61, %v2167_v35  ;;  %v4295_v59 = vsel %vm17221_vm8, %v4292_v49, %v4294_v30 }
 0x1e8   : > { %v10552_v32 = vpop.f32.mrf.mxu0  ;;  %10727 = vmatmul.mubr.msk.bf16.gmra.mxu0 %vm17818_vm13, %v3564_v43  ;;  %v2491_v63 = vpop.f32.mrf.mxu1  ;;  %vm17823_vm13 = vmmov %vm17809_vm0 }
 0x1e9   : > { %v2170_v36 = vadd.f32 %v10552_v32, %v13454_v60  ;;  %v13669_v11 = vadd.f32 %v2475_v52, %v2165_v12  ;;  %10770 = vmatprep.mubr.msk.bf16.mxu0 %vm17819_vm5, %v4291_v27  ;;  %v4293_v60 = vsel %vm17221_vm8, %v4290_v33, %v4292_v49  ;;  %vm17824_vm5 = vmmov %vm17809_vm0 }
 0x1ea   : > { %v2049_v14 = vpop.f32.mrf.mxu0  ;;  %v10594_v3 = vpop.f32.mrf.mxu1 }
 0x1eb   : > { %v2168_v55 = vadd.f32 %v2049_v14, %v13460_v48  ;;  %v13675_v61 = vadd.f32 %v10590_v18, %v2170_v36 }
 0x1ec   : > { %v10553_v16 = vpop.f32.mrf.mxu0  ;;  %v2504_v1 = vpop.f32.mrf.mxu1 }
 0x1ed   : > { %v2171_v58 = vadd.f32 %v10553_v16, %v13467_v26  ;;  %v13678_v5 = vadd.f32 %v2488_v54, %v2168_v55  ;;  %v4296_v26 = vrot.slane %v13420_v7, 3  ;;  %v4298_v54 = vrot.slane %v13425_v37, 3 }
 0x1ee   : > { %v2052_v52 = vpop.f32.mrf.mxu0  ;;  %v10595_v50 = vpop.f32.mrf.mxu1  ;;  %v4302_v55 = vrot.slane %v13452_v29, 3 }
 0x1ef   : > { %v2169_v51 = vadd.f32 %v2052_v52, %v13473_v21  ;;  %v13683_v41 = vadd.f32 %v10591_v31, %v2171_v58  ;;  %v4299_v7 = vsel %vm17221_vm8, %v4296_v26, %v4298_v54 }
 0x1f0   : > { %v10556_v28 = vpop.f32.mrf.mxu0  ;;  %10771 = vmatmul.mubr.msk.bf16.vlgmr.msra.gmra.mxu0 %vm17820_vm4, %v4293_v60  ;;  %v2507_v48 = vpop.f32.mrf.mxu1  ;;  %vm17827_vm4 = vmmov %vm17809_vm0 }
 0x1f1   : > { %v2174_v18 = vadd.f32 %v10556_v28, %v13482_v46  ;;  %v13687_v20 = vadd.f32 %v2491_v63, %v2169_v51  ;;  %10774 = vmatprep.mubr.msk.bf16.mxu0 %vm17809_vm0, %v4295_v59  ;;  %v4297_v46 = vsel %vm17221_vm8, %v4294_v30, %v4296_v26 }
 0x1f2   : > { %v2065_v33 = vpop.f32.mrf.mxu0  ;;  %v10598_v62 = vpop.f32.mrf.mxu1 }
 0x1f3   : > { %v2172_v21 = vadd.f32 %v2065_v33, %v13488_v45  ;;  %v13693_v35 = vadd.f32 %v10594_v3, %v2174_v18 }
 0x1f4   : > { %v10557_v43 = vpop.f32.mrf.mxu0  ;;  %v2520_v25 = vpop.f32.mrf.mxu1 }
 0x1f5   : > { %v2175_v31 = vadd.f32 %v10557_v43, %v13495_v57  ;;  %v13696_v27 = vadd.f32 %v2504_v1, %v2172_v21  ;;  %v4300_v57 = vrot.slane %v13447_v22, 3 }
 0x1f6   : > { %v2068_v12 = vpop.f32.mrf.mxu0  ;;  %v10599_v32 = vpop.f32.mrf.mxu1 }
 0x1f7   : > { %v2173_v63 = vadd.f32 %v2068_v12, %v13499_v24  ;;  %v13701_v36 = vadd.f32 %v10595_v50, %v2175_v31  ;;  %v4303_v22 = vsel %vm17221_vm8, %v4300_v57, %v4302_v55 }
 0x1f8   : > { %v10560_v37 = vpop.f32.mrf.mxu0  ;;  %10775 = vmatmul.mubr.msk.bf16.gmra.mxu0 %vm17821_vm14, %v4297_v46  ;;  %v2523_v45 = vpop.f32.mrf.mxu1  ;;  %vm17833_vm14 = vmmov %vm17809_vm0 }
 0x1f9   : > { %v2178_v49 = vadd.f32 %v10560_v37, %v13508_v10  ;;  %v13705_v14 = vadd.f32 %v2507_v48, %v2173_v63  ;;  %10778 = vmatprep.mubr.msk.bf16.mxu0 %vm17822_vm2, %v4299_v7  ;;  %v4301_v10 = vsel %vm17221_vm8, %v4298_v54, %v4300_v57  ;;  %v17826_v7 = vld [vmem:[#allocation45_spill] sm:$0xff]  ;;  %vm17835_vm2 = vmmov %vm17809_vm0 }
 0x1fa   : > { %v2081_v3 = vpop.f32.mrf.mxu0  ;;  %v10602_v30 = vpop.f32.mrf.mxu1 }
 0x1fb   : > { %v2176_v24 = vadd.f32 %v2081_v3, %v13514_v17  ;;  %v13711_v16 = vadd.f32 %v10598_v62, %v2178_v49  ;;  %v4306_v62 = vrot.slane %v13480_v23, 3  ;;  %v17829_v3 = vld [vmem:[#allocation42_spill] sm:$0xff] }
 0x1fc   : > { %v10561_v1 = vpop.f32.mrf.mxu0  ;;  %v2536_v58 = vpop.f32.mrf.mxu1 }
 0x1fd   : > { %v2179_v60 = vadd.f32 %v10561_v1, %v13521_v9  ;;  %v13714_v52 = vadd.f32 %v2520_v25, %v2176_v24  ;;  %v4304_v9 = vrot.slane %v13476_v2, 3  ;;  %v17825_v25 = vld [vmem:[#allocation46_spill] sm:$0xff]  ;;  %v17830_v1 = vld [vmem:[#allocation41_spill] sm:$0xff] }
 0x1fe   : > { %v2084_v50 = vpop.f32.mrf.mxu0  ;;  %v10603_v59 = vpop.f32.mrf.mxu1 }
 0x1ff   : > { %v2177_v51 = vadd.f32 %v2084_v50, %v13525_v38  ;;  %v13719_v28 = vadd.f32 %v10599_v32, %v2179_v60  ;;  %v4307_v2 = vsel %vm17221_vm8, %v4304_v9, %v4306_v62  ;;  %v17831_v60 = vld [vmem:[#allocation50_spill] sm:$0xff] }
 0x200   : > { %v10564_v29 = vpop.f32.mrf.mxu0  ;;  %10779 = vmatmul.mubr.msk.bf16.gmra.mxu0 %vm17823_vm13, %v4301_v10  ;;  %v2539_v17 = vpop.f32.mrf.mxu1  ;;  %vm17840_vm13 = vmmov %vm17809_vm0 }
 0x201   : > { %v2182_v48 = vadd.f32 %v10564_v29, %v13534_v56  ;;  %v13723_v18 = vadd.f32 %v2523_v45, %v2177_v51  ;;  %10782 = vmatprep.mubr.msk.bf16.mxu0 %vm17824_vm5, %v4303_v22  ;;  %v4305_v56 = vsel %vm17221_vm8, %v4302_v55, %v4304_v9  ;;  %v17828_v45 = vld [vmem:[#allocation49_spill] sm:$0xff]  ;;  %v17832_v51 = vld [vmem:[#allocation51_spill] sm:$0xff]  ;;  %vm17841_vm5 = vmmov %vm17809_vm0 }
 0x202   : > { %v2097_v26 = vpop.f32.mrf.mxu0  ;;  %v10606_v33 = vpop.f32.mrf.mxu1 }
 0x203   : > { %v2180_v38 = vadd.f32 %v2097_v26, %v13540_v39  ;;  %v13729_v54 = vadd.f32 %v10602_v30, %v2182_v48  ;;  %v4308_v30 = vrot.slane %v17829_v3, 3 }
 0x204   : > { %v10565_v21 = vpop.f32.mrf.mxu0  ;;  %v2552_v43 = vpop.f32.mrf.mxu1 }
 0x205   : > { %v2183_v31 = vadd.f32 %v10565_v21, %v17825_v25  ;;  %v13732_v46 = vadd.f32 %v2536_v58, %v2180_v38  ;;  %v4310_v58 = vrot.slane %v17830_v1, 3 }
 0x206   : > { %v2100_v12 = vpop.f32.mrf.mxu0  ;;  %v10607_v32 = vpop.f32.mrf.mxu1 }
 0x207   : > { %v2181_v63 = vadd.f32 %v2100_v12, %v17826_v7  ;;  %v13737_v37 = vadd.f32 %v10603_v59, %v2183_v31  ;;  %v4311_v38 = vsel %vm17221_vm8, %v4308_v30, %v4310_v58 }
 0x208   : > { %v10568_v23 = vpop.f32.mrf.mxu0  ;;  %10783 = vmatmul.mubr.msk.bf16.gmra.mxu0 %vm17827_vm4, %v4305_v56  ;;  %v2555_v39 = vpop.f32.mrf.mxu1  ;;  %v17834_v56 = vld [vmem:[#allocation54_spill] sm:$0xff]  ;;  %vm17844_vm4 = vmmov %vm17809_vm0 }
 0x209   : > { %v2186_v49 = vadd.f32 %v10568_v23, %v17828_v45  ;;  %v13741_v57 = vadd.f32 %v2539_v17, %v2181_v63  ;;  %10786 = vmatprep.mubr.msk.bf16.mxu0 %vm17809_vm0, %v4307_v2  ;;  %v4309_v17 = vsel %vm17221_vm8, %v4306_v62, %v4308_v30  ;;  %v17837_v23 = vld [vmem:[#allocation43_spill] sm:$0xff] }
 0x20a   : > { %v2113_v55 = vpop.f32.mrf.mxu0  ;;  %v10610_v24 = vpop.f32.mrf.mxu1  ;;  %v4314_v45 = vrot.slane %v17837_v23, 3 }
 0x20b   : > { %v2184_v10 = vadd.f32 %v2113_v55, %v17831_v60  ;;  %v13747_v50 = vadd.f32 %v10606_v33, %v2186_v49  ;;  %v17838_v49 = vld [vmem:[#allocation55_spill] sm:$0xff]  ;;  %v17839_v55 = vld [vmem:[#allocation56_spill] sm:$0xff] }
 0x20c   : > { %v10569_v59 = vpop.f32.mrf.mxu0  ;;  %v2568_v22 = vpop.f32.mrf.mxu1 }
 0x20d   : > { %v2187_v29 = vadd.f32 %v10569_v59, %v17832_v51  ;;  %v13750_v48 = vadd.f32 %v2552_v43, %v2184_v10  ;;  %v17836_v43 = vld [vmem:[#allocation44_spill] sm:$0xff] }
 0x20e   : > { %v2116_v9 = vpop.f32.mrf.mxu0  ;;  %v10611_v26 = vpop.f32.mrf.mxu1  ;;  %v4312_v62 = vrot.slane %v17836_v43, 3 }
 0x20f   : > { %v2185_v21 = vadd.f32 %v2116_v9, %v13577_v13  ;;  %v13755_v25 = vadd.f32 %v10607_v32, %v2187_v29 }
 0x210   : > { %v10572_v31 = vpop.f32.mrf.mxu0  ;;  %10787 = vmatmul.mubr.msk.bf16.gmra.mxu0 %vm17833_vm14, %v4309_v17  ;;  %v2571_v33 = vpop.f32.mrf.mxu1  ;;  %v4315_v51 = vsel %vm17221_vm8, %v4312_v62, %v4314_v45  ;;  %vm17847_vm14 = vmmov %vm17809_vm0 }
 0x211   : > { %v2190_v12 = vadd.f32 %v10572_v31, %v17834_v56  ;;  %v13759_v2 = vadd.f32 %v2555_v39, %v2185_v21  ;;  %10790 = vmatprep.mubr.msk.bf16.mxu0 %vm17835_vm2, %v4311_v38  ;;  %v4313_v39 = vsel %vm17221_vm8, %v4310_v58, %v4312_v62  ;;  %vm17848_vm2 = vmmov %vm17809_vm0 }
 0x212   : > { %v2129_v7 = vpop.f32.mrf.mxu0  ;;  %v10614_v63 = vpop.f32.mrf.mxu1 }
 0x213   : > { %v2188_v13 = vadd.f32 %v2129_v7, %v17838_v49  ;;  %v13765_v32 = vadd.f32 %v10610_v24, %v2190_v12  ;;  %v17843_v12 = vld [vmem:[#allocation47_spill] sm:$0xff] }
 0x214   : > { %v10573_v3 = vpop.f32.mrf.mxu0  ;;  %v2584_v30 = vpop.f32.mrf.mxu1  ;;  %v4318_v43 = vrot.slane %v17843_v12, 3 }
 0x215   : > { %v2191_v1 = vadd.f32 %v10573_v3, %v17839_v55  ;;  %v13768_v60 = vadd.f32 %v2568_v22, %v2188_v13  ;;  %v17842_v22 = vld [vmem:[#allocation48_spill] sm:$0xff] }
 0x216   : > { %v2132_v10 = vpop.f32.mrf.mxu0  ;;  %v10615_v59 = vpop.f32.mrf.mxu1  ;;  %v4316_v58 = vrot.slane %v17842_v22, 3 }
 0x217   : > { %v2189_v29 = vadd.f32 %v2132_v10, %v13603_v8  ;;  %v13773_v17 = vadd.f32 %v10611_v26, %v2191_v1 }
 0x218   : > { %v10576_v9 = vpop.f32.mrf.mxu0  ;;  %10791 = vmatmul.mubr.msk.bf16.gmra.mxu0 %vm17840_vm13, %v4313_v39  ;;  %v2587_v24 = vpop.f32.mrf.mxu1  ;;  %v4319_v3 = vsel %vm17221_vm8, %v4316_v58, %v4318_v43  ;;  %vm17850_vm13 = vmmov %vm17809_vm0 }
 0x219   : > { %v2194_v38 = vadd.f32 %v10576_v9, %v13610_v6  ;;  %v13777_v21 = vadd.f32 %v2571_v33, %v2189_v29  ;;  %10794 = vmatprep.mubr.msk.bf16.mxu0 %vm17841_vm5, %v4315_v51  ;;  %v4317_v6 = vsel %vm17221_vm8, %v4314_v45, %v4316_v58  ;;  %v17846_v29 = vld [vmem:[#allocation53_spill] sm:$0xff]  ;;  %vm17858_vm5 = vmmov %vm17809_vm0 }
 0x21a   : > { %v2145_v31 = vpop.f32.mrf.mxu0  ;;  %v10658_v56 = vpop.f32.mrf.mxu1  ;;  %v4322_v9 = vrot.slane %v17846_v29, 3 }
 0x21b   : > { %v2192_v8 = vadd.f32 %v2145_v31, %v13616_v44  ;;  %v13783_v26 = vadd.f32 %v10614_v63, %v2194_v38 }
 0x21c   : > { %v10577_v62 = vpop.f32.mrf.mxu0  ;;  %v3217_v7 = vpop.f32.mrf.mxu1 }
 0x21d   : > { %v2195_v23 = vadd.f32 %v10577_v62, %v13621_v53  ;;  %v13786_v49 = vadd.f32 %v2584_v30, %v2192_v8  ;;  %v17845_v30 = vld [vmem:[#allocation52_spill] sm:$0xff] }
 0x21e   : > { %v2148_v33 = vpop.f32.mrf.mxu0  ;;  %v10659_v13 = vpop.f32.mrf.mxu1  ;;  %v4320_v45 = vrot.slane %v17845_v30, 3 }
 0x21f   : > { %v2193_v55 = vadd.f32 %v2148_v33, %v13625_v4  ;;  %v13791_v1 = vadd.f32 %v10615_v59, %v2195_v23 }
 0x220   : > { %v10620_v39 = vpop.f32.mrf.mxu0  ;;  %10795 = vmatmul.mubr.msk.bf16.gmra.mxu0 %vm17844_vm4, %v4317_v6  ;;  %v3220_v44 = vpop.f32.mrf.mxu1  ;;  %v4323_v8 = vsel %vm17221_vm8, %v4320_v45, %v4322_v9  ;;  %vm17859_vm4 = vmmov %vm17809_vm0 }
 0x221   : > { %v13794_v63 = vadd.f32 %v2587_v24, %v2193_v55  ;;  %v3048_v53 = vadd.f32 %v10620_v39, %v13636_v47  ;;  %10798 = vmatprep.mubr.msk.bf16.mxu0 %vm17809_vm0, %v4319_v3  ;;  %v4321_v47 = vsel %vm17221_vm8, %v4318_v43, %v4320_v45 }
 0x222   : > { %v2903_v10 = vpop.f32.mrf.mxu0  ;;  %v10662_v51 = vpop.f32.mrf.mxu1 }
 0x223   : > { %v3046_v4 = vadd.f32 %v2903_v10, %v13640_v0  ;;  %v13801_v59 = vadd.f32 %v10658_v56, %v3048_v53 }
 0x224   : > { %v10621_v38 = vpop.f32.mrf.mxu0  ;;  %v3233_v22 = vpop.f32.mrf.mxu1 }
 0x225   : > { %v3049_v58 = vadd.f32 %v10621_v38, %v13646_v15  ;;  %v13804_v24 = vadd.f32 %v3217_v7, %v3046_v4  ;;  %v17849_v15 = vld [vmem:[#allocation57_spill] sm:$0xff] }
 0x226   : > { %v2906_v31 = vpop.f32.mrf.mxu0  ;;  %v10663_v12 = vpop.f32.mrf.mxu1  ;;  %v4324_v43 = vrot.slane %v17849_v15, 3 }
 0x227   : > { %v3047_v62 = vadd.f32 %v2906_v31, %v13651_v42  ;;  %v13809_v23 = vadd.f32 %v10659_v13, %v3049_v58 }
 0x228   : > { %v10624_v6 = vpop.f32.mrf.mxu0  ;;  %10799 = vmatmul.mubr.msk.bf16.gmra.mxu0 %vm17847_vm14, %v4321_v47  ;;  %v3236_v0 = vpop.f32.mrf.mxu1  ;;  %vm17862_vm14 = vmmov %vm17809_vm0 }
 0x229   : > { %v3052_v56 = vadd.f32 %v10624_v6, %v13657_v34  ;;  %v13813_v33 = vadd.f32 %v3220_v44, %v3047_v62  ;;  %10802 = vmatprep.mubr.msk.bf16.mxu0 %vm17848_vm2, %v4323_v8  ;;  %v4325_v34 = vsel %vm17221_vm8, %v4322_v9, %v4324_v43  ;;  %vm17864_vm2 = vmmov %vm17809_vm0 }
 0x22a   : > { %v2919_v7 = vpop.f32.mrf.mxu0  ;;  %v10666_v3 = vpop.f32.mrf.mxu1 }
 0x22b   : > { %v3050_v55 = vadd.f32 %v2919_v7, %v13660_v40  ;;  %v13818_v39 = vadd.f32 %v10662_v51, %v3052_v56 }
 0x22c   : > { %v10625_v42 = vpop.f32.mrf.mxu0  ;;  %v3249_v13 = vpop.f32.mrf.mxu1 }
 0x22d   : > { %v3053_v53 = vadd.f32 %v10625_v42, %v13665_v19  ;;  %v13821_v30 = vadd.f32 %v3233_v22, %v3050_v55 }
 0x22e   : > { %v2922_v44 = vpop.f32.mrf.mxu0  ;;  %v10667_v45 = vpop.f32.mrf.mxu1 }
 0x22f   : > { %v3051_v10 = vadd.f32 %v2922_v44, %v13669_v11  ;;  %v13825_v29 = vadd.f32 %v10663_v12, %v3053_v53 }
 0x230   : > { %v10628_v4 = vpop.f32.mrf.mxu0  ;;  %10803 = vmatmul.mubr.msk.bf16.gmra.mxu0 %vm17850_vm13, %v4325_v34  ;;  %v3252_v40 = vpop.f32.mrf.mxu1  ;;  %vm17866_vm13 = vmmov %vm17809_vm0 }
 0x231   : > { %v3056_v51 = vadd.f32 %v10628_v4, %v13675_v61  ;;  %v13829_v38 = vadd.f32 %v3236_v0, %v3051_v10 }
 0x232   : > { %v2935_v58 = vpop.f32.mrf.mxu0  ;;  %v10670_v19 = vpop.f32.mrf.mxu1 }
 0x233   : > { %v3054_v22 = vadd.f32 %v2935_v58, %v13678_v5  ;;  %v13832_v47 = vadd.f32 %v10666_v3, %v3056_v51 }
 0x234   : > { %v10629_v9 = vpop.f32.mrf.mxu0  ;;  %v3265_v31 = vpop.f32.mrf.mxu1 }
 0x235   : > { %v3057_v11 = vadd.f32 %v10629_v9, %v13683_v41  ;;  %v13835_v12 = vadd.f32 %v3249_v13, %v3054_v22 }
 0x236   : > { %v2938_v8 = vpop.f32.mrf.mxu0  ;;  %v10671_v62 = vpop.f32.mrf.mxu1 }
 0x237   : > { %v3055_v6 = vadd.f32 %v2938_v8, %v13687_v20  ;;  %v13838_v56 = vadd.f32 %v10667_v45, %v3057_v11 }
 0x238   : > { %v10632_v61 = vpop.f32.mrf.mxu0  ;;  %v3268_v0 = vpop.f32.mrf.mxu1 }
 0x239   : > { %v3060_v15 = vadd.f32 %v10632_v61, %v13693_v35  ;;  %v13841_v43 = vadd.f32 %v3252_v40, %v3055_v6 }
 0x23a   : > { %v2951_v5 = vpop.f32.mrf.mxu0  ;;  %v10674_v7 = vpop.f32.mrf.mxu1 }
 0x23b   : > { %v3058_v3 = vadd.f32 %v2951_v5, %v13696_v27  ;;  %v13844_v55 = vadd.f32 %v10670_v19, %v3060_v15 }
 0x23c   : > { %v10633_v41 = vpop.f32.mrf.mxu0  ;;  %v3281_v42 = vpop.f32.mrf.mxu1 }
 0x23d   : > { %v3061_v13 = vadd.f32 %v10633_v41, %v13701_v36  ;;  %v13847_v53 = vadd.f32 %v3265_v31, %v3058_v3 }
 0x23e   : > { %v2954_v20 = vpop.f32.mrf.mxu0  ;;  %v10675_v34 = vpop.f32.mrf.mxu1 }
 0x23f   : > { %v3059_v44 = vadd.f32 %v2954_v20, %v13705_v14  ;;  %v13850_v45 = vadd.f32 %v10671_v62, %v3061_v13 }
 0x240   : > { %v10636_v35 = vpop.f32.mrf.mxu0  ;;  %v3284_v10 = vpop.f32.mrf.mxu1 }
 0x241   : > { %v3064_v4 = vadd.f32 %v10636_v35, %v13711_v16  ;;  %v13853_v40 = vadd.f32 %v3268_v0, %v3059_v44 }
 0x242   : > { %v2967_v27 = vpop.f32.mrf.mxu0  ;;  %v10678_v51 = vpop.f32.mrf.mxu1 }
 0x243   : > { %v3062_v58 = vadd.f32 %v2967_v27, %v13714_v52  ;;  %v13856_v19 = vadd.f32 %v10674_v7, %v3064_v4 }
 0x244   : > { %v10637_v36 = vpop.f32.mrf.mxu0  ;;  %v3297_v22 = vpop.f32.mrf.mxu1 }
 0x245   : > { %v3065_v9 = vadd.f32 %v10637_v36, %v13719_v28  ;;  %v13859_v31 = vadd.f32 %v3281_v42, %v3062_v58 }
 0x246   : > { %v2970_v14 = vpop.f32.mrf.mxu0  ;;  %v10679_v11 = vpop.f32.mrf.mxu1 }
 0x247   : > { %v3063_v8 = vadd.f32 %v2970_v14, %v13723_v18  ;;  %v13862_v62 = vadd.f32 %v10675_v34, %v3065_v9 }
 0x248   : > { %v10640_v16 = vpop.f32.mrf.mxu0  ;;  %v3300_v6 = vpop.f32.mrf.mxu1 }
 0x249   : > { %v3068_v61 = vadd.f32 %v10640_v16, %v13729_v54  ;;  %v13865_v0 = vadd.f32 %v3284_v10, %v3063_v8 }
 0x24a   : > { %v2983_v52 = vpop.f32.mrf.mxu0  ;;  %v10682_v15 = vpop.f32.mrf.mxu1 }
 0x24b   : > { %v3066_v5 = vadd.f32 %v2983_v52, %v13732_v46  ;;  %v13868_v7 = vadd.f32 %v10678_v51, %v3068_v61 }
 0x24c   : > { %v10641_v28 = vpop.f32.mrf.mxu0  ;;  %v3313_v3 = vpop.f32.mrf.mxu1 }
 0x24d   : > { %v3069_v41 = vadd.f32 %v10641_v28, %v13737_v37  ;;  %v13871_v42 = vadd.f32 %v3297_v22, %v3066_v5 }
 0x24e   : > { %v2986_v18 = vpop.f32.mrf.mxu0  ;;  %v10683_v13 = vpop.f32.mrf.mxu1 }
 0x24f   : > { %v3067_v20 = vadd.f32 %v2986_v18, %v13741_v57  ;;  %v13874_v34 = vadd.f32 %v10679_v11, %v3069_v41 }
 0x250   : > { %v10644_v54 = vpop.f32.mrf.mxu0  ;;  %v3316_v44 = vpop.f32.mrf.mxu1 }
 0x251   : > { %v3072_v35 = vadd.f32 %v10644_v54, %v13747_v50  ;;  %v13877_v10 = vadd.f32 %v3300_v6, %v3067_v20 }
 0x252   : > { %v2999_v46 = vpop.f32.mrf.mxu0  ;;  %v10686_v4 = vpop.f32.mrf.mxu1 }
 0x253   : > { %v3070_v27 = vadd.f32 %v2999_v46, %v13750_v48  ;;  %v13880_v51 = vadd.f32 %v10682_v15, %v3072_v35 }
 0x254   : > { %v10645_v37 = vpop.f32.mrf.mxu0  ;;  %v3329_v58 = vpop.f32.mrf.mxu1 }
 0x255   : > { %v3073_v36 = vadd.f32 %v10645_v37, %v13755_v25  ;;  %v13883_v22 = vadd.f32 %v3313_v3, %v3070_v27 }
 0x256   : > { %v3002_v57 = vpop.f32.mrf.mxu0  ;;  %v10687_v9 = vpop.f32.mrf.mxu1 }
 0x257   : > { %v3071_v14 = vadd.f32 %v3002_v57, %v13759_v2  ;;  %v13886_v11 = vadd.f32 %v10683_v13, %v3073_v36 }
 0x258   : > { %v10648_v50 = vpop.f32.mrf.mxu0  ;;  %v3332_v8 = vpop.f32.mrf.mxu1 }
 0x259   : > { %v3076_v16 = vadd.f32 %v10648_v50, %v13765_v32  ;;  %v13889_v6 = vadd.f32 %v3316_v44, %v3071_v14 }
 0x25a   : > { %v3015_v48 = vpop.f32.mrf.mxu0  ;;  %v10690_v61 = vpop.f32.mrf.mxu1 }
 0x25b   : > { %v3074_v52 = vadd.f32 %v3015_v48, %v13768_v60  ;;  %v13892_v15 = vadd.f32 %v10686_v4, %v3076_v16 }
 0x25c   : > { %v10649_v25 = vpop.f32.mrf.mxu0  ;;  %v3345_v5 = vpop.f32.mrf.mxu1 }
 0x25d   : > { %v3077_v28 = vadd.f32 %v10649_v25, %v13773_v17  ;;  %v13895_v3 = vadd.f32 %v3329_v58, %v3074_v52 }
 0x25e   : > { %v3018_v2 = vpop.f32.mrf.mxu0  ;;  %v10691_v41 = vpop.f32.mrf.mxu1 }
 0x25f   : > { %v3075_v18 = vadd.f32 %v3018_v2, %v13777_v21  ;;  %v13898_v13 = vadd.f32 %v10687_v9, %v3077_v28 }
 0x260   : > { %v10652_v32 = vpop.f32.mrf.mxu0  ;;  %v3348_v60 = vpop.f32.mrf.mxu1 }
 0x261   : > { %v3080_v20 = vadd.f32 %v10652_v32, %v13783_v26  ;;  %v13901_v54 = vadd.f32 %v3332_v8, %v3075_v18 }
 0x262   : > { %v3031_v44 = vpop.f32.mrf.mxu0  ;;  %v13909_v37 = vpop.f32.mrf.mxu1 }
 0x263   : > { %v3078_v35 = vadd.f32 %v3031_v44, %v13786_v49  ;;  %v13904_v46 = vadd.f32 %v10690_v61, %v3080_v20 }
 0x264   : > { %v10653_v17 = vpop.f32.mrf.mxu0  ;;  %v13919_v49 = vpop.f32.mrf.mxu1 }
 0x265   : > { %v3081_v4 = vadd.f32 %v10653_v17, %v13791_v1  ;;  %v13907_v27 = vadd.f32 %v3345_v5, %v3078_v35 }
 0x266   : > { %v3034_v21 = vpop.f32.mrf.mxu0  ;;  %v13927_v16 = vpop.f32.mrf.mxu1 }
 0x267   : > { %v3079_v58 = vadd.f32 %v3034_v21, %v13794_v63  ;;  %v13912_v36 = vadd.f32 %v10691_v41, %v3081_v4 }
 0x268   : > { %v10696_v26 = vpop.f32.mrf.mxu0  ;;  %v13935_v52 = vpop.f32.mrf.mxu1 }
 0x269   : > { %v13914_v57 = vadd.f32 %v3348_v60, %v3079_v58  ;;  %v13917_v9 = vadd.f32 %v10696_v26, %v13801_v59 }
 0x26a   : > { %v3656_v14 = vpop.f32.mrf.mxu0  ;;  %v13940_v28 = vpop.f32.mrf.mxu1 }
 0x26b   : > { %v13922_v1 = vadd.f32 %v3656_v14, %v13804_v24 }
 0x26c   : > { %v10697_v50 = vpop.f32.mrf.mxu0  ;;  %v13948_v18 = vpop.f32.mrf.mxu1 }
 0x26d   : > { %v13925_v8 = vadd.f32 %v10697_v50, %v13809_v23 }
 0x26e   : > { %v3659_v63 = vpop.f32.mrf.mxu0  ;;  %v13956_v60 = vpop.f32.mrf.mxu1 }
 0x26f   : > { %v13930_v48 = vadd.f32 %v3659_v63, %v13813_v33 }
 0x270   : > { %v10700_v61 = vpop.f32.mrf.mxu0  ;;  %v13964_v17 = vpop.f32.mrf.mxu1 }
 0x271   : > { %v13933_v59 = vadd.f32 %v10700_v61, %v13818_v39 }
 0x272   : > { %v3672_v25 = vpop.f32.mrf.mxu0  ;;  %v13972_v58 = vpop.f32.mrf.mxu1 }
 0x273   : > { %v13938_v24 = vadd.f32 %v3672_v25, %v13821_v30 }
 0x274   : > { %v10701_v5 = vpop.f32.mrf.mxu0  ;;  %v13980_v50 = vpop.f32.mrf.mxu1 }
 0x275   : > { %v13943_v23 = vadd.f32 %v10701_v5, %v13825_v29 }
 0x276   : > { %v3675_v2 = vpop.f32.mrf.mxu0  ;;  %v13988_v25 = vpop.f32.mrf.mxu1 }
 0x277   : > { %v13946_v33 = vadd.f32 %v3675_v2, %v13829_v38 }
 0x278   : > { %v10704_v41 = vpop.f32.mrf.mxu0 }
 0x279   : > { %v13951_v39 = vadd.f32 %v10704_v41, %v13832_v47  ;;  %v13996_v41 = vpop.f32.mrf.mxu1 }
 0x27a   : > { %v3688_v32 = vpop.f32.mrf.mxu0 }
 0x27b   : > { %v13954_v30 = vadd.f32 %v3688_v32, %v13835_v12 }
 0x27c   : > { %v10705_v20 = vpop.f32.mrf.mxu0 }
 0x27d   : > { %v13959_v29 = vadd.f32 %v10705_v20, %v13838_v56 }
 0x27e   : > { %v3691_v44 = vpop.f32.mrf.mxu0 }
 0x27f   : > { %v13962_v38 = vadd.f32 %v3691_v44, %v13841_v43  ;;  %v14004_v44 = vpop.f32.mrf.mxu1 }
 0x280   : > { %v10708_v35 = vpop.f32.mrf.mxu0 }
 0x281   : > { %v13967_v47 = vadd.f32 %v10708_v35, %v13844_v55 }
 0x282   : > { %v3704_v4 = vpop.f32.mrf.mxu0 }
 0x283   : > { %v13970_v12 = vadd.f32 %v3704_v4, %v13847_v53 }
 0x284   : > { %v10709_v21 = vpop.f32.mrf.mxu0 }
 0x285   : > { %v13975_v56 = vadd.f32 %v10709_v21, %v13850_v45  ;;  %v14012_v21 = vpop.f32.mrf.mxu1 }
 0x286   : > { %v3707_v26 = vpop.f32.mrf.mxu0 }
 0x287   : > { %v13978_v43 = vadd.f32 %v3707_v26, %v13853_v40 }
 0x288   : > { %v10712_v14 = vpop.f32.mrf.mxu0 }
 0x289   : > { %v13983_v55 = vadd.f32 %v10712_v14, %v13856_v19 }
 0x28a   : > { %v3720_v63 = vpop.f32.mrf.mxu0 }
 0x28b   : > { %v13986_v53 = vadd.f32 %v3720_v63, %v13859_v31  ;;  %v14020_v63 = vpop.f32.mrf.mxu1 }
 0x28c   : > { %v10713_v61 = vpop.f32.mrf.mxu0 }
 0x28d   : > { %v13991_v45 = vadd.f32 %v10713_v61, %v13862_v62 }
 0x28e   : > { %v3723_v5 = vpop.f32.mrf.mxu0 }
 0x28f   : > { %v13994_v40 = vadd.f32 %v3723_v5, %v13865_v0 }
 0x290   : > { %v10716_v2 = vpop.f32.mrf.mxu0 }
 0x291   : > { %v13999_v19 = vadd.f32 %v10716_v2, %v13868_v7  ;;  %v14028_v2 = vpop.f32.mrf.mxu1 }
 0x292   : > { %v3736_v32 = vpop.f32.mrf.mxu0 }
 0x293   : > { %v14002_v31 = vadd.f32 %v3736_v32, %v13871_v42 }
 0x294   : > { %v10717_v20 = vpop.f32.mrf.mxu0 }
 0x295   : > { %v14007_v62 = vadd.f32 %v10717_v20, %v13874_v34 }
 0x296   : > { %v3739_v35 = vpop.f32.mrf.mxu0 }
 0x297   : > { %v14010_v0 = vadd.f32 %v3739_v35, %v13877_v10  ;;  %v14036_v35 = vpop.f32.mrf.mxu1 }
 0x298   : > { %v10720_v4 = vpop.f32.mrf.mxu0 }
 0x299   : > { %v14015_v7 = vadd.f32 %v10720_v4, %v13880_v51 }
 0x29a   : > { %v3752_v26 = vpop.f32.mrf.mxu0 }
 0x29b   : > { %v14018_v42 = vadd.f32 %v3752_v26, %v13883_v22 }
 0x29c   : > { %v10721_v14 = vpop.f32.mrf.mxu0 }
 0x29d   : > { %v14023_v34 = vadd.f32 %v10721_v14, %v13886_v11  ;;  %v14044_v14 = vpop.f32.mrf.mxu1 }
 0x29e   : > { %v3755_v61 = vpop.f32.mrf.mxu0 }
 0x29f   : > { %v14026_v10 = vadd.f32 %v3755_v61, %v13889_v6 }
 0x2a0   : > { %v10724_v5 = vpop.f32.mrf.mxu0 }
 0x2a1   : > { %v14031_v51 = vadd.f32 %v10724_v5, %v13892_v15 }
 0x2a2   : > { %v3768_v32 = vpop.f32.mrf.mxu0 }
 0x2a3   : > { %v14034_v22 = vadd.f32 %v3768_v32, %v13895_v3  ;;  %v14052_v32 = vpop.f32.mrf.mxu1 }
 0x2a4   : > { %v10725_v20 = vpop.f32.mrf.mxu0 }
 0x2a5   : > { %v14039_v11 = vadd.f32 %v10725_v20, %v13898_v13 }
 0x2a6   : > { %v3771_v4 = vpop.f32.mrf.mxu0 }
 0x2a7   : > { %v14042_v6 = vadd.f32 %v3771_v4, %v13901_v54 }
 0x2a8   : > { %v10728_v26 = vpop.f32.mrf.mxu0 }
 0x2a9   : > { %17851 = vst [vmem:[#allocation46_spill] sm:$0xff] %v14042_v6  ;;  %v14047_v15 = vadd.f32 %v10728_v26, %v13904_v46  ;;  %v4248_v6 = vadd.f32 %v13909_v37, %v13917_v9  ;;  %v4246_v46 = vadd.f32 %v13919_v49, %v13922_v1  ;;  %v14064_v26 = vpop.f32.mrf.mxu1  ;;  %v4247_v37 = vadd.f32 %v13935_v52, %v13930_v48 }
 0x2aa   : > { %v3784_v61 = vpop.f32.mrf.mxu0 }
 0x2ab   : > { %v14050_v3 = vadd.f32 %v3784_v61, %v13907_v27  ;;  %v4249_v61 = vadd.f32 %v13927_v16, %v13925_v8  ;;  %v14075_v9 = vpop.f32.mrf.mxu1 }
 0x2ac   : > { %v10729_v5 = vpop.f32.mrf.mxu0 }
 0x2ad   : > { %17852 = vst [vmem:[#allocation45_spill] sm:$0xff] %v14050_v3  ;;  %v14055_v13 = vadd.f32 %v10729_v5, %v13912_v36 }
 0x2ae   : > { %v3787_v20 = vpop.f32.mrf.mxu0 }
 0x2af   : > { %v14058_v54 = vadd.f32 %v3787_v20, %v13914_v57  ;;  %v14071_v57 = vld [vmem:[%s17014_s2] ss:$0 sm:$0xff] }
 0x2b0   : > { %v10772_v4 = vpop.f32.mrf.mxu0 }
 0x2b1   : > { %v4562_v3 = vadd.f32 %v10772_v4, %v4248_v6  ;;  %v4252_v6 = vadd.f32 %v13940_v28, %v13933_v59  ;;  %v4253_v59 = vadd.f32 %v13956_v60, %v13943_v23  ;;  %v4256_v23 = vadd.f32 %v13972_v58, %v13951_v39 }
 0x2b2   : > { %v4417_v27 = vpop.f32.mrf.mxu0 }
 0x2b3   : > { %v4560_v36 = vadd.f32 %v4417_v27, %v4246_v46  ;;  %v14081_v8 = vadd.f32 %v14071_v57, %v4562_v3  ;;  %v4250_v46 = vadd.f32 %v13948_v18, %v13938_v24  ;;  %v14087_v27 = vpop.f32.mrf.mxu1 }
 0x2b4   : > { %v10773_v5 = vpop.f32.mrf.mxu0 }
 0x2b5   : > { %v14078_v49 = vadd.f32 %v14071_v57, %v4560_v36  ;;  %v4563_v1 = vadd.f32 %v10773_v5, %v4249_v61  ;;  %17853 = vst [vmem:[#allocation49_spill] sm:$0xff] %v14081_v8  ;;  %v4713_v24 = vsel %vm12406_vm3, %v14081_v8, 0.0  ;;  %v14110_v48 = vpop.f32.mrf.mxu1 }
 0x2b6   : > { %v4420_v20 = vpop.f32.mrf.mxu0 }
 0x2b7   : > { %v4561_v16 = vadd.f32 %v4420_v20, %v4247_v37  ;;  %v4711_v52 = vsel %vm12398_vm12, %v14078_v49, 0.0  ;;  %v14093_v61 = vadd.f32 %v14071_v57, %v4563_v1  ;;  %v4251_v1 = vadd.f32 %v13964_v17, %v13946_v33 }
 0x2b8   : > { %v10776_v4 = vpop.f32.mrf.mxu0 }
 0x2b9   : > { %v14096_v3 = vadd.f32 %v14071_v57, %v4561_v16  ;;  %v4566_v36 = vadd.f32 %v10776_v4, %v4252_v6  ;;  %v4747_v16 = vsel %vm17858_vm5, %v4711_v52, 0.0  ;;  %v4714_v60 = vsel %vm12422_vm7, %v14093_v61, 0.0  ;;  %vm17868_vm5 = vmmov %vm17809_vm0 }
 0x2ba   : > { %v4433_v5 = vpop.f32.mrf.mxu0 }
 0x2bb   : > { %17855 = vst [vmem:[#allocation42_spill] sm:$0xff] %v14096_v3  ;;  %v4712_v37 = vsel %vm12402_vm9, %v14096_v3, 0.0  ;;  %v4564_v20 = vadd.f32 %v4433_v5, %v4250_v46  ;;  %v4750_v46 = vsel %vm17809_vm0, %v4713_v24, 0.0  ;;  %v14120_v33 = vadd.f32 %v14071_v57, %v4566_v36  ;;  %v14130_v24 = vpop.f32.mrf.mxu1 }
 0x2bc   : > { %v4748_v6 = vsel %vm17859_vm4, %v4712_v37, 0.0  ;;  %v10777_v4 = vpop.f32.mrf.mxu0 }
 0x2bd   : > { %v4749_v28 = vadd.f32 %v4748_v6, %v4747_v16  ;;  %v14116_v8 = vadd.f32 %v14071_v57, %v4564_v20  ;;  %v4567_v18 = vadd.f32 %v10777_v4, %v4253_v59  ;;  %v4752_v16 = vsel %vm17862_vm14, %v4714_v60, 0.0  ;;  %vm17871_vm14 = vmmov %vm17809_vm0 }
 0x2be   : > { %v4436_v17 = vpop.f32.mrf.mxu0  ;;  %v4254_v59 = vadd.f32 %v13980_v50, %v13954_v30  ;;  %v4717_v58 = vsel %vm12446_vm10, %v14120_v33, 0.0 }
 0x2bf   : > { %v4751_v52 = vadd.f32 %v4750_v46, %v4749_v28  ;;  %v4715_v37 = vsel %vm12426_vm6, %v14116_v8, 0.0  ;;  %v4565_v3 = vadd.f32 %v4436_v17, %v4251_v1  ;;  %v14133_v6 = vadd.f32 %v14071_v57, %v4567_v18 }
 0x2c0   : > { %v10780_v20 = vpop.f32.mrf.mxu0  ;;  %v4257_v1 = vadd.f32 %v13988_v25, %v13959_v29  ;;  %v4754_v4 = vsel %vm17864_vm2, %v4715_v37, 0.0  ;;  %v14150_v25 = vpop.f32.mrf.mxu1 }
 0x2c1   : > { %v4753_v36 = vadd.f32 %v4752_v16, %v4751_v52  ;;  %v14136_v28 = vadd.f32 %v14071_v57, %v4565_v3  ;;  %v4570_v18 = vadd.f32 %v10780_v20, %v4256_v23  ;;  %v4255_v3 = vadd.f32 %v13996_v41, %v13962_v38  ;;  %v17869_v41 = vld [vmem:[#allocation21_spill] sm:$0xff] }
 0x2c2   : > { %v4449_v60 = vpop.f32.mrf.mxu0  ;;  %v4718_v37 = vsel %vm12450_vm15, %v14133_v6, 0.0  ;;  %v4758_v23 = vsel %vm17868_vm5, %v4717_v58, 0.0  ;;  %vm17870_vm4 = vnez %v17869_v41  ;;  %v4260_v16 = vadd.f32 %v14004_v44, %v13967_v47  ;;  %v14170_v58 = vpop.f32.mrf.mxu1  ;;  %vm17876_vm5 = vmmov %vm17809_vm0 }
 0x2c3   : > { %v4755_v30 = vadd.f32 %v4754_v4, %v4753_v36  ;;  %v4716_v46 = vsel %vm12430_vm1, %v14136_v28, 0.0  ;;  %v4568_v17 = vadd.f32 %v4449_v60, %v4254_v59  ;;  %v14160_v38 = vadd.f32 %v14071_v57, %v4570_v18 }
 0x2c4   : > { %v4756_v52 = vsel %vm17866_vm13, %v4716_v46, 0.0  ;;  %v10781_v29 = vpop.f32.mrf.mxu0 }
 0x2c5   : > { %v4757_v39 = vadd.f32 %v4756_v52, %v4755_v30  ;;  %v14156_v36 = vadd.f32 %v14071_v57, %v4568_v17  ;;  %v4571_v4 = vadd.f32 %v10781_v29, %v4257_v1  ;;  %v4760_v30 = vsel %vm17809_vm0, %v4718_v37, 0.0  ;;  %v17872_v37 = vld [vmem:[#allocation18_spill] sm:$0xff] }
 0x2c6   : > { %v4452_v20 = vpop.f32.mrf.mxu0  ;;  %v4258_v1 = vadd.f32 %v14012_v21, %v13970_v12  ;;  %vm17873_vm2 = vnez %v17872_v37 }
 0x2c7   : > { %v4759_v59 = vadd.f32 %v4758_v23, %v4757_v39  ;;  %v4719_v60 = vsel %vm17870_vm4, %v14156_v36, 0.0  ;;  %v4569_v46 = vadd.f32 %v4452_v20, %v4255_v3  ;;  %v14173_v18 = vadd.f32 %v14071_v57, %v4571_v4  ;;  %v17874_v23 = vld [vmem:[#allocation17_spill] sm:$0xff] }
 0x2c8   : > { %v10784_v17 = vpop.f32.mrf.mxu0  ;;  %v4261_v3 = vadd.f32 %v14020_v63, %v13975_v56  ;;  %v4762_v47 = vsel %vm17871_vm14, %v4719_v60, 0.0  ;;  %v4721_v12 = vsel %vm17873_vm2, %v14160_v38, 0.0  ;;  %vm17875_vm13 = vnez %v17874_v23  ;;  %v14190_v63 = vpop.f32.mrf.mxu1  ;;  %vm17879_vm14 = vmmov %vm17876_vm5 }
 0x2c9   : > { %v4761_v39 = vadd.f32 %v4760_v30, %v4759_v59  ;;  %v14176_v52 = vadd.f32 %v14071_v57, %v4569_v46  ;;  %v4574_v44 = vadd.f32 %v10784_v17, %v4260_v16  ;;  %v4259_v59 = vadd.f32 %v14028_v2, %v13978_v43  ;;  %v17877_v16 = vld [vmem:[#allocation19_spill] sm:$0xff]  ;;  %vm17882_vm8 = vmmov %vm17879_vm14 }
 0x2ca   : > { %v4465_v29 = vpop.f32.mrf.mxu0  ;;  %vm17878_vm0 = vnez %v17877_v16  ;;  %v4264_v16 = vadd.f32 %v14036_v35, %v13983_v55  ;;  %v17883_v55 = vld [vmem:[#allocation22_spill] sm:$0xff] }
 0x2cb   : > { %v4763_v21 = vadd.f32 %v4762_v47, %v4761_v39  ;;  %v4720_v4 = vsel %vm17875_vm13, %v14176_v52, 0.0  ;;  %v4572_v20 = vadd.f32 %v4465_v29, %v4258_v1  ;;  %v4722_v60 = vsel %vm17878_vm0, %v14173_v18, 0.0  ;;  %v17880_v29 = vld [vmem:[#allocation20_spill] sm:$0xff] }
 0x2cc   : > { %v4764_v46 = vsel %vm17876_vm5, %v4720_v4, 0.0  ;;  %v10785_v56 = vpop.f32.mrf.mxu0  ;;  %v4766_v47 = vsel %vm17879_vm14, %v4721_v12, 0.0  ;;  %v14200_v1 = vadd.f32 %v14071_v57, %v4574_v44  ;;  %vm17881_vm5 = vnez %v17880_v29  ;;  %v14210_v12 = vpop.f32.mrf.mxu1 }
 0x2cd   : > { %v4765_v30 = vadd.f32 %v4764_v46, %v4763_v21  ;;  %v14196_v17 = vadd.f32 %v14071_v57, %v4572_v20  ;;  %v4575_v39 = vadd.f32 %v10785_v56, %v4261_v3  ;;  %v4768_v21 = vsel %vm17882_vm8, %v4722_v60, 0.0 }
 0x2ce   : > { %v4468_v43 = vpop.f32.mrf.mxu0  ;;  %v4262_v3 = vadd.f32 %v14044_v14, %v13986_v53  ;;  %vm17884_vm14 = vnez %v17883_v55  ;;  %v17885_v14 = vld [vmem:[#allocation13_spill] sm:$0xff] }
 0x2cf   : > { %v4767_v2 = vadd.f32 %v4766_v47, %v4765_v30  ;;  %v4723_v4 = vsel %vm17881_vm5, %v14196_v17, 0.0  ;;  %v4573_v37 = vadd.f32 %v4468_v43, %v4259_v59  ;;  %v14213_v46 = vadd.f32 %v14071_v57, %v4575_v39  ;;  %vm17887_vm5 = vmmov %vm17882_vm8 }
 0x2d0   : > { %v10788_v20 = vpop.f32.mrf.mxu0  ;;  %v4265_v59 = vadd.f32 %v14052_v32, %v13991_v45  ;;  %v4725_v35 = vsel %vm17884_vm14, %v14200_v1, 0.0  ;;  %v4770_v60 = vsel %vm17882_vm8, %v4723_v4, 0.0  ;;  %vm17886_vm11 = vnez %v17885_v14  ;;  %v14230_v32 = vpop.f32.mrf.mxu1  ;;  %vm17890_vm8 = vmmov %vm17887_vm5 }
 0x2d1   : > { %v4769_v44 = vadd.f32 %v4768_v21, %v4767_v2  ;;  %v14216_v56 = vadd.f32 %v14071_v57, %v4573_v37  ;;  %v4578_v39 = vadd.f32 %v10788_v20, %v4264_v16  ;;  %v4263_v37 = vadd.f32 %v14064_v26, %v13994_v40  ;;  %v17888_v21 = vld [vmem:[#allocation23_spill] sm:$0xff]  ;;  %v17891_v26 = vld [vmem:[#allocation24_spill] sm:$0xff] }
 0x2d2   : > { %v4481_v30 = vpop.f32.mrf.mxu0  ;;  %vm17889_vm14 = vnez %v17888_v21  ;;  %v4774_v16 = vsel %vm17890_vm8, %v4725_v35, 0.0  ;;  %v4268_v21 = vadd.f32 %v14075_v9, %v13999_v19  ;;  %v4215_v35 = vpop.f32.mrf.mxu1 }
 0x2d3   : > { %v4771_v53 = vadd.f32 %v4770_v60, %v4769_v44  ;;  %v4724_v47 = vsel %vm17886_vm11, %v14216_v56, 0.0  ;;  %v4576_v43 = vadd.f32 %v4481_v30, %v4262_v3  ;;  %v4726_v4 = vsel %vm17889_vm14, %v14213_v46, 0.0  ;;  %vm17893_vm14 = vmmov %vm17890_vm8 }
 0x2d4   : > { %v4772_v2 = vsel %vm17887_vm5, %v4724_v47, 0.0  ;;  %v10789_v45 = vpop.f32.mrf.mxu0  ;;  %v14240_v40 = vadd.f32 %v14071_v57, %v4578_v39  ;;  %vm17892_vm5 = vnez %v17891_v26  ;;  %vm17898_vm11 = vmmov %vm17890_vm8 }
 0x2d5   : > { %v4773_v55 = vadd.f32 %v4772_v2, %v4771_v53  ;;  %v14236_v44 = vadd.f32 %v14071_v57, %v4576_v43  ;;  %v4579_v60 = vadd.f32 %v10789_v45, %v4265_v59  ;;  %v4776_v53 = vsel %vm17893_vm14, %v4726_v4, 0.0  ;;  %v17894_v4 = vld [vmem:[#allocation26_spill] sm:$0xff] }
 0x2d6   : > { %v4484_v20 = vpop.f32.mrf.mxu0  ;;  %v4266_v59 = vadd.f32 %v14087_v27, %v14002_v31  ;;  %vm17895_vm14 = vnez %v17894_v4  ;;  %v17896_v27 = vld [vmem:[#allocation25_spill] sm:$0xff] }
 0x2d7   : > { %v4775_v3 = vadd.f32 %v4774_v16, %v4773_v55  ;;  %v4727_v30 = vsel %vm17892_vm5, %v14236_v44, 0.0  ;;  %v4577_v47 = vadd.f32 %v4484_v20, %v4263_v37  ;;  %v14251_v55 = vadd.f32 %v14071_v57, %v4579_v60 }
 0x2d8   : > { %v10792_v43 = vpop.f32.mrf.mxu0  ;;  %v4269_v37 = vadd.f32 %v14110_v48, %v14007_v62  ;;  %v4778_v45 = vsel %vm17890_vm8, %v4727_v30, 0.0  ;;  %v4729_v16 = vsel %vm17895_vm14, %v14240_v40, 0.0  ;;  %vm17897_vm5 = vnez %v17896_v27  ;;  %v10763_v48 = vpop.f32.mrf.mxu1  ;;  %vm17901_vm14 = vmmov %vm17898_vm11 }
 0x2d9   : > { %v4777_v2 = vadd.f32 %v4776_v53, %v4775_v3  ;;  %v14254_v39 = vadd.f32 %v14071_v57, %v4577_v47  ;;  %v4582_v19 = vadd.f32 %v10792_v43, %v4268_v21  ;;  %v4267_v3 = vadd.f32 %v14130_v24, %v14010_v0  ;;  %v17899_v21 = vld [vmem:[#allocation5_spill] sm:$0xff]  ;;  %v17902_v24 = vld [vmem:[#allocation27_spill] sm:$0xff] }
 0x2da   : > { %v4497_v9 = vpop.f32.mrf.mxu0  ;;  %vm17900_vm8 = vnez %v17899_v21  ;;  %v4272_v21 = vadd.f32 %v14150_v25, %v14015_v7 }
 0x2db   : > { %v4779_v31 = vadd.f32 %v4778_v45, %v4777_v2  ;;  %v4728_v60 = vsel %vm17897_vm5, %v14254_v39, 0.0  ;;  %v4580_v20 = vadd.f32 %v4497_v9, %v4266_v59  ;;  %v4730_v30 = vsel %vm17900_vm8, %v14251_v55, 0.0  ;;  %vm17904_vm8 = vmmov %vm17901_vm14 }
 0x2dc   : > { %v4780_v47 = vsel %vm17898_vm11, %v4728_v60, 0.0  ;;  %v10793_v62 = vpop.f32.mrf.mxu0  ;;  %v4782_v45 = vsel %vm17901_vm14, %v4729_v16, 0.0  ;;  %v14276_v59 = vadd.f32 %v14071_v57, %v4582_v19  ;;  %vm17903_vm11 = vnez %v17902_v24  ;;  %v4218_v16 = vpop.f32.mrf.mxu1  ;;  %vm17909_vm5 = vmmov %vm17904_vm8 }
 0x2dd   : > { %v4781_v53 = vadd.f32 %v4780_v47, %v4779_v31  ;;  %v14272_v43 = vadd.f32 %v14071_v57, %v4580_v20  ;;  %v4583_v2 = vadd.f32 %v10793_v62, %v4269_v37  ;;  %v4784_v31 = vsel %vm17904_vm8, %v4730_v30, 0.0 }
 0x2de   : > { %v4500_v9 = vpop.f32.mrf.mxu0  ;;  %v4270_v37 = vadd.f32 %v14170_v58, %v14018_v42  ;;  %v17907_v42 = vld [vmem:[#allocation6_spill] sm:$0xff] }
 0x2df   : > { %v4783_v0 = vadd.f32 %v4782_v45, %v4781_v53  ;;  %v4731_v60 = vsel %vm17903_vm11, %v14272_v43, 0.0  ;;  %v4581_v4 = vadd.f32 %v4500_v9, %v4267_v3  ;;  %v14287_v19 = vadd.f32 %v14071_v57, %v4583_v2  ;;  %v17905_v53 = vld [vmem:[#allocation28_spill] sm:$0xff] }
 0x2e0   : > { %v10796_v20 = vpop.f32.mrf.mxu0  ;;  %v4273_v3 = vadd.f32 %v14190_v63, %v14023_v34  ;;  %vm17906_vm14 = vnez %v17905_v53  ;;  %v4786_v25 = vsel %vm17904_vm8, %v4731_v60, 0.0  ;;  %vm17908_vm11 = vnez %v17907_v42  ;;  %v10766_v63 = vpop.f32.mrf.mxu1  ;;  %vm17912_vm8 = vmmov %vm17909_vm5 }
 0x2e1   : > { %v4785_v47 = vadd.f32 %v4784_v31, %v4783_v0  ;;  %v14290_v62 = vadd.f32 %v14071_v57, %v4581_v4  ;;  %v4733_v7 = vsel %vm17906_vm14, %v14276_v59, 0.0  ;;  %v4586_v2 = vadd.f32 %v10796_v20, %v4272_v21  ;;  %v17910_v31 = vld [vmem:[#allocation7_spill] sm:$0xff] }
 0x2e2   : > { %v4513_v30 = vpop.f32.mrf.mxu0  ;;  %v4271_v4 = vadd.f32 %v14210_v12, %v14026_v10  ;;  %vm17911_vm14 = vnez %v17910_v31  ;;  %v4790_v42 = vsel %vm17912_vm8, %v4733_v7, 0.0  ;;  %v17913_v10 = vld [vmem:[#allocation29_spill] sm:$0xff] }
 0x2e3   : > { %v4787_v45 = vadd.f32 %v4786_v25, %v4785_v47  ;;  %v4732_v58 = vsel %vm17908_vm11, %v14290_v62, 0.0  ;;  %v4584_v9 = vadd.f32 %v4513_v30, %v4270_v37  ;;  %v4734_v53 = vsel %vm17911_vm14, %v14287_v19, 0.0  ;;  %vm17915_vm14 = vmmov %vm17912_vm8 }
 0x2e4   : > { %v4788_v0 = vsel %vm17909_vm5, %v4732_v58, 0.0  ;;  %v10797_v34 = vpop.f32.mrf.mxu0  ;;  %v14312_v37 = vadd.f32 %v14071_v57, %v4586_v2  ;;  %vm17914_vm5 = vnez %v17913_v10  ;;  %v4276_v58 = vadd.f32 %v14230_v32, %v14031_v51  ;;  %v17916_v51 = vld [vmem:[#allocation31_spill] sm:$0xff]  ;;  %vm17921_vm11 = vmmov %vm17912_vm8 }
 0x2e5   : > { %v4789_v60 = vadd.f32 %v4788_v0, %v4787_v45  ;;  %v14308_v47 = vadd.f32 %v14071_v57, %v4584_v9  ;;  %v4587_v25 = vadd.f32 %v10797_v34, %v4273_v3  ;;  %v4792_v45 = vsel %vm17915_vm14, %v4734_v53, 0.0  ;;  %v4231_v0 = vpop.f32.mrf.mxu1 }
 0x2e6   : > { %v4516_v21 = vpop.f32.mrf.mxu0  ;;  %v4274_v3 = vadd.f32 %v4215_v35, %v14034_v22  ;;  %v4277_v34 = vadd.f32 %v10763_v48, %v14039_v11  ;;  %vm17917_vm14 = vnez %v17916_v51  ;;  %v17918_v22 = vld [vmem:[#allocation30_spill] sm:$0xff]  ;;  %v17922_v48 = vld [vmem:[#allocation32_spill] sm:$0xff] }
 0x2e7   : > { %v4791_v20 = vadd.f32 %v4790_v42, %v4789_v60  ;;  %v4735_v12 = vsel %vm17914_vm5, %v14308_v47, 0.0  ;;  %v4585_v30 = vadd.f32 %v4516_v21, %v4271_v4  ;;  %v14322_v42 = vadd.f32 %v14071_v57, %v4587_v25  ;;  %v10767_v11 = vpop.f32.mrf.mxu1 }
 0x2e8   : > { %v10800_v9 = vpop.f32.mrf.mxu0  ;;  %v4794_v4 = vsel %vm17912_vm8, %v4735_v12, 0.0  ;;  %v4737_v32 = vsel %vm17917_vm14, %v14312_v37, 0.0  ;;  %vm17919_vm5 = vnez %v17918_v22  ;;  %vm17923_vm8 = vnez %v17922_v48  ;;  %vm17924_vm14 = vmmov %vm17921_vm11 }
 0x2e9   : > { %v4793_v7 = vadd.f32 %v4792_v45, %v4791_v20  ;;  %v14325_v2 = vadd.f32 %v14071_v57, %v4585_v30  ;;  %v4590_v60 = vadd.f32 %v10800_v9, %v4276_v58  ;;  %v17920_v20 = vld [vmem:[#allocation46_spill] sm:$0xff]  ;;  %v4738_v12 = vsel %vm17923_vm8, %v14322_v42, 0.0  ;;  %vm17927_vm8 = vmmov %vm17924_vm14 }
 0x2ea   : > { %v4529_v21 = vpop.f32.mrf.mxu0  ;;  %v4275_v45 = vadd.f32 %v4218_v16, %v17920_v20  ;;  %v4280_v48 = vadd.f32 %v10766_v63, %v14047_v15 }
 0x2eb   : > { %v4795_v53 = vadd.f32 %v4794_v4, %v4793_v7  ;;  %v4736_v35 = vsel %vm17919_vm5, %v14325_v2, 0.0  ;;  %v4588_v25 = vadd.f32 %v4529_v21, %v4274_v3  ;;  %v4798_v4 = vsel %vm17924_vm14, %v4737_v32, 0.0  ;;  %v17925_v21 = vld [vmem:[#allocation33_spill] sm:$0xff] }
 0x2ec   : > { %v4796_v30 = vsel %vm17921_vm11, %v4736_v35, 0.0  ;;  %v10801_v10 = vpop.f32.mrf.mxu0  ;;  %v14345_v51 = vadd.f32 %v14071_v57, %v4590_v60  ;;  %vm17926_vm11 = vnez %v17925_v21 }
 0x2ed   : > { %v4797_v58 = vadd.f32 %v4796_v30, %v4795_v53  ;;  %v14341_v9 = vadd.f32 %v14071_v57, %v4588_v25  ;;  %v4591_v7 = vadd.f32 %v10801_v10, %v4277_v34  ;;  %v4800_v53 = vsel %vm17927_vm8, %v4738_v12, 0.0  ;;  %v17928_v25 = vld [vmem:[#allocation45_spill] sm:$0xff]  ;;  %v4234_v10 = vpop.f32.mrf.mxu1  ;;  %v17932_v12 = vld [vmem:[#allocation34_spill] sm:$0xff] }
 0x2ee   : > { %v4532_v3 = vpop.f32.mrf.mxu0  ;;  %v4278_v22 = vadd.f32 %v4231_v0, %v17928_v25 }
 0x2ef   : > { %v4799_v16 = vadd.f32 %v4798_v4, %v4797_v58  ;;  %v4739_v35 = vsel %vm17926_vm11, %v14341_v9, 0.0  ;;  %v4589_v20 = vadd.f32 %v4532_v3, %v4275_v45  ;;  %v4634_v32 = vadd.f32 %v14071_v57, %v4591_v7  ;;  %v17929_v4 = vld [vmem:[#allocation35_spill] sm:$0xff]  ;;  %vm17931_vm11 = vmmov %vm17927_vm8 }
 0x2f0   : > { %v10804_v30 = vpop.f32.mrf.mxu0  ;;  %v4281_v58 = vadd.f32 %v10767_v11, %v14055_v13  ;;  %vm17930_vm14 = vnez %v17929_v4  ;;  %v4802_v45 = vsel %vm17931_vm11, %v4739_v35, 0.0  ;;  %vm17933_vm8 = vnez %v17932_v12  ;;  %vm17934_vm5 = vmmov %vm17931_vm11 }
 0x2f1   : > { %v4801_v34 = vadd.f32 %v4800_v53, %v4799_v16  ;;  %v4632_v60 = vadd.f32 %v14071_v57, %v4589_v20  ;;  %v4741_v21 = vsel %vm17930_vm14, %v14345_v51, 0.0  ;;  %v4594_v0 = vadd.f32 %v10804_v30, %v4280_v48  ;;  %v17935_v53 = vld [vmem:[#allocation37_spill] sm:$0xff]  ;;  %vm17937_vm11 = vmmov %vm17934_vm5  ;;  %v17938_v48 = vld [vmem:[#allocation38_spill] sm:$0xff] }
 0x2f2   : > { %v4545_v15 = vpop.f32.mrf.mxu0  ;;  %v4279_v16 = vadd.f32 %v4234_v10, %v14058_v54  ;;  %vm17936_vm0 = vnez %v17935_v53  ;;  %v4806_v35 = vsel %vm17937_vm11, %v4741_v21, 0.0  ;;  %vm17939_vm14 = vnez %v17938_v48  ;;  %vm17945_vm2 = vmmov %vm17934_vm5 }
 0x2f3   : > { %v4803_v63 = vadd.f32 %v4802_v45, %v4801_v34  ;;  %v4740_v3 = vsel %vm17933_vm8, %v4632_v60, 0.0  ;;  %v4592_v25 = vadd.f32 %v4545_v15, %v4278_v22  ;;  %v4742_v13 = vsel %vm17936_vm0, %v4634_v32, 0.0  ;;  %vm17940_vm8 = vmmov %vm17934_vm5 }
 0x2f4   : > { %v4804_v7 = vsel %vm17934_vm5, %v4740_v3, 0.0  ;;  %v10805_v20 = vpop.f32.mrf.mxu0  ;;  %v4637_v12 = vadd.f32 %v14071_v57, %v4594_v0  ;;  %v4808_v30 = vsel %vm17940_vm8, %v4742_v13, 0.0  ;;  %vm17948_vm8 = vmmov %vm17945_vm2 }
 0x2f5   : > { %v4805_v11 = vadd.f32 %v4804_v7, %v4803_v63  ;;  %v4635_v4 = vadd.f32 %v14071_v57, %v4592_v25  ;;  %v4595_v31 = vadd.f32 %v10805_v20, %v4281_v58  ;;  %v17941_v58 = vld [vmem:[#allocation39_spill] sm:$0xff]  ;;  %v17943_v7 = vld [vmem:[#allocation36_spill] sm:$0xff]  ;;  %vm17949_vm13 = vmmov %vm17945_vm2 }
 0x2f6   : > { %v4548_v34 = vpop.f32.mrf.mxu0  ;;  %vm17942_vm0 = vnez %v17941_v58  ;;  %vm17944_vm11 = vnez %v17943_v7 }
 0x2f7   : > { %v4807_v45 = vadd.f32 %v4806_v35, %v4805_v11  ;;  %v4743_v22 = vsel %vm17939_vm14, %v4635_v4, 0.0  ;;  %v4593_v54 = vadd.f32 %v4548_v34, %v4279_v16  ;;  %v4638_v15 = vadd.f32 %v14071_v57, %v4595_v31  ;;  %v17946_v11 = vld [vmem:[#allocation40_spill] sm:$0xff] }
 0x2f8   : > { %v4810_v3 = vsel %vm17934_vm5, %v4743_v22, 0.0  ;;  %v4745_v21 = vsel %vm17942_vm0, %v4637_v12, 0.0  ;;  %vm17947_vm14 = vnez %v17946_v11  ;;  %vm17958_vm5 = vmmov %vm17945_vm2  ;;  %v4597_v11 = vld [vmem:[%s17014_s2 + $0x1] sm:$0x1] }
 0x2f9   : > { %v4809_v10 = vadd.f32 %v4808_v30, %v4807_v45  ;;  %v4636_v63 = vadd.f32 %v14071_v57, %v4593_v54  ;;  %v4746_v16 = vsel %vm17947_vm14, %v4638_v15, 0.0  ;;  %v4814_v35 = vsel %vm17948_vm8, %v4745_v21, 0.0  ;;  %vm17959_vm8 = vmmov %vm17945_vm2 }
 0x2fa   : > { %v4816_v57 = vsel %vm17949_vm13, %v4746_v16, 0.0  ;;  %vm17956_vm13 = vmmov %vm17945_vm2 }
 0x2fb   : > { %v4811_v25 = vadd.f32 %v4810_v3, %v4809_v10  ;;  %v4744_v0 = vsel %vm17944_vm11, %v4636_v63, 0.0 }
 0x2fc   : > { %v4812_v20 = vsel %vm17945_vm2, %v4744_v0, 0.0 }
 0x2fd   : > { %v4813_v13 = vadd.f32 %v4812_v20, %v4811_v25 }
 0x2ff   : > { %v4815_v31 = vadd.f32 %v4814_v35, %v4813_v13 }
 0x301   : > { %v4817_v34 = vadd.f32 %v4816_v57, %v4815_v31 }
 0x303   : > { %v4818_v45 = vrot.slane %v4817_v34, 4 }
 0x305   : > { %v4819_v22 = vadd.f32 %v4818_v45, %v4817_v34 }
 0x307   : > { %v4820_v54 = vrot.slane %v4819_v22, 2 }
 0x309   : > { %v4821_v30 = vadd.f32 %v4820_v54, %v4819_v22 }
 0x30b   : > { %v4822_v10 = vrot.slane %v4821_v30, 1 }
 0x30d   : > { %v4823_v3 = vadd.f32 %v4822_v10, %v4821_v30 }
 0x30f   : > { %v14384_v58 = vmul.f32 0.00390625, %v4823_v3 }
 0x311   : > { %v14388_v0 = vsub.f32 %v14236_v44, %v14384_v58  ;;  %v14392_v25 = vsub.f32 %v14254_v39, %v14384_v58  ;;  %v14396_v21 = vsub.f32 %v14240_v40, %v14384_v58  ;;  %v14400_v20 = vsub.f32 %v14251_v55, %v14384_v58 }
 0x312   : > { %v14404_v16 = vsub.f32 %v14272_v43, %v14384_v58  ;;  %v14408_v44 = vsub.f32 %v14290_v62, %v14384_v58  ;;  %v14412_v39 = vsub.f32 %v14276_v59, %v14384_v58  ;;  %v14416_v40 = vsub.f32 %v14287_v19, %v14384_v58 }
 0x313   : > { %v14420_v55 = vsub.f32 %v14308_v47, %v14384_v58  ;;  %v14424_v43 = vsub.f32 %v14325_v2, %v14384_v58  ;;  %v14428_v62 = vsub.f32 %v14312_v37, %v14384_v58  ;;  %v14432_v59 = vsub.f32 %v14322_v42, %v14384_v58 }
 0x314   : > { %v14436_v19 = vsub.f32 %v14341_v9, %v14384_v58  ;;  %v14439_v13 = vsub.f32 %v4632_v60, %v14384_v58  ;;  %v14443_v47 = vsub.f32 %v14345_v51, %v14384_v58  ;;  %v14446_v2 = vsub.f32 %v4634_v32, %v14384_v58  ;;  %v17950_v51 = vld [vmem:[#allocation42_spill] sm:$0xff] }
 0x315   : > { %v14449_v37 = vsub.f32 %v4635_v4, %v14384_v58  ;;  %v14452_v42 = vsub.f32 %v4636_v63, %v14384_v58  ;;  %v14455_v35 = vsub.f32 %v4637_v12, %v14384_v58  ;;  %v14458_v9 = vsub.f32 %v4638_v15, %v14384_v58  ;;  %v17951_v4 = vld [vmem:[#allocation49_spill] sm:$0xff] }
 0x316   : > { %v14462_v60 = vsub.f32 %v14078_v49, %v14384_v58  ;;  %v14466_v32 = vsub.f32 %v17950_v51, %v14384_v58  ;;  %v14470_v31 = vsub.f32 %v17951_v4, %v14384_v58  ;;  %v14474_v63 = vsub.f32 %v14093_v61, %v14384_v58 }
 0x317   : > { %v14482_v49 = vsub.f32 %v14116_v8, %v14384_v58  ;;  %v14488_v34 = vsub.f32 %v14136_v28, %v14384_v58  ;;  %v14498_v8 = vsub.f32 %v14120_v33, %v14384_v58  ;;  %v14526_v45 = vsub.f32 %v14176_v52, %v14384_v58 }
 0x318   : > { %v4861_v12 = vmul.f32 %v14462_v60, %v14462_v60  ;;  %v4862_v15 = vmul.f32 %v14466_v32, %v14466_v32  ;;  %v4863_v57 = vmul.f32 %v14470_v31, %v14470_v31  ;;  %v4864_v61 = vmul.f32 %v14474_v63, %v14474_v63 }
 0x319   : > { %17952 = vst [vmem:[#allocation41_spill] sm:$0xff] %v14482_v49  ;;  %v4865_v10 = vmul.f32 %v14482_v49, %v14482_v49  ;;  %v14535_v5 = vsub.f32 %v14160_v38, %v14384_v58  ;;  %v14544_v50 = vsub.f32 %v14173_v18, %v14384_v58  ;;  %v14571_v41 = vsub.f32 %v14200_v1, %v14384_v58 }
 0x31a   : > { %v4897_v22 = vsel %vm12398_vm12, %v4861_v12, 0.0  ;;  %v4898_v30 = vsel %vm12402_vm9, %v4862_v15, 0.0  ;;  %v4899_v28 = vsel %vm12406_vm3, %v4863_v57, 0.0  ;;  %v14508_v12 = vsub.f32 %v14133_v6, %v14384_v58 }
 0x31b   : > { %v4933_v51 = vsel %vm17945_vm2, %v4897_v22, 0.0  ;;  %v4934_v4 = vsel %vm17956_vm13, %v4898_v30, 0.0  ;;  %v4866_v15 = vmul.f32 %v14488_v34, %v14488_v34  ;;  %v4900_v33 = vsel %vm12422_vm7, %v4864_v61, 0.0  ;;  %vm17961_vm13 = vmmov %vm17945_vm2 }
 0x31c   : > { %v4935_v54 = vadd.f32 %v4934_v4, %v4933_v51  ;;  %v4936_v49 = vsel %vm17958_vm5, %v4899_v28, 0.0  ;;  %v14517_v57 = vsub.f32 %v14156_v36, %v14384_v58  ;;  %v4867_v22 = vmul.f32 %v14498_v8, %v14498_v8  ;;  %vm17963_vm5 = vmmov %vm17945_vm2 }
 0x31d   : > { %v4901_v6 = vsel %vm12426_vm6, %v4865_v10, 0.0  ;;  %v4938_v3 = vsel %vm17959_vm8, %v4900_v33, 0.0  ;;  %v4868_v61 = vmul.f32 %v14508_v12, %v14508_v12  ;;  %v4902_v36 = vsel %vm12430_vm1, %v4866_v15, 0.0  ;;  %vm17964_vm8 = vmmov %vm17945_vm2 }
 0x31e   : > { %v4937_v30 = vadd.f32 %v4936_v49, %v4935_v54  ;;  %v4940_v51 = vsel %vm17945_vm2, %v4901_v6, 0.0  ;;  %v4869_v49 = vmul.f32 %v14517_v57, %v14517_v57  ;;  %v4903_v52 = vsel %vm12446_vm10, %v4867_v22, 0.0 }
 0x31f   : > { %v4942_v33 = vsel %vm17961_vm13, %v4902_v36, 0.0  ;;  %v4870_v15 = vmul.f32 %v14526_v45, %v14526_v45  ;;  %v4904_v38 = vsel %vm12450_vm15, %v4868_v61, 0.0  ;;  %v4871_v22 = vmul.f32 %v14535_v5, %v14535_v5  ;;  %vm17966_vm13 = vmmov %vm17963_vm5 }
 0x320   : > { %v4939_v28 = vadd.f32 %v4938_v3, %v4937_v30  ;;  %v4944_v30 = vsel %vm17963_vm5, %v4903_v52, 0.0  ;;  %v14553_v3 = vsub.f32 %v14196_v17, %v14384_v58  ;;  %v4905_v18 = vsel %vm17870_vm4, %v4869_v49, 0.0 }
 0x321   : > { %v4872_v61 = vmul.f32 %v14544_v50, %v14544_v50  ;;  %vm17965_vm2 = vnez %v17874_v23  ;;  %v4948_v52 = vsel %vm17966_vm13, %v4905_v18, 0.0  ;;  %v14580_v23 = vsub.f32 %v14213_v46, %v14384_v58 }
 0x322   : > { %v4941_v4 = vadd.f32 %v4940_v51, %v4939_v28  ;;  %v4946_v28 = vsel %vm17964_vm8, %v4904_v38, 0.0  ;;  %v14562_v51 = vsub.f32 %v14216_v56, %v14384_v58  ;;  %v4906_v17 = vsel %vm17965_vm2, %v4870_v15, 0.0  ;;  %v17969_v38 = vld [vmem:[#allocation19_spill] sm:$0xff]  ;;  %vm17971_vm2 = vmmov %vm17963_vm5 }
 0x323   : > { %v4873_v49 = vmul.f32 %v14553_v3, %v14553_v3  ;;  %v4950_v54 = vsel %vm17963_vm5, %v4906_v17, 0.0  ;;  %vm17970_vm8 = vnez %v17969_v38  ;;  %v4875_v18 = vmul.f32 %v14571_v41, %v14571_v41 }
 0x324   : > { %v4943_v6 = vadd.f32 %v4942_v33, %v4941_v4  ;;  %v17967_v4 = vld [vmem:[#allocation18_spill] sm:$0xff]  ;;  %v4874_v15 = vmul.f32 %v14562_v51, %v14562_v51  ;;  %v4908_v1 = vsel %vm17970_vm8, %v4872_v61, 0.0  ;;  %vm17972_vm13 = vnez %v17880_v29  ;;  %vm17975_vm8 = vmmov %vm17971_vm2 }
 0x325   : > { %vm17968_vm4 = vnez %v17967_v4  ;;  %v4876_v46 = vmul.f32 %v14580_v23, %v14580_v23  ;;  %vm17974_vm5 = vnez %v17885_v14  ;;  %v4879_v38 = vmul.f32 %v14396_v21, %v14396_v21 }
 0x326   : > { %v4945_v36 = vadd.f32 %v4944_v30, %v4943_v6  ;;  %v4907_v56 = vsel %vm17968_vm4, %v4871_v22, 0.0  ;;  %v4909_v22 = vsel %vm17972_vm13, %v4873_v49, 0.0  ;;  %vm17973_vm4 = vmmov %vm17971_vm2  ;;  %v4910_v58 = vsel %vm17974_vm5, %v4874_v15, 0.0 }
 0x327   : > { %v4952_v30 = vsel %vm17971_vm2, %v4907_v56, 0.0  ;;  %v4956_v61 = vsel %vm17975_vm8, %v4909_v22, 0.0  ;;  %vm17978_vm13 = vmmov %vm17973_vm4  ;;  %v4878_v56 = vmul.f32 %v14392_v25, %v14392_v25 }
 0x328   : > { %v4947_v10 = vadd.f32 %v4946_v28, %v4945_v36  ;;  %v4954_v28 = vsel %vm17973_vm4, %v4908_v1, 0.0  ;;  %v4958_v49 = vsel %vm17978_vm13, %v4910_v58, 0.0  ;;  %vm17981_vm5 = vmmov %vm17975_vm8  ;;  %vm17982_vm8 = vnez %v17891_v26  ;;  %v17986_v58 = vld [vmem:[#allocation26_spill] sm:$0xff] }
 0x329   : > { %vm17984_vm13 = vnez %v17896_v27 }
 0x32a   : > { %v4949_v33 = vadd.f32 %v4948_v52, %v4947_v10  ;;  %v4877_v10 = vmul.f32 %v14388_v0, %v14388_v0  ;;  %v17976_v52 = vld [vmem:[#allocation22_spill] sm:$0xff]  ;;  %v4914_v22 = vsel %vm17984_vm13, %v4878_v56, 0.0 }
 0x32b   : > { %vm17977_vm2 = vnez %v17976_v52  ;;  %v17989_v52 = vld [vmem:[#allocation5_spill] sm:$0xff] }
 0x32c   : > { %v4951_v6 = vadd.f32 %v4950_v54, %v4949_v33  ;;  %v4911_v4 = vsel %vm17977_vm2, %v4875_v18, 0.0  ;;  %v17979_v33 = vld [vmem:[#allocation23_spill] sm:$0xff]  ;;  %v4913_v1 = vsel %vm17982_vm8, %v4877_v10, 0.0  ;;  %vm17983_vm2 = vmmov %vm17981_vm5  ;;  %v4880_v18 = vmul.f32 %v14400_v20, %v14400_v20 }
 0x32d   : > { %vm17980_vm4 = vnez %v17979_v33  ;;  %v4960_v15 = vsel %vm17981_vm5, %v4911_v4, 0.0  ;;  %vm17987_vm5 = vnez %v17986_v58  ;;  %vm17988_vm8 = vmmov %vm17983_vm2  ;;  %v4882_v10 = vmul.f32 %v14408_v44, %v14408_v44 }
 0x32e   : > { %v4953_v36 = vadd.f32 %v4952_v30, %v4951_v6  ;;  %v4912_v54 = vsel %vm17980_vm4, %v4876_v46, 0.0  ;;  %vm17985_vm4 = vmmov %vm17983_vm2  ;;  %v4881_v46 = vmul.f32 %v14404_v16, %v14404_v16 }
 0x32f   : > { %v4962_v30 = vsel %vm17983_vm2, %v4912_v54, 0.0  ;;  %vm17990_vm2 = vnez %v17989_v52  ;;  %vm17991_vm13 = vmmov %vm17985_vm4 }
 0x330   : > { %v4955_v17 = vadd.f32 %v4954_v28, %v4953_v36  ;;  %v4964_v28 = vsel %vm17985_vm4, %v4913_v1, 0.0  ;;  %v4916_v4 = vsel %vm17990_vm2, %v4880_v18, 0.0  ;;  %vm17992_vm4 = vnez %v17902_v24  ;;  %v17997_v18 = vld [vmem:[#allocation28_spill] sm:$0xff] }
 0x331   : > { %v4917_v56 = vsel %vm17992_vm4, %v4881_v46, 0.0  ;;  %v18000_v46 = vld [vmem:[#allocation7_spill] sm:$0xff] }
 0x332   : > { %v4957_v29 = vadd.f32 %v4956_v61, %v4955_v17  ;;  %v4915_v17 = vsel %vm17987_vm5, %v4879_v38, 0.0  ;;  %v4966_v61 = vsel %vm17988_vm8, %v4914_v22, 0.0  ;;  %vm17993_vm5 = vmmov %vm17988_vm8 }
 0x333   : > { %v4970_v54 = vsel %vm17993_vm5, %v4916_v4, 0.0  ;;  %vm17996_vm2 = vmmov %vm17993_vm5  ;;  %vm18001_vm5 = vnez %v18000_v46  ;;  %v18015_v46 = vld [vmem:[#allocation33_spill] sm:$0xff] }
 0x334   : > { %v4959_v14 = vadd.f32 %v4958_v49, %v4957_v29  ;;  %v4968_v29 = vsel %vm17991_vm13, %v4915_v17, 0.0  ;;  %v4883_v49 = vmul.f32 %v14412_v39, %v14412_v39  ;;  %vm17998_vm13 = vnez %v17997_v18  ;;  %vm17999_vm4 = vmmov %vm17996_vm2  ;;  %v18012_v18 = vld [vmem:[#allocation32_spill] sm:$0xff] }
 0x336   : > { %v4961_v6 = vadd.f32 %v4960_v15, %v4959_v14  ;;  %v4884_v14 = vmul.f32 %v14416_v40, %v14416_v40  ;;  %v17994_v15 = vld [vmem:[#allocation6_spill] sm:$0xff]  ;;  %v4919_v22 = vsel %vm17998_vm13, %v4883_v49, 0.0  ;;  %vm18005_vm13 = vmmov %vm17999_vm4 }
 0x337   : > { %vm17995_vm8 = vnez %v17994_v15  ;;  %v18006_v49 = vld [vmem:[#allocation30_spill] sm:$0xff]  ;;  %v18009_v15 = vld [vmem:[#allocation31_spill] sm:$0xff] }
 0x338   : > { %v4963_v36 = vadd.f32 %v4962_v30, %v4961_v6  ;;  %v4918_v38 = vsel %vm17995_vm8, %v4882_v10, 0.0  ;;  %v4972_v6 = vsel %vm17996_vm2, %v4917_v56, 0.0  ;;  %v4885_v30 = vmul.f32 %v14420_v55, %v14420_v55  ;;  %vm18002_vm8 = vmmov %vm17996_vm2  ;;  %v18003_v10 = vld [vmem:[#allocation29_spill] sm:$0xff] }
 0x339   : > { %v4920_v58 = vsel %vm18001_vm5, %v4884_v14, 0.0  ;;  %vm18004_vm2 = vnez %v18003_v10  ;;  %vm18008_vm5 = vmmov %vm18002_vm8  ;;  %v4889_v14 = vmul.f32 %v14436_v19, %v14436_v19  ;;  %v18018_v10 = vld [vmem:[#allocation34_spill] sm:$0xff] }
 0x33a   : > { %v4965_v26 = vadd.f32 %v4964_v28, %v4963_v36  ;;  %v4974_v36 = vsel %vm17999_vm4, %v4918_v38, 0.0  ;;  %v4886_v28 = vmul.f32 %v14424_v43, %v14424_v43  ;;  %v4921_v52 = vsel %vm18004_vm2, %v4885_v30, 0.0  ;;  %vm18011_vm2 = vmmov %vm18008_vm5 }
 0x33b   : > { %vm18007_vm4 = vnez %v18006_v49  ;;  %v4890_v30 = vmul.f32 %v14439_v13, %v14439_v13  ;;  %v18021_v49 = vld [vmem:[#allocation35_spill] sm:$0xff] }
 0x33c   : > { %v4967_v27 = vadd.f32 %v4966_v61, %v4965_v26  ;;  %v4976_v26 = vsel %vm18002_vm8, %v4919_v22, 0.0  ;;  %v4887_v61 = vmul.f32 %v14428_v62, %v14428_v62  ;;  %v4922_v56 = vsel %vm18007_vm4, %v4886_v28, 0.0  ;;  %vm18014_vm4 = vmmov %vm18011_vm2 }
 0x33d   : > { %vm18010_vm8 = vnez %v18009_v15  ;;  %v4891_v28 = vmul.f32 %v14443_v47, %v14443_v47 }
 0x33e   : > { %v4969_v33 = vadd.f32 %v4968_v29, %v4967_v27  ;;  %v4978_v27 = vsel %vm18005_vm13, %v4920_v58, 0.0  ;;  %v4888_v29 = vmul.f32 %v14432_v59, %v14432_v59  ;;  %v4923_v38 = vsel %vm18010_vm8, %v4887_v61, 0.0  ;;  %vm18017_vm8 = vmmov %vm18011_vm2 }
 0x33f   : > { %vm18013_vm13 = vnez %v18012_v18  ;;  %v4892_v61 = vmul.f32 %v14446_v2, %v14446_v2 }
 0x340   : > { %v4971_v1 = vadd.f32 %v4970_v54, %v4969_v33  ;;  %v4980_v54 = vsel %vm18008_vm5, %v4921_v52, 0.0  ;;  %v4924_v22 = vsel %vm18013_vm13, %v4888_v29, 0.0  ;;  %vm18016_vm5 = vnez %v18015_v46  ;;  %vm18020_vm13 = vmmov %vm18014_vm4 }
 0x341   : > { %v4925_v58 = vsel %vm18016_vm5, %v4889_v14, 0.0  ;;  %v4893_v29 = vmul.f32 %v14449_v37, %v14449_v37  ;;  %vm18023_vm5 = vmmov %vm18017_vm8  ;;  %v4894_v14 = vmul.f32 %v14452_v42, %v14452_v42 }
 0x342   : > { %v4973_v24 = vadd.f32 %v4972_v6, %v4971_v1  ;;  %v4982_v6 = vsel %vm18011_vm2, %v4922_v56, 0.0  ;;  %vm18019_vm2 = vnez %v18018_v10 }
 0x343   : > { %v4926_v52 = vsel %vm18019_vm2, %v4890_v30, 0.0  ;;  %vm18025_vm2 = vmmov %vm18023_vm5 }
 0x344   : > { %v4975_v17 = vadd.f32 %v4974_v36, %v4973_v24  ;;  %v4984_v36 = vsel %vm18014_vm4, %v4923_v38, 0.0  ;;  %vm18022_vm4 = vnez %v18021_v49 }
 0x345   : > { %v4927_v56 = vsel %vm18022_vm4, %v4891_v28, 0.0  ;;  %vm18027_vm4 = vmmov %vm18025_vm2 }
 0x346   : > { %v4977_v4 = vadd.f32 %v4976_v26, %v4975_v17  ;;  %v4986_v26 = vsel %vm18017_vm8, %v4924_v22, 0.0  ;;  %vm18024_vm8 = vnez %v17935_v53 }
 0x347   : > { %v4928_v15 = vsel %vm18024_vm8, %v4892_v61, 0.0  ;;  %vm18030_vm8 = vmmov %vm18025_vm2 }
 0x348   : > { %v4979_v33 = vadd.f32 %v4978_v27, %v4977_v4  ;;  %v4988_v27 = vsel %vm18020_vm13, %v4925_v58, 0.0  ;;  %vm18026_vm13 = vnez %v17938_v48  ;;  %v4994_v22 = vsel %vm18027_vm4, %v4928_v15, 0.0 }
 0x349   : > { %v4929_v30 = vsel %vm18026_vm13, %v4893_v29, 0.0  ;;  %vm18031_vm13 = vmmov %vm18025_vm2 }
 0x34a   : > { %v4981_v1 = vadd.f32 %v4980_v54, %v4979_v33  ;;  %v4990_v54 = vsel %vm18023_vm5, %v4926_v52, 0.0  ;;  %vm18028_vm5 = vmmov %vm18025_vm2 }
 0x34b   : > { %v4996_v28 = vsel %vm18028_vm5, %v4929_v30, 0.0 }
 0x34c   : > { %v4983_v24 = vadd.f32 %v4982_v6, %v4981_v1  ;;  %v4992_v1 = vsel %vm18025_vm2, %v4927_v56, 0.0  ;;  %v4895_v6 = vmul.f32 %v14455_v35, %v14455_v35 }
 0x34e   : > { %v4985_v17 = vadd.f32 %v4984_v36, %v4983_v24  ;;  %v4896_v24 = vmul.f32 %v14458_v9, %v14458_v9  ;;  %v4930_v36 = vsel %vm17944_vm11, %v4894_v14, 0.0  ;;  %v4931_v58 = vsel %vm17942_vm0, %v4895_v6, 0.0  ;;  %vm18034_vm0 = vmmov %vm18025_vm2 }
 0x34f   : > { %v5000_v10 = vsel %vm18025_vm2, %v4931_v58, 0.0  ;;  %vm18036_vm11 = vmmov %vm18034_vm0 }
 0x350   : > { %v4987_v4 = vadd.f32 %v4986_v26, %v4985_v17  ;;  %v4998_v26 = vsel %vm18030_vm8, %v4930_v36, 0.0  ;;  %v4932_v48 = vsel %vm17947_vm14, %v4896_v24, 0.0  ;;  %vm18035_vm14 = vmmov %vm18034_vm0 }
 0x351   : > { %vm18037_vm4 = vmmov %vm18034_vm0 }
 0x352   : > { %v4989_v33 = vadd.f32 %v4988_v27, %v4987_v4  ;;  %v5002_v4 = vsel %vm18031_vm13, %v4932_v48, 0.0  ;;  %vm18038_vm5 = vmmov %vm18034_vm0 }
 0x353   : > { %vm18039_vm8 = vmmov %vm18034_vm0 }
 0x354   : > { %v4991_v38 = vadd.f32 %v4990_v54, %v4989_v33  ;;  %vm18040_vm2 = vmmov %vm18034_vm0 }
 0x355   : > { %vm18041_vm13 = vmmov %vm18034_vm0 }
 0x356   : > { %v4993_v18 = vadd.f32 %v4992_v1, %v4991_v38  ;;  %v18032_v38 = vld [vmem:[#allocation4_spill] sm:$0xff]  ;;  %vm18063_vm15 = vmmov %vm18034_vm0 }
 0x357   : > { %v17230_v1 = vsub.s32 0, %v18032_v38  ;;  %vm18064_vm1 = vmmov %vm18034_vm0 }
 0x358   : > { %v4995_v53 = vadd.f32 %v4994_v22, %v4993_v18  ;;  %vm18065_vm10 = vmmov %vm18034_vm0 }
 0x35a   : > { %v4997_v17 = vadd.f32 %v4996_v28, %v4995_v53  ;;  %v18033_v28 = vld [vmem:[#allocation41_spill] sm:$0xff] }
 0x35c   : > { %v4999_v61 = vadd.f32 %v4998_v26, %v4997_v17 }
 0x35e   : > { %v5001_v52 = vadd.f32 %v5000_v10, %v4999_v61 }
 0x360   : > { %v5003_v7 = vadd.f32 %v5002_v4, %v5001_v52 }
 0x362   : > { %v5004_v27 = vrot.slane %v5003_v7, 4 }
 0x364   : > { %v5005_v29 = vadd.f32 %v5004_v27, %v5003_v7 }
 0x366   : > { %v5006_v49 = vrot.slane %v5005_v29, 2 }
 0x368   : > { %v5007_v56 = vadd.f32 %v5006_v49, %v5005_v29 }
 0x36a   : > { %v5008_v33 = vrot.slane %v5007_v56, 1 }
 0x36c   : > { %v5009_v54 = vadd.f32 %v5008_v33, %v5007_v56 }
 0x36e   : > { %v5010_v14 = vmul.f32 0.00390625, %v5009_v54 }
 0x370   : > { %v5011_v15 = vadd.f32 1e-05, %v5010_v14 }
 0x372   : > { %11330 = vrsqrt.f32 %v5011_v15 }
 0x37f   : > { %v11331_v6 = vpop.eup %11330 }
 0x380   : > { %v5013_v30 = vmul.f32 %v11331_v6, %v4597_v11 }
 0x382   : > { %v5017_v18 = vrot.slane %v5013_v30, %v17230_v1 }
 0x384   : > { %v5018_v22 = vmul.f32 %v5017_v18, %v14462_v60  ;;  %v5019_v24 = vmul.f32 %v5017_v18, %v14466_v32  ;;  %v5020_v36 = vmul.f32 %v5017_v18, %v14470_v31  ;;  %v5021_v53 = vmul.f32 %v5017_v18, %v14474_v63 }
 0x385   : > { %v5022_v46 = vmul.f32 %v5017_v18, %v18033_v28  ;;  %v5023_v58 = vmul.f32 %v5017_v18, %v14488_v34  ;;  %v5024_v17 = vmul.f32 %v5017_v18, %v14498_v8  ;;  %v5025_v26 = vmul.f32 %v5017_v18, %v14508_v12 }
 0x386   : > { %v5026_v48 = vmul.f32 %v5017_v18, %v14517_v57  ;;  %v5027_v61 = vmul.f32 %v5017_v18, %v14526_v45  ;;  %v5028_v60 = vmul.f32 %v5017_v18, %v14535_v5  ;;  %v5029_v32 = vmul.f32 %v5017_v18, %v14544_v50 }
 0x387   : > { %v5030_v31 = vmul.f32 %v5017_v18, %v14553_v3  ;;  %v5031_v63 = vmul.f32 %v5017_v18, %v14562_v51  ;;  %v5032_v10 = vmul.f32 %v5017_v18, %v14571_v41  ;;  %v5033_v34 = vmul.f32 %v5017_v18, %v14580_v23  ;;  %v9754_v41 = vld [vmem:[%s17014_s2 + $0x2] ss:$0 sm:$0xff] }
 0x388   : > { %v5034_v8 = vmul.f32 %v5017_v18, %v14388_v0  ;;  %v5035_v12 = vmul.f32 %v5017_v18, %v14392_v25  ;;  %v5036_v57 = vmul.f32 %v5017_v18, %v14396_v21  ;;  %v5037_v45 = vmul.f32 %v5017_v18, %v14400_v20 }
 0x389   : > { %v5038_v5 = vmul.f32 %v5017_v18, %v14404_v16  ;;  %v5039_v50 = vmul.f32 %v5017_v18, %v14408_v44  ;;  %v5040_v3 = vmul.f32 %v5017_v18, %v14412_v39  ;;  %v5041_v51 = vmul.f32 %v5017_v18, %v14416_v40 }
 0x38a   : > { %v5042_v0 = vmul.f32 %v5017_v18, %v14420_v55  ;;  %v5043_v25 = vmul.f32 %v5017_v18, %v14424_v43  ;;  %v5044_v21 = vmul.f32 %v5017_v18, %v14428_v62  ;;  %v5045_v20 = vmul.f32 %v5017_v18, %v14432_v59 }
 0x38b   : > { %v5046_v16 = vmul.f32 %v5017_v18, %v14436_v19  ;;  %v5047_v44 = vmul.f32 %v5017_v18, %v14439_v13  ;;  %v5048_v39 = vmul.f32 %v5017_v18, %v14443_v47  ;;  %v5049_v40 = vmul.f32 %v5017_v18, %v14446_v2 }
 0x38c   : > { %v5050_v23 = vmul.f32 %v5017_v18, %v14449_v37  ;;  %v5051_v52 = vmul.f32 %v5017_v18, %v14452_v42  ;;  %v5052_v55 = vmul.f32 %v5017_v18, %v14455_v35  ;;  %v5053_v43 = vmul.f32 %v5017_v18, %v14458_v9 }
 0x38d   : > { %v5058_v4 = vadd.f32 %v9754_v41, %v5018_v22  ;;  %v5059_v62 = vadd.f32 %v9754_v41, %v5019_v24  ;;  %v5060_v7 = vadd.f32 %v9754_v41, %v5020_v36  ;;  %v5061_v59 = vadd.f32 %v9754_v41, %v5021_v53 }
 0x38e   : > { %v5062_v27 = vadd.f32 %v9754_v41, %v5022_v46  ;;  %v5063_v19 = vadd.f32 %v9754_v41, %v5023_v58  ;;  %v5064_v29 = vadd.f32 %v9754_v41, %v5024_v17  ;;  %v5065_v13 = vadd.f32 %v9754_v41, %v5025_v26 }
 0x38f   : > { %v5066_v49 = vadd.f32 %v9754_v41, %v5026_v48  ;;  %v5067_v47 = vadd.f32 %v9754_v41, %v5027_v61  ;;  %v5068_v56 = vadd.f32 %v9754_v41, %v5028_v60  ;;  %v5069_v2 = vadd.f32 %v9754_v41, %v5029_v32 }
 0x390   : > { %v5070_v33 = vadd.f32 %v9754_v41, %v5030_v31  ;;  %v5071_v37 = vadd.f32 %v9754_v41, %v5031_v63  ;;  %v5072_v54 = vadd.f32 %v9754_v41, %v5032_v10  ;;  %v5073_v42 = vadd.f32 %v9754_v41, %v5033_v34 }
 0x391   : > { %v14749_v14 = vadd.f32 %v9754_v41, %v5034_v8  ;;  %v14751_v35 = vadd.f32 %v9754_v41, %v5035_v12  ;;  %v14753_v9 = vadd.f32 %v9754_v41, %v5036_v57  ;;  %v14755_v15 = vadd.f32 %v9754_v41, %v5037_v45 }
 0x392   : > { %v14757_v11 = vadd.f32 %v9754_v41, %v5038_v5  ;;  %v14759_v38 = vadd.f32 %v9754_v41, %v5039_v50  ;;  %v14761_v6 = vadd.f32 %v9754_v41, %v5040_v3  ;;  %v14763_v30 = vadd.f32 %v9754_v41, %v5041_v51 }
 0x393   : > { %v14765_v18 = vadd.f32 %v9754_v41, %v5042_v0  ;;  %v14767_v22 = vadd.f32 %v9754_v41, %v5043_v25  ;;  %v14769_v24 = vadd.f32 %v9754_v41, %v5044_v21  ;;  %v14771_v36 = vadd.f32 %v9754_v41, %v5045_v20 }
 0x394   : > { %v14773_v53 = vadd.f32 %v9754_v41, %v5046_v16  ;;  %v14775_v28 = vadd.f32 %v9754_v41, %v5047_v44  ;;  %v14777_v46 = vadd.f32 %v9754_v41, %v5048_v39  ;;  %v14779_v58 = vadd.f32 %v9754_v41, %v5049_v40 }
 0x395   : > { %v14781_v17 = vadd.f32 %v9754_v41, %v5050_v23  ;;  %v14783_v26 = vadd.f32 %v9754_v41, %v5051_v52  ;;  %v14785_v48 = vadd.f32 %v9754_v41, %v5052_v55  ;;  %v14787_v61 = vadd.f32 %v9754_v41, %v5053_v43 }
 0x396   : > { %v5094_v60 = vmax.f32 %v5058_v4, 0.0  ;;  %v5095_v32 = vmax.f32 %v5059_v62, 0.0  ;;  %v5096_v31 = vmax.f32 %v5060_v7, 0.0  ;;  %v5097_v63 = vmax.f32 %v5061_v59, 0.0 }
 0x397   : > { %v5098_v10 = vmax.f32 %v5062_v27, 0.0  ;;  %v5099_v34 = vmax.f32 %v5063_v19, 0.0  ;;  %v5100_v8 = vmax.f32 %v5064_v29, 0.0  ;;  %v5101_v12 = vmax.f32 %v5065_v13, 0.0 }
 0x398   : > { %v5102_v57 = vmax.f32 %v5066_v49, 0.0  ;;  %v5103_v45 = vmax.f32 %v5067_v47, 0.0  ;;  %v5104_v5 = vmax.f32 %v5068_v56, 0.0  ;;  %v5105_v50 = vmax.f32 %v5069_v2, 0.0  ;;  %5130 = vst.msk [vmem:[#allocation2 + $0x13] sm:$0xff] %vm18034_vm0, %v5094_v60 }
 0x399   : > { %5131 = vst.msk [vmem:[#allocation2 + $0x1b] sm:$0xff] %vm18035_vm14, %v5095_v32  ;;  %v5106_v3 = vmax.f32 %v5070_v33, 0.0  ;;  %v5107_v51 = vmax.f32 %v5071_v37, 0.0  ;;  %v5108_v41 = vmax.f32 %v5072_v54, 0.0  ;;  %v5109_v0 = vmax.f32 %v5073_v42, 0.0  ;;  %vm18042_vm14 = vmmov %vm18034_vm0 }
 0x39a   : > { %5132 = vst.msk [vmem:[#allocation2 + $0x23] sm:$0xff] %vm18036_vm11, %v5096_v31  ;;  %v5110_v25 = vmax.f32 %v14749_v14, 0.0  ;;  %v5111_v21 = vmax.f32 %v14751_v35, 0.0  ;;  %v5112_v20 = vmax.f32 %v14753_v9, 0.0  ;;  %v5113_v16 = vmax.f32 %v14755_v15, 0.0  ;;  %vm18043_vm11 = vmmov %vm18034_vm0 }
 0x39b   : > { %5133 = vst.msk [vmem:[#allocation2 + $0x2b] sm:$0xff] %vm18037_vm4, %v5097_v63  ;;  %vm18044_vm4 = vmmov %vm18034_vm0  ;;  %v5114_v44 = vmax.f32 %v14757_v11, 0.0  ;;  %v5115_v39 = vmax.f32 %v14759_v38, 0.0  ;;  %v5116_v40 = vmax.f32 %v14761_v6, 0.0  ;;  %v5117_v23 = vmax.f32 %v14763_v30, 0.0 }
 0x39c   : > { %5134 = vst.msk [vmem:[#allocation2 + $0x33] sm:$0xff] %vm18038_vm5, %v5098_v10  ;;  %vm18045_vm5 = vmmov %vm18034_vm0  ;;  %v5118_v52 = vmax.f32 %v14765_v18, 0.0  ;;  %v5119_v55 = vmax.f32 %v14767_v22, 0.0  ;;  %v5120_v43 = vmax.f32 %v14769_v24, 0.0  ;;  %v5121_v4 = vmax.f32 %v14771_v36, 0.0 }
 0x39d   : > { %5135 = vst.msk [vmem:[#allocation2 + $0x3b] sm:$0xff] %vm18039_vm8, %v5099_v34  ;;  %vm18046_vm8 = vmmov %vm18034_vm0  ;;  %v5122_v62 = vmax.f32 %v14773_v53, 0.0  ;;  %v5123_v7 = vmax.f32 %v14775_v28, 0.0  ;;  %v5124_v59 = vmax.f32 %v14777_v46, 0.0  ;;  %v5125_v27 = vmax.f32 %v14779_v58, 0.0 }
 0x39e   : > { %5136 = vst.msk [vmem:[#allocation2 + $0x43] sm:$0xff] %vm18040_vm2, %v5100_v8  ;;  %vm18047_vm2 = vmmov %vm18034_vm0  ;;  %v5126_v19 = vmax.f32 %v14781_v17, 0.0  ;;  %v5127_v29 = vmax.f32 %v14783_v26, 0.0  ;;  %v5128_v13 = vmax.f32 %v14785_v48, 0.0  ;;  %v5129_v49 = vmax.f32 %v14787_v61, 0.0 }
 0x39f   : > { %5137 = vst.msk [vmem:[#allocation2 + $0x4b] sm:$0xff] %vm18041_vm13, %v5101_v12  ;;  %vm18048_vm13 = vmmov %vm18034_vm0 }
 0x3a0   : > { %5138 = vst.msk [vmem:[#allocation2 + $0x53] sm:$0xff] %vm18034_vm0, %v5102_v57  ;;  %5146 = vst.msk [vmem:[#allocation2 + $0x93] sm:$0xff] %vm18034_vm0, %v5110_v25 }
 0x3a1   : > { %5139 = vst.msk [vmem:[#allocation2 + $0x5b] sm:$0xff] %vm18042_vm14, %v5103_v45  ;;  %vm18049_vm14 = vmmov %vm18034_vm0 }
 0x3a2   : > { %5140 = vst.msk [vmem:[#allocation2 + $0x63] sm:$0xff] %vm18043_vm11, %v5104_v5  ;;  %vm18050_vm11 = vmmov %vm18034_vm0 }
 0x3a3   : > { %5141 = vst.msk [vmem:[#allocation2 + $0x6b] sm:$0xff] %vm18044_vm4, %v5105_v50  ;;  %vm18051_vm4 = vmmov %vm18034_vm0 }
 0x3a4   : > { %5142 = vst.msk [vmem:[#allocation2 + $0x73] sm:$0xff] %vm18045_vm5, %v5106_v3  ;;  %vm18052_vm5 = vmmov %vm18034_vm0 }
 0x3a5   : > { %5143 = vst.msk [vmem:[#allocation2 + $0x7b] sm:$0xff] %vm18046_vm8, %v5107_v51  ;;  %vm18053_vm8 = vmmov %vm18034_vm0 }
 0x3a6   : > { %5144 = vst.msk [vmem:[#allocation2 + $0x83] sm:$0xff] %vm18047_vm2, %v5108_v41  ;;  %vm18054_vm2 = vmmov %vm18034_vm0 }
 0x3a7   : > { %5145 = vst.msk [vmem:[#allocation2 + $0x8b] sm:$0xff] %vm18048_vm13, %v5109_v0  ;;  %vm18055_vm13 = vmmov %vm18034_vm0 }
 0x3a8   : > { %5147 = vst.msk [vmem:[#allocation2 + $0x9b] sm:$0xff] %vm18049_vm14, %v5111_v21  ;;  %vm18056_vm14 = vmmov %vm18034_vm0 }
 0x3a9   : > { %5148 = vst.msk [vmem:[#allocation2 + $0xa3] sm:$0xff] %vm18050_vm11, %v5112_v20  ;;  %vm18057_vm11 = vmmov %vm18034_vm0 }
 0x3aa   : > { %5149 = vst.msk [vmem:[#allocation2 + $0xab] sm:$0xff] %vm18051_vm4, %v5113_v16  ;;  %vm18058_vm4 = vmmov %vm18034_vm0 }
 0x3ab   : > { %5150 = vst.msk [vmem:[#allocation2 + $0xb3] sm:$0xff] %vm18052_vm5, %v5114_v44  ;;  %vm18059_vm5 = vmmov %vm18034_vm0 }
 0x3ac   : > { %5151 = vst.msk [vmem:[#allocation2 + $0xbb] sm:$0xff] %vm18053_vm8, %v5115_v39  ;;  %vm18060_vm8 = vmmov %vm18034_vm0 }
 0x3ad   : > { %5152 = vst.msk [vmem:[#allocation2 + $0xc3] sm:$0xff] %vm18054_vm2, %v5116_v40  ;;  %vm18061_vm2 = vmmov %vm18034_vm0 }
 0x3ae   : > { %5153 = vst.msk [vmem:[#allocation2 + $0xcb] sm:$0xff] %vm18055_vm13, %v5117_v23  ;;  %vm18062_vm13 = vmmov %vm18034_vm0 }
 0x3af   : > { %5154 = vst.msk [vmem:[#allocation2 + $0xd3] sm:$0xff] %vm18034_vm0, %v5118_v52  ;;  %5165 = vst.msk [vmem:[#allocation2 + $0x12b] sm:$0xff] %vm18034_vm0, %v5129_v49 }
 0x3b0   : > { %5155 = vst.msk [vmem:[#allocation2 + $0xdb] sm:$0xff] %vm18056_vm14, %v5119_v55 }
 0x3b1   : > { %5156 = vst.msk [vmem:[#allocation2 + $0xe3] sm:$0xff] %vm18057_vm11, %v5120_v43 }
 0x3b2   : > { %5157 = vst.msk [vmem:[#allocation2 + $0xeb] sm:$0xff] %vm18058_vm4, %v5121_v4 }
 0x3b3   : > { %5158 = vst.msk [vmem:[#allocation2 + $0xf3] sm:$0xff] %vm18059_vm5, %v5122_v62 }
 0x3b4   : > { %5159 = vst.msk [vmem:[#allocation2 + $0xfb] sm:$0xff] %vm18060_vm8, %v5123_v7 }
 0x3b5   : > { %5160 = vst.msk [vmem:[#allocation2 + $0x103] sm:$0xff] %vm18061_vm2, %v5124_v59 }
 0x3b6   : > { %5161 = vst.msk [vmem:[#allocation2 + $0x10b] sm:$0xff] %vm18062_vm13, %v5125_v27 }
 0x3b7   : > { %5162 = vst.msk [vmem:[#allocation2 + $0x113] sm:$0xff] %vm18063_vm15, %v5126_v19 }
 0x3b8   : > { %5163 = vst.msk [vmem:[#allocation2 + $0x11b] sm:$0xff] %vm18064_vm1, %v5127_v29 }
 0x3b9   : > { %5164 = vst.msk [vmem:[#allocation2 + $0x123] sm:$0xff] %vm18065_vm10, %v5128_v13 }
 0x3ba LB: >> { %s9409_s28 = smul.u32 18, %s11419_s27  ;;  %vm5178_vm14 = vcmask 24576   ;;  %s5171_s27 = sadd.s32 1, %s11419_s27   ;;  %s11419_s27 = sphi %s11417_s27, %s5171_s27  }
 0x3bb   : >> { %p5168_p5 = scmp.ge.s32.totalorder %s5171_s27, 16  }
 0x3bc   : >> { %s9410_s29 = scalar_lea.vmem [#allocation2], %s9409_s28  ;;  %v9801_v2 = vld [vmem:[%s17013_s1 + $0x14] sm:$0x3] (%p5168_p5)  ;;  %v9800_v33 = vld [vmem:[%s17013_s1 + $0x12] sm:$0x3] (%p5168_p5)  ;;  %vm18066_vm15 = vcmask (%p5168_p5), 1041408  }
 0x3bd   : > { %5170 = sbr.rel (!%p5168_p5) target bundleno = 954 (0x3ba), region = 122  ;;  %11157 = vmatprep.subr.msk.bf16.mxu1 (%p5168_p5), %vm18066_vm15, %v9801_v2  ;;  %vm18067_vm1 = vmmov (%p5168_p5), %vm18066_vm15  ;;  %vm18070_vm4 = vcmask (%p5168_p5), 31744   ;;  %vm18072_vm8 = vcmask (%p5168_p5), 25600   ;;  %v14861_v11 = vld [vmem:[%s17013_s1 + $0x16] sm:$0x3] (%p5168_p5)  ;;  %vm18074_vm13 = vcmask (%p5168_p5), 27648  }
 0x3be   : > { %v5782_v54 = vsel (%p5168_p5), %vm18067_vm1, %v9801_v2, 0  ;;  %vm18068_vm10 = vmmov (%p5168_p5), %vm18067_vm1  ;;  %s11421_s30 = smov (%p5168_p5), 0  }
 0x3bf   : > { %11158 = vmatprep.subr.msk.bf16.mxu0 (%p5168_p5), %vm18068_vm10, %v9800_v33  ;;  %vm18069_vm11 = vmmov (%p5168_p5), %vm18067_vm1  ;;  %10807 = vmatpush3.bf16.msra.mxu1 (%p5168_p5), %v5782_v54 }
 0x3c0   : >> { %v9755_v47 = vld [vmem:[%s9410_s29 + $0x14] sm:$0x1]  ;;  %v9757_v56 = vld [vmem:[%s9410_s29 + $0x21] sm:$0x1]  ;;  %v5998_v42 = vsel (%p5168_p5), %vm18069_vm11, %v9800_v33, 0  ;;  %vm18071_vm5 = vmmov (%p5168_p5), %vm18070_vm4 }
 0x3c1   : >> { %9756 = vst.msk [vmem:[%s9410_s29 + $0x12] sm:$0x1] %vm5178_vm14, %v9755_v47  ;;  %9758 = vst.msk [vmem:[%s9410_s29 + $0x23] sm:$0x1] %vm5178_vm14, %v9757_v56  ;;  %10845 = vmatpush3.bf16.msra.mxu0 (%p5168_p5), %v5998_v42 }
 0x3c2   : > { %vm18073_vm2 = vmmov %vm18067_vm1 }
 0x3c3   : > { %11159 = vmatprep.subr.msk.bf16.mxu1 %vm18073_vm2, %v14861_v11  ;;  %vm18075_vm0 = vmmov %vm18074_vm13 }
 0x3c4   : > { %vm18076_vm14 = vmmov %vm18075_vm0 }
 0x3c5   : > { %vm18077_vm15 = vmmov %vm18075_vm0 }
 0x3c6   : > { %vm18078_vm1 = vmmov %vm18075_vm0 }
 0x3c7   : > { %vm18079_vm10 = vmmov %vm18075_vm0 }
 0x3c8   : > { %v5186_v37 = vld [vmem:[#allocation2 + $0x24] sm:$0xff]  ;;  %v5187_v14 = vld [vmem:[#allocation2 + $0x2c] sm:$0xff]  ;;  %v5188_v35 = vld [vmem:[#allocation2 + $0x34] sm:$0x3] }
 0x3c9   : > { %5189 = vst.msk [vmem:[#allocation2] sm:$0xff] %vm18070_vm4, %v5186_v37  ;;  %v5201_v9 = vld [vmem:[#allocation2 + $0x18] sm:$0xff]  ;;  %v5202_v38 = vld [vmem:[#allocation2 + $0x20] sm:$0xff]  ;;  %v5203_v6 = vld [vmem:[#allocation2 + $0x28] sm:$0xff] }
 0x3ca   : > { %5190 = vst.msk [vmem:[#allocation2 + $0x8] sm:$0xff] %vm18071_vm5, %v5187_v14  ;;  %v10084_v15 = vpack.c.bf16 %v5201_v9, %v5201_v9  ;;  %v10085_v30 = vpack.c.bf16 %v5202_v38, %v5202_v38  ;;  %v10086_v18 = vpack.c.bf16 %v5203_v6, %v5203_v6  ;;  %v5204_v22 = vld [vmem:[#allocation2 + $0x30] sm:$0xff]  ;;  %v5205_v24 = vld [vmem:[#allocation2 + $0x38] sm:$0xff]  ;;  %v5206_v36 = vld [vmem:[#allocation2 + $0x40] sm:$0xff] }
 0x3cb   : > { %5191 = vst.msk [vmem:[#allocation2 + $0x10] sm:$0x3] %vm18072_vm8, %v5188_v35  ;;  %v10087_v53 = vpack.c.bf16 %v5204_v22, %v5204_v22  ;;  %v10088_v28 = vpack.c.bf16 %v5205_v24, %v5205_v24  ;;  %v5207_v46 = vld [vmem:[#allocation2 + $0x48] sm:$0xff]  ;;  %v10089_v58 = vpack.c.bf16 %v5206_v36, %v5206_v36  ;;  %v5208_v17 = vld [vmem:[#allocation2 + $0x50] sm:$0xff]  ;;  %v5209_v26 = vld [vmem:[#allocation2 + $0x58] sm:$0xff] }
 0x3cc   : > { %5407 = vst.msk [vmem:[#allocation3 + $0xc] sm:$0xf] %vm18074_vm13, %v10084_v15  ;;  %v10090_v48 = vpack.c.bf16 %v5207_v46, %v5207_v46  ;;  %v10091_v61 = vpack.c.bf16 %v5208_v17, %v5208_v17  ;;  %v10092_v60 = vpack.c.bf16 %v5209_v26, %v5209_v26  ;;  %v5210_v32 = vld [vmem:[#allocation2 + $0x60] sm:$0xff]  ;;  %v5211_v31 = vld [vmem:[#allocation2 + $0x68] sm:$0xff]  ;;  %v5212_v63 = vld [vmem:[#allocation2 + $0x70] sm:$0xff] }
 0x3cd   : > { %5408 = vst.msk [vmem:[#allocation3 + $0x10] sm:$0xf] %vm18075_vm0, %v10085_v30  ;;  %v10093_v10 = vpack.c.bf16 %v5210_v32, %v5210_v32  ;;  %v10094_v34 = vpack.c.bf16 %v5211_v31, %v5211_v31  ;;  %v5213_v8 = vld [vmem:[#allocation2 + $0x78] sm:$0xff]  ;;  %v10095_v12 = vpack.c.bf16 %v5212_v63, %v5212_v63  ;;  %v5214_v57 = vld [vmem:[#allocation2 + $0x80] sm:$0xff]  ;;  %v5215_v45 = vld [vmem:[#allocation2 + $0x88] sm:$0xff] }
 0x3ce   : > { %5409 = vst.msk [vmem:[#allocation3 + $0x14] sm:$0xf] %vm18076_vm14, %v10086_v18  ;;  %vm18080_vm11 = vmmov %vm18075_vm0  ;;  %v10096_v5 = vpack.c.bf16 %v5213_v8, %v5213_v8  ;;  %v10097_v50 = vpack.c.bf16 %v5214_v57, %v5214_v57  ;;  %v10098_v3 = vpack.c.bf16 %v5215_v45, %v5215_v45  ;;  %v5216_v51 = vld [vmem:[#allocation2 + $0x90] sm:$0xff]  ;;  %v5217_v41 = vld [vmem:[#allocation2 + $0x98] sm:$0xff] }
 0x3cf   : > { %5410 = vst.msk [vmem:[#allocation3 + $0x18] sm:$0xf] %vm18077_vm15, %v10087_v53  ;;  %vm18081_vm4 = vmmov %vm18075_vm0  ;;  %v5218_v0 = vld [vmem:[#allocation2 + $0xa0] sm:$0xff]  ;;  %v10099_v21 = vpack.c.bf16 %v5216_v51, %v5216_v51  ;;  %v10100_v20 = vpack.c.bf16 %v5217_v41, %v5217_v41  ;;  %v5219_v16 = vld [vmem:[#allocation2 + $0xa8] sm:$0xff] }
 0x3d0   : > { %5411 = vst.msk [vmem:[#allocation3 + $0x1c] sm:$0xf] %vm18078_vm1, %v10088_v28  ;;  %vm18082_vm5 = vmmov %vm18075_vm0  ;;  %v5198_v25 = vld [vmem:[#allocation2] sm:$0xff]  ;;  %v10101_v44 = vpack.c.bf16 %v5218_v0, %v5218_v0  ;;  %v5220_v39 = vld [vmem:[#allocation2 + $0xb0] sm:$0xff]  ;;  %v10102_v55 = vpack.c.bf16 %v5219_v16, %v5219_v16 }
 0x3d1   : > { %5412 = vst.msk [vmem:[#allocation3 + $0x20] sm:$0xf] %vm18079_vm10, %v10089_v58  ;;  %vm18083_vm8 = vmmov %vm18075_vm0  ;;  %v5199_v40 = vld [vmem:[#allocation2 + $0x8] sm:$0xff]  ;;  %v10081_v52 = vpack.c.bf16 %v5198_v25, %v5198_v25  ;;  %v5221_v43 = vld [vmem:[#allocation2 + $0xb8] sm:$0xff]  ;;  %v10103_v4 = vpack.c.bf16 %v5220_v39, %v5220_v39 }
 0x3d2   : > { %5413 = vst.msk [vmem:[#allocation3 + $0x24] sm:$0xf] %vm18080_vm11, %v10090_v48  ;;  %vm18084_vm2 = vmmov %vm18075_vm0  ;;  %v5200_v23 = vld [vmem:[#allocation2 + $0x10] sm:$0xff]  ;;  %v10082_v62 = vpack.c.bf16 %v5199_v40, %v5199_v40  ;;  %v10104_v59 = vpack.c.bf16 %v5221_v43, %v5221_v43  ;;  %v5222_v27 = vld [vmem:[#allocation2 + $0xc0] sm:$0xff] }
 0x3d3   : > { %5414 = vst.msk [vmem:[#allocation3 + $0x28] sm:$0xf] %vm18081_vm4, %v10091_v61  ;;  %vm18085_vm13 = vmmov %vm18075_vm0  ;;  %v10083_v7 = vpack.c.bf16 %v5200_v23, %v5200_v23  ;;  %v5223_v19 = vld [vmem:[#allocation2 + $0xc8] sm:$0xff]  ;;  %v5224_v29 = vld [vmem:[#allocation2 + $0xd0] sm:$0xff]  ;;  %v10105_v13 = vpack.c.bf16 %v5222_v27, %v5222_v27 }
 0x3d4   : > { %5415 = vst.msk [vmem:[#allocation3 + $0x2c] sm:$0xf] %vm18082_vm5, %v10092_v60  ;;  %vm18086_vm14 = vmmov %vm18075_vm0  ;;  %v10106_v49 = vpack.c.bf16 %v5223_v19, %v5223_v19  ;;  %v5225_v47 = vld [vmem:[#allocation2 + $0xd8] sm:$0xff]  ;;  %v10107_v56 = vpack.c.bf16 %v5224_v29, %v5224_v29  ;;  %v5226_v2 = vld [vmem:[#allocation2 + $0xe0] sm:$0xff] }
 0x3d5   : > { %5416 = vst.msk [vmem:[#allocation3 + $0x30] sm:$0xf] %vm18083_vm8, %v10093_v10  ;;  %vm18087_vm15 = vmmov %vm18075_vm0  ;;  %v10108_v33 = vpack.c.bf16 %v5225_v47, %v5225_v47  ;;  %v10109_v37 = vpack.c.bf16 %v5226_v2, %v5226_v2  ;;  %v14892_v54 = vld [vmem:[#allocation3 + $0x10] sm:$0xff]   ;;  %v5230_v0 = vld [vmem:[#allocation2 + $0x100] sm:$0xff] }
 0x3d6   : > { %5417 = vst.msk [vmem:[#allocation3 + $0x34] sm:$0xf] %vm18084_vm2, %v10094_v34  ;;  %vm18088_vm1 = vmmov %vm18075_vm0  ;;  %v5595_v35 = vshll.u32 %v14892_v54, 16  ;;  %v5599_v6 = vshrl.u32 %v14892_v54, 16  ;;  %v5229_v41 = vld [vmem:[#allocation2 + $0xf8] sm:$0xff]  ;;  %v5231_v16 = vld [vmem:[#allocation2 + $0x108] sm:$0xff]  ;;  %v10113_v27 = vpack.c.bf16 %v5230_v0, %v5230_v0 }
 0x3d7   : > { %5418 = vst.msk [vmem:[#allocation3 + $0x38] sm:$0xf] %vm18085_vm13, %v10095_v12  ;;  %vm18089_vm10 = vmmov %vm18075_vm0  ;;  %v14896_v42 = vld [vmem:[#allocation3 + $0x18] sm:$0xff]   ;;  %v5233_v39 = vld [vmem:[#allocation2 + $0x118] sm:$0xff]  ;;  %v10112_v43 = vpack.c.bf16 %v5229_v41, %v5229_v41  ;;  %v10114_v47 = vpack.c.bf16 %v5231_v16, %v5231_v16 }
 0x3d8   : > { %5419 = vst.msk [vmem:[#allocation3 + $0x3c] sm:$0xf] %vm18075_vm0, %v10096_v5  ;;  %vm18090_vm11 = vmmov %vm18075_vm0  ;;  %v5603_v30 = vshll.u32 %v14896_v42, 16  ;;  %v5597_v53 = vrot.slane %v5595_v35, 1  ;;  %v5607_v34 = vshrl.u32 %v14896_v42, 16  ;;  %v10116_v2 = vpack.c.bf16 %v5233_v39, %v5233_v39 }
 0x3d9   : > { %5420 = vst.msk [vmem:[#allocation3 + $0x40] sm:$0xf] %vm18086_vm14, %v10097_v50  ;;  %vm18091_vm4 = vmmov %vm18075_vm0  ;;  %v14909_v28 = vld [vmem:[#allocation3 + $0x20] sm:$0xff]   ;;  %v5228_v50 = vld [vmem:[#allocation2 + $0xf0] sm:$0xff] }
 0x3da   : > { %5421 = vst.msk [vmem:[#allocation3 + $0x44] sm:$0xf] %vm18087_vm15, %v10098_v3  ;;  %vm18092_vm5 = vmmov %vm18075_vm0  ;;  %v5601_v26 = vor.u32 %v5599_v6, %v5597_v53  ;;  %v5605_v48 = vrot.slane %v5603_v30, 1  ;;  %v5611_v31 = vshll.u32 %v14909_v28, 16  ;;  %v5615_v8 = vshrl.u32 %v14909_v28, 16 }
 0x3db   : > { %5422 = vst.msk [vmem:[#allocation3 + $0x48] sm:$0xf] %vm18088_vm1, %v10099_v21  ;;  %vm18093_vm8 = vmmov %vm18075_vm0  ;;  %v14913_v58 = vld [vmem:[#allocation3 + $0x28] sm:$0xff]   ;;  %v14951_v29 = vld [vmem:[%s17013_s1 + $0x1a] sm:$0x3] }
 0x3dc   : > { %5423 = vst.msk [vmem:[#allocation3 + $0x4c] sm:$0xf] %vm18089_vm10, %v10100_v20  ;;  %vm18094_vm2 = vmmov %vm18075_vm0  ;;  %v5619_v45 = vshll.u32 %v14913_v58, 16  ;;  %v5613_v3 = vrot.slane %v5611_v31, 1  ;;  %v5609_v25 = vor.u32 %v5607_v34, %v5605_v48  ;;  %v5623_v21 = vshrl.u32 %v14913_v58, 16 }
 0x3dd   : > { %5424 = vst.msk [vmem:[#allocation3 + $0x50] sm:$0xf] %vm18090_vm11, %v10101_v44  ;;  %vm18095_vm13 = vmmov %vm18075_vm0  ;;  %v14920_v63 = vld [vmem:[#allocation3 + $0x30] sm:$0xff]   ;;  %v5232_v44 = vld [vmem:[#allocation2 + $0x110] sm:$0xff] }
 0x3de   : > { %5404 = vst.msk [vmem:[#allocation3] sm:$0xf] %vm18091_vm4, %v10081_v52  ;;  %vm18096_vm14 = vmmov %vm18075_vm0  ;;  %vm18101_vm4 = vcmask 31744   ;;  %v5627_v51 = vshll.u32 %v14920_v63, 16  ;;  %v5617_v40 = vor.u32 %v5615_v8, %v5613_v3  ;;  %v5621_v23 = vrot.slane %v5619_v45, 1 }
 0x3df   : > { %5425 = vst.msk [vmem:[#allocation3 + $0x54] sm:$0xf] %vm18092_vm5, %v10102_v55  ;;  %vm18097_vm15 = vmmov %vm18075_vm0  ;;  %v14928_v5 = vld [vmem:[#allocation3 + $0x38] sm:$0xff]   ;;  %v10111_v55 = vpack.c.bf16 %v5228_v50, %v5228_v50  ;;  %v6192_v8 = vrot.slane %v14913_v58, 1  ;;  %v6194_v50 = vrot.slane %v14920_v63, 1 }
 0x3e0   : > { %5426 = vst.msk [vmem:[#allocation3 + $0x58] sm:$0xf] %vm18093_vm8, %v10103_v4  ;;  %vm18098_vm1 = vmmov %vm18075_vm0  ;;  %v5234_v4 = vld [vmem:[#allocation2 + $0x120] sm:$0xff]  ;;  %v5625_v6 = vor.u32 %v5623_v21, %v5621_v23  ;;  %v15018_v39 = vld [vmem:[#allocation3 + $0xc] sm:$0xf] }
 0x3e1   : > { %5405 = vst.msk [vmem:[#allocation3 + $0x4] sm:$0xf] %vm18094_vm2, %v10082_v62  ;;  %vm18099_vm10 = vmmov %vm18075_vm0  ;;  %vm18104_vm2 = vcmask 1041408   ;;  %v14937_v52 = vld [vmem:[#allocation3 + $0x40] sm:$0xff]   ;;  %v9877_v62 = vld [vmem:[%s17013_s1 + $0x18] sm:$0x3] }
 0x3e2   : > { %5406 = vst.msk [vmem:[#allocation3 + $0x8] sm:$0xf] %vm18095_vm13, %v10083_v7  ;;  %vm18100_vm11 = vmmov %vm18075_vm0  ;;  %v6275_v32 = vsel %vm18104_vm2, %v14861_v11, 0  ;;  %vm18105_vm13 = vsmask.f32 7424  ;;  %v5227_v11 = vld [vmem:[#allocation2 + $0xe8] sm:$0xff] }
 0x3e3   : > { %5427 = vst.msk [vmem:[#allocation3 + $0x5c] sm:$0xf] %vm18075_vm0, %v10104_v59  ;;  %vm18102_vm5 = vmmov %vm18101_vm4  ;;  %v10110_v20 = vpack.c.bf16 %v5227_v11, %v5227_v11  ;;  %v5631_v7 = vshrl.u32 %v14920_v63, 16  ;;  %v5635_v59 = vshll.u32 %v14928_v5, 16 }
 0x3e4   : > { %5428 = vst.msk [vmem:[#allocation3 + $0x60] sm:$0xf] %vm18096_vm14, %v10105_v13  ;;  %vm18103_vm8 = vmmov %vm18101_vm4  ;;  %v5629_v13 = vrot.slane %v5627_v51, 1 }
 0x3e5   : > { %5429 = vst.msk [vmem:[#allocation3 + $0x64] sm:$0xf] %vm18097_vm15, %v10106_v49  ;;  %v5445_v14 = vld [vmem:[#allocation3] sm:$0xf]  ;;  %vm18106_vm0 = vmmov %vm18105_vm13  ;;  %v14953_v49 = vld [vmem:[#allocation3 + $0x48] sm:$0xff]  }
 0x3e6   : > { %5430 = vst.msk [vmem:[#allocation3 + $0x68] sm:$0xf] %vm18098_vm1, %v10107_v56  ;;  %vm18107_vm14 = vmmov %vm18106_vm0  ;;  %v6177_v19 = vld [vmem:[#allocation3] sm:$0xe]  ;;  %v10115_v56 = vpack.c.bf16 %v5232_v44, %v5232_v44 }
 0x3e7   : > { %5431 = vst.msk [vmem:[#allocation3 + $0x6c] sm:$0xf] %vm18099_vm10, %v10108_v33  ;;  %v5606_v57 = vsel %vm18107_vm14, %v5601_v26, %v5605_v48  ;;  %vm18108_vm15 = vmmov %vm18101_vm4  ;;  %v5614_v33 = vsel %vm18107_vm14, %v5609_v25, %v5613_v3  ;;  %v5647_v26 = vshrl.u32 %v14937_v52, 16 }
 0x3e8   : > { %5432 = vst.msk [vmem:[#allocation3 + $0x70] sm:$0xf] %vm18100_vm11, %v10109_v37  ;;  %v14899_v9 = vld [vmem:[#allocation3 + $0x4] sm:$0xf]  ;;  %vm18109_vm1 = vmmov %vm18101_vm4  ;;  %v5639_v37 = vshrl.u32 %v14928_v5, 16 }
 0x3e9   : > { %v14901_v15 = vld [vmem:[#allocation3 + $0x8] sm:$0xff]   ;;  %v9802_v38 = vcombine.low %v5445_v14, %v14899_v9  ;;  %vm18110_vm10 = vmmov %vm18109_vm1  ;;  %v10117_v14 = vpack.c.bf16 %v5234_v4, %v5234_v4  ;;  %v15025_v4 = vld [vmem:[#allocation3 + $0x10] sm:$0xff]  }
 0x3ea   : > { %v5587_v18 = vshll.u32 %v14901_v15, 16  ;;  %v5591_v22 = vshrl.u32 %v14901_v15, 16  ;;  %vm18111_vm11 = vmmov %vm18109_vm1  ;;  %v14964_v30 = vld [vmem:[#allocation3 + $0x58] sm:$0xff]   ;;  %v6490_v44 = vld [vmem:[#allocation3 + $0x8] sm:$0xe] }
 0x3eb   : > { %v5580_v24 = vshrl.u32 %v9802_v38, 16  ;;  %v5582_v36 = vshll.u32 %v9802_v38, 16  ;;  %10846 = vmatprep.mubr.msk.bf16.mxu0 %vm18101_vm4, %v9802_v38  ;;  %vm18112_vm4 = vmmov %vm18109_vm1  ;;  %v5671_v21 = vshrl.u32 %v14964_v30, 16 }
 0x3ec   : > { %v5589_v46 = vrot.slane %v5587_v18, 1  ;;  %10847 = vmatmul.mubr.msk.bf16.vlgmr.msra.gmra.mxu0 %vm18102_vm5, %v14901_v15  ;;  %vm18113_vm5 = vcmask 27648   ;;  %v9858_v18 = vcombine.low %v6177_v19, %v14899_v9  ;;  %v6190_v9 = vrot.slane %v14909_v28, 1  ;;  %v15037_v19 = vld [vmem:[#allocation3 + $0x20] sm:$0xff]  }
 0x3ed   : > { %v5584_v17 = vrot.slane %v5582_v36, 1  ;;  %10850 = vmatprep.mubr.msk.bf16.mxu0 %vm18103_vm8, %v14892_v54  ;;  %5433 = vst.msk [vmem:[#allocation3 + $0x74] sm:$0xf] %vm18113_vm5, %v10110_v20  ;;  %vm18114_vm8 = vmmov %vm18104_vm2  ;;  %v5637_v36 = vrot.slane %v5635_v59, 1 }
 0x3ee   : > { %v5593_v61 = vor.u32 %v5591_v22, %v5589_v46  ;;  %11160 = vmatprep.subr.msk.bf16.mxu0 %vm18114_vm8, %v9877_v62  ;;  %vm18115_vm2 = vmmov %vm18113_vm5  ;;  %v6184_v22 = vrot.slane %v14901_v15, 1  ;;  %v6183_v48 = vrot.slane %v9858_v18, 1  ;;  %v5651_v15 = vshll.u32 %v14953_v49, 16  ;;  %v15006_v11 = vld [vmem:[#allocation3 + $0x68] sm:$0xff]  }
 0x3ef   : > { %v5585_v60 = vor.u32 %v5584_v17, %v5580_v24  ;;  %5434 = vst.msk [vmem:[#allocation3 + $0x78] sm:$0xf] %vm18115_vm2, %v10111_v55  ;;  %vm18123_vm5 = vmmov %vm18115_vm2  ;;  %v5633_v24 = vor.u32 %v5631_v7, %v5629_v13  ;;  %v6186_v17 = vrot.slane %v14892_v54, 1  ;;  %v5667_v54 = vshll.u32 %v14964_v30, 16 }
 0x3f0   : > { %v5598_v10 = vsel %vm18105_vm13, %v5593_v61, %v5597_v53  ;;  %vm18116_vm13 = vmmov %vm18115_vm2  ;;  %5439 = vst.msk [vmem:[#allocation3 + $0x8c] sm:$0xf] %vm18123_vm5, %v10116_v2  ;;  %v5643_v53 = vshll.u32 %v14937_v52, 16  ;;  %v6188_v61 = vrot.slane %v14896_v42, 1  ;;  %v5653_v3 = vrot.slane %v5651_v15, 1 }
 0x3f1   : > { %v5590_v12 = vsel %vm18106_vm0, %v5585_v60, %v5589_v46  ;;  %5435 = vst.msk [vmem:[#allocation3 + $0x7c] sm:$0xf] %vm18116_vm13, %v10112_v43  ;;  %vm18117_vm0 = vmmov %vm18114_vm8  ;;  %v14972_v46 = vld [vmem:[#allocation3 + $0x50] sm:$0xff]   ;;  %v14982_v60 = vld [vmem:[#allocation3 + $0x60] sm:$0xff]   ;;  %v5641_v25 = vor.u32 %v5639_v37, %v5637_v36  ;;  %v5687_v43 = vshrl.u32 %v15006_v11, 16 }
 0x3f2   : > { %10808 = vmatprep.mubr.msk.bf16.mxu1 %vm18108_vm15, %v5590_v12  ;;  %vm18118_vm15 = vmmov %vm18115_vm2  ;;  %v5645_v34 = vrot.slane %v5643_v53, 1  ;;  %v5659_v45 = vshll.u32 %v14972_v46, 16  ;;  %v5663_v51 = vshrl.u32 %v14972_v46, 16  ;;  %v5675_v41 = vshll.u32 %v14982_v60, 16 }
 0x3f3   : > { %10809 = vmatmul.mubr.msk.bf16.vlgmr.msra.gmra.mxu1 %vm18109_vm1, %v5598_v10  ;;  %5436 = vst.msk [vmem:[#allocation3 + $0x80] sm:$0xf] %vm18118_vm15, %v10113_v27  ;;  %vm18119_vm1 = vmmov %vm18117_vm0  ;;  %v15035_v27 = vcombine.low %v6490_v44, %v15018_v39  ;;  %v6962_v53 = vshrl.u32 %v15037_v19, 16 }
 0x3f4   : > { %10883 = vmatpush3.bf16.msra.mxu1 %v6275_v32  ;;  %10812 = vmatprep.mubr.msk.bf16.mxu1 %vm18110_vm10, %v5606_v57  ;;  %v6714_v35 = vsel %vm18119_vm1, %v9877_v62, 0  ;;  %vm18120_vm10 = vmmov %vm18107_vm14  ;;  %v5655_v57 = vshrl.u32 %v14953_v49, 16  ;;  %v5649_v16 = vor.u32 %v5647_v26, %v5645_v34  ;;  %v5677_v55 = vrot.slane %v5675_v41, 1  ;;  %v15027_v62 = vld [vmem:[#allocation3 + $0x18] sm:$0xff]   ;;  %v15032_v59 = vld [vmem:[#allocation3 + $0x70] sm:$0xff]  }
 0x3f5   : > { %10851 = vmatmul.mubr.msk.bf16.gmra.mxu0 %vm18111_vm11, %v14896_v42  ;;  %11161 = vmatprep.subr.msk.bf16.mxu1 %vm18117_vm0, %v14951_v29  ;;  %v5622_v38 = vsel %vm18120_vm10, %v5617_v40, %v5621_v23  ;;  %vm18121_vm11 = vmmov %vm18115_vm2  ;;  %vm18127_vm0 = vcmask 1046528   ;;  %v5679_v40 = vshrl.u32 %v14982_v60, 16  ;;  %v5683_v23 = vshll.u32 %v15006_v11, 16 }
 0x3f6   : > { %10854 = vmatprep.mubr.msk.bf16.mxu0 %vm18112_vm4, %v14909_v28  ;;  %5437 = vst.msk [vmem:[#allocation3 + $0x84] sm:$0xf] %vm18121_vm11, %v10114_v47  ;;  %vm18122_vm4 = vmmov %vm18115_vm2  ;;  %10921 = vmatpush3.bf16.msra.mxu0 %v6714_v35  ;;  %v14985_v32 = vsel %vm18127_vm0, %v6184_v22, %v6186_v17  ;;  %vm18132_vm11 = vsmask.f32 7424  ;;  %v6198_v47 = vrot.slane %v14937_v52, 1  ;;  %v5657_v2 = vor.u32 %v5655_v57, %v5653_v3 }
 0x3f7   : > { %5438 = vst.msk [vmem:[#allocation3 + $0x88] sm:$0xf] %vm18122_vm4, %v10115_v56  ;;  %vm18124_vm8 = vmmov %vm18115_vm2  ;;  %vm18125_vm2 = vcmask 31744   ;;  %v5630_v10 = vsel %vm18132_vm11, %v5625_v6, %v5629_v13  ;;  %v6196_v13 = vrot.slane %v14928_v5, 1  ;;  %v5685_v35 = vrot.slane %v5683_v23, 1 }
 0x3f8   : > { %5440 = vst.msk [vmem:[#allocation3 + $0x90] sm:$0xf] %vm18124_vm8, %v10117_v14  ;;  %vm18126_vm13 = vmmov %vm18125_vm2  ;;  %v5681_v14 = vor.u32 %v5679_v40, %v5677_v55  ;;  %v6206_v26 = vrot.slane %v14982_v60, 1  ;;  %v5695_v57 = vshrl.u32 %v15032_v59, 16 }
 0x3f9   : > { %vm18128_vm14 = vmmov %vm18125_vm2 }
 0x3fa   : > { %vm18129_vm15 = vmmov %vm18127_vm0 }
 0x3fb   : > { %10813 = vmatmul.mubr.msk.bf16.gmra.mxu1 %vm18125_vm2, %v5614_v33  ;;  %v14991_v31 = vsel %vm18129_vm15, %v6183_v48, %v6184_v22  ;;  %vm18130_vm1 = vmmov %vm18127_vm0  ;;  %v5691_v48 = vshll.u32 %v15032_v59, 16 }
 0x3fc   : > { %10816 = vmatprep.mubr.msk.bf16.mxu1 %vm18126_vm13, %v5622_v38  ;;  %v14994_v42 = vsel %vm18130_vm1, %v6186_v17, %v6188_v61  ;;  %vm18131_vm10 = vmmov %vm18127_vm0  ;;  %v15044_v38 = vld [vmem:[#allocation3 + $0x78] sm:$0xff]   ;;  %v6204_v17 = vrot.slane %v14964_v30, 1 }
 0x3fd   : > { %10855 = vmatmul.mubr.msk.bf16.gmra.mxu0 %vm18128_vm14, %v14913_v58  ;;  %v14997_v28 = vsel %vm18131_vm10, %v6188_v61, %v6190_v9  ;;  %vm18133_vm4 = vmmov %vm18125_vm2  ;;  %v5669_v58 = vrot.slane %v5667_v54, 1  ;;  %v15061_v61 = vld [vmem:[#allocation3 + $0x80] sm:$0xff]   ;;  %v5693_v44 = vrot.slane %v5691_v48, 1  ;;  %v7375_v48 = vld [vmem:[#allocation3 + $0x8] sm:$0xc] }
 0x3fe   : > { %10858 = vmatprep.mubr.msk.bf16.mxu0 %vm18133_vm4, %v14920_v63  ;;  %vm18134_vm5 = vmmov %vm18132_vm11  ;;  %v5661_v63 = vrot.slane %v5659_v45, 1  ;;  %v5703_v45 = vshrl.u32 %v15044_v38, 16 }
 0x3ff   : > { %v5638_v12 = vsel %vm18134_vm5, %v5633_v24, %v5637_v36  ;;  %vm18135_vm8 = vmmov %vm18127_vm0  ;;  %v5673_v37 = vor.u32 %v5671_v21, %v5669_v58  ;;  %v6200_v24 = vrot.slane %v14953_v49, 1  ;;  %v6622_v36 = vrot.slane %v15035_v27, 1 }
 0x400   : > { %v15012_v0 = vsel %vm18135_vm8, %v6190_v9, %v6192_v8  ;;  %vm18136_vm2 = vmmov %vm18127_vm0  ;;  %v5665_v33 = vor.u32 %v5663_v51, %v5661_v63  ;;  %v6210_v51 = vrot.slane %v15032_v59, 1 }
 0x401   : > { %v15016_v20 = vsel %vm18136_vm2, %v6192_v8, %v6194_v50  ;;  %vm18137_vm13 = vmmov %vm18133_vm4 }
 0x402   : > { %vm18138_vm0 = vmmov %vm18133_vm4 }
 0x403   : > { %10817 = vmatmul.mubr.msk.bf16.gmra.mxu1 %vm18137_vm13, %v5630_v10  ;;  %vm18139_vm14 = vmmov %vm18134_vm5  ;;  %v5699_v10 = vshll.u32 %v15044_v38, 16 }
 0x404   : > { %10820 = vmatprep.mubr.msk.bf16.mxu1 %vm18138_vm0, %v5638_v12  ;;  %v5646_v7 = vsel %vm18139_vm14, %v5641_v25, %v5645_v34  ;;  %vm18140_vm15 = vmmov %vm18138_vm0  ;;  %v15072_v34 = vld [vmem:[#allocation3 + $0x88] sm:$0xff]  }
 0x405   : > { %10859 = vmatmul.mubr.msk.bf16.gmra.mxu0 %vm18140_vm15, %v14928_v5  ;;  %vm18141_vm1 = vmmov %vm18134_vm5  ;;  %v17231_v5 = vrot.slane %v15025_v4, 1  ;;  %v5715_v23 = vshll.u32 %v15072_v34, 16 }
 0x406   : > { %v5654_v56 = vsel %vm18141_vm1, %v5649_v16, %v5653_v3  ;;  %vm18142_vm10 = vmmov %vm18138_vm0  ;;  %v6208_v3 = vrot.slane %v15006_v11, 1  ;;  %v5689_v16 = vor.u32 %v5687_v43, %v5685_v35  ;;  %v5697_v43 = vor.u32 %v5695_v57, %v5693_v44 }
 0x407   : > { %10862 = vmatprep.mubr.msk.bf16.mxu0 %vm18142_vm10, %v14937_v52  ;;  %vm18143_vm11 = vmmov %vm18136_vm2  ;;  %v6202_v52 = vrot.slane %v14972_v46, 1 }
 0x408   : > { %v15047_v6 = vsel %vm18143_vm11, %v6194_v50, %v6196_v13  ;;  %vm18144_vm4 = vmmov %vm18136_vm2  ;;  %v15083_v50 = vld [vmem:[#allocation3 + $0x90] ss:$0 sps:$4 sm:$0x11]  }
 0x409   : > { %v15050_v18 = vsel %vm18144_vm4, %v6196_v13, %v6198_v47  ;;  %vm18145_vm5 = vmmov %vm18136_vm2  ;;  %v6216_v13 = vrot.slane %v15072_v34, 1 }
 0x40a   : > { %v15064_v9 = vsel %vm18145_vm5, %v6198_v47, %v6200_v24  ;;  %vm18146_vm8 = vmmov %vm18136_vm2  ;;  %v6218_v47 = vrot.slane %v15083_v50, 1 }
 0x40b   : > { %v15067_v15 = vsel %vm18146_vm8, %v6200_v24, %v6202_v52  ;;  %vm18147_vm2 = vmmov %vm18138_vm0 }
 0x40c   : > { %10821 = vmatmul.mubr.msk.bf16.gmra.mxu1 %vm18147_vm2, %v5646_v7  ;;  %vm18148_vm13 = vmmov %vm18141_vm1  ;;  %v6214_v7 = vrot.slane %v15061_v61, 1 }
 0x40d   : > { %v5662_v54 = vsel %vm18148_vm13, %v5657_v2, %v5661_v63  ;;  %vm18149_vm0 = vmmov %vm18144_vm4  ;;  %v5707_v63 = vshll.u32 %v15061_v61, 16 }
 0x40e   : > { %v15075_v8 = vsel %vm18149_vm0, %v6202_v52, %v6204_v17  ;;  %vm18150_vm14 = vmmov %vm18149_vm0 }
 0x40f   : > { %v15078_v12 = vsel %vm18150_vm14, %v6204_v17, %v6206_v26  ;;  %vm18151_vm15 = vmmov %vm18147_vm2  ;;  %v15123_v24 = vrot.slane %v5707_v63, 1 }
 0x410   : > { %10824 = vmatprep.mubr.msk.bf16.mxu1 %vm18151_vm15, %v5654_v56  ;;  %vm18152_vm1 = vmmov %vm18147_vm2  ;;  %v5235_v56 = vld [vmem:[#allocation2 + $0x128] sm:$0xff] }
 0x411   : > { %10863 = vmatmul.mubr.msk.bf16.gmra.mxu0 %vm18152_vm1, %v14953_v49  ;;  %vm18153_vm10 = vmmov %vm18148_vm13  ;;  %v10118_v17 = vpack.c.bf16 %v5235_v56, %v5235_v56 }
 0x412   : > { %v5670_v41 = vsel %vm18153_vm10, %v5665_v33, %v5669_v58  ;;  %vm18154_vm11 = vmmov %vm18153_vm10  ;;  %v5701_v58 = vrot.slane %v5699_v10, 1 }
 0x413   : > { %v15091_v25 = vsel %vm18154_vm11, %v5673_v37, %v5677_v55  ;;  %vm18155_vm4 = vmmov %vm18153_vm10  ;;  %v6212_v55 = vrot.slane %v15044_v38, 1 }
 0x414   : > { %v15094_v21 = vsel %vm18155_vm4, %v5681_v14, %v5685_v35  ;;  %vm18156_vm5 = vmmov %vm18152_vm1  ;;  %v5192_v35 = vld [vmem:[#allocation2 + $0x10e] sm:$0xff]  ;;  %v15139_v10 = vsel %vm18155_vm4, %v5689_v16, %v5693_v44  ;;  %v15141_v57 = vor.u32 %v5703_v45, %v5701_v58  ;;  %v6944_v16 = vshrl.u32 %v15025_v4, 16 }
 0x415   : > { %10866 = vmatprep.mubr.msk.bf16.mxu0 %vm18156_vm5, %v14972_v46  ;;  %vm18157_vm8 = vmmov %vm18149_vm0  ;;  %v15118_v37 = vsel %vm18149_vm0, %v6210_v51, %v6212_v55  ;;  %v6947_v45 = vshll.u32 %v15025_v4, 16  ;;  %v15158_v44 = vld [vmem:[#allocation3 + $0x28] sm:$0xff]  }
 0x416   : > { %v15100_v40 = vsel %vm18157_vm8, %v6206_v26, %v6208_v3  ;;  %vm18158_vm2 = vmmov %vm18149_vm0  ;;  %v15135_v26 = vld [vmem:[%s17013_s1 + $0x1c] sm:$0x3] }
 0x417   : > { %v15103_v49 = vsel %vm18158_vm2, %v6208_v3, %v6210_v51  ;;  %vm18159_vm13 = vmmov %vm18149_vm0  ;;  %v15143_v3 = vrot.slane %v5715_v23, 1  ;;  %v6936_v51 = vshrl.u32 %v15035_v27, 16 }
 0x418   : > { %v15111_v46 = vsel %vm18159_vm13, %v6622_v36, %v17231_v5  ;;  %vm18160_vm14 = vmmov %vm18149_vm0  ;;  %vm18168_vm13 = vcmask 27648  }
 0x419   : > { %v15121_v14 = vsel %vm18160_vm14, %v6212_v55, %v6214_v7  ;;  %vm18161_vm15 = vmmov %vm18149_vm0  ;;  %5441 = vst.msk [vmem:[#allocation3 + $0x94] sm:$0xf] %vm18168_vm13, %v10118_v17  ;;  %v6938_v23 = vrot.slane %v6936_v51, 1  ;;  %v6953_v55 = vshrl.u32 %v15027_v62, 16  ;;  %v15167_v17 = vld [vmem:[#allocation3 + $0x30] sm:$0xff]  }
 0x41a   : > { %v15126_v52 = vsel %vm18161_vm15, %v6214_v7, %v6216_v13  ;;  %vm18162_vm1 = vmmov %vm18149_vm0  ;;  %v6946_v7 = vrot.slane %v6944_v16, 1  ;;  %vm18171_vm15 = vcmask 1045504   ;;  %v7390_v33 = vrot.slane %v15167_v17, 2 }
 0x41b   : > { %v15129_v36 = vsel %vm18162_vm1, %v6216_v13, %v6218_v47  ;;  %vm18163_vm10 = vmmov %vm18156_vm5  ;;  %v7382_v13 = vrot.slane %v15025_v4, 2  ;;  %v6955_v47 = vrot.slane %v6953_v55, 1 }
 0x41c   : > { %5195 = vst.msk [vmem:[#allocation2 + $0x132] sm:$0xff] %vm18163_vm10, %v5192_v35  ;;  %vm18164_vm11 = vmmov %vm18156_vm5  ;;  %vm18165_vm5 = vcmask 1041408   ;;  %v7384_v35 = vrot.slane %v15027_v62, 2 }
 0x41d   : > { %10825 = vmatmul.mubr.msk.bf16.gmra.mxu1 %vm18164_vm11, %v5662_v54  ;;  %11162 = vmatprep.subr.msk.bf16.mxu0 %vm18165_vm5, %v15135_v26  ;;  %vm18166_vm8 = vmmov %vm18163_vm10  ;;  %v6939_v54 = vshll.u32 %v15035_v27, 16  ;;  %vm18173_vm10 = vsmask.f32 6400 }
 0x41e   : > { %10828 = vmatprep.mubr.msk.bf16.mxu1 %vm18166_vm8, %v5670_v41  ;;  %vm18167_vm2 = vmmov %vm18155_vm4  ;;  %v6956_v41 = vshll.u32 %v15027_v62, 16 }
 0x41f   : > { %v15150_v63 = vsel %vm18167_vm2, %v5697_v43, %v5701_v58  ;;  %vm18169_vm0 = vmmov %vm18166_vm8  ;;  %v9936_v58 = vcombine.low %v7375_v48, %v15018_v39  ;;  %v6941_v27 = vrot.slane %v6939_v54, 2  ;;  %v6949_v43 = vrot.slane %v6947_v45, 2 }
 0x420   : > { %10867 = vmatmul.mubr.msk.bf16.gmra.mxu0 %vm18169_vm0, %v14964_v30  ;;  %vm18170_vm14 = vmmov %vm18169_vm0  ;;  %v6958_v56 = vrot.slane %v6956_v41, 2  ;;  %v6965_v39 = vshll.u32 %v15037_v19, 16  ;;  %v6971_v45 = vshrl.u32 %v15158_v44, 16 }
 0x421   : > { %10870 = vmatprep.mubr.msk.bf16.mxu0 %vm18170_vm14, %v14982_v60  ;;  %v7381_v30 = vrot.slane %v9936_v58, 2  ;;  %v6942_v51 = vor.u32 %v6941_v27, %v6938_v23  ;;  %v6950_v1 = vor.u32 %v6949_v43, %v6946_v7  ;;  %vm18172_vm1 = vmmov %vm18171_vm15  ;;  %v6964_v23 = vrot.slane %v6962_v53, 1  ;;  %v15183_v27 = vld [vmem:[#allocation3 + $0x38] sm:$0xff]  }
 0x422   : > { %v6959_v60 = vor.u32 %v6958_v56, %v6955_v47  ;;  %v15175_v16 = vsel %vm18172_vm1, %v7382_v13, %v7384_v35  ;;  %v6967_v58 = vrot.slane %v6965_v39, 2  ;;  %vm18174_vm11 = vmmov %vm18169_vm0  ;;  %v6973_v43 = vrot.slane %v6971_v45, 1  ;;  %v15192_v56 = vld [vmem:[#allocation3 + $0x40] sm:$0xff]   ;;  %v15201_v39 = vld [vmem:[#allocation3 + $0x48] sm:$0xff]  }
 0x423   : > { %v5236_v48 = vld [vmem:[#allocation2 + $0x130] sm:$0xff]  ;;  %v15172_v54 = vsel %vm18171_vm15, %v7381_v30, %v7382_v13  ;;  %v15179_v41 = vsel %vm18173_vm10, %v6942_v51, %v6950_v1  ;;  %vm18175_vm4 = vmmov %vm18173_vm10  ;;  %v6974_v13 = vshll.u32 %v15158_v44, 16  ;;  %v7386_v47 = vrot.slane %v15037_v19, 2 }
 0x424   : > { %v10119_v55 = vpack.c.bf16 %v5236_v48, %v5236_v48  ;;  %v15186_v7 = vsel %vm18175_vm4, %v6950_v1, %v6959_v60  ;;  %vm18176_vm5 = vmmov %vm18169_vm0  ;;  %v6968_v53 = vor.u32 %v6967_v58, %v6964_v23  ;;  %v6980_v30 = vshrl.u32 %v15167_v17, 16 }
 0x425   : > { %10829 = vmatmul.mubr.msk.bf16.gmra.mxu1 %vm18174_vm11, %v15091_v25  ;;  %vm18177_vm8 = vmmov %vm18168_vm13  ;;  %v7388_v25 = vrot.slane %v15158_v44, 2  ;;  %v6983_v1 = vshll.u32 %v15167_v17, 16  ;;  %v5723_v51 = vshll.u32 %v15083_v50, 16  ;;  %v6976_v48 = vrot.slane %v6974_v13, 2 }
 0x426   : > { %10832 = vmatprep.mubr.msk.bf16.mxu1 %vm18176_vm5, %v15094_v21  ;;  %5442 = vst.msk [vmem:[#allocation3 + $0x98] sm:$0xf] %vm18177_vm8, %v10119_v55  ;;  %vm18178_vm2 = vmmov %vm18169_vm0  ;;  %v6989_v45 = vshrl.u32 %v15183_v27, 16  ;;  %v6992_v5 = vshll.u32 %v15183_v27, 16  ;;  %v7007_v2 = vshrl.u32 %v15201_v39, 16 }
 0x427   : > { %vm18179_vm13 = vmmov %vm18172_vm1  ;;  %v6985_v58 = vrot.slane %v6983_v1, 2  ;;  %v6977_v13 = vor.u32 %v6976_v48, %v6973_v43  ;;  %v7001_v1 = vshll.u32 %v15192_v56, 16 }
 0x428   : > { %10871 = vmatmul.mubr.msk.bf16.gmra.mxu0 %vm18178_vm2, %v15006_v11  ;;  %v15204_v21 = vsel %vm18179_vm13, %v7384_v35, %v7386_v47  ;;  %vm18180_vm14 = vmmov %vm18175_vm4  ;;  %v6982_v11 = vrot.slane %v6980_v30, 1  ;;  %v6991_v35 = vrot.slane %v6989_v45, 1  ;;  %v6994_v30 = vrot.slane %v6992_v5, 2 }
 0x429   : > { %10874 = vmatprep.mubr.msk.bf16.mxu0 %vm18169_vm0, %v15032_v59  ;;  %v15210_v55 = vsel %vm18180_vm14, %v6959_v60, %v6968_v53  ;;  %vm18181_vm15 = vmmov %vm18172_vm1  ;;  %vm18183_vm1 = vsmask.f32 7424  ;;  %v7392_v59 = vrot.slane %v15183_v27, 2  ;;  %v6998_v60 = vshrl.u32 %v15192_v56, 16 }
 0x42a   : > { %v15213_v23 = vsel %vm18181_vm15, %v7386_v47, %v7388_v25  ;;  %v5710_v50 = vsel %vm18183_vm1, %v15141_v57, %v15123_v24  ;;  %v6986_v22 = vor.u32 %v6985_v58, %v6982_v11  ;;  %vm18184_vm10 = vmmov %vm18175_vm4  ;;  %v18193_v5 = vshrl.u32 %v15061_v61, 16  ;;  %v15243_v58 = vld [vmem:[#allocation3 + $0x50] sm:$0xff]  }
 0x42b   : > { %18182 = vst [vmem:[#allocation50_spill] sm:$0xff] %v15213_v23  ;;  %v15223_v47 = vsel %vm18184_vm10, %v6968_v53, %v6977_v13  ;;  %vm18186_vm11 = vmmov %vm18175_vm4  ;;  %v7000_v45 = vrot.slane %v6998_v60, 1  ;;  %v15241_v11 = vrot.slane %v5723_v51, 1  ;;  %v7010_v60 = vshll.u32 %v15201_v39, 16 }
 0x42c   : > { %18185 = vst [vmem:[#allocation51_spill] sm:$0xff] %v15223_v47  ;;  %v15228_v57 = vsel %vm18186_vm11, %v6977_v13, %v6986_v22  ;;  %vm18188_vm4 = vmmov %vm18179_vm13  ;;  %v5713_v53 = vor.u32 %v18193_v5, %v15123_v24  ;;  %v15245_v13 = vld [vmem:[#allocation3 + $0x58] sm:$0xff]   ;;  %v18196_v24 = vshrl.u32 %v15072_v34, 16  ;;  %v15257_v5 = vld [vmem:[#allocation3 + $0x60] sm:$0xff]  }
 0x42d   : > { %18187 = vst [vmem:[#allocation54_spill] sm:$0xff] %v15228_v57  ;;  %v15231_v43 = vsel %vm18188_vm4, %v7388_v25, %v7390_v33  ;;  %vm18190_vm5 = vmmov %vm18188_vm4  ;;  %v6995_v57 = vor.u32 %v6994_v30, %v6991_v35  ;;  %v7003_v25 = vrot.slane %v7001_v1, 2  ;;  %v7012_v30 = vrot.slane %v7010_v60, 2 }
 0x42e   : > { %18189 = vst [vmem:[#allocation44_spill] sm:$0xff] %v15231_v43  ;;  %v15234_v48 = vsel %vm18190_vm5, %v7390_v33, %v7392_v59  ;;  %vm18192_vm8 = vmmov %vm18169_vm0  ;;  %v7009_v33 = vrot.slane %v7007_v2, 1  ;;  %v5721_v51 = vor.u32 %v18196_v24, %v15143_v3  ;;  %v7016_v2 = vshrl.u32 %v15243_v58, 16 }
 0x42f   : > { %18191 = vst [vmem:[#allocation43_spill] sm:$0xff] %v15234_v48  ;;  %10833 = vmatmul.mubr.msk.bf16.gmra.mxu1 %vm18192_vm8, %v15139_v10  ;;  %vm18194_vm2 = vmmov %vm18169_vm0  ;;  %v7394_v10 = vrot.slane %v15192_v56, 2  ;;  %v7396_v48 = vrot.slane %v15201_v39, 2  ;;  %v7019_v24 = vshll.u32 %v15243_v58, 16  ;;  %v7034_v43 = vshrl.u32 %v15257_v5, 16 }
 0x430   : > { %10836 = vmatprep.mubr.msk.bf16.mxu1 %vm18194_vm2, %v15150_v63  ;;  %vm18195_vm13 = vmmov %vm18169_vm0  ;;  %v7004_v63 = vor.u32 %v7003_v25, %v7000_v45  ;;  %v7018_v45 = vrot.slane %v7016_v2, 1  ;;  %v7025_v25 = vshrl.u32 %v15245_v13, 16 }
 0x431   : > { %10875 = vmatmul.mubr.msk.bf16.gmra.mxu0 %vm18195_vm13, %v15044_v38  ;;  %vm18197_vm0 = vmmov %vm18184_vm10  ;;  %vm18204_vm10 = vsmask.f32 7424  ;;  %v7021_v60 = vrot.slane %v7019_v24, 2  ;;  %v7036_v24 = vrot.slane %v7034_v43, 1 }
 0x432   : > { %v15260_v35 = vsel %vm18197_vm0, %v6986_v22, %v6995_v57  ;;  %vm18199_vm14 = vmmov %vm18194_vm2  ;;  %v5718_v47 = vsel %vm18204_vm10, %v5713_v53, %v15143_v3  ;;  %v7037_v3 = vshll.u32 %v15257_v5, 16 }
 0x433   : > { %18198 = vst [vmem:[#allocation55_spill] sm:$0xff] %v15260_v35  ;;  %10878 = vmatprep.mubr.msk.bf16.mxu0 %vm18199_vm14, %v15061_v61  ;;  %vm18200_vm15 = vmmov %vm18188_vm4  ;;  %v15278_v35 = vld [vmem:[#allocation3 + $0x68] sm:$0xff]   ;;  %v7013_v61 = vor.u32 %v7012_v30, %v7009_v33  ;;  %v7022_v53 = vor.u32 %v7021_v60, %v7018_v45  ;;  %v15292_v33 = vld [vmem:[#allocation3 + $0x70] sm:$0xff]   ;;  %v7402_v60 = vrot.slane %v15257_v5, 2 }
 0x434   : > { %v15266_v1 = vsel %vm18200_vm15, %v7392_v59, %v7394_v10  ;;  %vm18202_vm1 = vmmov %vm18188_vm4  ;;  %v7028_v59 = vshll.u32 %v15245_v13, 16  ;;  %v7043_v23 = vshrl.u32 %v15278_v35, 16 }
 0x435   : > { %18201 = vst [vmem:[#allocation56_spill] sm:$0xff] %v15266_v1  ;;  %v15269_v38 = vsel %vm18202_vm1, %v7394_v10, %v7396_v48  ;;  %vm18205_vm11 = vmmov %vm18197_vm0  ;;  %v7398_v10 = vrot.slane %v15243_v58, 2  ;;  %v7400_v1 = vrot.slane %v15245_v13, 2 }
 0x436   : > { %18203 = vst [vmem:[#allocation48_spill] sm:$0xff] %v15269_v38  ;;  %v15275_v22 = vsel %vm18205_vm11, %v6995_v57, %v7004_v63  ;;  %v7027_v38 = vrot.slane %v7025_v25, 1  ;;  %vm18207_vm4 = vmmov %vm18197_vm0  ;;  %v7030_v2 = vrot.slane %v7028_v59, 2  ;;  %v7039_v25 = vrot.slane %v7037_v3, 2 }
 0x437   : > { %18206 = vst [vmem:[#allocation47_spill] sm:$0xff] %v15275_v22  ;;  %v15286_v57 = vsel %vm18207_vm4, %v7004_v63, %v7013_v61  ;;  %vm18208_vm5 = vmmov %vm18202_vm1  ;;  %v15300_v63 = vsel %vm18197_vm0, %v7013_v61, %v7022_v53  ;;  %v7045_v43 = vrot.slane %v7043_v23, 1  ;;  %v7052_v3 = vshrl.u32 %v15292_v33, 16 }
 0x438   : > { %v15289_v22 = vsel %vm18208_vm5, %v7396_v48, %v7398_v10  ;;  %vm18209_vm8 = vmmov %vm18194_vm2  ;;  %v7031_v45 = vor.u32 %v7030_v2, %v7027_v38  ;;  %v7046_v48 = vshll.u32 %v15278_v35, 16  ;;  %v7040_v59 = vor.u32 %v7039_v25, %v7036_v24 }
 0x439   : > { %10837 = vmatmul.mubr.msk.bf16.gmra.mxu1 %vm18209_vm8, %v5710_v50  ;;  %vm18210_vm2 = vmmov %vm18202_vm1  ;;  %v15306_v50 = vld [vmem:[#allocation3 + $0x78] sm:$0xff]   ;;  %v7054_v24 = vrot.slane %v7052_v3, 1  ;;  %vm18223_vm5 = vsmask.f32 7424 }
 0x43a   : > { %v15295_v30 = vsel %vm18210_vm2, %v7398_v10, %v7400_v1  ;;  %vm18212_vm13 = vmmov %vm18209_vm8  ;;  %v7404_v10 = vrot.slane %v15278_v35, 2  ;;  %v7048_v38 = vrot.slane %v7046_v48, 2  ;;  %v7061_v25 = vshrl.u32 %v15306_v50, 16 }
 0x43b   : > { %18211 = vst [vmem:[#allocation52_spill] sm:$0xff] %v15295_v30  ;;  %10840 = vmatprep.mubr.msk.bf16.mxu1 %vm18212_vm13, %v5718_v47  ;;  %vm18213_vm14 = vmmov %vm18209_vm8  ;;  %v7064_v48 = vshll.u32 %v15306_v50, 16 }
 0x43c   : > { %10879 = vmatmul.mubr.msk.bf16.gmra.mxu0 %vm18213_vm14, %v15072_v34  ;;  %vm18214_vm15 = vmmov %vm18209_vm8  ;;  %v7055_v34 = vshll.u32 %v15292_v33, 16  ;;  %vm18226_vm8 = vcmask 1046528   ;;  %v7063_v30 = vrot.slane %v7061_v25, 1 }
 0x43d   : > { %10922 = vmatprep.mubr.msk.bf16.mxu0 %vm18214_vm15, %v15111_v46  ;;  %vm18215_vm1 = vmmov %vm18197_vm0  ;;  %v5726_v46 = vsel %vm18223_vm5, %v5721_v51, %v15241_v11  ;;  %v7406_v11 = vrot.slane %v15292_v33, 2  ;;  %v15342_v51 = vld [vmem:[#allocation3 + $0x88] sm:$0xff]  }
 0x43e   : > { %v15313_v47 = vsel %vm18215_vm1, %v7022_v53, %v7031_v45  ;;  %vm18217_vm10 = vmmov %vm18210_vm2  ;;  %v7049_v53 = vor.u32 %v7048_v38, %v7045_v43 }
 0x43f   : > { %18216 = vst [vmem:[#allocation53_spill] sm:$0xff] %v15313_v47  ;;  %v15316_v61 = vsel %vm18217_vm10, %v7400_v1, %v7402_v60  ;;  %vm18219_vm11 = vmmov %vm18197_vm0  ;;  %v7057_v47 = vrot.slane %v7055_v34, 2  ;;  %v18224_v1 = vrot.slane %v15027_v62, 1 }
 0x440   : > { %18218 = vst [vmem:[#allocation57_spill] sm:$0xff] %v15316_v61  ;;  %v15320_v2 = vsel %vm18219_vm11, %v7031_v45, %v7040_v59  ;;  %vm18221_vm4 = vmmov %vm18210_vm2  ;;  %v18225_v61 = vrot.slane %v15025_v4, 1  ;;  %v7066_v4 = vrot.slane %v7064_v48, 2  ;;  %v7082_v48 = vshll.u32 %v15342_v51, 16 }
 0x441   : > { %18220 = vst [vmem:[#allocation46_spill] sm:$0xff] %v15320_v2  ;;  %v15323_v23 = vsel %vm18221_vm4, %v7402_v60, %v7404_v10  ;;  %v18227_v2 = vrot.slane %v15037_v19, 1  ;;  %v18228_v60 = vmov %v18224_v1  ;;  %vm18229_vm2 = vmmov %vm18226_vm8  ;;  %v7058_v38 = vor.u32 %v7057_v47, %v7054_v24 }
 0x442   : > { %18222 = vst [vmem:[#allocation45_spill] sm:$0xff] %v15323_v23  ;;  %v6626_v45 = vsel %vm18226_vm8, %v18225_v61, %v18224_v1  ;;  %v15339_v23 = vld [vmem:[#allocation3 + $0x80] sm:$0xff]   ;;  %vm18230_vm13 = vmmov %vm18197_vm0  ;;  %v7408_v61 = vrot.slane %v15306_v50, 2  ;;  %v7067_v47 = vor.u32 %v7066_v4, %v7063_v30  ;;  %v6629_v1 = vrot.slane %v15158_v44, 1  ;;  %v15375_v4 = vld [vmem:[#allocation3 + $0x90] sm:$0xff]  }
 0x443   : > { %v6628_v3 = vsel %vm18229_vm2, %v18228_v60, %v18227_v2  ;;  %v15345_v43 = vsel %vm18230_vm13, %v7040_v59, %v7049_v53  ;;  %vm18231_vm0 = vmmov %vm18213_vm14  ;;  %vm18232_vm14 = vcmask 1041408   ;;  %v7070_v2 = vshrl.u32 %v15339_v23, 16 }
 0x444   : > { %10841 = vmatmul.mubr.msk.bf16.gmra.mxu1 %vm18231_vm0, %v5726_v46  ;;  %v7473_v62 = vsel %vm18232_vm14, %v15135_v26, 0  ;;  %vm18233_vm15 = vmmov %vm18221_vm4  ;;  %v7073_v25 = vshll.u32 %v15339_v23, 16  ;;  %v7079_v46 = vshrl.u32 %v15342_v51, 16  ;;  %v7410_v44 = vrot.slane %v15339_v23, 2 }
 0x445   : > { %v15352_v34 = vsel %vm18233_vm15, %v7404_v10, %v7406_v11  ;;  %vm18234_vm1 = vmmov %vm18231_vm0  ;;  %v7072_v26 = vrot.slane %v7070_v2, 1 }
 0x446   : > { %10884 = vmatprep.mubr.msk.bf16.mxu1 %vm18234_vm1, %v14991_v31  ;;  %vm18235_vm10 = vmmov %vm18219_vm11  ;;  %v7075_v10 = vrot.slane %v7073_v25, 2  ;;  %v6631_v31 = vrot.slane %v15167_v17, 1  ;;  %v18242_v17 = vrot.slane %v15037_v19, 1  ;;  %v15388_v25 = vld [vmem:[%s17013_s1 + $0x1e] sm:$0x3]  ;;  %v7088_v19 = vshrl.u32 %v15375_v4, 16 }
 0x447   : > { %v15359_v59 = vsel %vm18235_vm10, %v7049_v53, %v7058_v38  ;;  %vm18236_vm11 = vmmov %vm18221_vm4  ;;  %v7081_v53 = vrot.slane %v7079_v46, 1 }
 0x448   : > { %v15362_v24 = vsel %vm18236_vm11, %v7406_v11, %v7408_v61  ;;  %vm18237_vm4 = vmmov %vm18231_vm0  ;;  %v7076_v60 = vor.u32 %v7075_v10, %v7072_v26  ;;  %v7084_v11 = vrot.slane %v7082_v48, 2  ;;  %v7091_v26 = vshll.u32 %v15375_v4, 16 }
 0x449   : > { %10923 = vmatmul.mubr.msk.bf16.vlgmr.msra.gmra.mxu0 %vm18237_vm4, %v6626_v45  ;;  %vm18238_vm5 = vmmov %vm18231_vm0  ;;  %vm18243_vm0 = vcmask 1046528  }
 0x44a   : > { %10926 = vmatprep.mubr.msk.bf16.mxu0 %vm18238_vm5, %v6628_v3  ;;  %10997 = vmatpush3.bf16.msra.mxu0 %v7473_v62  ;;  %vm18239_vm8 = vmmov %vm18235_vm10  ;;  %v7085_v3 = vor.u32 %v7084_v11, %v7081_v53  ;;  %v6630_v62 = vsel %vm18243_vm0, %v18242_v17, %v6629_v1  ;;  %v7093_v48 = vrot.slane %v7091_v26, 2  ;;  %v11369_v17 = vld [vmem:[#allocation3 + $0x98] ss:$0 sps:$4 sm:$0x11]  }
 0x44b   : > { %v15371_v30 = vsel %vm18239_vm8, %v7058_v38, %v7067_v47  ;;  %vm18240_vm2 = vmmov %vm18232_vm14 }
 0x44c   : > { %v7160_v45 = vsel %vm18240_vm2, %v14951_v29, 0  ;;  %vm18241_vm13 = vmmov %vm18239_vm8  ;;  %v7412_v29 = vrot.slane %v15342_v51, 2 }
 0x44d   : > { %v15378_v2 = vsel %vm18241_vm13, %v7067_v47, %v7076_v60  ;;  %vm18244_vm14 = vmmov %vm18243_vm0 }
 0x44e   : > { %v6632_v38 = vsel %vm18244_vm14, %v6629_v1, %v6631_v31  ;;  %vm18245_vm15 = vmmov %vm18234_vm1  ;;  %v6635_v1 = vrot.slane %v15192_v56, 1  ;;  %v6637_v56 = vrot.slane %v15201_v39, 1  ;;  %v6641_v39 = vrot.slane %v15245_v13, 1 }
 0x44f   : > { %10885 = vmatmul.mubr.msk.bf16.vlgmr.msra.gmra.mxu1 %vm18245_vm15, %v14985_v32  ;;  %vm18246_vm1 = vmmov %vm18239_vm8  ;;  %v7090_v32 = vrot.slane %v7088_v19, 1  ;;  %v6647_v13 = vrot.slane %v15292_v33, 1 }
 0x450   : > { %v15394_v47 = vsel %vm18246_vm1, %v7076_v60, %v7085_v3  ;;  %vm18247_vm10 = vmmov %vm18236_vm11  ;;  %10959 = vmatpush3.bf16.msra.mxu1 %v7160_v45  ;;  %v7414_v60 = vrot.slane %v15375_v4, 2 }
 0x451   : > { %v15397_v46 = vsel %vm18247_vm10, %v7408_v61, %v7410_v44  ;;  %vm18248_vm11 = vmmov %vm18237_vm4  ;;  %10927 = vmatmul.mubr.msk.bf16.gmra.mxu0 %vm18238_vm5, %v6630_v62  ;;  %v6633_v61 = vrot.slane %v15183_v27, 1  ;;  %v15412_v53 = vor.u32 %v7093_v48, %v7090_v32  ;;  %v5193_v62 = vld [vmem:[#allocation2 + $0x116] sm:$0xff] }
 0x452   : > { %10888 = vmatprep.mubr.msk.bf16.mxu1 %vm18248_vm11, %v14994_v42  ;;  %vm18249_vm4 = vmmov %vm18247_vm10  ;;  %v18321_v32 = vld [vmem:[#allocation48_spill] sm:$0xff] }
 0x453   : > { %v15404_v10 = vsel %vm18249_vm4, %v7410_v44, %v7412_v29  ;;  %vm18250_vm8 = vmmov %vm18240_vm2  ;;  %v6634_v11 = vsel %vm18243_vm0, %v6631_v31, %v6633_v61  ;;  %v6639_v31 = vrot.slane %v15243_v58, 1  ;;  %v6643_v58 = vrot.slane %v15257_v5, 1  ;;  %v18325_v48 = vld [vmem:[#allocation52_spill] sm:$0xff] }
 0x454   : > { %11163 = vmatprep.subr.msk.bf16.mxu1 %vm18250_vm8, %v15388_v25  ;;  %vm18251_vm2 = vmmov %vm18238_vm5 }
 0x455   : > { %10930 = vmatprep.mubr.msk.bf16.mxu0 %vm18251_vm2, %v6632_v38  ;;  %vm18252_vm13 = vmmov %vm18246_vm1  ;;  %v5194_v38 = vld [vmem:[#allocation2 + $0x11e] sm:$0x3] }
 0x456   : > { %v15416_v42 = vsel %vm18252_vm13, %v7085_v3, %v15412_v53  ;;  %vm18253_vm14 = vmmov %vm18251_vm2 }
 0x457   : > { %10889 = vmatmul.mubr.msk.bf16.gmra.mxu1 %vm18253_vm14, %v14997_v28  ;;  %vm18254_vm15 = vmmov %vm18243_vm0  ;;  %v9993_v28 = vld [vmem:[%s17013_s1 + $0x20] sm:$0x3] }
 0x458   : > { %v6636_v45 = vsel %vm18254_vm15, %v6633_v61, %v6635_v1  ;;  %vm18255_vm1 = vmmov %vm18249_vm4  ;;  %v18327_v61 = vld [vmem:[#allocation57_spill] sm:$0xff] }
 0x459   : > { %v15426_v27 = vsel %vm18255_vm1, %v7412_v29, %v7414_v60  ;;  %vm18256_vm10 = vmmov %vm18251_vm2 }
 0x45a   : > { %10892 = vmatprep.mubr.msk.bf16.mxu1 %vm18256_vm10, %v15012_v0  ;;  %vm18257_vm11 = vmmov %vm18251_vm2 }
 0x45b   : > { %10931 = vmatmul.mubr.msk.bf16.gmra.mxu0 %vm18257_vm11, %v6634_v11  ;;  %vm18258_vm4 = vmmov %vm18251_vm2  ;;  %v18331_v11 = vld [vmem:[#allocation46_spill] sm:$0xff] }
 0x45c   : > { %10934 = vmatprep.mubr.msk.bf16.mxu0 %vm18258_vm4, %v6636_v45  ;;  %vm18259_vm5 = vmmov %vm18250_vm8  ;;  %v18333_v45 = vld [vmem:[#allocation45_spill] sm:$0xff] }
 0x45d   : > { %11164 = vmatprep.subr.msk.bf16.mxu0 %vm18259_vm5, %v9993_v28  ;;  %vm18260_vm8 = vmmov %vm18243_vm0 }
 0x45e   : > { %v6638_v3 = vsel %vm18260_vm8, %v6635_v1, %v6637_v56  ;;  %vm18261_vm13 = vmmov %vm18243_vm0  ;;  %v18329_v1 = vld [vmem:[#allocation53_spill] sm:$0xff] }
 0x45f   : > { %10893 = vmatmul.mubr.msk.bf16.gmra.mxu1 %vm18251_vm2, %v15016_v20  ;;  %v6640_v0 = vsel %vm18261_vm13, %v6637_v56, %v6639_v31  ;;  %vm18262_vm0 = vmmov %vm18251_vm2  ;;  %v15563_v56 = vld [vmem:[#allocation3 + $0x18] sm:$0xff]  }
 0x460   : > { %10896 = vmatprep.mubr.msk.bf16.mxu1 %vm18262_vm0, %v15047_v6  ;;  %vm18263_vm14 = vmmov %vm18262_vm0  ;;  %v6645_v6 = vrot.slane %v15278_v35, 1  ;;  %v6651_v35 = vrot.slane %v15339_v23, 1 }
 0x461   : > { %vm18264_vm15 = vmmov %vm18262_vm0 }
 0x462   : > { %vm18265_vm1 = vmmov %vm18260_vm8 }
 0x463   : > { %10935 = vmatmul.mubr.msk.bf16.gmra.mxu0 %vm18263_vm14, %v6638_v3  ;;  %v6642_v44 = vsel %vm18265_vm1, %v6639_v31, %v6641_v39  ;;  %vm18266_vm10 = vmmov %vm18262_vm0  ;;  %v8142_v3 = vshrl.u32 %v15563_v56, 16 }
 0x464   : > { %10938 = vmatprep.mubr.msk.bf16.mxu0 %vm18264_vm15, %v6640_v0  ;;  %vm18267_vm11 = vmmov %vm18265_vm1  ;;  %v8145_v0 = vshll.u32 %v15563_v56, 16 }
 0x465   : > { %v6644_v20 = vsel %vm18267_vm11, %v6641_v39, %v6643_v58  ;;  %vm18268_vm4 = vmmov %vm18262_vm0 }
 0x466   : > { %vm18269_vm5 = vmmov %vm18262_vm0 }
 0x467   : > { %10897 = vmatmul.mubr.msk.bf16.gmra.mxu1 %vm18266_vm10, %v15050_v18  ;;  %vm18270_vm8 = vmmov %vm18262_vm0 }
 0x468   : > { %10900 = vmatprep.mubr.msk.bf16.mxu1 %vm18268_vm4, %v15064_v9  ;;  %vm18271_vm2 = vmmov %vm18265_vm1  ;;  %v6649_v9 = vrot.slane %v15306_v50, 1  ;;  %v6655_v50 = vrot.slane %v15375_v4, 1 }
 0x469   : > { %v6646_v5 = vsel %vm18271_vm2, %v6643_v58, %v6645_v6  ;;  %vm18272_vm13 = vmmov %vm18262_vm0  ;;  %v11370_v58 = vld [vmem:[#allocation3 + $0x98] ss:$0 sps:$4 sm:$0x33]  }
 0x46a   : > { %vm18273_vm0 = vmmov %vm18265_vm1 }
 0x46b   : > { %10939 = vmatmul.mubr.msk.bf16.gmra.mxu0 %vm18269_vm5, %v6642_v44  ;;  %v6648_v18 = vsel %vm18273_vm0, %v6645_v6, %v6647_v13  ;;  %vm18274_vm14 = vmmov %vm18268_vm4 }
 0x46c   : > { %10942 = vmatprep.mubr.msk.bf16.mxu0 %vm18270_vm8, %v6644_v20  ;;  %vm18275_vm15 = vmmov %vm18268_vm4 }
 0x46d   : > { %vm18276_vm1 = vmmov %vm18268_vm4 }
 0x46e   : > { %vm18277_vm10 = vmmov %vm18273_vm0 }
 0x46f   : > { %10901 = vmatmul.mubr.msk.bf16.gmra.mxu1 %vm18272_vm13, %v15067_v15  ;;  %v6650_v33 = vsel %vm18277_vm10, %v6647_v13, %v6649_v9  ;;  %vm18278_vm11 = vmmov %vm18276_vm1  ;;  %v8147_v13 = vrot.slane %v8145_v0, 3 }
 0x470   : > { %10904 = vmatprep.mubr.msk.bf16.mxu1 %vm18274_vm14, %v15075_v8  ;;  %vm18279_vm4 = vmmov %vm18273_vm0  ;;  %v6653_v8 = vrot.slane %v15342_v51, 1 }
 0x471   : > { %v6652_v15 = vsel %vm18279_vm4, %v6649_v9, %v6651_v35  ;;  %vm18280_vm5 = vmmov %vm18276_vm1  ;;  %v7097_v9 = vshrl.u32 %v11370_v58, 16 }
 0x472   : > { %vm18281_vm8 = vmmov %vm18276_vm1 }
 0x473   : > { %10943 = vmatmul.mubr.msk.bf16.gmra.mxu0 %vm18275_vm15, %v6646_v5  ;;  %vm18282_vm2 = vmmov %vm18276_vm1  ;;  %v15579_v5 = vld [vmem:[#allocation3 + $0x28] sm:$0xff]  }
 0x474   : > { %10946 = vmatprep.mubr.msk.bf16.mxu0 %vm18276_vm1, %v6648_v18  ;;  %vm18283_vm13 = vmmov %vm18273_vm0 }
 0x475   : > { %v6654_v23 = vsel %vm18283_vm13, %v6651_v35, %v6653_v8  ;;  %vm18284_vm0 = vmmov %vm18276_vm1  ;;  %v7100_v35 = vshll.u32 %v11370_v58, 16 }
 0x476   : > { %vm18285_vm14 = vmmov %vm18279_vm4 }
 0x477   : > { %10905 = vmatmul.mubr.msk.bf16.gmra.mxu1 %vm18278_vm11, %v15078_v12  ;;  %v6656_v12 = vsel %vm18285_vm14, %v6653_v8, %v6655_v50  ;;  %vm18286_vm15 = vmmov %vm18284_vm0 }
 0x478   : > { %10908 = vmatprep.mubr.msk.bf16.mxu1 %vm18280_vm5, %v15100_v40  ;;  %vm18287_vm1 = vmmov %vm18284_vm0  ;;  %v6657_v40 = vrot.slane %v11369_v17, 1 }
 0x479   : > { %vm18288_vm10 = vmmov %vm18284_vm0 }
 0x47a   : > { %vm18289_vm11 = vmmov %vm18279_vm4 }
 0x47b   : > { %10947 = vmatmul.mubr.msk.bf16.gmra.mxu0 %vm18281_vm8, %v6650_v33  ;;  %v6658_v51 = vsel %vm18289_vm11, %v6655_v50, %v6657_v40  ;;  %vm18290_vm4 = vmmov %vm18284_vm0  ;;  %vm18292_vm8 = vcmask 25600  }
 0x47c   : > { %10950 = vmatprep.mubr.msk.bf16.mxu0 %vm18282_vm2, %v6652_v15  ;;  %5196 = vst.msk [vmem:[#allocation2 + $0x13a] sm:$0xff] %vm18290_vm4, %v5193_v62  ;;  %vm18291_vm5 = vmmov %vm18284_vm0  ;;  %v8160_v62 = vshrl.u32 %v15579_v5, 16 }
 0x47d   : > { %5197 = vst.msk [vmem:[#allocation2 + $0x142] sm:$0x3] %vm18292_vm8, %v5194_v38  ;;  %vm18293_vm2 = vmmov %vm18284_vm0 }
 0x47e   : > { %vm18294_vm13 = vmmov %vm18284_vm0 }
 0x47f   : > { %10909 = vmatmul.mubr.msk.bf16.gmra.mxu1 %vm18284_vm0, %v15103_v49  ;;  %vm18295_vm14 = vmmov %vm18284_vm0 }
 0x480   : > { %10912 = vmatprep.mubr.msk.bf16.mxu1 %vm18286_vm15, %v15118_v37  ;;  %vm18296_vm15 = vcmask 1041408   ;;  %vm18299_vm11 = vmmov %vm18284_vm0 }
 0x481   : > { %v8358_v19 = vsel %vm18296_vm15, %v9993_v28, 0  ;;  %vm18300_vm4 = vmmov %vm18292_vm8 }
 0x482   : > { %vm18302_vm8 = vmmov %vm18296_vm15 }
 0x483   : > { %10951 = vmatmul.mubr.msk.bf16.gmra.mxu0 %vm18287_vm1, %v6654_v23  ;;  %v5237_v49 = vld [vmem:[#allocation2 + $0x138] sm:$0xff]  ;;  %vm18297_vm1 = vmmov %vm18284_vm0 }
 0x484   : > { %10954 = vmatprep.mubr.msk.bf16.mxu0 %vm18288_vm10, %v6656_v12  ;;  %v10120_v37 = vpack.c.bf16 %v5237_v49, %v5237_v49  ;;  %v5238_v29 = vld [vmem:[#allocation2 + $0x140] sm:$0xf]  ;;  %vm18298_vm10 = vcmask 27648   ;;  %vm18308_vm15 = vmmov %vm18284_vm0  ;;  %v7102_v49 = vrot.slane %v7100_v35, 2 }
 0x485   : > { %v10121_v26 = vpack.c.bf16 %v5238_v29, %v5238_v29 }
 0x486   : > { %5443 = vst.msk [vmem:[#allocation3 + $0x9c] sm:$0xf] %vm18298_vm10, %v10120_v37  ;;  %vm18312_vm10 = vmmov %vm18284_vm0 }
 0x487   : > { %10913 = vmatmul.mubr.msk.bf16.gmra.mxu1 %vm18291_vm5, %v15121_v14  ;;  %5444 = vst.msk [vmem:[#allocation3 + $0xa0] sm:$0x3] %vm18300_vm4, %v10121_v26  ;;  %vm18301_vm5 = vmmov %vm18284_vm0  ;;  %v7912_v14 = vsel %vm18302_vm8, %v15388_v25, 0  ;;  %v18319_v25 = vld [vmem:[#allocation47_spill] sm:$0xff] }
 0x488   : > { %10916 = vmatprep.mubr.msk.bf16.mxu1 %vm18293_vm2, %v15126_v52  ;;  %v15512_v52 = vld [vmem:[%s17013_s1 + $0x22] sm:$0x3]  ;;  %vm18303_vm2 = vmmov %vm18284_vm0 }
 0x489   : > { %vm18316_vm4 = vmmov %vm18284_vm0 }
 0x48b   : > { %10955 = vmatmul.mubr.msk.bf16.gmra.mxu0 %vm18294_vm13, %v6658_v51  ;;  %vm18304_vm13 = vmmov %vm18284_vm0  ;;  %v8163_v51 = vshll.u32 %v15579_v5, 16 }
 0x48c   : > { %10998 = vmatprep.mubr.msk.bf16.mxu0 %vm18284_vm0, %v15172_v54  ;;  %v18307_v54 = vld [vmem:[#allocation44_spill] sm:$0xff] }
 0x48f   : > { %10917 = vmatmul.mubr.msk.bf16.gmra.mxu1 %vm18295_vm14, %v15129_v36  ;;  %v18305_v36 = vld [vmem:[#allocation50_spill] sm:$0xff]  ;;  %vm18306_vm14 = vmmov %vm18302_vm8 }
 0x490   : > { %10960 = vmatprep.mubr.msk.bf16.mxu1 %vm18297_vm1, %v15179_v41  ;;  %vm18310_vm1 = vmmov %vm18284_vm0  ;;  %v18311_v41 = vld [vmem:[#allocation54_spill] sm:$0xff] }
 0x491   : > { %vm18320_vm8 = vmmov %vm18284_vm0 }
 0x493   : > { %10999 = vmatmul.mubr.msk.bf16.vlgmr.msra.gmra.mxu0 %vm18299_vm11, %v15175_v16  ;;  %v18309_v16 = vld [vmem:[#allocation51_spill] sm:$0xff]  ;;  %vm18314_vm11 = vmmov %vm18284_vm0 }
 0x494   : > { %11002 = vmatprep.mubr.msk.bf16.mxu0 %vm18301_vm5, %v15204_v21  ;;  %11073 = vmatpush3.bf16.msra.mxu0 %v8358_v19  ;;  %v18315_v21 = vld [vmem:[#allocation56_spill] sm:$0xff]  ;;  %vm18318_vm5 = vmmov %vm18284_vm0 }
 0x497   : > { %10961 = vmatmul.mubr.msk.bf16.vlgmr.msra.gmra.mxu1 %vm18303_vm2, %v15186_v7  ;;  %v18313_v7 = vld [vmem:[#allocation43_spill] sm:$0xff]  ;;  %vm18322_vm2 = vmmov %vm18284_vm0 }
 0x498   : > { %11035 = vmatpush3.bf16.msra.mxu1 %v7912_v14  ;;  %10964 = vmatprep.mubr.msk.bf16.mxu1 %vm18304_vm13, %v15210_v55  ;;  %v18317_v55 = vld [vmem:[#allocation55_spill] sm:$0xff]  ;;  %vm18323_vm13 = vmmov %vm18284_vm0 }
 0x499   : > { %11165 = vmatprep.subr.msk.bf16.mxu1 %vm18306_vm14, %v15512_v52  ;;  %vm18324_vm14 = vmmov %vm18284_vm0 }
 0x49b   : > { %11003 = vmatmul.mubr.msk.bf16.gmra.mxu0 %vm18284_vm0, %v18305_v36  ;;  %v15602_v36 = vld [vmem:[#allocation3 + $0x30] sm:$0xff]  }
 0x49c   : > { %11006 = vmatprep.mubr.msk.bf16.mxu0 %vm18308_vm15, %v18307_v54  ;;  %vm18326_vm15 = vmmov %vm18284_vm0 }
 0x49f   : > { %10965 = vmatmul.mubr.msk.bf16.gmra.mxu1 %vm18310_vm1, %v18309_v16  ;;  %vm18328_vm1 = vmmov %vm18284_vm0 }
 0x4a0   : > { %10968 = vmatprep.mubr.msk.bf16.mxu1 %vm18312_vm10, %v18311_v41  ;;  %vm18330_vm10 = vmmov %vm18284_vm0 }
 0x4a3   : > { %11007 = vmatmul.mubr.msk.bf16.gmra.mxu0 %vm18314_vm11, %v18313_v7  ;;  %vm18332_vm11 = vmmov %vm18284_vm0  ;;  %v8162_v7 = vrot.slane %v8160_v62, 2 }
 0x4a4   : > { %11010 = vmatprep.mubr.msk.bf16.mxu0 %vm18316_vm4, %v18315_v21  ;;  %vm18334_vm4 = vmmov %vm18284_vm0  ;;  %v8165_v21 = vrot.slane %v8163_v51, 3 }
 0x4a7   : > { %10969 = vmatmul.mubr.msk.bf16.gmra.mxu1 %vm18318_vm5, %v18317_v55  ;;  %vm18335_vm5 = vmmov %vm18284_vm0  ;;  %v15607_v55 = vld [vmem:[#allocation3 + $0x38] sm:$0xff]  }
 0x4a8   : > { %10972 = vmatprep.mubr.msk.bf16.mxu1 %vm18320_vm8, %v18319_v25  ;;  %vm18336_vm8 = vmmov %vm18284_vm0 }
 0x4ab   : > { %11011 = vmatmul.mubr.msk.bf16.gmra.mxu0 %vm18322_vm2, %v18321_v32  ;;  %vm18337_vm2 = vmmov %vm18284_vm0 }
 0x4ac   : > { %11014 = vmatprep.mubr.msk.bf16.mxu0 %vm18323_vm13, %v15289_v22  ;;  %v7688_v22 = vld [vmem:[#allocation3 + $0x10] sm:$0xc]  ;;  %v10848_v31 = vpop.f32.mrf.mxu0  ;;  %vm18338_vm13 = vmmov %vm18284_vm0 }
 0x4ae   : > { %v6034_v28 = vpop.f32.mrf.mxu0 }
 0x4af   : > { %10973 = vmatmul.mubr.msk.bf16.gmra.mxu1 %vm18284_vm0, %v15286_v57  ;;  %v15556_v57 = vld [vmem:[#allocation3 + $0x14] sm:$0xf] }
 0x4b0   : > { %10976 = vmatprep.mubr.msk.bf16.mxu1 %vm18324_vm14, %v15300_v63  ;;  %v15561_v63 = vcombine.low %v7688_v22, %v15556_v57  ;;  %v10849_v39 = vpop.f32.mrf.mxu0  ;;  %vm18339_vm14 = vmmov %vm18284_vm0 }
 0x4b2   : > { %v6037_v44 = vpop.f32.mrf.mxu0 }
 0x4b3   : > { %11015 = vmatmul.mubr.msk.bf16.gmra.mxu0 %vm18326_vm15, %v18325_v48  ;;  %v10810_v20 = vpop.f32.mrf.mxu1  ;;  %vm18340_vm15 = vmmov %vm18284_vm0  ;;  %v7820_v48 = vrot.slane %v15561_v63, 2 }
 0x4b4   : > { %11018 = vmatprep.mubr.msk.bf16.mxu0 %vm18328_vm1, %v18327_v61  ;;  %v15581_v18 = vadd.f32 %v10848_v31, %v10810_v20  ;;  %vm18341_vm1 = vmmov %vm18284_vm0  ;;  %v8166_v31 = vor.u32 %v8165_v21, %v8162_v7 }
 0x4b5   : > { %v5818_v33 = vpop.f32.mrf.mxu1  ;;  %v10852_v15 = vpop.f32.mrf.mxu0 }
 0x4b6   : > { %v15587_v8 = vadd.f32 %v6034_v28, %v5818_v33  ;;  %v8178_v28 = vshrl.u32 %v15607_v55, 16  ;;  %v15635_v33 = vld [vmem:[#allocation3 + $0x48] sm:$0xff]  }
 0x4b7   : > { %10977 = vmatmul.mubr.msk.bf16.gmra.mxu1 %vm18330_vm10, %v18329_v1  ;;  %vm18342_vm10 = vmmov %vm18284_vm0  ;;  %v10811_v17 = vpop.f32.mrf.mxu1  ;;  %v6050_v12 = vpop.f32.mrf.mxu0 }
 0x4b8   : > { %10980 = vmatprep.mubr.msk.bf16.mxu1 %vm18332_vm11, %v18331_v11  ;;  %v15595_v38 = vadd.f32 %v10849_v39, %v10811_v17  ;;  %vm18343_vm11 = vcmask 1045504   ;;  %v8169_v11 = vshrl.u32 %v15602_v36, 16  ;;  %v8180_v35 = vrot.slane %v8178_v28, 2 }
 0x4b9   : > { %v5821_v37 = vpop.f32.mrf.mxu1  ;;  %v10853_v29 = vpop.f32.mrf.mxu0  ;;  %v7825_v17 = vrot.slane %v15579_v5, 2 }
 0x4ba   : > { %v8171_v20 = vrot.slane %v8169_v11, 2 }
 0x4bb   : > { %11019 = vmatmul.mubr.msk.bf16.gmra.mxu0 %vm18334_vm4, %v18333_v45  ;;  %v10814_v54 = vpop.f32.mrf.mxu1  ;;  %vm18344_vm4 = vmmov %vm18284_vm0  ;;  %v6053_v16 = vpop.f32.mrf.mxu0  ;;  %v8172_v45 = vshll.u32 %v15602_v36, 16 }
 0x4bc   : > { %11022 = vmatprep.mubr.msk.bf16.mxu0 %vm18335_vm5, %v15352_v34  ;;  %v8134_v34 = vshrl.u32 %v15561_v63, 16  ;;  %vm18345_vm5 = vsmask.f32 5376  ;;  %v15609_v25 = vadd.f32 %v10852_v15, %v10814_v54 }
 0x4bd   : > { %v10856_v32 = vpop.f32.mrf.mxu0 }
 0x4bf   : > { %10981 = vmatmul.mubr.msk.bf16.gmra.mxu1 %vm18336_vm8, %v15345_v43  ;;  %v8137_v43 = vshll.u32 %v15561_v63, 16  ;;  %vm18346_vm8 = vmmov %vm18284_vm0 }
 0x4c0   : > { %10984 = vmatprep.mubr.msk.bf16.mxu1 %vm18337_vm2, %v15359_v59  ;;  %v15575_v59 = vld [vmem:[#allocation3 + $0x20] sm:$0xff]   ;;  %vm18347_vm2 = vmmov %vm18284_vm0 }
 0x4c1   : > { %v8139_v6 = vrot.slane %v8137_v43, 3  ;;  %v8151_v50 = vshrl.u32 %v15575_v59, 16  ;;  %v8154_v23 = vshll.u32 %v15575_v59, 16 }
 0x4c3   : > { %11023 = vmatmul.mubr.msk.bf16.gmra.mxu0 %vm18338_vm13, %v15362_v24  ;;  %v8136_v24 = vrot.slane %v8134_v34, 2  ;;  %v8153_v26 = vrot.slane %v8151_v50, 2  ;;  %v8156_v14 = vrot.slane %v8154_v23, 3  ;;  %vm18348_vm13 = vmmov %vm18284_vm0  ;;  %v8181_v34 = vshll.u32 %v15607_v55, 16 }
 0x4c4   : > { %11026 = vmatprep.mubr.msk.bf16.mxu0 %vm18284_vm0, %v15397_v46  ;;  %v8144_v46 = vrot.slane %v8142_v3, 2  ;;  %vm18349_vm0 = vsmask.f32 6400 }
 0x4c5   : > { %v8157_v1 = vor.u32 %v8156_v14, %v8153_v26 }
 0x4c6   : > { %v8148_v40 = vor.u32 %v8147_v13, %v8144_v46 }
 0x4c7   : > { %10985 = vmatmul.mubr.msk.bf16.gmra.mxu1 %vm18339_vm14, %v15371_v30  ;;  %v7416_v30 = vrot.slane %v11370_v58, 2  ;;  %vm18350_vm14 = vmmov %vm18343_vm11 }
 0x4c8   : > { %10988 = vmatprep.mubr.msk.bf16.mxu1 %vm18340_vm15, %v15378_v2  ;;  %v8140_v2 = vor.u32 %v8139_v6, %v8136_v24  ;;  %vm18351_vm15 = vmmov %vm18345_vm5  ;;  %v8174_v24 = vrot.slane %v8172_v45, 3  ;;  %v15631_v6 = vld [vmem:[#allocation3 + $0x40] sm:$0xff]  }
 0x4c9   : > { %v7417_v19 = vsel %vm18343_vm11, %v7414_v60, %v7416_v30  ;;  %v5834_v60 = vpop.f32.mrf.mxu1  ;;  %vm18353_vm11 = vmmov %vm18341_vm1  ;;  %v7823_v30 = vrot.slane %v15575_v59, 2  ;;  %v8190_v62 = vshll.u32 %v15631_v6, 16 }
 0x4ca   : > { %v8149_v41 = vsel %vm18345_vm5, %v8140_v2, %v8148_v40  ;;  %v15616_v61 = vadd.f32 %v6050_v12, %v5834_v60  ;;  %v8175_v2 = vor.u32 %v8174_v24, %v8171_v20 }
 0x4cb   : > { %11027 = vmatmul.mubr.msk.bf16.gmra.mxu0 %vm18341_vm1, %v15404_v10  ;;  %v7099_v10 = vrot.slane %v7097_v9, 1  ;;  %v10815_v22 = vpop.f32.mrf.mxu1  ;;  %v8192_v60 = vrot.slane %v8190_v62, 3 }
 0x4cc   : > { %11030 = vmatprep.mubr.msk.bf16.mxu0 %vm18342_vm10, %v15426_v27  ;;  %v15597_v27 = vadd.f32 %v6037_v44, %v5821_v37  ;;  %v15623_v43 = vadd.f32 %v10853_v29, %v10815_v22  ;;  %v8158_v44 = vsel %vm18351_vm15, %v8148_v40, %v8157_v1  ;;  %vm18352_vm10 = vmmov %vm18345_vm5  ;;  %v8187_v40 = vshrl.u32 %v15631_v6, 16 }
 0x4cd   : > { %v7103_v4 = vor.u32 %v7102_v49, %v7099_v10  ;;  %v5837_v3 = vpop.f32.mrf.mxu1  ;;  %v8167_v9 = vsel %vm18352_vm10, %v8157_v1, %v8166_v31  ;;  %vm18355_vm5 = vmmov %vm18341_vm1  ;;  %v8196_v37 = vshrl.u32 %v15635_v33, 16  ;;  %v8199_v29 = vshll.u32 %v15635_v33, 16 }
 0x4ce   : > { %v15628_v58 = vadd.f32 %v6053_v16, %v5837_v3 }
 0x4cf   : > { %10989 = vmatmul.mubr.msk.bf16.gmra.mxu1 %vm18344_vm4, %v15394_v47  ;;  %v7821_v47 = vrot.slane %v15563_v56, 2  ;;  %v7104_v63 = vsel %vm18349_vm0, %v15412_v53, %v7103_v4  ;;  %v10818_v46 = vpop.f32.mrf.mxu1  ;;  %v8183_v53 = vrot.slane %v8181_v34, 3  ;;  %vm18354_vm4 = vmmov %vm18341_vm1  ;;  %v8189_v4 = vrot.slane %v8187_v40, 2 }
 0x4d0   : > { %10992 = vmatprep.mubr.msk.bf16.mxu1 %vm18346_vm8, %v15416_v42  ;;  %v6066_v42 = vpop.f32.mrf.mxu0  ;;  %v15637_v15 = vadd.f32 %v10856_v32, %v10818_v46  ;;  %vm18356_vm8 = vmmov %vm18350_vm14  ;;  %v15659_v32 = vld [vmem:[#allocation3 + $0x50] sm:$0xff]   ;;  %v8198_v11 = vrot.slane %v8196_v37, 2  ;;  %v8201_v45 = vrot.slane %v8199_v29, 3  ;;  %v7829_v34 = vrot.slane %v15607_v55, 2 }
 0x4d1   : > { %v7822_v39 = vsel %vm18350_vm14, %v7820_v48, %v7821_v47  ;;  %v5850_v50 = vpop.f32.mrf.mxu1  ;;  %v8184_v49 = vor.u32 %v8183_v53, %v8180_v35  ;;  %v7824_v26 = vsel %vm18356_vm8, %v7821_v47, %v7823_v30  ;;  %vm18359_vm0 = vmmov %vm18352_vm10  ;;  %v8193_v3 = vor.u32 %v8192_v60, %v8189_v4 }
 0x4d2   : > { %v10857_v0 = vpop.f32.mrf.mxu0  ;;  %v15643_v12 = vadd.f32 %v6066_v42, %v5850_v50  ;;  %v8176_v21 = vsel %vm18359_vm0, %v8166_v31, %v8175_v2  ;;  %vm18360_vm14 = vmmov %vm18341_vm1  ;;  %v7827_v42 = vrot.slane %v15602_v36, 2  ;;  %v8202_v24 = vor.u32 %v8201_v45, %v8198_v11 }
 0x4d3   : > { %11031 = vmatmul.mubr.msk.bf16.gmra.mxu0 %vm18347_vm2, %v7417_v19  ;;  %v10819_v51 = vpop.f32.mrf.mxu1  ;;  %vm18357_vm2 = vcmask 1041408   ;;  %vm18361_vm15 = vmmov %vm18359_vm0 }
 0x4d4   : > { %11074 = vmatprep.mubr.msk.bf16.mxu0 %vm18348_vm13, %v8149_v41  ;;  %v6069_v13 = vpop.f32.mrf.mxu0  ;;  %v15650_v19 = vadd.f32 %v10857_v0, %v10819_v51  ;;  %v8671_v54 = vsel %vm18357_vm2, %v15512_v52, 0  ;;  %vm18358_vm13 = vmmov %vm18356_vm8  ;;  %v8185_v47 = vsel %vm18361_vm15, %v8175_v2, %v8184_v49  ;;  %v15663_v52 = vld [vmem:[#allocation3 + $0x58] sm:$0xff]   ;;  %v8205_v0 = vshrl.u32 %v15659_v32, 16  ;;  %v15685_v51 = vld [vmem:[#allocation3 + $0x60] sm:$0xff]  }
 0x4d5   : > { %v5853_v14 = vpop.f32.mrf.mxu1  ;;  %v7826_v41 = vsel %vm18358_vm13, %v7823_v30, %v7825_v17  ;;  %vm18362_vm10 = vmmov %vm18341_vm1  ;;  %v8214_v46 = vshrl.u32 %v15663_v52, 16  ;;  %18367 = vst [vmem:[#allocation42_spill] sm:$0xff] %v15685_v51 }
 0x4d6   : > { %v10860_v23 = vpop.f32.mrf.mxu0  ;;  %v15656_v7 = vadd.f32 %v6069_v13, %v5853_v14  ;;  %v8217_v13 = vshll.u32 %v15663_v52, 16  ;;  %v8207_v40 = vrot.slane %v8205_v0, 2  ;;  %vm18368_vm2 = vmmov %vm18341_vm1  ;;  %v15689_v14 = vld [vmem:[#allocation3 + $0x68] sm:$0xff]  }
 0x4d7   : > { %10993 = vmatmul.mubr.msk.bf16.gmra.mxu1 %vm18341_vm1, %v7104_v63  ;;  %v10822_v48 = vpop.f32.mrf.mxu1  ;;  %vm18369_vm13 = vmmov %vm18359_vm0  ;;  %18370 = vst [vmem:[#allocation49_spill] sm:$0xff] %v15689_v14 }
 0x4d8   : > { %11036 = vmatprep.mubr.msk.bf16.mxu1 %vm18353_vm11, %v7822_v39  ;;  %v6082_v10 = vpop.f32.mrf.mxu0  ;;  %v15665_v22 = vadd.f32 %v10860_v23, %v10822_v48  ;;  %vm18363_vm11 = vmmov %vm18341_vm1  ;;  %v8208_v39 = vshll.u32 %v15659_v32, 16  ;;  %v8203_v29 = vsel %vm18369_vm13, %v8193_v3, %v8202_v24  ;;  %v8223_v48 = vshrl.u32 %v15685_v51, 16 }
 0x4d9   : > { %v5866_v31 = vpop.f32.mrf.mxu1 }
 0x4da   : > { %v10861_v16 = vpop.f32.mrf.mxu0  ;;  %v15671_v63 = vadd.f32 %v6082_v10, %v5866_v31  ;;  %v8210_v62 = vrot.slane %v8208_v39, 3  ;;  %v8235_v31 = vshll.u32 %v15689_v14, 16 }
 0x4db   : > { %11075 = vmatmul.mubr.msk.bf16.vlgmr.msra.gmra.mxu0 %vm18354_vm4, %v8158_v44  ;;  %v10823_v44 = vpop.f32.mrf.mxu1  ;;  %vm18364_vm4 = vmmov %vm18356_vm8 }
 0x4dc   : > { %11078 = vmatprep.mubr.msk.bf16.mxu0 %vm18355_vm5, %v8167_v9  ;;  %v6085_v1 = vpop.f32.mrf.mxu0  ;;  %v15678_v9 = vadd.f32 %v10861_v16, %v10823_v44  ;;  %v7828_v35 = vsel %vm18364_vm4, %v7825_v17, %v7827_v42  ;;  %vm18365_vm5 = vmmov %vm18364_vm4  ;;  %v8219_v17 = vrot.slane %v8217_v13, 3  ;;  %v8211_v60 = vor.u32 %v8210_v62, %v8207_v40  ;;  %v15715_v62 = vld [vmem:[#allocation3 + $0x78] sm:$0xff]  }
 0x4dd   : > { %v5869_v53 = vpop.f32.mrf.mxu1  ;;  %v7830_v50 = vsel %vm18365_vm5, %v7827_v42, %v7829_v34  ;;  %vm18366_vm8 = vmmov %vm18359_vm0  ;;  %v8232_v42 = vshrl.u32 %v15689_v14, 16  ;;  %v8225_v13 = vrot.slane %v8223_v48, 2  ;;  %18380 = vst [vmem:[#allocation50_spill] sm:$0xff] %v15715_v62 }
 0x4de   : > { %v10864_v28 = vpop.f32.mrf.mxu0  ;;  %v15682_v23 = vadd.f32 %v6085_v1, %v5869_v53  ;;  %v8194_v2 = vsel %vm18366_vm8, %v8184_v49, %v8193_v3  ;;  %vm18371_vm0 = vmmov %vm18341_vm1  ;;  %v7831_v49 = vrot.slane %v15631_v6, 2  ;;  %v8226_v1 = vshll.u32 %v15685_v51, 16  ;;  %v15711_v53 = vld [vmem:[#allocation3 + $0x70] sm:$0xff]  }
 0x4df   : > { %11037 = vmatmul.mubr.msk.bf16.vlgmr.msra.gmra.mxu1 %vm18360_vm14, %v7824_v26  ;;  %v10826_v10 = vpop.f32.mrf.mxu1  ;;  %v8216_v26 = vrot.slane %v8214_v46, 2  ;;  %vm18372_vm14 = vmmov %vm18371_vm0  ;;  %18377 = vst [vmem:[#allocation41_spill] sm:$0xff] %v15711_v53  ;;  %v8234_v40 = vrot.slane %v8232_v42, 2  ;;  %v8253_v42 = vshll.u32 %v15715_v62, 16 }
 0x4e0   : > { %11111 = vmatpush3.bf16.msra.mxu1 %v8671_v54  ;;  %11040 = vmatprep.mubr.msk.bf16.mxu1 %vm18341_vm1, %v7826_v41  ;;  %v6098_v20 = vpop.f32.mrf.mxu0  ;;  %v15691_v54 = vadd.f32 %v10864_v28, %v10826_v10  ;;  %vm18373_vm15 = vmmov %vm18371_vm0 }
 0x4e1   : > { %v5882_v16 = vpop.f32.mrf.mxu1  ;;  %v8220_v45 = vor.u32 %v8219_v17, %v8216_v26  ;;  %vm18374_vm1 = vmmov %vm18364_vm4  ;;  %v7837_v26 = vrot.slane %v15663_v52, 2 }
 0x4e2   : > { %v10865_v30 = vpop.f32.mrf.mxu0  ;;  %v15697_v4 = vadd.f32 %v6098_v20, %v5882_v16  ;;  %v7832_v3 = vsel %vm18374_vm1, %v7829_v34, %v7831_v49  ;;  %vm18378_vm4 = vmmov %vm18371_vm0  ;;  %v8237_v34 = vrot.slane %v8235_v31, 3  ;;  %v8241_v16 = vshrl.u32 %v15711_v53, 16 }
 0x4e3   : > { %11079 = vmatmul.mubr.msk.bf16.gmra.mxu0 %vm18362_vm10, %v8176_v21  ;;  %v7833_v21 = vrot.slane %v15635_v33, 2  ;;  %vm18375_vm10 = vmmov %vm18374_vm1 }
 0x4e4   : > { %11082 = vmatprep.mubr.msk.bf16.mxu0 %vm18363_vm11, %v8185_v47  ;;  %v6101_v37 = vpop.f32.mrf.mxu0  ;;  %v10827_v47 = vpop.f32.mrf.mxu1  ;;  %vm18376_vm11 = vmmov %vm18366_vm8 }
 0x4e5   : > { %v15704_v28 = vadd.f32 %v10865_v30, %v10827_v47  ;;  %v7834_v44 = vsel %vm18375_vm10, %v7831_v49, %v7833_v21  ;;  %v8212_v46 = vsel %vm18376_vm11, %v8202_v24, %v8211_v60  ;;  %vm18379_vm5 = vmmov %vm18366_vm8  ;;  %v7835_v24 = vrot.slane %v15659_v32, 2 }
 0x4e6   : > { %v10868_v41 = vpop.f32.mrf.mxu0  ;;  %v5885_v0 = vpop.f32.mrf.mxu1  ;;  %v8221_v30 = vsel %vm18379_vm5, %v8211_v60, %v8220_v45  ;;  %vm18381_vm8 = vmmov %vm18371_vm0  ;;  %v8250_v47 = vshrl.u32 %v15715_v62, 16 }
 0x4e7   : > { %11041 = vmatmul.mubr.msk.bf16.gmra.mxu1 %vm18368_vm2, %v7828_v35  ;;  %v15708_v20 = vadd.f32 %v6101_v37, %v5885_v0  ;;  %v8228_v35 = vrot.slane %v8226_v1, 3  ;;  %vm18382_vm2 = vmmov %vm18371_vm0  ;;  %v8238_v1 = vor.u32 %v8237_v34, %v8234_v40 }
 0x4e8   : > { %11044 = vmatprep.mubr.msk.bf16.mxu1 %vm18371_vm0, %v7830_v50  ;;  %v6114_v11 = vpop.f32.mrf.mxu0  ;;  %v10830_v50 = vpop.f32.mrf.mxu1  ;;  %vm18383_vm13 = vmmov %vm18371_vm0 }
 0x4e9   : > { %v15717_v10 = vadd.f32 %v10868_v41, %v10830_v50  ;;  %v8229_v49 = vor.u32 %v8228_v35, %v8225_v13  ;;  %v8244_v41 = vshll.u32 %v15711_v53, 16  ;;  %vm18385_vm0 = vmmov %vm18374_vm1  ;;  %v8243_v35 = vrot.slane %v8241_v16, 2 }
 0x4ea   : > { %v10869_v39 = vpop.f32.mrf.mxu0  ;;  %v5898_v37 = vpop.f32.mrf.mxu1  ;;  %vm18390_vm1 = vmmov %vm18382_vm2  ;;  %v7841_v16 = vrot.slane %v15689_v14, 2 }
 0x4eb   : > { %11083 = vmatmul.mubr.msk.bf16.gmra.mxu0 %vm18372_vm14, %v8194_v2  ;;  %v15723_v17 = vadd.f32 %v6114_v11, %v5898_v37  ;;  %vm18386_vm14 = vmmov %vm18385_vm0  ;;  %v8246_v50 = vrot.slane %v8244_v41, 3  ;;  %v8252_v37 = vrot.slane %v8250_v47, 2 }
 0x4ec   : > { %11086 = vmatprep.mubr.msk.bf16.mxu0 %vm18373_vm15, %v8203_v29  ;;  %v6117_v2 = vpop.f32.mrf.mxu0  ;;  %v10831_v60 = vpop.f32.mrf.mxu1  ;;  %vm18388_vm15 = vmmov %vm18379_vm5 }
 0x4ed   : > { %v15730_v31 = vadd.f32 %v10869_v39, %v10831_v60  ;;  %v8230_v13 = vsel %vm18388_vm15, %v8220_v45, %v8229_v49  ;;  %vm18391_vm10 = vmmov %vm18379_vm5  ;;  %v15741_v60 = vld [vmem:[#allocation3 + $0x88] sm:$0xff]   ;;  %v7839_v45 = vrot.slane %v15685_v51, 2 }
 0x4ee   : > { %v10872_v29 = vpop.f32.mrf.mxu0  ;;  %v5901_v11 = vpop.f32.mrf.mxu1  ;;  %v8239_v39 = vsel %vm18391_vm10, %v8229_v49, %v8238_v1  ;;  %18392 = vst [vmem:[#allocation43_spill] sm:$0xff] %v15741_v60  ;;  %vm18394_vm11 = vmmov %vm18390_vm1  ;;  %v8247_v49 = vor.u32 %v8246_v50, %v8243_v35 }
 0x4ef   : > { %11045 = vmatmul.mubr.msk.bf16.gmra.mxu1 %vm18378_vm4, %v7832_v3  ;;  %18384 = vst [vmem:[#allocation44_spill] sm:$0xff] %v15730_v31  ;;  %v7836_v3 = vsel %vm18385_vm0, %v7833_v21, %v7835_v24  ;;  %v8255_v21 = vrot.slane %v8253_v42, 3  ;;  %vm18395_vm4 = vmmov %vm18390_vm1 }
 0x4f0   : > { %11048 = vmatprep.mubr.msk.bf16.mxu1 %vm18381_vm8, %v7834_v44  ;;  %v6130_v48 = vpop.f32.mrf.mxu0  ;;  %v7838_v44 = vsel %vm18386_vm14, %v7835_v24, %v7837_v26  ;;  %v10834_v40 = vpop.f32.mrf.mxu1  ;;  %vm18397_vm5 = vmmov %vm18390_vm1 }
 0x4f1   : > { %v15743_v31 = vadd.f32 %v10872_v29, %v10834_v40  ;;  %v8271_v40 = vshll.u32 %v15741_v60, 16  ;;  %vm18399_vm8 = vmmov %vm18385_vm0 }
 0x4f2   : > { %v10873_v0 = vpop.f32.mrf.mxu0  ;;  %vm18404_vm14 = vmmov %vm18391_vm10 }
 0x4f3   : > { %11087 = vmatmul.mubr.msk.bf16.gmra.mxu0 %vm18382_vm2, %v8212_v46  ;;  %v15734_v46 = vadd.f32 %v6117_v2, %v5901_v11  ;;  %18393 = vst [vmem:[#allocation56_spill] sm:$0xff] %v15743_v31  ;;  %v5914_v2 = vpop.f32.mrf.mxu1  ;;  %v8256_v11 = vor.u32 %v8255_v21, %v8252_v37  ;;  %vm18400_vm2 = vmmov %vm18385_vm0  ;;  %v15763_v31 = vld [vmem:[#allocation3 + $0x90] sm:$0xff]  }
 0x4f4   : > { %11090 = vmatprep.mubr.msk.bf16.mxu0 %vm18383_vm13, %v8221_v30  ;;  %v15737_v30 = vld [vmem:[#allocation3 + $0x80] sm:$0xff]   ;;  %v6133_v34 = vpop.f32.mrf.mxu0  ;;  %v15749_v41 = vadd.f32 %v6130_v48, %v5914_v2  ;;  %vm18401_vm13 = vmmov %vm18391_vm10  ;;  %18402 = vst [vmem:[#allocation48_spill] sm:$0xff] %v15763_v31 }
 0x4f5   : > { %18387 = vst [vmem:[#allocation51_spill] sm:$0xff] %v15734_v46  ;;  %18389 = vst [vmem:[#allocation54_spill] sm:$0xff] %v15737_v30  ;;  %v8259_v47 = vshrl.u32 %v15737_v30, 16  ;;  %v8262_v29 = vshll.u32 %v15737_v30, 16  ;;  %v10835_v42 = vpop.f32.mrf.mxu1  ;;  %v8248_v50 = vsel %vm18401_vm13, %v8238_v1, %v8247_v49  ;;  %v7843_v1 = vrot.slane %v15711_v53, 2 }
 0x4f6   : > { %v10876_v24 = vpop.f32.mrf.mxu0  ;;  %18396 = vst [vmem:[#allocation55_spill] sm:$0xff] %v15749_v41  ;;  %v15756_v51 = vadd.f32 %v10873_v0, %v10835_v42  ;;  %vm18403_vm0 = vmmov %vm18390_vm1  ;;  %v8257_v0 = vsel %vm18404_vm14, %v8247_v49, %v8256_v11 }
 0x4f7   : > { %11049 = vmatmul.mubr.msk.bf16.gmra.mxu1 %vm18390_vm1, %v7836_v3  ;;  %v5917_v48 = vpop.f32.mrf.mxu1  ;;  %v8261_v41 = vrot.slane %v8259_v47, 2  ;;  %v8264_v14 = vrot.slane %v8262_v29, 3  ;;  %vm18407_vm15 = vmmov %vm18403_vm0  ;;  %v7845_v47 = vrot.slane %v15715_v62, 2 }
 0x4f8   : > { %11052 = vmatprep.mubr.msk.bf16.mxu1 %vm18394_vm11, %v7838_v44  ;;  %v6146_v3 = vpop.f32.mrf.mxu0  ;;  %v8268_v44 = vshrl.u32 %v15741_v60, 16  ;;  %18398 = vst [vmem:[#allocation47_spill] sm:$0xff] %v15756_v51  ;;  %v15760_v35 = vadd.f32 %v6133_v34, %v5917_v48  ;;  %v15767_v51 = vld [vmem:[#allocation3 + $0x98] sm:$0xff]   ;;  %vm18408_vm1 = vmmov %vm18403_vm0 }
 0x4f9   : > { %v10838_v37 = vpop.f32.mrf.mxu1  ;;  %18405 = vst [vmem:[#allocation52_spill] sm:$0xff] %v15767_v51  ;;  %vm18410_vm10 = vmmov %vm18403_vm0  ;;  %v8265_v49 = vor.u32 %v8264_v14, %v8261_v41 }
 0x4fa   : > { %v10877_v2 = vpop.f32.mrf.mxu0  ;;  %v8270_v42 = vrot.slane %v8268_v44, 2  ;;  %v15769_v46 = vadd.f32 %v10876_v24, %v10838_v37  ;;  %v8277_v44 = vshrl.u32 %v15763_v31, 16  ;;  %v8280_v24 = vshll.u32 %v15763_v31, 16  ;;  %vm18412_vm11 = vmmov %vm18400_vm2 }
 0x4fb   : > { %11091 = vmatmul.mubr.msk.bf16.gmra.mxu0 %vm18395_vm4, %v8230_v13  ;;  %v7840_v13 = vsel %vm18399_vm8, %v7837_v26, %v7839_v45  ;;  %v8273_v26 = vrot.slane %v8271_v40, 3  ;;  %v5930_v34 = vpop.f32.mrf.mxu1  ;;  %v8289_v37 = vshll.u32 %v15767_v51, 16  ;;  %vm18413_vm4 = vmmov %vm18400_vm2 }
 0x4fc   : > { %11094 = vmatprep.mubr.msk.bf16.mxu0 %vm18397_vm5, %v8239_v39  ;;  %v7842_v39 = vsel %vm18400_vm2, %v7839_v45, %v7841_v16  ;;  %v6149_v21 = vpop.f32.mrf.mxu0  ;;  %18406 = vst [vmem:[#allocation57_spill] sm:$0xff] %v15769_v46  ;;  %v15775_v29 = vadd.f32 %v6146_v3, %v5930_v34  ;;  %vm18414_vm5 = vmmov %vm18401_vm13  ;;  %v8282_v62 = vrot.slane %v8280_v24, 3  ;;  %v15789_v46 = vld [vmem:[#allocation3 + $0xa0] ss:$0 sps:$4 sm:$0x77]  }
 0x4fd   : > { %v10839_v40 = vpop.f32.mrf.mxu1  ;;  %v8274_v48 = vor.u32 %v8273_v26, %v8270_v42  ;;  %v8266_v41 = vsel %vm18414_vm5, %v8256_v11, %v8265_v49  ;;  %18415 = vst [vmem:[#allocation45_spill] sm:$0xff] %v15789_v46  ;;  %vm18416_vm8 = vmmov %vm18403_vm0 }
 0x4fe   : > { %v10880_v45 = vpop.f32.mrf.mxu0  ;;  %18409 = vst [vmem:[#allocation53_spill] sm:$0xff] %v15775_v29  ;;  %v15782_v53 = vadd.f32 %v10877_v2, %v10839_v40  ;;  %v8279_v29 = vrot.slane %v8277_v44, 2  ;;  %vm18417_vm2 = vmmov %vm18414_vm5  ;;  %v7849_v44 = vrot.slane %v15741_v60, 2 }
 0x4ff   : > { %11053 = vmatmul.mubr.msk.bf16.gmra.mxu1 %vm18403_vm0, %v7840_v13  ;;  %v5933_v3 = vpop.f32.mrf.mxu1  ;;  %v8275_v2 = vsel %vm18417_vm2, %v8265_v49, %v8274_v48  ;;  %vm18418_vm13 = vmmov %vm18403_vm0  ;;  %v8295_v49 = vshrl.u32 %v15789_v46, 16 }
 0x500   : > { %11056 = vmatprep.mubr.msk.bf16.mxu1 %vm18407_vm15, %v7842_v39  ;;  %v6162_v13 = vpop.f32.mrf.mxu0  ;;  %v8286_v39 = vshrl.u32 %v15767_v51, 16  ;;  %18411 = vst [vmem:[#allocation46_spill] sm:$0xff] %v15782_v53  ;;  %v15786_v14 = vadd.f32 %v6149_v21, %v5933_v3  ;;  %v7847_v21 = vrot.slane %v15737_v30, 2  ;;  %vm18419_vm14 = vmmov %vm18403_vm0 }
 0x501   : > { %vm18420_vm15 = vmmov %vm18413_vm4 }
 0x502   : > { %v10881_v34 = vpop.f32.mrf.mxu0  ;;  %v8288_v40 = vrot.slane %v8286_v39, 2  ;;  %vm18425_vm5 = vmmov %vm18403_vm0 }
 0x503   : > { %11095 = vmatmul.mubr.msk.bf16.gmra.mxu0 %vm18408_vm1, %v8248_v50  ;;  %v7844_v50 = vsel %vm18412_vm11, %v7841_v16, %v7843_v1  ;;  %v8291_v16 = vrot.slane %v8289_v37, 3  ;;  %vm18421_vm1 = vmmov %vm18413_vm4 }
 0x504   : > { %11098 = vmatprep.mubr.msk.bf16.mxu0 %vm18410_vm10, %v8257_v0  ;;  %v7846_v0 = vsel %vm18413_vm4, %v7843_v1, %v7845_v47  ;;  %v10842_v42 = vpop.f32.mrf.mxu1  ;;  %v6165_v26 = vpop.f32.mrf.mxu0  ;;  %v7850_v60 = vsel %vm18421_vm1, %v7847_v21, %v7849_v44  ;;  %vm18422_vm10 = vmmov %vm18417_vm2 }
 0x505   : > { %v15793_v53 = vadd.f32 %v10880_v45, %v10842_v42  ;;  %v8298_v45 = vshll.u32 %v15789_v46, 16  ;;  %v8292_v3 = vor.u32 %v8291_v16, %v8288_v40  ;;  %v7848_v42 = vsel %vm18420_vm15, %v7845_v47, %v7847_v21  ;;  %vm18423_vm11 = vmmov %vm18403_vm0 }
 0x506   : > { %v5946_v1 = vpop.f32.mrf.mxu1  ;;  %vm18424_vm4 = vmmov %vm18417_vm2  ;;  %v7851_v47 = vrot.slane %v15763_v31, 2 }
 0x507   : > { %11057 = vmatmul.mubr.msk.bf16.gmra.mxu1 %vm18416_vm8, %v7844_v50  ;;  %v15799_v24 = vadd.f32 %v6162_v13, %v5946_v1  ;;  %v8283_v50 = vor.u32 %v8282_v62, %v8279_v29  ;;  %v8297_v62 = vrot.slane %v8295_v49, 2  ;;  %v8300_v29 = vrot.slane %v8298_v45, 3  ;;  %vm18426_vm8 = vmmov %vm18403_vm0 }
 0x508   : > { %11060 = vmatprep.mubr.msk.bf16.mxu1 %vm18418_vm13, %v7846_v0  ;;  %v10843_v39 = vpop.f32.mrf.mxu1  ;;  %vm18427_vm2 = vmmov %vm18403_vm0 }
 0x509   : > { %v10924_v11 = vpop.f32.mrf.mxu0  ;;  %v15804_v0 = vadd.f32 %v10881_v34, %v10843_v39  ;;  %v8293_v40 = vsel %vm18424_vm4, %v8283_v50, %v8292_v3  ;;  %v8301_v49 = vor.u32 %v8300_v29, %v8297_v62  ;;  %vm18428_vm13 = vmmov %vm18421_vm1 }
 0x50a   : > { %v5949_v30 = vpop.f32.mrf.mxu1  ;;  %vm18431_vm15 = vmmov %vm18427_vm2 }
 0x50b   : > { %11099 = vmatmul.mubr.msk.bf16.gmra.mxu0 %vm18403_vm0, %v8266_v41  ;;  %v6750_v37 = vpop.f32.mrf.mxu0  ;;  %v15808_v13 = vadd.f32 %v6165_v26, %v5949_v30  ;;  %v7853_v30 = vrot.slane %v15767_v51, 2  ;;  %vm18429_vm0 = vmmov %vm18421_vm1 }
 0x50c   : > { %11102 = vmatprep.mubr.msk.bf16.mxu0 %vm18419_vm14, %v8275_v2  ;;  %v8284_v2 = vsel %vm18422_vm10, %v8274_v48, %v8283_v50  ;;  %v8573_v50 = vld [vmem:[#allocation3 + $0x10] sm:$0x8]  ;;  %vm18430_vm14 = vmmov %vm18424_vm4  ;;  %vm18435_vm4 = vcmask 1044480  }
 0x50d   : > { %v10925_v41 = vpop.f32.mrf.mxu0  ;;  %v7854_v51 = vsel %vm18429_vm0, %v7851_v47, %v7853_v30  ;;  %v8302_v62 = vsel %vm18430_vm14, %v8292_v3, %v8301_v49  ;;  %vm18432_vm1 = vmmov %vm18427_vm2 }
 0x50e   : > { %vm18433_vm10 = vmmov %vm18432_vm1 }
 0x50f   : > { %v10886_v1 = vpop.f32.mrf.mxu1  ;;  %11061 = vmatmul.mubr.msk.bf16.gmra.mxu1 %vm18423_vm11, %v7848_v42  ;;  %v6753_v46 = vpop.f32.mrf.mxu0  ;;  %v7852_v42 = vsel %vm18428_vm13, %v7849_v44, %v7851_v47  ;;  %vm18434_vm11 = vmmov %vm18429_vm0 }
 0x510   : > { %v6456_v34 = vadd.f32 %v10886_v1, %v15581_v18  ;;  %11064 = vmatprep.mubr.msk.bf16.mxu1 %vm18425_vm5, %v7850_v60  ;;  %v11389_v1 = vld [vmem:[#allocation3 + $0xa0] ss:$0 sps:$4 sm:$0x33]   ;;  %vm18436_vm5 = vmmov %vm18432_vm1 }
 0x511   : > { %v6311_v16 = vpop.f32.mrf.mxu1  ;;  %v10928_v21 = vpop.f32.mrf.mxu0  ;;  %vm18440_vm0 = vmmov %vm18432_vm1 }
 0x512   : > { %v6454_v48 = vadd.f32 %v6311_v16, %v15587_v8  ;;  %v15819_v26 = vadd.f32 %v10924_v11, %v6456_v34  ;;  %v10014_v8 = vcombine.low %v8573_v50, %v15556_v57  ;;  %v7855_v34 = vrot.slane %v11389_v1, 2  ;;  %vm18441_vm14 = vmmov %vm18440_vm0 }
 0x513   : > { %11103 = vmatmul.mubr.msk.bf16.gmra.mxu0 %vm18426_vm8, %v8284_v2  ;;  %v10887_v45 = vpop.f32.mrf.mxu1  ;;  %v6766_v18 = vpop.f32.mrf.mxu0  ;;  %vm18437_vm8 = vmmov %vm18432_vm1 }
 0x514   : > { %11106 = vmatprep.mubr.msk.bf16.mxu0 %vm18427_vm2, %v8293_v40  ;;  %v6457_v60 = vadd.f32 %v10887_v45, %v15595_v38  ;;  %v15823_v39 = vadd.f32 %v6750_v37, %v6454_v48  ;;  %v8579_v57 = vrot.slane %v10014_v8, 3  ;;  %v8584_v8 = vrot.slane %v15579_v5, 3  ;;  %vm18438_vm2 = vmmov %vm18435_vm4 }
 0x515   : > { %v6314_v2 = vpop.f32.mrf.mxu1  ;;  %v10929_v31 = vpop.f32.mrf.mxu0  ;;  %vm18439_vm13 = vmmov %vm18438_vm2 }
 0x516   : > { %v6455_v11 = vadd.f32 %v6314_v2, %v15597_v27  ;;  %v15829_v40 = vadd.f32 %v10925_v41, %v6457_v60  ;;  %v8580_v27 = vrot.slane %v15563_v56, 3 }
 0x517   : > { %v10890_v29 = vpop.f32.mrf.mxu1  ;;  %11065 = vmatmul.mubr.msk.bf16.gmra.mxu1 %vm18431_vm15, %v7852_v42  ;;  %v6769_v38 = vpop.f32.mrf.mxu0  ;;  %vm18442_vm15 = vmmov %vm18438_vm2 }
 0x518   : > { %v6460_v37 = vadd.f32 %v10890_v29, %v15609_v25  ;;  %v15834_v44 = vadd.f32 %v6753_v46, %v6455_v11  ;;  %11068 = vmatprep.mubr.msk.bf16.mxu1 %vm18432_vm1, %v7854_v51  ;;  %v7856_v51 = vsel %vm18434_vm11, %v7853_v30, %v7855_v34  ;;  %v8581_v60 = vsel %vm18435_vm4, %v8579_v57, %v8580_v27  ;;  %vm18443_vm1 = vmmov %vm18438_vm2 }
 0x519   : > { %v6327_v47 = vpop.f32.mrf.mxu1  ;;  %vm18445_vm11 = vmmov %vm18440_vm0 }
 0x51a   : > { %v6458_v3 = vadd.f32 %v6327_v47, %v15616_v61  ;;  %v15840_v41 = vadd.f32 %v10928_v21, %v6460_v37  ;;  %vm18446_vm4 = vmmov %vm18443_vm1 }
 0x51b   : > { %v10932_v16 = vpop.f32.mrf.mxu0  ;;  %11107 = vmatmul.mubr.msk.bf16.gmra.mxu0 %vm18433_vm10, %v8302_v62  ;;  %v10891_v48 = vpop.f32.mrf.mxu1  ;;  %vm18444_vm10 = vmmov %vm18440_vm0 }
 0x51c   : > { %v6461_v25 = vadd.f32 %v10891_v48, %v15623_v43  ;;  %v15843_v46 = vadd.f32 %v6766_v18, %v6458_v3  ;;  %v8582_v43 = vrot.slane %v15575_v59, 3 }
 0x51d   : > { %v6782_v49 = vpop.f32.mrf.mxu0  ;;  %v6330_v50 = vpop.f32.mrf.mxu1 }
 0x51e   : > { %v6459_v42 = vadd.f32 %v6330_v50, %v15628_v58  ;;  %v15848_v1 = vadd.f32 %v10929_v31, %v6461_v25  ;;  %v8585_v34 = vsel %vm18439_vm13, %v8582_v43, %v8584_v8  ;;  %vm18451_vm13 = vmmov %vm18443_vm1 }
 0x51f   : > { %v10933_v45 = vpop.f32.mrf.mxu0  ;;  %v10894_v56 = vpop.f32.mrf.mxu1  ;;  %11069 = vmatmul.mubr.msk.bf16.gmra.mxu1 %vm18436_vm5, %v7856_v51  ;;  %vm18447_vm5 = vmmov %vm18443_vm1 }
 0x520   : > { %v6464_v21 = vadd.f32 %v10894_v56, %v15637_v15  ;;  %v15852_v2 = vadd.f32 %v6769_v38, %v6459_v42  ;;  %11112 = vmatprep.mubr.msk.bf16.mxu1 %vm18437_vm8, %v8581_v60  ;;  %v8583_v15 = vsel %vm18438_vm2, %v8580_v27, %v8582_v43  ;;  %vm18448_vm8 = vmmov %vm18440_vm0 }
 0x521   : > { %v6785_v61 = vpop.f32.mrf.mxu0  ;;  %v6343_v30 = vpop.f32.mrf.mxu1  ;;  %vm18449_vm2 = vmmov %vm18440_vm0 }
 0x522   : > { %v6462_v58 = vadd.f32 %v6343_v30, %v15643_v12  ;;  %v15858_v31 = vadd.f32 %v10932_v16, %v6464_v21 }
 0x523   : > { %v10936_v18 = vpop.f32.mrf.mxu0  ;;  %v10895_v11 = vpop.f32.mrf.mxu1 }
 0x524   : > { %v6465_v29 = vadd.f32 %v10895_v11, %v15650_v19  ;;  %v15861_v37 = vadd.f32 %v6782_v49, %v6462_v58  ;;  %v8586_v19 = vrot.slane %v15602_v36, 3  ;;  %v8588_v49 = vrot.slane %v15607_v55, 3 }
 0x525   : > { %v6798_v62 = vpop.f32.mrf.mxu0  ;;  %v6346_v38 = vpop.f32.mrf.mxu1  ;;  %v8592_v58 = vrot.slane %v15635_v33, 3 }
 0x526   : > { %v6463_v47 = vadd.f32 %v6346_v38, %v15656_v7  ;;  %v15866_v57 = vadd.f32 %v10933_v45, %v6465_v29  ;;  %v8589_v36 = vsel %vm18443_vm1, %v8586_v19, %v8588_v49 }
 0x527   : > { %v10937_v59 = vpop.f32.mrf.mxu0  ;;  %v10898_v5 = vpop.f32.mrf.mxu1  ;;  %11113 = vmatmul.mubr.msk.bf16.vlgmr.msra.gmra.mxu1 %vm18440_vm0, %v8583_v15  ;;  %vm18452_vm0 = vmmov %vm18443_vm1 }
 0x528   : > { %v6468_v16 = vadd.f32 %v10898_v5, %v15665_v22  ;;  %v15870_v3 = vadd.f32 %v6785_v61, %v6463_v47  ;;  %11116 = vmatprep.mubr.msk.bf16.mxu1 %vm18441_vm14, %v8585_v34  ;;  %v8587_v22 = vsel %vm18442_vm15, %v8584_v8, %v8586_v19  ;;  %vm18454_vm14 = vmmov %vm18449_vm2 }
 0x529   : > { %v6801_v12 = vpop.f32.mrf.mxu0  ;;  %v6359_v27 = vpop.f32.mrf.mxu1  ;;  %vm18456_vm15 = vmmov %vm18449_vm2 }
 0x52a   : > { %v6466_v7 = vadd.f32 %v6359_v27, %v15671_v63  ;;  %v15876_v25 = vadd.f32 %v10936_v18, %v6468_v16  ;;  %vm18461_vm1 = vmmov %vm18452_vm0 }
 0x52b   : > { %v10940_v48 = vpop.f32.mrf.mxu0  ;;  %v10899_v51 = vpop.f32.mrf.mxu1 }
 0x52c   : > { %v6469_v45 = vadd.f32 %v10899_v51, %v15678_v9  ;;  %v15879_v60 = vadd.f32 %v6798_v62, %v6466_v7  ;;  %v8590_v9 = vrot.slane %v15631_v6, 3 }
 0x52d   : > { %v6814_v50 = vpop.f32.mrf.mxu0  ;;  %v6362_v42 = vpop.f32.mrf.mxu1 }
 0x52e   : > { %v6467_v61 = vadd.f32 %v6362_v42, %v15682_v23  ;;  %v15884_v21 = vadd.f32 %v10937_v59, %v6469_v45  ;;  %v8593_v6 = vsel %vm18447_vm5, %v8590_v9, %v8592_v58  ;;  %vm18470_vm5 = vmmov %vm18452_vm0 }
 0x52f   : > { %v10941_v56 = vpop.f32.mrf.mxu0  ;;  %v10902_v55 = vpop.f32.mrf.mxu1  ;;  %11117 = vmatmul.mubr.msk.bf16.gmra.mxu1 %vm18444_vm10, %v8587_v22  ;;  %vm18462_vm10 = vmmov %vm18452_vm0 }
 0x530   : > { %v6472_v43 = vadd.f32 %v10902_v55, %v15691_v54  ;;  %v15888_v30 = vadd.f32 %v6801_v12, %v6467_v61  ;;  %11120 = vmatprep.mubr.msk.bf16.mxu1 %vm18445_vm11, %v8589_v36  ;;  %v8591_v54 = vsel %vm18446_vm4, %v8588_v49, %v8590_v9  ;;  %v18453_v36 = vld [vmem:[#allocation51_spill] sm:$0xff]  ;;  %vm18463_vm11 = vmmov %vm18449_vm2 }
 0x531   : > { %v6817_v63 = vpop.f32.mrf.mxu0  ;;  %v6375_v18 = vpop.f32.mrf.mxu1  ;;  %vm18465_vm4 = vmmov %vm18449_vm2 }
 0x532   : > { %v6470_v23 = vadd.f32 %v6375_v18, %v15697_v4  ;;  %v15894_v11 = vadd.f32 %v10940_v48, %v6472_v43  ;;  %v8596_v48 = vrot.slane %v15663_v52, 3  ;;  %v18457_v18 = vld [vmem:[#allocation42_spill] sm:$0xff] }
 0x533   : > { %v10944_v8 = vpop.f32.mrf.mxu0  ;;  %v10903_v62 = vpop.f32.mrf.mxu1 }
 0x534   : > { %v6473_v15 = vadd.f32 %v10903_v62, %v15704_v28  ;;  %v15897_v38 = vadd.f32 %v6814_v50, %v6470_v23  ;;  %v8594_v28 = vrot.slane %v15659_v32, 3  ;;  %v18450_v50 = vld [vmem:[#allocation44_spill] sm:$0xff]  ;;  %v18458_v62 = vld [vmem:[#allocation49_spill] sm:$0xff] }
 0x535   : > { %v6830_v29 = vpop.f32.mrf.mxu0  ;;  %v6378_v59 = vpop.f32.mrf.mxu1 }
 0x536   : > { %v6471_v47 = vadd.f32 %v6378_v59, %v15708_v20  ;;  %v15902_v5 = vadd.f32 %v10941_v56, %v6473_v15  ;;  %v8597_v32 = vsel %vm18452_vm0, %v8594_v28, %v8596_v48  ;;  %v18459_v15 = vld [vmem:[#allocation55_spill] sm:$0xff] }
 0x537   : > { %v10945_v34 = vpop.f32.mrf.mxu0  ;;  %v10906_v33 = vpop.f32.mrf.mxu1  ;;  %11121 = vmatmul.mubr.msk.bf16.gmra.mxu1 %vm18448_vm8, %v8591_v54  ;;  %vm18471_vm8 = vmmov %vm18452_vm0 }
 0x538   : > { %v6476_v12 = vadd.f32 %v10906_v33, %v15717_v10  ;;  %v15906_v16 = vadd.f32 %v6817_v63, %v6471_v47  ;;  %11124 = vmatprep.mubr.msk.bf16.mxu1 %vm18449_vm2, %v8593_v6  ;;  %v8595_v10 = vsel %vm18451_vm13, %v8592_v58, %v8594_v28  ;;  %v18455_v63 = vld [vmem:[#allocation56_spill] sm:$0xff]  ;;  %v18460_v47 = vld [vmem:[#allocation47_spill] sm:$0xff]  ;;  %vm18472_vm13 = vmmov %vm18449_vm2 }
 0x539   : > { %v6833_v4 = vpop.f32.mrf.mxu0  ;;  %v6391_v19 = vpop.f32.mrf.mxu1 }
 0x53a   : > { %v6474_v20 = vadd.f32 %v6391_v19, %v15723_v17  ;;  %v15912_v49 = vadd.f32 %v10944_v8, %v6476_v12  ;;  %v8598_v8 = vrot.slane %v18457_v18, 3 }
 0x53b   : > { %v10948_v27 = vpop.f32.mrf.mxu0  ;;  %v10907_v7 = vpop.f32.mrf.mxu1 }
 0x53c   : > { %v6477_v45 = vadd.f32 %v10907_v7, %v18450_v50  ;;  %v15915_v22 = vadd.f32 %v6830_v29, %v6474_v20  ;;  %v8600_v29 = vrot.slane %v18458_v62, 3 }
 0x53d   : > { %v6846_v51 = vpop.f32.mrf.mxu0  ;;  %v6394_v42 = vpop.f32.mrf.mxu1 }
 0x53e   : > { %v6475_v61 = vadd.f32 %v6394_v42, %v18453_v36  ;;  %v15920_v55 = vadd.f32 %v10945_v34, %v6477_v45  ;;  %v8601_v20 = vsel %vm18462_vm10, %v8598_v8, %v8600_v29  ;;  %vm18480_vm10 = vmmov %vm18452_vm0 }
 0x53f   : > { %v10949_v56 = vpop.f32.mrf.mxu0  ;;  %v10910_v52 = vpop.f32.mrf.mxu1  ;;  %11125 = vmatmul.mubr.msk.bf16.gmra.mxu1 %vm18454_vm14, %v8595_v10  ;;  %v18464_v10 = vld [vmem:[#allocation57_spill] sm:$0xff]  ;;  %vm18475_vm14 = vmmov %vm18452_vm0 }
 0x540   : > { %v6480_v43 = vadd.f32 %v10910_v52, %v18455_v63  ;;  %v15924_v9 = vadd.f32 %v6833_v4, %v6475_v61  ;;  %11128 = vmatprep.mubr.msk.bf16.mxu1 %vm18456_vm15, %v8597_v32  ;;  %v8599_v4 = vsel %vm18461_vm1, %v8596_v48, %v8598_v8  ;;  %v18467_v52 = vld [vmem:[#allocation50_spill] sm:$0xff]  ;;  %vm18476_vm15 = vmmov %vm18449_vm2 }
 0x541   : > { %v6849_v17 = vpop.f32.mrf.mxu0  ;;  %v6407_v58 = vpop.f32.mrf.mxu1  ;;  %v8604_v63 = vrot.slane %v18467_v52, 3  ;;  %vm18477_vm1 = vmmov %vm18449_vm2 }
 0x542   : > { %v6478_v54 = vadd.f32 %v6407_v58, %v18459_v15  ;;  %v15930_v59 = vadd.f32 %v10948_v27, %v6480_v43  ;;  %v18468_v43 = vld [vmem:[#allocation53_spill] sm:$0xff]  ;;  %v18469_v58 = vld [vmem:[#allocation46_spill] sm:$0xff] }
 0x543   : > { %v10952_v23 = vpop.f32.mrf.mxu0  ;;  %v10911_v34 = vpop.f32.mrf.mxu1 }
 0x544   : > { %v6481_v33 = vadd.f32 %v10911_v34, %v18460_v47  ;;  %v15933_v12 = vadd.f32 %v6846_v51, %v6478_v54  ;;  %v18466_v51 = vld [vmem:[#allocation41_spill] sm:$0xff] }
 0x545   : > { %v6862_v6 = vpop.f32.mrf.mxu0  ;;  %v6410_v28 = vpop.f32.mrf.mxu1  ;;  %v8602_v48 = vrot.slane %v18466_v51, 3 }
 0x546   : > { %v6479_v7 = vadd.f32 %v6410_v28, %v15760_v35  ;;  %v15938_v50 = vadd.f32 %v10949_v56, %v6481_v33 }
 0x547   : > { %v10953_v19 = vpop.f32.mrf.mxu0  ;;  %v10914_v45 = vpop.f32.mrf.mxu1  ;;  %11129 = vmatmul.mubr.msk.bf16.gmra.mxu1 %vm18463_vm11, %v8599_v4  ;;  %v8605_v47 = vsel %vm18471_vm8, %v8602_v48, %v8604_v63  ;;  %vm18481_vm11 = vmmov %vm18452_vm0 }
 0x548   : > { %v6484_v42 = vadd.f32 %v10914_v45, %v18464_v10  ;;  %v15942_v32 = vadd.f32 %v6849_v17, %v6479_v7  ;;  %11132 = vmatprep.mubr.msk.bf16.mxu1 %vm18465_vm4, %v8601_v20  ;;  %v8603_v17 = vsel %vm18470_vm5, %v8600_v29, %v8602_v48  ;;  %vm18482_vm4 = vmmov %vm18477_vm1 }
 0x549   : > { %v6865_v27 = vpop.f32.mrf.mxu0  ;;  %v6423_v36 = vpop.f32.mrf.mxu1  ;;  %vm18483_vm5 = vmmov %vm18477_vm1 }
 0x54a   : > { %v6482_v35 = vadd.f32 %v6423_v36, %v18468_v43  ;;  %v15948_v56 = vadd.f32 %v10952_v23, %v6484_v42  ;;  %v18474_v42 = vld [vmem:[#allocation43_spill] sm:$0xff]  ;;  %vm18485_vm8 = vmmov %vm18452_vm0 }
 0x54b   : > { %v10956_v61 = vpop.f32.mrf.mxu0  ;;  %v10915_v18 = vpop.f32.mrf.mxu1  ;;  %v8608_v51 = vrot.slane %v18474_v42, 3 }
 0x54c   : > { %v6485_v62 = vadd.f32 %v10915_v18, %v18469_v58  ;;  %v15951_v15 = vadd.f32 %v6862_v6, %v6482_v35  ;;  %v18473_v6 = vld [vmem:[#allocation54_spill] sm:$0xff] }
 0x54d   : > { %v6878_v8 = vpop.f32.mrf.mxu0  ;;  %v6426_v54 = vpop.f32.mrf.mxu1  ;;  %v8606_v29 = vrot.slane %v18473_v6, 3 }
 0x54e   : > { %v6483_v33 = vadd.f32 %v6426_v54, %v15786_v14  ;;  %v15956_v4 = vadd.f32 %v10953_v19, %v6485_v62 }
 0x54f   : > { %v10957_v34 = vpop.f32.mrf.mxu0  ;;  %v10918_v28 = vpop.f32.mrf.mxu1  ;;  %11133 = vmatmul.mubr.msk.bf16.gmra.mxu1 %vm18449_vm2, %v8603_v17  ;;  %v8609_v18 = vsel %vm18475_vm14, %v8606_v29, %v8608_v51  ;;  %vm18486_vm2 = vmmov %vm18477_vm1 }
 0x550   : > { %v6488_v20 = vadd.f32 %v10918_v28, %v15793_v53  ;;  %v15960_v7 = vadd.f32 %v6865_v27, %v6483_v33  ;;  %11136 = vmatprep.mubr.msk.bf16.mxu1 %vm18472_vm13, %v8605_v47  ;;  %v8607_v53 = vsel %vm18452_vm0, %v8604_v63, %v8606_v29  ;;  %v18479_v33 = vld [vmem:[#allocation52_spill] sm:$0xff]  ;;  %vm18494_vm13 = vmmov %vm18477_vm1 }
 0x551   : > { %v6881_v23 = vpop.f32.mrf.mxu0  ;;  %v6439_v45 = vpop.f32.mrf.mxu1  ;;  %v8612_v28 = vrot.slane %v18479_v33, 3  ;;  %vm18495_vm0 = vmmov %vm18477_vm1 }
 0x552   : > { %v6486_v14 = vadd.f32 %v6439_v45, %v15799_v24  ;;  %v15966_v19 = vadd.f32 %v10956_v61, %v6488_v20  ;;  %vm18497_vm14 = vmmov %vm18495_vm0 }
 0x553   : > { %v11000_v10 = vpop.f32.mrf.mxu0  ;;  %v10919_v48 = vpop.f32.mrf.mxu1 }
 0x554   : > { %v6489_v52 = vadd.f32 %v10919_v48, %v15804_v0  ;;  %v15969_v43 = vadd.f32 %v6878_v8, %v6486_v14  ;;  %v18478_v8 = vld [vmem:[#allocation48_spill] sm:$0xff] }
 0x555   : > { %v7509_v36 = vpop.f32.mrf.mxu0  ;;  %v6442_v27 = vpop.f32.mrf.mxu1  ;;  %v8610_v63 = vrot.slane %v18478_v8, 3 }
 0x556   : > { %v6487_v58 = vadd.f32 %v6442_v27, %v15808_v13  ;;  %v15974_v62 = vadd.f32 %v10957_v34, %v6489_v52 }
 0x557   : > { %v11001_v35 = vpop.f32.mrf.mxu0  ;;  %v10962_v17 = vpop.f32.mrf.mxu1  ;;  %11137 = vmatmul.mubr.msk.bf16.gmra.mxu1 %vm18476_vm15, %v8607_v53  ;;  %v8613_v14 = vsel %vm18481_vm11, %v8610_v63, %v8612_v28  ;;  %vm18499_vm15 = vmmov %vm18495_vm0 }
 0x558   : > { %v15977_v61 = vadd.f32 %v6881_v23, %v6487_v58  ;;  %v7341_v0 = vadd.f32 %v10962_v17, %v15819_v26  ;;  %11140 = vmatprep.mubr.msk.bf16.mxu1 %vm18477_vm1, %v8609_v18  ;;  %v8611_v26 = vsel %vm18480_vm10, %v8608_v51, %v8610_v63  ;;  %vm18502_vm10 = vmmov %vm18495_vm0 }
 0x559   : > { %v7512_v24 = vpop.f32.mrf.mxu0  ;;  %v7196_v54 = vpop.f32.mrf.mxu1 }
 0x55a   : > { %v7339_v13 = vadd.f32 %v7196_v54, %v15823_v39  ;;  %v15984_v34 = vadd.f32 %v11000_v10, %v7341_v0 }
 0x55b   : > { %v11004_v47 = vpop.f32.mrf.mxu0  ;;  %v10963_v20 = vpop.f32.mrf.mxu1 }
 0x55c   : > { %v7342_v29 = vadd.f32 %v10963_v20, %v15829_v40  ;;  %v15987_v23 = vadd.f32 %v7509_v36, %v7339_v13  ;;  %v18484_v40 = vld [vmem:[#allocation45_spill] sm:$0xff] }
 0x55d   : > { %v7525_v6 = vpop.f32.mrf.mxu0  ;;  %v7199_v45 = vpop.f32.mrf.mxu1  ;;  %v8614_v51 = vrot.slane %v18484_v40, 3 }
 0x55e   : > { %v7340_v48 = vadd.f32 %v7199_v45, %v15834_v44  ;;  %v15992_v52 = vadd.f32 %v11001_v35, %v7342_v29 }
 0x55f   : > { %v11005_v42 = vpop.f32.mrf.mxu0  ;;  %v10966_v53 = vpop.f32.mrf.mxu1  ;;  %11141 = vmatmul.mubr.msk.bf16.gmra.mxu1 %vm18482_vm4, %v8611_v26  ;;  %vm18505_vm4 = vmmov %vm18495_vm0 }
 0x560   : > { %v7345_v10 = vadd.f32 %v10966_v53, %v15840_v41  ;;  %v15996_v27 = vadd.f32 %v7512_v24, %v7340_v48  ;;  %11144 = vmatprep.mubr.msk.bf16.mxu1 %vm18483_vm5, %v8613_v14  ;;  %v8615_v41 = vsel %vm18485_vm8, %v8612_v28, %v8614_v51  ;;  %vm18508_vm8 = vmmov %vm18495_vm0 }
 0x561   : > { %v7528_v39 = vpop.f32.mrf.mxu0  ;;  %v7212_v36 = vpop.f32.mrf.mxu1 }
 0x562   : > { %v7343_v58 = vadd.f32 %v7212_v36, %v15843_v46  ;;  %v16001_v17 = vadd.f32 %v11004_v47, %v7345_v10 }
 0x563   : > { %v11008_v18 = vpop.f32.mrf.mxu0  ;;  %v10967_v44 = vpop.f32.mrf.mxu1 }
 0x564   : > { %v7346_v0 = vadd.f32 %v10967_v44, %v15848_v1  ;;  %v16004_v8 = vadd.f32 %v7525_v6, %v7343_v58 }
 0x565   : > { %v7541_v35 = vpop.f32.mrf.mxu0  ;;  %v7215_v24 = vpop.f32.mrf.mxu1 }
 0x566   : > { %v7344_v54 = vadd.f32 %v7215_v24, %v15852_v2  ;;  %v16008_v33 = vadd.f32 %v11005_v42, %v7346_v0 }
 0x567   : > { %v11009_v63 = vpop.f32.mrf.mxu0  ;;  %v10970_v13 = vpop.f32.mrf.mxu1  ;;  %11145 = vmatmul.mubr.msk.bf16.gmra.mxu1 %vm18486_vm2, %v8615_v41 }
 0x568   : > { %v7349_v47 = vadd.f32 %v10970_v13, %v15858_v31  ;;  %v16012_v20 = vadd.f32 %v7528_v39, %v7344_v54 }
 0x569   : > { %v7544_v46 = vpop.f32.mrf.mxu0  ;;  %v7228_v29 = vpop.f32.mrf.mxu1 }
 0x56a   : > { %v7347_v6 = vadd.f32 %v7228_v29, %v15861_v37  ;;  %v16015_v26 = vadd.f32 %v11008_v18, %v7349_v47 }
 0x56b   : > { %v11012_v1 = vpop.f32.mrf.mxu0  ;;  %v10971_v28 = vpop.f32.mrf.mxu1 }
 0x56c   : > { %v7350_v2 = vadd.f32 %v10971_v28, %v15866_v57  ;;  %v16018_v42 = vadd.f32 %v7541_v35, %v7347_v6 }
 0x56d   : > { %v7557_v45 = vpop.f32.mrf.mxu0  ;;  %v7231_v14 = vpop.f32.mrf.mxu1 }
 0x56e   : > { %v7348_v53 = vadd.f32 %v7231_v14, %v15870_v3  ;;  %v16021_v10 = vadd.f32 %v11009_v63, %v7350_v2 }
 0x56f   : > { %v11013_v48 = vpop.f32.mrf.mxu0  ;;  %v10974_v31 = vpop.f32.mrf.mxu1 }
 0x570   : > { %v7353_v40 = vadd.f32 %v10974_v31, %v15876_v25  ;;  %v16024_v51 = vadd.f32 %v7544_v46, %v7348_v53 }
 0x571   : > { %v7560_v39 = vpop.f32.mrf.mxu0  ;;  %v7244_v37 = vpop.f32.mrf.mxu1 }
 0x572   : > { %v7351_v18 = vadd.f32 %v7244_v37, %v15879_v60  ;;  %v16027_v58 = vadd.f32 %v11012_v1, %v7353_v40 }
 0x573   : > { %v11016_v36 = vpop.f32.mrf.mxu0  ;;  %v10975_v57 = vpop.f32.mrf.mxu1 }
 0x574   : > { %v7354_v35 = vadd.f32 %v10975_v57, %v15884_v21  ;;  %v16030_v0 = vadd.f32 %v7557_v45, %v7351_v18 }
 0x575   : > { %v7573_v44 = vpop.f32.mrf.mxu0  ;;  %v7247_v3 = vpop.f32.mrf.mxu1 }
 0x576   : > { %v7352_v24 = vadd.f32 %v7247_v3, %v15888_v30  ;;  %v16033_v63 = vadd.f32 %v11013_v48, %v7354_v35 }
 0x577   : > { %v11017_v41 = vpop.f32.mrf.mxu0  ;;  %v10978_v25 = vpop.f32.mrf.mxu1 }
 0x578   : > { %v7357_v13 = vadd.f32 %v10978_v25, %v15894_v11  ;;  %v16036_v46 = vadd.f32 %v7560_v39, %v7352_v24 }
 0x579   : > { %v7576_v54 = vpop.f32.mrf.mxu0  ;;  %v7260_v60 = vpop.f32.mrf.mxu1 }
 0x57a   : > { %v7355_v29 = vadd.f32 %v7260_v60, %v15897_v38  ;;  %v16039_v1 = vadd.f32 %v11016_v36, %v7357_v13 }
 0x57b   : > { %v11020_v47 = vpop.f32.mrf.mxu0  ;;  %v10979_v21 = vpop.f32.mrf.mxu1 }
 0x57c   : > { %v7358_v28 = vadd.f32 %v10979_v21, %v15902_v5  ;;  %v16042_v45 = vadd.f32 %v7573_v44, %v7355_v29 }
 0x57d   : > { %v7589_v6 = vpop.f32.mrf.mxu0  ;;  %v7263_v30 = vpop.f32.mrf.mxu1 }
 0x57e   : > { %v7356_v14 = vadd.f32 %v7263_v30, %v15906_v16  ;;  %v16045_v48 = vadd.f32 %v11017_v41, %v7358_v28 }
 0x57f   : > { %v11021_v2 = vpop.f32.mrf.mxu0  ;;  %v10982_v11 = vpop.f32.mrf.mxu1 }
 0x580   : > { %v7361_v31 = vadd.f32 %v10982_v11, %v15912_v49  ;;  %v16048_v39 = vadd.f32 %v7576_v54, %v7356_v14 }
 0x581   : > { %v7592_v53 = vpop.f32.mrf.mxu0  ;;  %v7276_v38 = vpop.f32.mrf.mxu1 }
 0x582   : > { %v7359_v37 = vadd.f32 %v7276_v38, %v15915_v22  ;;  %v16051_v36 = vadd.f32 %v11020_v47, %v7361_v31 }
 0x583   : > { %v11024_v40 = vpop.f32.mrf.mxu0  ;;  %v10983_v5 = vpop.f32.mrf.mxu1 }
 0x584   : > { %v7362_v57 = vadd.f32 %v10983_v5, %v15920_v55  ;;  %v16054_v44 = vadd.f32 %v7589_v6, %v7359_v37 }
 0x585   : > { %v7605_v18 = vpop.f32.mrf.mxu0  ;;  %v7279_v16 = vpop.f32.mrf.mxu1 }
 0x586   : > { %v7360_v3 = vadd.f32 %v7279_v16, %v15924_v9  ;;  %v16057_v41 = vadd.f32 %v11021_v2, %v7362_v57 }
 0x587   : > { %v11025_v35 = vpop.f32.mrf.mxu0  ;;  %v10986_v49 = vpop.f32.mrf.mxu1 }
 0x588   : > { %v7365_v25 = vadd.f32 %v10986_v49, %v15930_v59  ;;  %v16060_v54 = vadd.f32 %v7592_v53, %v7360_v3 }
 0x589   : > { %v7608_v24 = vpop.f32.mrf.mxu0  ;;  %v7292_v22 = vpop.f32.mrf.mxu1 }
 0x58a   : > { %v7363_v60 = vadd.f32 %v7292_v22, %v15933_v12  ;;  %v16063_v47 = vadd.f32 %v11024_v40, %v7365_v25 }
 0x58b   : > { %v11028_v13 = vpop.f32.mrf.mxu0  ;;  %v10987_v55 = vpop.f32.mrf.mxu1 }
 0x58c   : > { %v7366_v21 = vadd.f32 %v10987_v55, %v15938_v50  ;;  %v16066_v6 = vadd.f32 %v7605_v18, %v7363_v60 }
 0x58d   : > { %v7621_v29 = vpop.f32.mrf.mxu0  ;;  %v7295_v9 = vpop.f32.mrf.mxu1 }
 0x58e   : > { %v7364_v30 = vadd.f32 %v7295_v9, %v15942_v32  ;;  %v16069_v2 = vadd.f32 %v11025_v35, %v7366_v21 }
 0x58f   : > { %v11029_v28 = vpop.f32.mrf.mxu0  ;;  %v10990_v59 = vpop.f32.mrf.mxu1 }
 0x590   : > { %v7369_v11 = vadd.f32 %v10990_v59, %v15948_v56  ;;  %v16072_v53 = vadd.f32 %v7608_v24, %v7364_v30 }
 0x591   : > { %v7624_v14 = vpop.f32.mrf.mxu0  ;;  %v7308_v12 = vpop.f32.mrf.mxu1 }
 0x592   : > { %v7367_v38 = vadd.f32 %v7308_v12, %v15951_v15  ;;  %v16075_v40 = vadd.f32 %v11028_v13, %v7369_v11 }
 0x593   : > { %v11032_v31 = vpop.f32.mrf.mxu0  ;;  %v10991_v50 = vpop.f32.mrf.mxu1 }
 0x594   : > { %v7370_v5 = vadd.f32 %v10991_v50, %v15956_v4  ;;  %v16078_v18 = vadd.f32 %v7621_v29, %v7367_v38 }
 0x595   : > { %v7637_v37 = vpop.f32.mrf.mxu0  ;;  %v7311_v32 = vpop.f32.mrf.mxu1 }
 0x596   : > { %v7368_v16 = vadd.f32 %v7311_v32, %v15960_v7  ;;  %v16081_v35 = vadd.f32 %v11029_v28, %v7370_v5 }
 0x597   : > { %v11033_v57 = vpop.f32.mrf.mxu0  ;;  %v10994_v56 = vpop.f32.mrf.mxu1 }
 0x598   : > { %v7373_v3 = vadd.f32 %v10994_v56, %v15966_v19  ;;  %v16084_v49 = vadd.f32 %v7624_v14, %v7368_v16 }
 0x599   : > { %v7640_v15 = vpop.f32.mrf.mxu0  ;;  %v7324_v24 = vpop.f32.mrf.mxu1 }
 0x59a   : > { %v7371_v25 = vadd.f32 %v7324_v24, %v15969_v43  ;;  %v16087_v22 = vadd.f32 %v11032_v31, %v7373_v3 }
 0x59b   : > { %v10995_v4 = vpop.f32.mrf.mxu1  ;;  %v16092_v55 = vpop.f32.mrf.mxu0 }
 0x59c   : > { %v7374_v13 = vadd.f32 %v10995_v4, %v15974_v62  ;;  %v16090_v60 = vadd.f32 %v7637_v37, %v7371_v25 }
 0x59d   : > { %v7327_v7 = vpop.f32.mrf.mxu1  ;;  %v16102_v43 = vpop.f32.mrf.mxu0 }
 0x59e   : > { %v7372_v29 = vadd.f32 %v7327_v7, %v15977_v61  ;;  %v16095_v21 = vadd.f32 %v11033_v57, %v7374_v13 }
 0x59f   : > { %v11038_v19 = vpop.f32.mrf.mxu1  ;;  %v16110_v11 = vpop.f32.mrf.mxu0 }
 0x5a0   : > { %v16097_v9 = vadd.f32 %v7640_v15, %v7372_v29  ;;  %v16100_v28 = vadd.f32 %v11038_v19, %v15984_v34 }
 0x5a1   : > { %v7948_v30 = vpop.f32.mrf.mxu1  ;;  %v16118_v38 = vpop.f32.mrf.mxu0 }
 0x5a2   : > { %v16105_v62 = vadd.f32 %v7948_v30, %v15987_v23 }
 0x5a3   : > { %v11039_v59 = vpop.f32.mrf.mxu1  ;;  %v16123_v5 = vpop.f32.mrf.mxu0 }
 0x5a4   : > { %v16108_v14 = vadd.f32 %v11039_v59, %v15992_v52 }
 0x5a5   : > { %v7951_v61 = vpop.f32.mrf.mxu1  ;;  %v16131_v16 = vpop.f32.mrf.mxu0 }
 0x5a6   : > { %v16113_v12 = vadd.f32 %v7951_v61, %v15996_v27 }
 0x5a7   : > { %v11042_v31 = vpop.f32.mrf.mxu1  ;;  %v16139_v15 = vpop.f32.mrf.mxu0 }
 0x5a8   : > { %v16116_v34 = vadd.f32 %v11042_v31, %v16001_v17 }
 0x5a9   : > { %v7964_v50 = vpop.f32.mrf.mxu1  ;;  %v16147_v4 = vpop.f32.mrf.mxu0 }
 0x5aa   : > { %v16121_v23 = vadd.f32 %v7964_v50, %v16004_v8 }
 0x5ab   : > { %v11043_v37 = vpop.f32.mrf.mxu1  ;;  %v16155_v29 = vpop.f32.mrf.mxu0 }
 0x5ac   : > { %v16126_v52 = vadd.f32 %v11043_v37, %v16008_v33 }
 0x5ad   : > { %v7967_v32 = vpop.f32.mrf.mxu1  ;;  %v16163_v59 = vpop.f32.mrf.mxu0 }
 0x5ae   : > { %v16129_v27 = vadd.f32 %v7967_v32, %v16012_v20 }
 0x5af   : > { %v11046_v57 = vpop.f32.mrf.mxu1  ;;  %v16171_v50 = vpop.f32.mrf.mxu0 }
 0x5b0   : > { %v16134_v17 = vadd.f32 %v11046_v57, %v16015_v26 }
 0x5b1   : > { %v7980_v56 = vpop.f32.mrf.mxu1  ;;  %v16179_v57 = vpop.f32.mrf.mxu0 }
 0x5b2   : > { %v16137_v8 = vadd.f32 %v7980_v56, %v16018_v42 }
 0x5b3   : > { %v11047_v3 = vpop.f32.mrf.mxu1 }
 0x5b4   : > { %v16142_v33 = vadd.f32 %v11047_v3, %v16021_v10 }
 0x5b5   : > { %v7983_v24 = vpop.f32.mrf.mxu1 }
 0x5b6   : > { %v16145_v20 = vadd.f32 %v7983_v24, %v16024_v51  ;;  %v16187_v24 = vpop.f32.mrf.mxu0 }
 0x5b7   : > { %v11050_v25 = vpop.f32.mrf.mxu1 }
 0x5b8   : > { %v16150_v26 = vadd.f32 %v11050_v25, %v16027_v58 }
 0x5b9   : > { %v7996_v13 = vpop.f32.mrf.mxu1 }
 0x5ba   : > { %v16153_v42 = vadd.f32 %v7996_v13, %v16030_v0 }
 0x5bb   : > { %v11051_v7 = vpop.f32.mrf.mxu1 }
 0x5bc   : > { %v16158_v10 = vadd.f32 %v11051_v7, %v16033_v63  ;;  %v16195_v7 = vpop.f32.mrf.mxu0 }
 0x5bd   : > { %v7999_v19 = vpop.f32.mrf.mxu1 }
 0x5be   : > { %v16161_v51 = vadd.f32 %v7999_v19, %v16036_v46 }
 0x5bf   : > { %v11054_v30 = vpop.f32.mrf.mxu1 }
 0x5c0   : > { %v16166_v58 = vadd.f32 %v11054_v30, %v16039_v1 }
 0x5c1   : > { %v8012_v61 = vpop.f32.mrf.mxu1 }
 0x5c2   : > { %v16169_v0 = vadd.f32 %v8012_v61, %v16042_v45  ;;  %v16203_v61 = vpop.f32.mrf.mxu0 }
 0x5c3   : > { %v11055_v31 = vpop.f32.mrf.mxu1 }
 0x5c4   : > { %v16174_v63 = vadd.f32 %v11055_v31, %v16045_v48 }
 0x5c5   : > { %v8015_v37 = vpop.f32.mrf.mxu1 }
 0x5c6   : > { %v16177_v46 = vadd.f32 %v8015_v37, %v16048_v39 }
 0x5c7   : > { %v11058_v32 = vpop.f32.mrf.mxu1 }
 0x5c8   : > { %v16182_v1 = vadd.f32 %v11058_v32, %v16051_v36  ;;  %v16211_v32 = vpop.f32.mrf.mxu0 }
 0x5c9   : > { %v8028_v56 = vpop.f32.mrf.mxu1 }
 0x5ca   : > { %v16185_v45 = vadd.f32 %v8028_v56, %v16054_v44 }
 0x5cb   : > { %v11059_v3 = vpop.f32.mrf.mxu1 }
 0x5cc   : > { %v16190_v48 = vadd.f32 %v11059_v3, %v16057_v41 }
 0x5cd   : > { %v8031_v25 = vpop.f32.mrf.mxu1 }
 0x5ce   : > { %v16193_v39 = vadd.f32 %v8031_v25, %v16060_v54  ;;  %v16219_v25 = vpop.f32.mrf.mxu0 }
 0x5cf   : > { %v11062_v13 = vpop.f32.mrf.mxu1 }
 0x5d0   : > { %v16198_v36 = vadd.f32 %v11062_v13, %v16063_v47 }
 0x5d1   : > { %v8044_v19 = vpop.f32.mrf.mxu1 }
 0x5d2   : > { %v16201_v44 = vadd.f32 %v8044_v19, %v16066_v6 }
 0x5d3   : > { %v11063_v30 = vpop.f32.mrf.mxu1 }
 0x5d4   : > { %v16206_v41 = vadd.f32 %v11063_v30, %v16069_v2  ;;  %v16227_v30 = vpop.f32.mrf.mxu0 }
 0x5d5   : > { %v8047_v31 = vpop.f32.mrf.mxu1 }
 0x5d6   : > { %v16209_v54 = vadd.f32 %v8047_v31, %v16072_v53 }
 0x5d7   : > { %v11066_v37 = vpop.f32.mrf.mxu1 }
 0x5d8   : > { %v16214_v47 = vadd.f32 %v11066_v37, %v16075_v40 }
 0x5d9   : > { %v8060_v56 = vpop.f32.mrf.mxu1 }
 0x5da   : > { %v16217_v6 = vadd.f32 %v8060_v56, %v16078_v18  ;;  %v16235_v56 = vpop.f32.mrf.mxu0 }
 0x5db   : > { %v11067_v3 = vpop.f32.mrf.mxu1 }
 0x5dc   : > { %v16222_v2 = vadd.f32 %v11067_v3, %v16081_v35 }
 0x5dd   : > { %v8063_v13 = vpop.f32.mrf.mxu1 }
 0x5de   : > { %v16225_v53 = vadd.f32 %v8063_v13, %v16084_v49 }
 0x5df   : > { %v11070_v19 = vpop.f32.mrf.mxu1 }
 0x5e0   : > { %18487 = vst [vmem:[#allocation44_spill] sm:$0xff] %v16225_v53  ;;  %v16230_v40 = vadd.f32 %v11070_v19, %v16087_v22  ;;  %v8539_v53 = vadd.f32 %v16092_v55, %v16100_v28  ;;  %v8537_v22 = vadd.f32 %v16102_v43, %v16105_v62  ;;  %v16247_v19 = vpop.f32.mrf.mxu0  ;;  %v8538_v55 = vadd.f32 %v16118_v38, %v16113_v12 }
 0x5e1   : > { %v8076_v31 = vpop.f32.mrf.mxu1 }
 0x5e2   : > { %v16233_v18 = vadd.f32 %v8076_v31, %v16090_v60  ;;  %v8540_v31 = vadd.f32 %v16110_v11, %v16108_v14  ;;  %v16258_v28 = vpop.f32.mrf.mxu0 }
 0x5e3   : > { %v11071_v37 = vpop.f32.mrf.mxu1 }
 0x5e4   : > { %18488 = vst [vmem:[#allocation51_spill] sm:$0xff] %v16233_v18  ;;  %v16238_v35 = vadd.f32 %v11071_v37, %v16095_v21 }
 0x5e5   : > { %v8079_v3 = vpop.f32.mrf.mxu1 }
 0x5e6   : > { %v16241_v49 = vadd.f32 %v8079_v3, %v16097_v9  ;;  %v16254_v9 = vld [vmem:[%s17014_s2 + $0x3] ss:$0 sm:$0xff] }
 0x5e7   : > { %v11114_v13 = vpop.f32.mrf.mxu1 }
 0x5e8   : > { %v8852_v18 = vadd.f32 %v11114_v13, %v8539_v53  ;;  %v8543_v53 = vadd.f32 %v16123_v5, %v16116_v34  ;;  %v8544_v34 = vadd.f32 %v16139_v15, %v16126_v52  ;;  %v8547_v52 = vadd.f32 %v16155_v29, %v16134_v17  ;;  %v18500_v17 = vld [vmem:[#allocation16_spill] sm:$0xff] }
 0x5e9   : > { %v8707_v60 = vpop.f32.mrf.mxu1  ;;  %vm18501_vm1 = vnez %v18500_v17 }
 0x5ea   : > { %v8850_v21 = vadd.f32 %v8707_v60, %v8537_v22  ;;  %v16264_v14 = vadd.f32 %v16254_v9, %v8852_v18  ;;  %v8541_v22 = vadd.f32 %v16131_v16, %v16121_v23  ;;  %v16270_v60 = vpop.f32.mrf.mxu0 }
 0x5eb   : > { %v11115_v37 = vpop.f32.mrf.mxu1 }
 0x5ec   : > { %v16261_v43 = vadd.f32 %v16254_v9, %v8850_v21  ;;  %v8853_v62 = vadd.f32 %v11115_v37, %v8540_v31  ;;  %18489 = vst [vmem:[#allocation56_spill] sm:$0xff] %v16264_v14  ;;  %v8931_v23 = vsel %vm12406_vm3, %v16264_v14, 0.0  ;;  %v16293_v12 = vpop.f32.mrf.mxu0 }
 0x5ed   : > { %v8710_v3 = vpop.f32.mrf.mxu1 }
 0x5ee   : > { %v8851_v11 = vadd.f32 %v8710_v3, %v8538_v55  ;;  %v8929_v38 = vsel %vm12398_vm12, %v16261_v43, 0.0  ;;  %v16276_v31 = vadd.f32 %v16254_v9, %v8853_v62  ;;  %v8542_v62 = vadd.f32 %v16147_v4, %v16129_v27 }
 0x5ef   : > { %v11118_v13 = vpop.f32.mrf.mxu1 }
 0x5f0   : > { %v16279_v18 = vadd.f32 %v16254_v9, %v8851_v11  ;;  %v8856_v21 = vadd.f32 %v11118_v13, %v8543_v53  ;;  %v8965_v11 = vsel %vm18494_vm13, %v8929_v38, 0.0  ;;  %v8932_v15 = vsel %vm12422_vm7, %v16276_v31, 0.0  ;;  %vm18511_vm13 = vmmov %vm18495_vm0 }
 0x5f1   : > { %v8723_v37 = vpop.f32.mrf.mxu1 }
 0x5f2   : > { %18491 = vst [vmem:[#allocation42_spill] sm:$0xff] %v16279_v18  ;;  %v8930_v55 = vsel %vm12402_vm9, %v16279_v18, 0.0  ;;  %v8854_v3 = vadd.f32 %v8723_v37, %v8541_v22  ;;  %v8968_v22 = vsel %vm18497_vm14, %v8931_v23, 0.0  ;;  %v16303_v27 = vadd.f32 %v16254_v9, %v8856_v21  ;;  %v16313_v23 = vpop.f32.mrf.mxu0 }
 0x5f3   : > { %v8966_v53 = vsel %vm18495_vm0, %v8930_v55, 0.0  ;;  %v11119_v13 = vpop.f32.mrf.mxu1 }
 0x5f4   : > { %v8967_v5 = vadd.f32 %v8966_v53, %v8965_v11  ;;  %v16299_v14 = vadd.f32 %v16254_v9, %v8854_v3  ;;  %v8857_v16 = vadd.f32 %v11119_v13, %v8544_v34  ;;  %v8970_v11 = vsel %vm18499_vm15, %v8932_v15, 0.0 }
 0x5f5   : > { %v8726_v4 = vpop.f32.mrf.mxu1  ;;  %v8545_v34 = vadd.f32 %v16163_v59, %v16137_v8  ;;  %v8935_v29 = vsel %vm18501_vm1, %v16303_v27, 0.0  ;;  %v18503_v59 = vld [vmem:[#allocation14_spill] sm:$0xff] }
 0x5f6   : > { %v8969_v38 = vadd.f32 %v8968_v22, %v8967_v5  ;;  %v8933_v55 = vsel %vm12426_vm6, %v16299_v14, 0.0  ;;  %v8855_v18 = vadd.f32 %v8726_v4, %v8542_v62  ;;  %v16316_v53 = vadd.f32 %v16254_v9, %v8857_v16 }
 0x5f7   : > { %v11122_v3 = vpop.f32.mrf.mxu1  ;;  %v8548_v62 = vadd.f32 %v16171_v50, %v16142_v33  ;;  %v8972_v13 = vsel %vm18502_vm10, %v8933_v55, 0.0  ;;  %vm18504_vm11 = vnez %v18503_v59  ;;  %v16333_v50 = vpop.f32.mrf.mxu0  ;;  %vm18516_vm10 = vmmov %vm18495_vm0 }
 0x5f8   : > { %v8971_v21 = vadd.f32 %v8970_v11, %v8969_v38  ;;  %v16319_v5 = vadd.f32 %v16254_v9, %v8855_v18  ;;  %v8860_v16 = vadd.f32 %v11122_v3, %v8547_v52  ;;  %v8546_v18 = vadd.f32 %v16179_v57, %v16145_v20  ;;  %v18506_v11 = vld [vmem:[#allocation15_spill] sm:$0xff]  ;;  %v18509_v57 = vld [vmem:[#allocation21_spill] sm:$0xff] }
 0x5f9   : > { %v8739_v15 = vpop.f32.mrf.mxu1  ;;  %vm18507_vm5 = vnez %v18506_v11  ;;  %v8976_v52 = vsel %vm18508_vm8, %v8935_v29, 0.0  ;;  %vm18510_vm2 = vnez %v18509_v57  ;;  %v8551_v11 = vadd.f32 %v16187_v24, %v16150_v26  ;;  %v16353_v29 = vpop.f32.mrf.mxu0  ;;  %vm18519_vm8 = vmmov %vm18495_vm0 }
 0x5fa   : > { %v8973_v8 = vadd.f32 %v8972_v13, %v8971_v21  ;;  %v8934_v22 = vsel %vm18504_vm11, %v16319_v5, 0.0  ;;  %v8858_v4 = vadd.f32 %v8739_v15, %v8545_v34  ;;  %v8936_v55 = vsel %vm18507_vm5, %v16316_v53, 0.0 }
 0x5fb   : > { %v8974_v38 = vsel %vm18505_vm4, %v8934_v22, 0.0  ;;  %v11123_v33 = vpop.f32.mrf.mxu1  ;;  %v16343_v20 = vadd.f32 %v16254_v9, %v8860_v16 }
 0x5fc   : > { %v8975_v17 = vadd.f32 %v8974_v38, %v8973_v8  ;;  %v16339_v21 = vadd.f32 %v16254_v9, %v8858_v4  ;;  %v8861_v13 = vadd.f32 %v11123_v33, %v8548_v62  ;;  %v8978_v8 = vsel %vm18511_vm13, %v8936_v55, 0.0  ;;  %v18512_v55 = vld [vmem:[#allocation18_spill] sm:$0xff] }
 0x5fd   : > { %v8742_v3 = vpop.f32.mrf.mxu1  ;;  %v8549_v62 = vadd.f32 %v16195_v7, %v16153_v42  ;;  %vm18513_vm14 = vnez %v18512_v55 }
 0x5fe   : > { %v8977_v34 = vadd.f32 %v8976_v52, %v8975_v17  ;;  %v8937_v15 = vsel %vm18510_vm2, %v16339_v21, 0.0  ;;  %v8859_v22 = vadd.f32 %v8742_v3, %v8546_v18  ;;  %v16356_v16 = vadd.f32 %v16254_v9, %v8861_v13  ;;  %v18514_v52 = vld [vmem:[#allocation17_spill] sm:$0xff] }
 0x5ff   : > { %v11126_v4 = vpop.f32.mrf.mxu1  ;;  %v8552_v18 = vadd.f32 %v16203_v61, %v16158_v10  ;;  %v8980_v26 = vsel %vm18495_vm0, %v8937_v15, 0.0  ;;  %v8939_v42 = vsel %vm18513_vm14, %v16343_v20, 0.0  ;;  %vm18515_vm15 = vnez %v18514_v52  ;;  %v16373_v61 = vpop.f32.mrf.mxu0 }
 0x600   : > { %v8979_v17 = vadd.f32 %v8978_v8, %v8977_v34  ;;  %v16359_v38 = vadd.f32 %v16254_v9, %v8859_v22  ;;  %v8864_v24 = vadd.f32 %v11126_v4, %v8551_v11  ;;  %v8550_v34 = vadd.f32 %v16211_v32, %v16161_v51  ;;  %v18517_v11 = vld [vmem:[#allocation19_spill] sm:$0xff] }
 0x601   : > { %v8755_v33 = vpop.f32.mrf.mxu1  ;;  %vm18518_vm4 = vnez %v18517_v11  ;;  %v8555_v11 = vadd.f32 %v16219_v25, %v16166_v58  ;;  %v18522_v58 = vld [vmem:[#allocation22_spill] sm:$0xff] }
 0x602   : > { %v8981_v7 = vadd.f32 %v8980_v26, %v8979_v17  ;;  %v8938_v13 = vsel %vm18515_vm15, %v16359_v38, 0.0  ;;  %v8862_v3 = vadd.f32 %v8755_v33, %v8549_v62  ;;  %v8940_v15 = vsel %vm18518_vm4, %v16356_v16, 0.0  ;;  %v18520_v33 = vld [vmem:[#allocation20_spill] sm:$0xff] }
 0x603   : > { %v8982_v22 = vsel %vm18516_vm10, %v8938_v13, 0.0  ;;  %v11127_v10 = vpop.f32.mrf.mxu1  ;;  %v8984_v26 = vsel %vm18519_vm8, %v8939_v42, 0.0  ;;  %v16383_v62 = vadd.f32 %v16254_v9, %v8864_v24  ;;  %vm18521_vm13 = vnez %v18520_v33  ;;  %v16393_v42 = vpop.f32.mrf.mxu0  ;;  %vm18524_vm8 = vmmov %vm18495_vm0 }
 0x604   : > { %v8983_v8 = vadd.f32 %v8982_v22, %v8981_v7  ;;  %v16379_v4 = vadd.f32 %v16254_v9, %v8862_v3  ;;  %v8865_v17 = vadd.f32 %v11127_v10, %v8552_v18  ;;  %v8986_v7 = vsel %vm18495_vm0, %v8940_v15, 0.0 }
 0x605   : > { %v8758_v51 = vpop.f32.mrf.mxu1  ;;  %v8553_v18 = vadd.f32 %v16227_v30, %v16169_v0  ;;  %vm18523_vm10 = vnez %v18522_v58  ;;  %v18525_v30 = vld [vmem:[#allocation13_spill] sm:$0xff] }
 0x606   : > { %v8985_v32 = vadd.f32 %v8984_v26, %v8983_v8  ;;  %v8941_v13 = vsel %vm18521_vm13, %v16379_v4, 0.0  ;;  %v8863_v55 = vadd.f32 %v8758_v51, %v8550_v34  ;;  %v16396_v22 = vadd.f32 %v16254_v9, %v8865_v17  ;;  %vm18527_vm13 = vmmov %vm18524_vm8 }
 0x607   : > { %v11130_v3 = vpop.f32.mrf.mxu1  ;;  %v8556_v34 = vadd.f32 %v16235_v56, %v16174_v63  ;;  %v8943_v25 = vsel %vm18523_vm10, %v16383_v62, 0.0  ;;  %v8988_v15 = vsel %vm18524_vm8, %v8941_v13, 0.0  ;;  %vm18526_vm0 = vnez %v18525_v30  ;;  %v16413_v56 = vpop.f32.mrf.mxu0 }
 0x608   : > { %v8987_v24 = vadd.f32 %v8986_v7, %v8985_v32  ;;  %v16399_v10 = vadd.f32 %v16254_v9, %v8863_v55  ;;  %v8868_v17 = vadd.f32 %v11130_v3, %v8555_v11  ;;  %v8554_v55 = vadd.f32 %v16247_v19, %v16177_v46  ;;  %v18528_v7 = vld [vmem:[#allocation23_spill] sm:$0xff]  ;;  %v18530_v19 = vld [vmem:[#allocation24_spill] sm:$0xff] }
 0x609   : > { %v8771_v8 = vpop.f32.mrf.mxu1  ;;  %vm18529_vm10 = vnez %v18528_v7  ;;  %v8992_v11 = vsel %vm18524_vm8, %v8943_v25, 0.0  ;;  %v8559_v7 = vadd.f32 %v16258_v28, %v16182_v1  ;;  %v8506_v25 = vpop.f32.mrf.mxu0 }
 0x60a   : > { %v8989_v0 = vadd.f32 %v8988_v15, %v8987_v24  ;;  %v8942_v26 = vsel %vm18526_vm0, %v16399_v10, 0.0  ;;  %v8866_v51 = vadd.f32 %v8771_v8, %v8553_v18  ;;  %v8944_v13 = vsel %vm18529_vm10, %v16396_v22, 0.0  ;;  %vm18532_vm10 = vmmov %vm18524_vm8 }
 0x60b   : > { %v8990_v32 = vsel %vm18527_vm13, %v8942_v26, 0.0  ;;  %v11131_v63 = vpop.f32.mrf.mxu1  ;;  %v16423_v46 = vadd.f32 %v16254_v9, %v8868_v17  ;;  %vm18531_vm13 = vnez %v18530_v19  ;;  %vm18537_vm0 = vmmov %vm18524_vm8 }
 0x60c   : > { %v8991_v58 = vadd.f32 %v8990_v32, %v8989_v0  ;;  %v16419_v24 = vadd.f32 %v16254_v9, %v8866_v51  ;;  %v8869_v15 = vadd.f32 %v11131_v63, %v8556_v34  ;;  %v8994_v0 = vsel %vm18532_vm10, %v8944_v13, 0.0  ;;  %v18533_v13 = vld [vmem:[#allocation26_spill] sm:$0xff] }
 0x60d   : > { %v8774_v3 = vpop.f32.mrf.mxu1  ;;  %v8557_v34 = vadd.f32 %v16270_v60, %v16185_v45  ;;  %vm18534_vm10 = vnez %v18533_v13  ;;  %v18535_v60 = vld [vmem:[#allocation25_spill] sm:$0xff] }
 0x60e   : > { %v8993_v18 = vadd.f32 %v8992_v11, %v8991_v58  ;;  %v8945_v8 = vsel %vm18531_vm13, %v16419_v24, 0.0  ;;  %v8867_v26 = vadd.f32 %v8774_v3, %v8554_v55  ;;  %v16434_v58 = vadd.f32 %v16254_v9, %v8869_v15 }
 0x60f   : > { %v11134_v51 = vpop.f32.mrf.mxu1  ;;  %v8560_v55 = vadd.f32 %v16293_v12, %v16190_v48  ;;  %v8996_v63 = vsel %vm18524_vm8, %v8945_v8, 0.0  ;;  %v8947_v11 = vsel %vm18534_vm10, %v16423_v46, 0.0  ;;  %vm18536_vm13 = vnez %v18535_v60  ;;  %v11105_v12 = vpop.f32.mrf.mxu0  ;;  %vm18540_vm10 = vmmov %vm18537_vm0 }
 0x610   : > { %v8995_v32 = vadd.f32 %v8994_v0, %v8993_v18  ;;  %v16437_v17 = vadd.f32 %v16254_v9, %v8867_v26  ;;  %v8872_v1 = vadd.f32 %v11134_v51, %v8559_v7  ;;  %v8558_v18 = vadd.f32 %v16313_v23, %v16193_v39  ;;  %v18538_v7 = vld [vmem:[#allocation5_spill] sm:$0xff]  ;;  %v18541_v23 = vld [vmem:[#allocation27_spill] sm:$0xff] }
 0x611   : > { %v8787_v28 = vpop.f32.mrf.mxu1  ;;  %vm18539_vm8 = vnez %v18538_v7  ;;  %v8563_v7 = vadd.f32 %v16333_v50, %v16198_v36 }
 0x612   : > { %v8997_v45 = vadd.f32 %v8996_v63, %v8995_v32  ;;  %v8946_v15 = vsel %vm18536_vm13, %v16437_v17, 0.0  ;;  %v8870_v3 = vadd.f32 %v8787_v28, %v8557_v34  ;;  %v8948_v8 = vsel %vm18539_vm8, %v16434_v58, 0.0  ;;  %vm18543_vm8 = vmmov %vm18540_vm10 }
 0x613   : > { %v8998_v26 = vsel %vm18537_vm0, %v8946_v15, 0.0  ;;  %v11135_v48 = vpop.f32.mrf.mxu1  ;;  %v9000_v63 = vsel %vm18540_vm10, %v8947_v11, 0.0  ;;  %v16459_v34 = vadd.f32 %v16254_v9, %v8872_v1  ;;  %vm18542_vm0 = vnez %v18541_v23  ;;  %v8509_v11 = vpop.f32.mrf.mxu0  ;;  %vm18548_vm13 = vmmov %vm18543_vm8 }
 0x614   : > { %v8999_v0 = vadd.f32 %v8998_v26, %v8997_v45  ;;  %v16455_v51 = vadd.f32 %v16254_v9, %v8870_v3  ;;  %v8873_v32 = vadd.f32 %v11135_v48, %v8560_v55  ;;  %v9002_v45 = vsel %vm18543_vm8, %v8948_v8, 0.0 }
 0x615   : > { %v8790_v28 = vpop.f32.mrf.mxu1  ;;  %v8561_v55 = vadd.f32 %v16353_v29, %v16201_v44  ;;  %v18546_v44 = vld [vmem:[#allocation6_spill] sm:$0xff] }
 0x616   : > { %v9001_v39 = vadd.f32 %v9000_v63, %v8999_v0  ;;  %v8949_v15 = vsel %vm18542_vm0, %v16455_v51, 0.0  ;;  %v8871_v13 = vadd.f32 %v8790_v28, %v8558_v18  ;;  %v16470_v1 = vadd.f32 %v16254_v9, %v8873_v32  ;;  %v18544_v0 = vld [vmem:[#allocation28_spill] sm:$0xff] }
 0x617   : > { %v11138_v3 = vpop.f32.mrf.mxu1  ;;  %v8564_v18 = vadd.f32 %v16373_v61, %v16206_v41  ;;  %vm18545_vm10 = vnez %v18544_v0  ;;  %v9004_v50 = vsel %vm18543_vm8, %v8949_v15, 0.0  ;;  %vm18547_vm0 = vnez %v18546_v44  ;;  %v11108_v61 = vpop.f32.mrf.mxu0 }
 0x618   : > { %v9003_v26 = vadd.f32 %v9002_v45, %v9001_v39  ;;  %v16473_v48 = vadd.f32 %v16254_v9, %v8871_v13  ;;  %v8951_v36 = vsel %vm18545_vm10, %v16459_v34, 0.0  ;;  %v8876_v32 = vadd.f32 %v11138_v3, %v8563_v7  ;;  %v18549_v45 = vld [vmem:[#allocation7_spill] sm:$0xff] }
 0x619   : > { %v8803_v8 = vpop.f32.mrf.mxu1  ;;  %v8562_v13 = vadd.f32 %v16393_v42, %v16209_v54  ;;  %vm18550_vm10 = vnez %v18549_v45  ;;  %v9008_v44 = vsel %vm18543_vm8, %v8951_v36, 0.0  ;;  %v18551_v54 = vld [vmem:[#allocation29_spill] sm:$0xff] }
 0x61a   : > { %v9005_v63 = vadd.f32 %v9004_v50, %v9003_v26  ;;  %v8950_v29 = vsel %vm18547_vm0, %v16473_v48, 0.0  ;;  %v8874_v28 = vadd.f32 %v8803_v8, %v8561_v55  ;;  %v8952_v0 = vsel %vm18550_vm10, %v16470_v1, 0.0  ;;  %vm18553_vm10 = vmmov %vm18543_vm8 }
 0x61b   : > { %v9006_v39 = vsel %vm18548_vm13, %v8950_v29, 0.0  ;;  %v11139_v41 = vpop.f32.mrf.mxu1  ;;  %v16495_v55 = vadd.f32 %v16254_v9, %v8876_v32  ;;  %vm18552_vm13 = vnez %v18551_v54  ;;  %v8567_v29 = vadd.f32 %v16413_v56, %v16214_v47  ;;  %v18554_v47 = vld [vmem:[#allocation31_spill] sm:$0xff]  ;;  %vm18559_vm0 = vmmov %vm18543_vm8 }
 0x61c   : > { %v9007_v15 = vadd.f32 %v9006_v39, %v9005_v63  ;;  %v16491_v26 = vadd.f32 %v16254_v9, %v8874_v28  ;;  %v8877_v50 = vadd.f32 %v11139_v41, %v8564_v18  ;;  %v9010_v63 = vsel %vm18553_vm10, %v8952_v0, 0.0  ;;  %v8522_v39 = vpop.f32.mrf.mxu0 }
 0x61d   : > { %v8806_v7 = vpop.f32.mrf.mxu1  ;;  %v8565_v18 = vadd.f32 %v8506_v25, %v16217_v6  ;;  %v8568_v41 = vadd.f32 %v11105_v12, %v16222_v2  ;;  %vm18555_vm10 = vnez %v18554_v47  ;;  %v18556_v6 = vld [vmem:[#allocation30_spill] sm:$0xff]  ;;  %v18560_v12 = vld [vmem:[#allocation32_spill] sm:$0xff] }
 0x61e   : > { %v9009_v3 = vadd.f32 %v9008_v44, %v9007_v15  ;;  %v8953_v42 = vsel %vm18552_vm13, %v16491_v26, 0.0  ;;  %v8875_v8 = vadd.f32 %v8806_v7, %v8562_v13  ;;  %v16505_v44 = vadd.f32 %v16254_v9, %v8877_v50  ;;  %v11109_v2 = vpop.f32.mrf.mxu0 }
 0x61f   : > { %v11142_v28 = vpop.f32.mrf.mxu1  ;;  %v9012_v13 = vsel %vm18543_vm8, %v8953_v42, 0.0  ;;  %v8955_v56 = vsel %vm18555_vm10, %v16495_v55, 0.0  ;;  %vm18557_vm13 = vnez %v18556_v6  ;;  %vm18561_vm8 = vnez %v18560_v12  ;;  %vm18562_vm10 = vmmov %vm18559_vm0 }
 0x620   : > { %v9011_v36 = vadd.f32 %v9010_v63, %v9009_v3  ;;  %v16508_v32 = vadd.f32 %v16254_v9, %v8875_v8  ;;  %v8880_v15 = vadd.f32 %v11142_v28, %v8567_v29  ;;  %v18558_v3 = vld [vmem:[#allocation44_spill] sm:$0xff]  ;;  %v8956_v42 = vsel %vm18561_vm8, %v16505_v44, 0.0  ;;  %vm18565_vm8 = vmmov %vm18562_vm10 }
 0x621   : > { %v8819_v7 = vpop.f32.mrf.mxu1  ;;  %v8566_v63 = vadd.f32 %v8509_v11, %v18558_v3  ;;  %v8571_v12 = vadd.f32 %v11108_v61, %v16230_v40 }
 0x622   : > { %v9013_v0 = vadd.f32 %v9012_v13, %v9011_v36  ;;  %v8954_v25 = vsel %vm18557_vm13, %v16508_v32, 0.0  ;;  %v8878_v50 = vadd.f32 %v8819_v7, %v8565_v18  ;;  %v9016_v13 = vsel %vm18562_vm10, %v8955_v56, 0.0  ;;  %v18563_v7 = vld [vmem:[#allocation33_spill] sm:$0xff] }
 0x623   : > { %v9014_v8 = vsel %vm18559_vm0, %v8954_v25, 0.0  ;;  %v11143_v54 = vpop.f32.mrf.mxu1  ;;  %v16528_v47 = vadd.f32 %v16254_v9, %v8880_v15  ;;  %vm18564_vm0 = vnez %v18563_v7 }
 0x624   : > { %v9015_v29 = vadd.f32 %v9014_v8, %v9013_v0  ;;  %v16524_v28 = vadd.f32 %v16254_v9, %v8878_v50  ;;  %v8881_v36 = vadd.f32 %v11143_v54, %v8568_v41  ;;  %v9018_v0 = vsel %vm18565_vm8, %v8956_v42, 0.0  ;;  %v18566_v50 = vld [vmem:[#allocation51_spill] sm:$0xff]  ;;  %v8525_v54 = vpop.f32.mrf.mxu0  ;;  %v18570_v42 = vld [vmem:[#allocation34_spill] sm:$0xff] }
 0x625   : > { %v8822_v18 = vpop.f32.mrf.mxu1  ;;  %v8569_v6 = vadd.f32 %v8522_v39, %v18566_v50 }
 0x626   : > { %v9017_v11 = vadd.f32 %v9016_v13, %v9015_v29  ;;  %v8957_v25 = vsel %vm18564_vm0, %v16524_v28, 0.0  ;;  %v8879_v3 = vadd.f32 %v8822_v18, %v8566_v63  ;;  %v8924_v56 = vadd.f32 %v16254_v9, %v8881_v36  ;;  %v18567_v13 = vld [vmem:[#allocation35_spill] sm:$0xff]  ;;  %vm18569_vm0 = vmmov %vm18565_vm8 }
 0x627   : > { %v11146_v8 = vpop.f32.mrf.mxu1  ;;  %v8572_v29 = vadd.f32 %v11109_v2, %v16238_v35  ;;  %vm18568_vm10 = vnez %v18567_v13  ;;  %v9020_v63 = vsel %vm18569_vm0, %v8957_v25, 0.0  ;;  %vm18571_vm8 = vnez %v18570_v42  ;;  %vm18572_vm13 = vmmov %vm18569_vm0 }
 0x628   : > { %v9019_v41 = vadd.f32 %v9018_v0, %v9017_v11  ;;  %v8922_v15 = vadd.f32 %v16254_v9, %v8879_v3  ;;  %v8959_v7 = vsel %vm18568_vm10, %v16528_v47, 0.0  ;;  %v8884_v39 = vadd.f32 %v11146_v8, %v8571_v12  ;;  %v18573_v0 = vld [vmem:[#allocation37_spill] sm:$0xff]  ;;  %v18575_v12 = vld [vmem:[#allocation38_spill] sm:$0xff] }
 0x629   : > { %v8835_v40 = vpop.f32.mrf.mxu1  ;;  %v8570_v11 = vadd.f32 %v8525_v54, %v16241_v49  ;;  %vm18574_vm4 = vnez %v18573_v0  ;;  %v9024_v25 = vsel %vm18569_vm0, %v8959_v7, 0.0  ;;  %vm18576_vm10 = vnez %v18575_v12 }
 0x62a   : > { %v9021_v61 = vadd.f32 %v9020_v63, %v9019_v41  ;;  %v8958_v18 = vsel %vm18571_vm8, %v8922_v15, 0.0  ;;  %v8882_v50 = vadd.f32 %v8835_v40, %v8569_v6  ;;  %v8960_v35 = vsel %vm18574_vm4, %v8924_v56, 0.0  ;;  %vm18577_vm8 = vmmov %vm18569_vm0 }
 0x62b   : > { %v9022_v36 = vsel %vm18572_vm13, %v8958_v18, 0.0  ;;  %v11147_v3 = vpop.f32.mrf.mxu1  ;;  %v8927_v42 = vadd.f32 %v16254_v9, %v8884_v39  ;;  %v9026_v8 = vsel %vm18577_vm8, %v8960_v35, 0.0  ;;  %vm18578_vm13 = vmmov %vm18569_vm0 }
 0x62c   : > { %v9023_v2 = vadd.f32 %v9022_v36, %v9021_v61  ;;  %v8925_v13 = vadd.f32 %v16254_v9, %v8882_v50  ;;  %v8885_v45 = vadd.f32 %v11147_v3, %v8572_v29  ;;  %v18579_v29 = vld [vmem:[#allocation39_spill] sm:$0xff]  ;;  %v18581_v36 = vld [vmem:[#allocation36_spill] sm:$0xff]  ;;  %vm18583_vm14 = vmmov %vm18577_vm8 }
 0x62d   : > { %v8838_v41 = vpop.f32.mrf.mxu1  ;;  %vm18580_vm4 = vnez %v18579_v29  ;;  %vm18582_vm0 = vnez %v18581_v36  ;;  %vm18586_vm15 = vmmov %vm18577_vm8 }
 0x62e   : > { %v9025_v63 = vadd.f32 %v9024_v25, %v9023_v2  ;;  %v8961_v6 = vsel %vm18576_vm10, %v8925_v13, 0.0  ;;  %v8883_v49 = vadd.f32 %v8838_v41, %v8570_v11  ;;  %v8928_v40 = vadd.f32 %v16254_v9, %v8885_v45  ;;  %v18584_v2 = vld [vmem:[#allocation40_spill] sm:$0xff] }
 0x62f   : > { %v9028_v18 = vsel %vm18578_vm13, %v8961_v6, 0.0  ;;  %v8963_v7 = vsel %vm18580_vm4, %v8927_v42, 0.0  ;;  %vm18585_vm10 = vnez %v18584_v2  ;;  %v8887_v2 = vld [vmem:[%s17014_s2 + $0x4] sm:$0x1] }
 0x630   : > { %v9027_v54 = vadd.f32 %v9026_v8, %v9025_v63  ;;  %v8926_v61 = vadd.f32 %v16254_v9, %v8883_v49  ;;  %v8964_v11 = vsel %vm18585_vm10, %v8928_v40, 0.0  ;;  %v9032_v25 = vsel %vm18577_vm8, %v8963_v7, 0.0 }
 0x631   : > { %v9034_v9 = vsel %vm18586_vm15, %v8964_v11, 0.0  ;;  %vm18594_vm15 = vmmov %vm18577_vm8 }
 0x632   : > { %v9029_v50 = vadd.f32 %v9028_v18, %v9027_v54  ;;  %v8962_v39 = vsel %vm18582_vm0, %v8926_v61, 0.0 }
 0x633   : > { %v9030_v3 = vsel %vm18583_vm14, %v8962_v39, 0.0  ;;  %vm18593_vm14 = vmmov %vm18577_vm8 }
 0x634   : > { %v9031_v35 = vadd.f32 %v9030_v3, %v9029_v50 }
 0x636   : > { %v9033_v45 = vadd.f32 %v9032_v25, %v9031_v35 }
 0x638   : > { %v9035_v41 = vadd.f32 %v9034_v9, %v9033_v45 }
 0x63a   : > { %v9036_v63 = vrot.slane %v9035_v41, 4 }
 0x63c   : > { %v9037_v6 = vadd.f32 %v9036_v63, %v9035_v41 }
 0x63e   : > { %v9038_v49 = vrot.slane %v9037_v6, 2 }
 0x640   : > { %v9039_v8 = vadd.f32 %v9038_v49, %v9037_v6 }
 0x642   : > { %v9040_v54 = vrot.slane %v9039_v8, 1 }
 0x644   : > { %v9041_v18 = vadd.f32 %v9040_v54, %v9039_v8 }
 0x646   : > { %v16567_v29 = vmul.f32 0.00390625, %v9041_v18 }
 0x648   : > { %v16571_v39 = vsub.f32 %v16419_v24, %v16567_v29  ;;  %v16575_v50 = vsub.f32 %v16437_v17, %v16567_v29  ;;  %v16579_v7 = vsub.f32 %v16423_v46, %v16567_v29  ;;  %v16583_v3 = vsub.f32 %v16434_v58, %v16567_v29 }
 0x649   : > { %v16587_v11 = vsub.f32 %v16455_v51, %v16567_v29  ;;  %v16591_v24 = vsub.f32 %v16473_v48, %v16567_v29  ;;  %v16595_v17 = vsub.f32 %v16459_v34, %v16567_v29  ;;  %v16599_v46 = vsub.f32 %v16470_v1, %v16567_v29 }
 0x64a   : > { %v16603_v58 = vsub.f32 %v16491_v26, %v16567_v29  ;;  %v16607_v51 = vsub.f32 %v16508_v32, %v16567_v29  ;;  %v16611_v48 = vsub.f32 %v16495_v55, %v16567_v29  ;;  %v16615_v34 = vsub.f32 %v16505_v44, %v16567_v29 }
 0x64b   : > { %v16619_v1 = vsub.f32 %v16524_v28, %v16567_v29  ;;  %v16622_v35 = vsub.f32 %v8922_v15, %v16567_v29  ;;  %v16626_v26 = vsub.f32 %v16528_v47, %v16567_v29  ;;  %v16629_v32 = vsub.f32 %v8924_v56, %v16567_v29  ;;  %v18587_v47 = vld [vmem:[#allocation42_spill] sm:$0xff] }
 0x64c   : > { %v16632_v55 = vsub.f32 %v8925_v13, %v16567_v29  ;;  %v16635_v44 = vsub.f32 %v8926_v61, %v16567_v29  ;;  %v16638_v25 = vsub.f32 %v8927_v42, %v16567_v29  ;;  %v16641_v28 = vsub.f32 %v8928_v40, %v16567_v29  ;;  %v18588_v13 = vld [vmem:[#allocation56_spill] sm:$0xff] }
 0x64d   : > { %v16645_v15 = vsub.f32 %v16261_v43, %v16567_v29  ;;  %v16649_v56 = vsub.f32 %v18587_v47, %v16567_v29  ;;  %v16653_v45 = vsub.f32 %v18588_v13, %v16567_v29  ;;  %v16657_v61 = vsub.f32 %v16276_v31, %v16567_v29 }
 0x64e   : > { %v16665_v43 = vsub.f32 %v16299_v14, %v16567_v29  ;;  %v16671_v41 = vsub.f32 %v16319_v5, %v16567_v29  ;;  %v16681_v14 = vsub.f32 %v16303_v27, %v16567_v29  ;;  %v16709_v63 = vsub.f32 %v16359_v38, %v16567_v29 }
 0x64f   : > { %v9079_v42 = vmul.f32 %v16645_v15, %v16645_v15  ;;  %v9080_v40 = vmul.f32 %v16649_v56, %v16649_v56  ;;  %v9081_v9 = vmul.f32 %v16653_v45, %v16653_v45  ;;  %v9082_v31 = vmul.f32 %v16657_v61, %v16657_v61 }
 0x650   : > { %18589 = vst [vmem:[#allocation49_spill] sm:$0xff] %v16665_v43  ;;  %v9083_v54 = vmul.f32 %v16665_v43, %v16665_v43  ;;  %v16718_v37 = vsub.f32 %v16343_v20, %v16567_v29  ;;  %v16727_v59 = vsub.f32 %v16356_v16, %v16567_v29  ;;  %v16754_v57 = vsub.f32 %v16383_v62, %v16567_v29 }
 0x651   : > { %v9115_v6 = vsel %vm12398_vm12, %v9079_v42, 0.0  ;;  %v9116_v8 = vsel %vm12402_vm9, %v9080_v40, 0.0  ;;  %v9117_v5 = vsel %vm12406_vm3, %v9081_v9, 0.0  ;;  %v16691_v42 = vsub.f32 %v16316_v53, %v16567_v29  ;;  %vm18596_vm12 = vmmov %vm18577_vm8 }
 0x652   : > { %v9151_v47 = vsel %vm18593_vm14, %v9115_v6, 0.0  ;;  %v9152_v13 = vsel %vm18594_vm15, %v9116_v8, 0.0  ;;  %v9084_v40 = vmul.f32 %v16671_v41, %v16671_v41  ;;  %v9118_v27 = vsel %vm12422_vm7, %v9082_v31, 0.0  ;;  %vm18597_vm9 = vmmov %vm18577_vm8 }
 0x653   : > { %v9153_v49 = vadd.f32 %v9152_v13, %v9151_v47  ;;  %v9154_v43 = vsel %vm18596_vm12, %v9117_v5, 0.0  ;;  %v16700_v9 = vsub.f32 %v16339_v21, %v16567_v29  ;;  %v9085_v6 = vmul.f32 %v16681_v14, %v16681_v14  ;;  %vm18598_vm3 = vmmov %vm18577_vm8 }
 0x654   : > { %v9119_v53 = vsel %vm12426_vm6, %v9083_v54, 0.0  ;;  %v9156_v18 = vsel %vm18597_vm9, %v9118_v27, 0.0  ;;  %v9086_v31 = vmul.f32 %v16691_v42, %v16691_v42  ;;  %v9120_v21 = vsel %vm18504_vm11, %v9084_v40, 0.0  ;;  %vm18600_vm7 = vmmov %vm18598_vm3 }
 0x655   : > { %v9155_v8 = vadd.f32 %v9154_v43, %v9153_v49  ;;  %v9158_v47 = vsel %vm18598_vm3, %v9119_v53, 0.0  ;;  %v9087_v43 = vmul.f32 %v16700_v9, %v16700_v9  ;;  %v9121_v38 = vsel %vm18501_vm1, %v9085_v6, 0.0  ;;  %vm18602_vm6 = vmmov %vm18598_vm3 }
 0x656   : > { %v9160_v27 = vsel %vm18600_vm7, %v9120_v21, 0.0  ;;  %v9088_v40 = vmul.f32 %v16709_v63, %v16709_v63  ;;  %v9122_v20 = vsel %vm18507_vm5, %v9086_v31, 0.0  ;;  %v9089_v6 = vmul.f32 %v16718_v37, %v16718_v37  ;;  %vm18603_vm1 = vmmov %vm18598_vm3 }
 0x657   : > { %v9157_v5 = vadd.f32 %v9156_v18, %v9155_v8  ;;  %v9162_v8 = vsel %vm18602_vm6, %v9121_v38, 0.0  ;;  %v16736_v18 = vsub.f32 %v16379_v4, %v16567_v29  ;;  %v9123_v16 = vsel %vm18510_vm2, %v9087_v43, 0.0  ;;  %vm18605_vm5 = vmmov %vm18603_vm1 }
 0x658   : > { %v9090_v31 = vmul.f32 %v16727_v59, %v16727_v59  ;;  %vm18604_vm11 = vnez %v18514_v52  ;;  %v9166_v38 = vsel %vm18605_vm5, %v9123_v16, 0.0  ;;  %vm18608_vm13 = vmmov %vm18603_vm1  ;;  %v16763_v52 = vsub.f32 %v16396_v22, %v16567_v29 }
 0x659   : > { %v9159_v13 = vadd.f32 %v9158_v47, %v9157_v5  ;;  %v9164_v5 = vsel %vm18603_vm1, %v9122_v20, 0.0  ;;  %v16745_v47 = vsub.f32 %v16399_v10, %v16567_v29  ;;  %v9124_v4 = vsel %vm18604_vm11, %v9088_v40, 0.0  ;;  %v18609_v20 = vld [vmem:[#allocation19_spill] sm:$0xff]  ;;  %vm18611_vm14 = vmmov %vm18603_vm1 }
 0x65a   : > { %v9091_v43 = vmul.f32 %v16736_v18, %v16736_v18  ;;  %v9168_v49 = vsel %vm18608_vm13, %v9124_v4, 0.0  ;;  %vm18610_vm8 = vnez %v18609_v20  ;;  %v9093_v16 = vmul.f32 %v16754_v57, %v16754_v57  ;;  %vm18613_vm12 = vmmov %vm18603_vm1 }
 0x65b   : > { %v9161_v53 = vadd.f32 %v9160_v27, %v9159_v13  ;;  %v18606_v13 = vld [vmem:[#allocation18_spill] sm:$0xff]  ;;  %v9092_v40 = vmul.f32 %v16745_v47, %v16745_v47  ;;  %v9126_v62 = vsel %vm18610_vm8, %v9090_v31, 0.0  ;;  %vm18612_vm15 = vnez %v18520_v33  ;;  %vm18615_vm3 = vmmov %vm18603_vm1 }
 0x65c   : > { %vm18607_vm2 = vnez %v18606_v13  ;;  %v9094_v22 = vmul.f32 %v16763_v52, %v16763_v52  ;;  %vm18614_vm9 = vnez %v18525_v30  ;;  %vm18618_vm6 = vmmov %vm18603_vm1  ;;  %v9097_v20 = vmul.f32 %v16579_v7, %v16579_v7 }
 0x65d   : > { %v9163_v21 = vadd.f32 %v9162_v8, %v9161_v53  ;;  %v9125_v10 = vsel %vm18607_vm2, %v9089_v6, 0.0  ;;  %v9127_v6 = vsel %vm18612_vm15, %v9091_v43, 0.0  ;;  %v9128_v29 = vsel %vm18614_vm9, %v9092_v40, 0.0  ;;  %vm18621_vm11 = vmmov %vm18615_vm3 }
 0x65e   : > { %v9170_v8 = vsel %vm18611_vm14, %v9125_v10, 0.0  ;;  %v9174_v31 = vsel %vm18615_vm3, %v9127_v6, 0.0  ;;  %v9176_v43 = vsel %vm18618_vm6, %v9128_v29, 0.0  ;;  %v9096_v10 = vmul.f32 %v16575_v50, %v16575_v50  ;;  %vm18623_vm2 = vmmov %vm18615_vm3  ;;  %v18626_v29 = vld [vmem:[#allocation26_spill] sm:$0xff] }
 0x65f   : > { %v9165_v54 = vadd.f32 %v9164_v5, %v9163_v21  ;;  %v9172_v5 = vsel %vm18613_vm12, %v9126_v62, 0.0  ;;  %vm18622_vm5 = vnez %v18530_v19  ;;  %vm18624_vm13 = vnez %v18535_v60  ;;  %vm18625_vm8 = vmmov %vm18623_vm2 }
 0x660   : > { %v9132_v6 = vsel %vm18624_vm13, %v9096_v10, 0.0  ;;  %vm18627_vm14 = vnez %v18626_v29  ;;  %vm18628_vm15 = vmmov %vm18623_vm2  ;;  %vm18632_vm3 = vnez %v18541_v23 }
 0x661   : > { %v9167_v27 = vadd.f32 %v9166_v38, %v9165_v54  ;;  %v9095_v54 = vmul.f32 %v16571_v39, %v16571_v39  ;;  %v18616_v38 = vld [vmem:[#allocation22_spill] sm:$0xff]  ;;  %vm18631_vm9 = vmmov %vm18623_vm2 }
 0x662   : > { %vm18617_vm7 = vnez %v18616_v38  ;;  %v18629_v38 = vld [vmem:[#allocation5_spill] sm:$0xff] }
 0x663   : > { %v9169_v53 = vadd.f32 %v9168_v49, %v9167_v27  ;;  %v9129_v13 = vsel %vm18617_vm7, %v9093_v16, 0.0  ;;  %v18619_v27 = vld [vmem:[#allocation23_spill] sm:$0xff]  ;;  %v9131_v62 = vsel %vm18622_vm5, %v9095_v54, 0.0  ;;  %v9098_v16 = vmul.f32 %v16583_v3, %v16583_v3  ;;  %vm18633_vm7 = vmmov %vm18623_vm2 }
 0x664   : > { %vm18620_vm1 = vnez %v18619_v27  ;;  %v9178_v40 = vsel %vm18621_vm11, %v9129_v13, 0.0  ;;  %v9100_v54 = vmul.f32 %v16591_v24, %v16591_v24  ;;  %vm18630_vm12 = vnez %v18629_v38 }
 0x665   : > { %v9171_v21 = vadd.f32 %v9170_v8, %v9169_v53  ;;  %v9130_v49 = vsel %vm18620_vm1, %v9094_v22, 0.0  ;;  %v9099_v22 = vmul.f32 %v16587_v11, %v16587_v11  ;;  %v9134_v13 = vsel %vm18630_vm12, %v9098_v16, 0.0  ;;  %vm18636_vm1 = vmmov %vm18623_vm2  ;;  %v18637_v16 = vld [vmem:[#allocation28_spill] sm:$0xff] }
 0x666   : > { %v9180_v8 = vsel %vm18623_vm2, %v9130_v49, 0.0  ;;  %v9188_v49 = vsel %vm18633_vm7, %v9134_v13, 0.0  ;;  %vm18638_vm11 = vnez %v18637_v16  ;;  %vm18639_vm5 = vmmov %vm18636_vm1  ;;  %v18652_v16 = vld [vmem:[#allocation32_spill] sm:$0xff] }
 0x667   : > { %v9173_v4 = vadd.f32 %v9172_v5, %v9171_v21  ;;  %v9182_v5 = vsel %vm18625_vm8, %v9131_v62, 0.0  ;;  %v9135_v10 = vsel %vm18632_vm3, %v9099_v22, 0.0  ;;  %v18640_v22 = vld [vmem:[#allocation7_spill] sm:$0xff]  ;;  %vm18642_vm13 = vmmov %vm18636_vm1  ;;  %vm18653_vm7 = vnez %v18652_v16 }
 0x668   : > { %vm18641_vm2 = vnez %v18640_v22  ;;  %vm18648_vm12 = vmmov %vm18636_vm1  ;;  %v18655_v22 = vld [vmem:[#allocation33_spill] sm:$0xff] }
 0x669   : > { %v9175_v33 = vadd.f32 %v9174_v31, %v9173_v4  ;;  %v9133_v4 = vsel %vm18627_vm14, %v9097_v20, 0.0  ;;  %v9184_v31 = vsel %vm18628_vm15, %v9132_v6, 0.0  ;;  %vm18645_vm14 = vmmov %vm18636_vm1 }
 0x66a   : > { %vm18651_vm3 = vmmov %vm18636_vm1 }
 0x66b   : > { %v9177_v30 = vadd.f32 %v9176_v43, %v9175_v33  ;;  %v9186_v33 = vsel %vm18631_vm9, %v9133_v4, 0.0  ;;  %v9101_v43 = vmul.f32 %v16595_v17, %v16595_v17 }
 0x66d   : > { %v9179_v53 = vadd.f32 %v9178_v40, %v9177_v30  ;;  %v9102_v30 = vmul.f32 %v16599_v46, %v16599_v46  ;;  %v18634_v40 = vld [vmem:[#allocation6_spill] sm:$0xff]  ;;  %v9137_v6 = vsel %vm18638_vm11, %v9101_v43, 0.0  ;;  %vm18657_vm11 = vmmov %vm18651_vm3 }
 0x66e   : > { %vm18635_vm6 = vnez %v18634_v40  ;;  %v18646_v43 = vld [vmem:[#allocation30_spill] sm:$0xff]  ;;  %v18649_v40 = vld [vmem:[#allocation31_spill] sm:$0xff] }
 0x66f   : > { %v9181_v21 = vadd.f32 %v9180_v8, %v9179_v53  ;;  %v9136_v20 = vsel %vm18635_vm6, %v9100_v54, 0.0  ;;  %v9190_v53 = vsel %vm18636_vm1, %v9135_v10, 0.0  ;;  %v9103_v8 = vmul.f32 %v16603_v58, %v16603_v58  ;;  %v18643_v54 = vld [vmem:[#allocation29_spill] sm:$0xff]  ;;  %vm18654_vm6 = vmmov %vm18636_vm1 }
 0x670   : > { %v9138_v29 = vsel %vm18641_vm2, %v9102_v30, 0.0  ;;  %vm18644_vm8 = vnez %v18643_v54  ;;  %vm18647_vm15 = vnez %v18646_v43  ;;  %v9107_v30 = vmul.f32 %v16619_v1, %v16619_v1  ;;  %v18658_v54 = vld [vmem:[#allocation34_spill] sm:$0xff]  ;;  %vm18660_vm2 = vmmov %vm18651_vm3  ;;  %v18661_v43 = vld [vmem:[#allocation35_spill] sm:$0xff] }
 0x671   : > { %v9183_v19 = vadd.f32 %v9182_v5, %v9181_v21  ;;  %v9192_v21 = vsel %vm18639_vm5, %v9136_v20, 0.0  ;;  %v9104_v5 = vmul.f32 %v16607_v51, %v16607_v51  ;;  %v9139_v38 = vsel %vm18644_vm8, %v9103_v8, 0.0  ;;  %vm18663_vm8 = vmmov %vm18660_vm2 }
 0x672   : > { %vm18650_vm9 = vnez %v18649_v40  ;;  %v9108_v8 = vmul.f32 %v16622_v35, %v16622_v35  ;;  %vm18656_vm1 = vnez %v18655_v22  ;;  %vm18659_vm5 = vnez %v18658_v54 }
 0x673   : > { %v9185_v60 = vadd.f32 %v9184_v31, %v9183_v19  ;;  %v9194_v19 = vsel %vm18642_vm13, %v9137_v6, 0.0  ;;  %v9105_v31 = vmul.f32 %v16611_v48, %v16611_v48  ;;  %v9140_v10 = vsel %vm18647_vm15, %v9104_v5, 0.0  ;;  %vm18665_vm15 = vmmov %vm18660_vm2 }
 0x674   : > { %v9109_v5 = vmul.f32 %v16626_v26, %v16626_v26  ;;  %vm18662_vm13 = vnez %v18661_v43 }
 0x675   : > { %v9187_v27 = vadd.f32 %v9186_v33, %v9185_v60  ;;  %v9196_v60 = vsel %vm18645_vm14, %v9138_v29, 0.0  ;;  %v9106_v33 = vmul.f32 %v16615_v34, %v16615_v34  ;;  %v9141_v20 = vsel %vm18650_vm9, %v9105_v31, 0.0  ;;  %vm18667_vm9 = vmmov %vm18660_vm2 }
 0x676   : > { %v9143_v29 = vsel %vm18656_vm1, %v9107_v30, 0.0  ;;  %v9110_v31 = vmul.f32 %v16629_v32, %v16629_v32  ;;  %v9112_v30 = vmul.f32 %v16635_v44, %v16635_v44  ;;  %vm18664_vm14 = vnez %v18573_v0  ;;  %vm18672_vm1 = vmmov %vm18660_vm2 }
 0x677   : > { %v9189_v62 = vadd.f32 %v9188_v49, %v9187_v27  ;;  %v9198_v49 = vsel %vm18648_vm12, %v9139_v38, 0.0  ;;  %v9142_v6 = vsel %vm18653_vm7, %v9106_v33, 0.0  ;;  %v9144_v38 = vsel %vm18659_vm5, %v9108_v8, 0.0  ;;  %vm18670_vm7 = vmmov %vm18660_vm2 }
 0x678   : > { %v9111_v33 = vmul.f32 %v16632_v55, %v16632_v55  ;;  %v9146_v40 = vsel %vm18664_vm14, %v9110_v31, 0.0  ;;  %vm18666_vm12 = vnez %v18575_v12 }
 0x679   : > { %v9191_v23 = vadd.f32 %v9190_v53, %v9189_v62  ;;  %v9200_v53 = vsel %vm18651_vm3, %v9140_v10, 0.0  ;;  %v9145_v10 = vsel %vm18662_vm13, %v9109_v5, 0.0  ;;  %vm18668_vm3 = vmmov %vm18660_vm2 }
 0x67a   : > { %v9147_v8 = vsel %vm18666_vm12, %v9111_v33, 0.0 }
 0x67b   : > { %v9193_v4 = vadd.f32 %v9192_v21, %v9191_v23  ;;  %v9202_v21 = vsel %vm18654_vm6, %v9141_v20, 0.0  ;;  %v9214_v5 = vsel %vm18668_vm3, %v9147_v8, 0.0  ;;  %vm18671_vm6 = vmmov %vm18660_vm2 }
 0x67d   : > { %v9195_v13 = vadd.f32 %v9194_v19, %v9193_v4  ;;  %v9204_v19 = vsel %vm18657_vm11, %v9142_v6, 0.0  ;;  %v9212_v6 = vsel %vm18667_vm9, %v9146_v40, 0.0 }
 0x67f   : > { %v9197_v27 = vadd.f32 %v9196_v60, %v9195_v13  ;;  %v9206_v60 = vsel %vm18660_vm2, %v9143_v29, 0.0 }
 0x681   : > { %v9199_v62 = vadd.f32 %v9198_v49, %v9197_v27  ;;  %v9208_v49 = vsel %vm18663_vm8, %v9144_v38, 0.0 }
 0x683   : > { %v9201_v23 = vadd.f32 %v9200_v53, %v9199_v62  ;;  %v9210_v62 = vsel %vm18665_vm15, %v9145_v10, 0.0  ;;  %v9113_v53 = vmul.f32 %v16638_v25, %v16638_v25 }
 0x685   : > { %v9203_v4 = vadd.f32 %v9202_v21, %v9201_v23  ;;  %v9114_v23 = vmul.f32 %v16641_v28, %v16641_v28  ;;  %v9148_v21 = vsel %vm18582_vm0, %v9112_v30, 0.0  ;;  %v9149_v29 = vsel %vm18580_vm4, %v9113_v53, 0.0  ;;  %v18673_v53 = vld [vmem:[#allocation4_spill] sm:$0xff]  ;;  %vm18676_vm4 = vmmov %vm18672_vm1 }
 0x686   : > { %v9218_v54 = vsel %vm18671_vm6, %v9149_v29, 0.0  ;;  %v18674_v8 = vsub.s32 0, %v18673_v53  ;;  %vm18678_vm0 = vmmov %vm18672_vm1 }
 0x687   : > { %v9205_v13 = vadd.f32 %v9204_v19, %v9203_v4  ;;  %v9216_v19 = vsel %vm18670_vm7, %v9148_v21, 0.0  ;;  %v9150_v12 = vsel %vm18585_vm10, %v9114_v23, 0.0  ;;  %vm18677_vm10 = vmmov %vm18672_vm1 }
 0x688   : > { %vm18679_vm11 = vmmov %vm18678_vm0 }
 0x689   : > { %v9207_v27 = vadd.f32 %v9206_v60, %v9205_v13  ;;  %v9220_v13 = vsel %vm18672_vm1, %v9150_v12, 0.0  ;;  %vm18680_vm5 = vmmov %vm18678_vm0 }
 0x68a   : > { %vm18681_vm2 = vmmov %vm18678_vm0 }
 0x68b   : > { %v9209_v20 = vadd.f32 %v9208_v49, %v9207_v27  ;;  %vm18682_vm13 = vmmov %vm18678_vm0 }
 0x68c   : > { %vm18683_vm8 = vmmov %vm18678_vm0 }
 0x68d   : > { %v9211_v16 = vadd.f32 %v9210_v62, %v9209_v20  ;;  %vm18684_vm14 = vmmov %vm18678_vm0 }
 0x68e   : > { %vm18685_vm15 = vmmov %vm18678_vm0 }
 0x68f   : > { %v9213_v0 = vadd.f32 %v9212_v6, %v9211_v16  ;;  %vm18686_vm12 = vmmov %vm18678_vm0 }
 0x690   : > { %vm18687_vm9 = vmmov %vm18678_vm0 }
 0x691   : > { %v9215_v4 = vadd.f32 %v9214_v5, %v9213_v0  ;;  %v18675_v5 = vld [vmem:[#allocation49_spill] sm:$0xff]  ;;  %vm18688_vm3 = vmmov %vm18678_vm0 }
 0x692   : > { %vm18689_vm7 = vmmov %vm18678_vm0 }
 0x693   : > { %v9217_v31 = vadd.f32 %v9216_v19, %v9215_v4  ;;  %vm18690_vm6 = vmmov %vm18678_vm0 }
 0x694   : > { %vm18691_vm1 = vmmov %vm18678_vm0 }
 0x695   : > { %v9219_v38 = vadd.f32 %v9218_v54, %v9217_v31 }
 0x697   : > { %v9221_v36 = vadd.f32 %v9220_v13, %v9219_v38 }
 0x699   : > { %v9222_v60 = vrot.slane %v9221_v36, 4 }
 0x69b   : > { %v9223_v33 = vadd.f32 %v9222_v60, %v9221_v36 }
 0x69d   : > { %v9224_v43 = vrot.slane %v9223_v33, 2 }
 0x69f   : > { %v9225_v10 = vadd.f32 %v9224_v43, %v9223_v33 }
 0x6a1   : > { %v9226_v27 = vrot.slane %v9225_v10, 1 }
 0x6a3   : > { %v9227_v49 = vadd.f32 %v9226_v27, %v9225_v10 }
 0x6a5   : > { %v9228_v30 = vmul.f32 0.00390625, %v9227_v49 }
 0x6a7   : > { %v9229_v40 = vadd.f32 1e-05, %v9228_v30 }
 0x6a9   : > { %11391 = vrsqrt.f32 %v9229_v40 }
 0x6b6   : > { %v11392_v20 = vpop.eup %11391 }
 0x6b7   : > { %v9231_v62 = vmul.f32 %v11392_v20, %v8887_v2 }
 0x6b9   : > { %v9235_v16 = vrot.slane %v9231_v62, %v18674_v8 }
 0x6bb   : > { %v9236_v6 = vmul.f32 %v9235_v16, %v16645_v15  ;;  %v9237_v23 = vmul.f32 %v9235_v16, %v16649_v56  ;;  %v9238_v21 = vmul.f32 %v9235_v16, %v16653_v45  ;;  %v9239_v0 = vmul.f32 %v9235_v16, %v16657_v61 }
 0x6bc   : > { %v9240_v22 = vmul.f32 %v9235_v16, %v18675_v5  ;;  %v9241_v29 = vmul.f32 %v9235_v16, %v16671_v41  ;;  %v9242_v4 = vmul.f32 %v9235_v16, %v16681_v14  ;;  %v9243_v19 = vmul.f32 %v9235_v16, %v16691_v42 }
 0x6bd   : > { %v9244_v12 = vmul.f32 %v9235_v16, %v16700_v9  ;;  %v9245_v31 = vmul.f32 %v9235_v16, %v16709_v63  ;;  %v9246_v15 = vmul.f32 %v9235_v16, %v16718_v37  ;;  %v9247_v56 = vmul.f32 %v9235_v16, %v16727_v59 }
 0x6be   : > { %v9248_v45 = vmul.f32 %v9235_v16, %v16736_v18  ;;  %v9249_v61 = vmul.f32 %v9235_v16, %v16745_v47  ;;  %v9250_v54 = vmul.f32 %v9235_v16, %v16754_v57  ;;  %v9251_v41 = vmul.f32 %v9235_v16, %v16763_v52  ;;  %v16919_v57 = vld [vmem:[%s17014_s2 + $0x5] ss:$0 sm:$0xff] }
 0x6bf   : > { %v9252_v14 = vmul.f32 %v9235_v16, %v16571_v39  ;;  %v9253_v42 = vmul.f32 %v9235_v16, %v16575_v50  ;;  %v9254_v9 = vmul.f32 %v9235_v16, %v16579_v7  ;;  %v9255_v63 = vmul.f32 %v9235_v16, %v16583_v3 }
 0x6c0   : > { %v9256_v37 = vmul.f32 %v9235_v16, %v16587_v11  ;;  %v9257_v59 = vmul.f32 %v9235_v16, %v16591_v24  ;;  %v9258_v18 = vmul.f32 %v9235_v16, %v16595_v17  ;;  %v9259_v47 = vmul.f32 %v9235_v16, %v16599_v46 }
 0x6c1   : > { %v9260_v39 = vmul.f32 %v9235_v16, %v16603_v58  ;;  %v9261_v50 = vmul.f32 %v9235_v16, %v16607_v51  ;;  %v9262_v7 = vmul.f32 %v9235_v16, %v16611_v48  ;;  %v9263_v3 = vmul.f32 %v9235_v16, %v16615_v34 }
 0x6c2   : > { %v9264_v11 = vmul.f32 %v9235_v16, %v16619_v1  ;;  %v9265_v24 = vmul.f32 %v9235_v16, %v16622_v35  ;;  %v9266_v17 = vmul.f32 %v9235_v16, %v16626_v26  ;;  %v9267_v46 = vmul.f32 %v9235_v16, %v16629_v32 }
 0x6c3   : > { %v9268_v52 = vmul.f32 %v9235_v16, %v16632_v55  ;;  %v9269_v38 = vmul.f32 %v9235_v16, %v16635_v44  ;;  %v9270_v58 = vmul.f32 %v9235_v16, %v16638_v25  ;;  %v9271_v51 = vmul.f32 %v9235_v16, %v16641_v28 }
 0x6c4   : > { %v9276_v48 = vadd.f32 %v16919_v57, %v9236_v6  ;;  %v9277_v34 = vadd.f32 %v16919_v57, %v9237_v23  ;;  %v9278_v1 = vadd.f32 %v16919_v57, %v9238_v21  ;;  %v9279_v35 = vadd.f32 %v16919_v57, %v9239_v0 }
 0x6c5   : > { %v9280_v26 = vadd.f32 %v16919_v57, %v9240_v22  ;;  %v9281_v32 = vadd.f32 %v16919_v57, %v9241_v29  ;;  %v9282_v55 = vadd.f32 %v16919_v57, %v9242_v4  ;;  %v9283_v44 = vadd.f32 %v16919_v57, %v9243_v19 }
 0x6c6   : > { %v9284_v25 = vadd.f32 %v16919_v57, %v9244_v12  ;;  %v9285_v28 = vadd.f32 %v16919_v57, %v9245_v31  ;;  %v9286_v13 = vadd.f32 %v16919_v57, %v9246_v15  ;;  %v9287_v36 = vadd.f32 %v16919_v57, %v9247_v56  ;;  %9312 = vst.msk [vmem:[#allocation2] sm:$0xff] %vm18676_vm4, %v9276_v48  ;;  %vm18692_vm4 = vmmov %vm18678_vm0 }
 0x6c7   : > { %9313 = vst.msk [vmem:[#allocation2 + $0x8] sm:$0xff] %vm18677_vm10, %v9277_v34  ;;  %v9288_v60 = vadd.f32 %v16919_v57, %v9248_v45  ;;  %v9289_v33 = vadd.f32 %v16919_v57, %v9249_v61  ;;  %v9290_v43 = vadd.f32 %v16919_v57, %v9250_v54  ;;  %v9291_v10 = vadd.f32 %v16919_v57, %v9251_v41  ;;  %vm18693_vm10 = vmmov %vm18678_vm0 }
 0x6c8   : > { %9314 = vst.msk [vmem:[#allocation2 + $0x10] sm:$0xff] %vm18678_vm0, %v9278_v1  ;;  %v9292_v27 = vadd.f32 %v16919_v57, %v9252_v14  ;;  %v9293_v49 = vadd.f32 %v16919_v57, %v9253_v42  ;;  %v9294_v30 = vadd.f32 %v16919_v57, %v9254_v9  ;;  %v9295_v40 = vadd.f32 %v16919_v57, %v9255_v63 }
 0x6c9   : > { %9315 = vst.msk [vmem:[#allocation2 + $0x18] sm:$0xff] %vm18679_vm11, %v9279_v35  ;;  %v9296_v2 = vadd.f32 %v16919_v57, %v9256_v37  ;;  %v9297_v20 = vadd.f32 %v16919_v57, %v9257_v59  ;;  %v9298_v62 = vadd.f32 %v16919_v57, %v9258_v18  ;;  %v9299_v53 = vadd.f32 %v16919_v57, %v9259_v47  ;;  %vm18694_vm11 = vmmov %vm18678_vm0 }
 0x6ca   : > { %9316 = vst.msk [vmem:[#allocation2 + $0x20] sm:$0xff] %vm18680_vm5, %v9280_v26  ;;  %v9300_v8 = vadd.f32 %v16919_v57, %v9260_v39  ;;  %v9301_v16 = vadd.f32 %v16919_v57, %v9261_v50  ;;  %v9302_v6 = vadd.f32 %v16919_v57, %v9262_v7  ;;  %v9303_v23 = vadd.f32 %v16919_v57, %v9263_v3  ;;  %vm18695_vm5 = vmmov %vm18678_vm0 }
 0x6cb   : > { %9317 = vst.msk [vmem:[#allocation2 + $0x28] sm:$0xff] %vm18681_vm2, %v9281_v32  ;;  %v9304_v21 = vadd.f32 %v16919_v57, %v9264_v11  ;;  %v9305_v0 = vadd.f32 %v16919_v57, %v9265_v24  ;;  %v9306_v5 = vadd.f32 %v16919_v57, %v9266_v17  ;;  %v9307_v22 = vadd.f32 %v16919_v57, %v9267_v46  ;;  %vm18696_vm2 = vmmov %vm18678_vm0 }
 0x6cc   : > { %9318 = vst.msk [vmem:[#allocation2 + $0x30] sm:$0xff] %vm18682_vm13, %v9282_v55  ;;  %vm18697_vm13 = vmmov %vm18678_vm0  ;;  %v9308_v29 = vadd.f32 %v16919_v57, %v9268_v52  ;;  %v9309_v4 = vadd.f32 %v16919_v57, %v9269_v38  ;;  %v9310_v19 = vadd.f32 %v16919_v57, %v9270_v58  ;;  %v9311_v12 = vadd.f32 %v16919_v57, %v9271_v51 }
 0x6cd   : > { %9319 = vst.msk [vmem:[#allocation2 + $0x38] sm:$0xff] %vm18683_vm8, %v9283_v44  ;;  %vm18698_vm8 = vmmov %vm18678_vm0 }
 0x6ce   : > { %9320 = vst.msk [vmem:[#allocation2 + $0x40] sm:$0xff] %vm18684_vm14, %v9284_v25  ;;  %vm18699_vm14 = vmmov %vm18678_vm0 }
 0x6cf   : > { %9321 = vst.msk [vmem:[#allocation2 + $0x48] sm:$0xff] %vm18685_vm15, %v9285_v28  ;;  %vm18700_vm15 = vmmov %vm18678_vm0 }
 0x6d0   : > { %9322 = vst.msk [vmem:[#allocation2 + $0x50] sm:$0xff] %vm18686_vm12, %v9286_v13  ;;  %vm18701_vm12 = vmmov %vm18678_vm0 }
 0x6d1   : > { %9323 = vst.msk [vmem:[#allocation2 + $0x58] sm:$0xff] %vm18687_vm9, %v9287_v36  ;;  %vm18702_vm9 = vmmov %vm18678_vm0 }
 0x6d2   : > { %9324 = vst.msk [vmem:[#allocation2 + $0x60] sm:$0xff] %vm18688_vm3, %v9288_v60  ;;  %vm18703_vm3 = vmmov %vm18678_vm0 }
 0x6d3   : > { %9325 = vst.msk [vmem:[#allocation2 + $0x68] sm:$0xff] %vm18689_vm7, %v9289_v33  ;;  %vm18704_vm7 = vmmov %vm18678_vm0 }
 0x6d4   : > { %9326 = vst.msk [vmem:[#allocation2 + $0x70] sm:$0xff] %vm18690_vm6, %v9290_v43  ;;  %vm18705_vm6 = vmmov %vm18678_vm0 }
 0x6d5   : > { %9327 = vst.msk [vmem:[#allocation2 + $0x78] sm:$0xff] %vm18691_vm1, %v9291_v10  ;;  %vm18706_vm1 = vmmov %vm18678_vm0 }
 0x6d6   : > { %9328 = vst.msk [vmem:[#allocation2 + $0x80] sm:$0xff] %vm18692_vm4, %v9292_v27  ;;  %vm18707_vm4 = vmmov %vm18678_vm0 }
 0x6d7   : > { %9329 = vst.msk [vmem:[#allocation2 + $0x88] sm:$0xff] %vm18693_vm10, %v9293_v49  ;;  %vm18708_vm10 = vmmov %vm18678_vm0 }
 0x6d8   : > { %9330 = vst.msk [vmem:[#allocation2 + $0x90] sm:$0xff] %vm18678_vm0, %v9294_v30  ;;  %9346 = vst.msk [vmem:[#allocation2 + $0x110] sm:$0xff] %vm18678_vm0, %v9310_v19 }
 0x6d9   : > { %9331 = vst.msk [vmem:[#allocation2 + $0x98] sm:$0xff] %vm18694_vm11, %v9295_v40  ;;  %vm18709_vm11 = vmmov %vm18678_vm0 }
 0x6da   : > { %9332 = vst.msk [vmem:[#allocation2 + $0xa0] sm:$0xff] %vm18695_vm5, %v9296_v2 }
 0x6db   : > { %9333 = vst.msk [vmem:[#allocation2 + $0xa8] sm:$0xff] %vm18696_vm2, %v9297_v20 }
 0x6dc   : > { %9334 = vst.msk [vmem:[#allocation2 + $0xb0] sm:$0xff] %vm18697_vm13, %v9298_v62 }
 0x6dd   : > { %9335 = vst.msk [vmem:[#allocation2 + $0xb8] sm:$0xff] %vm18698_vm8, %v9299_v53 }
 0x6de   : > { %9336 = vst.msk [vmem:[#allocation2 + $0xc0] sm:$0xff] %vm18699_vm14, %v9300_v8 }
 0x6df   : > { %9337 = vst.msk [vmem:[#allocation2 + $0xc8] sm:$0xff] %vm18700_vm15, %v9301_v16 }
 0x6e0   : > { %9338 = vst.msk [vmem:[#allocation2 + $0xd0] sm:$0xff] %vm18701_vm12, %v9302_v6 }
 0x6e1   : > { %9339 = vst.msk [vmem:[#allocation2 + $0xd8] sm:$0xff] %vm18702_vm9, %v9303_v23 }
 0x6e2   : > { %9340 = vst.msk [vmem:[#allocation2 + $0xe0] sm:$0xff] %vm18703_vm3, %v9304_v21 }
 0x6e3   : > { %9341 = vst.msk [vmem:[#allocation2 + $0xe8] sm:$0xff] %vm18704_vm7, %v9305_v0 }
 0x6e4   : > { %9342 = vst.msk [vmem:[#allocation2 + $0xf0] sm:$0xff] %vm18705_vm6, %v9306_v5 }
 0x6e5   : > { %9343 = vst.msk [vmem:[#allocation2 + $0xf8] sm:$0xff] %vm18706_vm1, %v9307_v22 }
 0x6e6   : > { %9344 = vst.msk [vmem:[#allocation2 + $0x100] sm:$0xff] %vm18707_vm4, %v9308_v29 }
 0x6e7   : > { %9345 = vst.msk [vmem:[#allocation2 + $0x108] sm:$0xff] %vm18708_vm10, %v9309_v4 }
 0x6e8   : > { %9347 = vst.msk [vmem:[#allocation2 + $0x118] sm:$0xff] %vm18709_vm11, %v9311_v12 }
 0x6e9 LB: >> { %s9354_s4 = smul.u32 18, %s11423_s30  ;;  %s10035_s5 = sshll.u32 %s11423_s30, 4  ;;  %vm18710_vm5 = vcmask 31744   ;;  %s11423_s30 = sphi %s11421_s30, %s9353_s30  }
 0x6ea   : >> { %s9359_s6 = scalar_lea.vmem %s11508_s18, %s10035_s5  ;;  %s9364_s8 = scalar_lea.vmem %s11513_s21, %s10035_s5  ;;  %vm18711_vm2 = vmmov %vm18710_vm5 }
 0x6eb   : >> { %v9360_v31 = vld [vmem:[%s9359_s6] sm:$0xff]  ;;  %v9361_v15 = vld [vmem:[%s9359_s6 + $0x8] sm:$0xff]  ;;  %s9355_s7 = scalar_lea.vmem [#allocation2], %s9354_s4  ;;  %s9353_s30 = sadd.s32 1, %s11423_s30  }
 0x6ec   : >> { %p9350_p6 = scmp.ge.s32.totalorder %s9353_s30, 16  }
 0x6ef   : >> { %v9356_v56 = vld [vmem:[%s9355_s7] sm:$0xff]  ;;  %v9357_v45 = vld [vmem:[%s9355_s7 + $0x8] sm:$0xff]  ;;  %9352 = sbr.rel (!%p9350_p6) target bundleno = 1769 (0x6e9), region = 133 }
 0x6f0   : >> { %v9362_v61 = vadd.f32 %v9360_v31, %v9356_v56  ;;  %v9363_v54 = vadd.f32 %v9361_v15, %v9357_v45 }
 0x6f2   : >> { %9365 = vst.msk [vmem:[%s9364_s8] sm:$0xff] %vm18710_vm5, %v9362_v61 }
 0x6f3   : >> { %9366 = vst.msk [vmem:[%s9364_s8 + $0x8] sm:$0xff] %vm18711_vm2, %v9363_v54 }
 0x6f4 PF: > { %s13_s12 = sadd.s32 1, %s11411_s12  }
 0x6f5   : > { %p10_p7 = scmp.ge.s32.totalorder %s13_s12, 4  }
 0x6f7   :  { %12 = sbr.rel (!%p10_p7) target bundleno = 1 (0x1), region = 144 }

</bundles_post_ra>
